<compile_context>
chip_gen: v7x
topology: tpu7x:2x2x1
jax: 0.10.0
libtpu: 0.0.40
codegen_flags: <defaults>
</compile_context>

<pallas_src>
import functools

import jax
import jax.numpy as jnp
from jax import lax
from jax.experimental import pallas as pl
from jax.experimental.pallas import tpu as pltpu


# ----------------------------------------------------------------------------
# Pallas kernel: one batch element per grid step.
# ----------------------------------------------------------------------------
def _pt_last_kernel(x_ref, xyzt_ref, w1_ref, wpos_ref, bpos_ref,
                    wkv_ref, bkv_ref, wt_ref, bt_ref, out_ref,
                    *, C, tq, n_row_tiles):
    # x_ref   : (1, C, N) f32      xyzt_ref : (1, 3, N) f32
    # w1_ref  : (C, C) bf16 (BN1 folded)
    # wpos_ref: (C, 3) f32         bpos_ref : (C, 1) f32
    # wkv_ref : (4, C//4 + C, C) bf16   bkv_ref : (4, C//4 + C, 1) f32
    # wt_ref  : (4, C, C) bf16 (after_norm folded)   bt_ref : (4, C, 1) f32
    # out_ref : (1, 4*C, N) f32
    x = x_ref[0]                                         # (C, N)
    xyzt = xyzt_ref[0]                                   # (3, N)
    C4 = C // 4

    # positional encoding: Conv1d(3 -> C) with bias (tiny K=3 matmul, f32)
    pos = jnp.dot(wpos_ref[...], xyzt,
                  preferred_element_type=jnp.float32) + bpos_ref[...]

    # x = relu(bn1(conv1(x))) -- BN folded; bf16 operands, f32 accumulation
    h = jnp.maximum(
        jnp.dot(w1_ref[...], x.astype(jnp.bfloat16),
                preferred_element_type=jnp.float32), 0.0)

    for l in range(4):                                   # 4 SA layers, unrolled
        xin = h + pos                                    # (C, N) f32
        xin_b = xin.astype(jnp.bfloat16)

        # fused q/k (shared weights) + v projection: one MXU matmul per layer
        kv = jnp.dot(wkv_ref[l], xin_b,
                     preferred_element_type=jnp.float32) + bkv_ref[l]
        k_b = kv[:C4].astype(jnp.bfloat16)               # (C//4, N)
        v_b = kv[C4:].astype(jnp.bfloat16)               # (C, N)

        # attention, tiled along the query axis; the softmax (key) axis stays
        # fully resident so every row softmax is exact.
        x_r = None
        colsum = None
        for ti in range(n_row_tiles):
            lo, hi = ti * tq, (ti + 1) * tq
            # energy = k[:, lo:hi]^T @ k  (transposed-LHS form, no jnp transpose)
            e = lax.dot_general(k_b[:, lo:hi], k_b,
                                (((0,), (0,)), ((), ())),
                                preferred_element_type=jnp.float32)   # (tq, N)
            # softmax over keys, f32 element-wise math, EUP reciprocal
            e = e - jnp.max(e, axis=-1, keepdims=True)
            p = jnp.exp(e)
            attn = p * pl.reciprocal(jnp.sum(p, axis=-1, keepdims=True),
                                     approx=True)
            cs = jnp.sum(attn, axis=0, keepdims=True)                 # (1, N)
            xr = jnp.dot(v_b[:, lo:hi], attn.astype(jnp.bfloat16),
                         preferred_element_type=jnp.float32)          # (C, N)
            if x_r is None:
                x_r, colsum = xr, cs
            else:
                x_r, colsum = x_r + xr, colsum + cs

        # torch: attention / (1e-9 + attention.sum(dim=1, keepdim=True)),
        # folded onto the (C, N) result instead of the (N, N) matrix.
        x_r = x_r * pl.reciprocal(1e-9 + colsum, approx=True)

        t = jnp.dot(wt_ref[l], (xin - x_r).astype(jnp.bfloat16),
                    preferred_element_type=jnp.float32) + bt_ref[l]
        h = xin + jnp.maximum(t, 0.0)                    # relu(after_norm(...))

        out_ref[0, l * C:(l + 1) * C, :] = h             # cat along channels


def _row_tile(n):
    """Largest query-row tile that divides n while keeping the (tq, n) f32
    energy tile around <= 4 MiB."""
    for cand in (512, 256, 128):
        if n > cand and n % cand == 0 and cand * n * 4 <= (4 << 20):
            return cand
    return n


# ----------------------------------------------------------------------------
# Wrapper: BlockSpecs, grid over batch (parallel -> megacore sharding).
# ----------------------------------------------------------------------------
@jax.jit
def point_transformer_last_forward(x, xyz, w1f, wpos, bpos, wkv, bkv,
                                   wtf, btf):
    B, C, N = x.shape
    xyzt = jnp.transpose(xyz, (0, 2, 1))                 # (B, 3, N) glue transpose

    tq = _row_tile(N)
    n_row_tiles = N // tq

    # vmem limit: 85% of physical capacity (headroom on v7x, full use of
    # v5e/v6e's 128 MiB); falls back to a safe 54 MiB if the query fails.
    vmem_cap = 64 * 1024 * 1024
    try:
        vmem_cap = pltpu.get_tpu_info().vmem_capacity_bytes
    except Exception:
        pass
    vmem_limit = int(vmem_cap * 0.85)

    # Weights / biases: whole-array, single-buffered VMEM residents (constant
    # index across the grid -> no point double-buffering them).
    wspec = pl.BlockSpec(memory_space=pltpu.MemorySpace.VMEM)

    grid_spec = pltpu.PrefetchScalarGridSpec(
        num_scalar_prefetch=0,
        grid=(B,),
        in_specs=[
            pl.BlockSpec((1, C, N), lambda b: (b, 0, 0)),        # x
            pl.BlockSpec((1, 3, N), lambda b: (b, 0, 0)),        # xyz (transposed)
            wspec,                                               # conv1 (BN folded, bf16)
            wspec,                                               # pos_xyz W
            wspec,                                               # pos_xyz b
            wspec,                                               # fused [q/k ; v] W (bf16)
            wspec,                                               # fused [0 ; v] bias
            wspec,                                               # trans conv W (BN folded, bf16)
            wspec,                                               # trans conv b (BN folded)
        ],
        out_specs=pl.BlockSpec((1, 4 * C, N), lambda b: (b, 0, 0)),
    )

    kernel = functools.partial(_pt_last_kernel, C=C, tq=tq,
                               n_row_tiles=n_row_tiles)

    return pl.pallas_call(
        kernel,
        out_shape=jax.ShapeDtypeStruct((B, 4 * C, N), jnp.float32),
        grid_spec=grid_spec,
        compiler_params=pltpu.CompilerParams(
            dimension_semantics=("parallel",),
            vmem_limit_bytes=vmem_limit),
    )(x, xyzt, w1f, wpos, bpos, wkv, bkv, wtf, btf)


# ----------------------------------------------------------------------------
# Pure-JAX reference (mirrors the PyTorch forward) for a sanity check.
# ----------------------------------------------------------------------------
def reference_forward(x, xyz, w1, wpos, bpos, wq, wv, bv, wt, bt, eps=1e-5):
    s = 1.0 / jnp.sqrt(1.0 + eps)                        # eval-mode BN scale
    xyz_t = jnp.transpose(xyz, (0, 2, 1))                # (B, 3, N)
    pos = jnp.einsum("cd,bdn->bcn", wpos, xyz_t) + bpos[None]
    h = jnp.maximum(s * jnp.einsum("oc,bcn->bon", w1, x), 0.0)
    outs = []
    for l in range(4):
        xin = h + pos
        k = jnp.einsum("qc,bcn->bqn", wq[l], xin)        # (B, C/4, N)
        q = jnp.transpose(k, (0, 2, 1))                  # (B, N, C/4)
        v = jnp.einsum("oc,bcn->bon", wv[l], xin) + bv[l][None]
        energy = jnp.einsum("bic,bcj->bij", q, k)        # (B, N, N)
        attn = jax.nn.softmax(energy, axis=-1)
        attn = attn / (1e-9 + jnp.sum(attn, axis=1, keepdims=True))
        x_r = jnp.einsum("bci,bij->bcj", v, attn)
        t = jnp.einsum("oc,bcn->bon", wt[l], xin - x_r) + bt[l][None]
        h = xin + jnp.maximum(s * t, 0.0)
        outs.append(h)
    return jnp.concatenate(outs, axis=1)


# ----------------------------------------------------------------------------
# Main
# ----------------------------------------------------------------------------
if __name__ == "__main__":
    # Small shapes consistent with the module: channels=256 (module default),
    # N kept a multiple of 128 for lane-dense stores.
    B, C, N = 2, 256, 128

    key = jax.random.PRNGKey(0)
    keys = jax.random.split(key, 10)

    x = jax.random.normal(keys[0], (B, C, N), jnp.float32)
    xyz = jax.random.normal(keys[1], (B, N, 3), jnp.float32)

    # Conv1d(kernel_size=1) parameters -> plain matrices / column biases.
    w1 = 0.05 * jax.random.normal(keys[2], (C, C), jnp.float32)        # conv1 (no bias)
    wpos = 0.05 * jax.random.normal(keys[3], (C, 3), jnp.float32)      # pos_xyz W
    bpos = 0.05 * jax.random.normal(keys[4], (C, 1), jnp.float32)      # pos_xyz b

    # Per-SA-layer weights stacked along a leading axis of size 4.
    wq = 0.05 * jax.random.normal(keys[5], (4, C // 4, C), jnp.float32)  # shared q/k
    wv = 0.05 * jax.random.normal(keys[6], (4, C, C), jnp.float32)
    bv = 0.05 * jax.random.normal(keys[7], (4, C, 1), jnp.float32)
    wt = 0.05 * jax.random.normal(keys[8], (4, C, C), jnp.float32)       # trans_conv
    bt = 0.05 * jax.random.normal(keys[9], (4, C, 1), jnp.float32)

    # Fold eval-mode BatchNorm1d (running mean=0, var=1, gamma=1, beta=0,
    # eps=1e-5) into the preceding conv weights; cast matmul weights to bf16
    # (MXU operands), keep biases f32 (added on the VPU).
    s = 1.0 / jnp.sqrt(1.0 + 1e-5)
    w1_k = (w1 * s).astype(jnp.bfloat16)                 # bn1 folded into conv1
    wt_k = (wt * s).astype(jnp.bfloat16)                 # after_norm folded
    bt_k = bt * s

    # Fuse the (shared) q/k projection with the v projection into one matmul.
    wkv = jnp.concatenate([wq, wv], axis=1).astype(jnp.bfloat16)   # (4, C//4+C, C)
    bkv = jnp.concatenate(
        [jnp.zeros((4, C // 4, 1), jnp.float32), bv], axis=1)       # k_conv has no bias

    out = point_transformer_last_forward(x, xyz, w1_k, wpos, bpos,
                                          wkv, bkv, wt_k, bt_k)
    out = jax.block_until_ready(out)

    ref = reference_forward(x, xyz, w1, wpos, bpos, wq, wv, bv, wt, bt)
    assert out.shape == (B, 4 * C, N), out.shape
    # bf16 MXU operands + approx EUP reciprocals -> relaxed tolerance vs the
    # f32 reference (per review: expect ~1e-2 relative error).
    max_err = float(jnp.max(jnp.abs(out - ref)))
    assert jnp.allclose(out, ref, rtol=5e-2, atol=1e-1), max_err

    print("KERNEL_OK")
</pallas_src>

<mosaic_0001>
module attributes {stable_mosaic.version = 11 : i64} {
  func.func @_pt_last_kernel(%arg0: i32, %arg1: memref<1x256x128xf32, #tpu.memory_space<vmem>>, %arg2: memref<1x3x128xf32, #tpu.memory_space<vmem>>, %arg3: memref<256x256xbf16, #tpu.memory_space<vmem>>, %arg4: memref<256x3xf32, #tpu.memory_space<vmem>>, %arg5: memref<256x1xf32, #tpu.memory_space<vmem>>, %arg6: memref<4x320x256xbf16, #tpu.memory_space<vmem>>, %arg7: memref<4x320x1xf32, #tpu.memory_space<vmem>>, %arg8: memref<4x256x256xbf16, #tpu.memory_space<vmem>>, %arg9: memref<4x256x1xf32, #tpu.memory_space<vmem>>, %arg10: memref<1x1024x128xf32, #tpu.memory_space<vmem>>) attributes {dimension_semantics = [#tpu.dimension_semantics<parallel>], iteration_bounds = array<i64: 2>, scalar_prefetch = 0 : i64, scratch_operands = 0 : i64, tpu.core_type = #tpu.core_type<tc>, window_params = [{transform_indices = @transform_0, window_bounds = array<i64: 1, 256, 128>}, {transform_indices = @transform_1, window_bounds = array<i64: 1, 3, 128>}, {pipeline_mode = #tpu.pipeline_mode<synchronous>, transform_indices = @transform_2, window_bounds = array<i64: 256, 256>}, {pipeline_mode = #tpu.pipeline_mode<synchronous>, transform_indices = @transform_3, window_bounds = array<i64: 256, 3>}, {pipeline_mode = #tpu.pipeline_mode<synchronous>, transform_indices = @transform_4, window_bounds = array<i64: 256, 1>}, {pipeline_mode = #tpu.pipeline_mode<synchronous>, transform_indices = @transform_5, window_bounds = array<i64: 4, 320, 256>}, {pipeline_mode = #tpu.pipeline_mode<synchronous>, transform_indices = @transform_6, window_bounds = array<i64: 4, 320, 1>}, {pipeline_mode = #tpu.pipeline_mode<synchronous>, transform_indices = @transform_7, window_bounds = array<i64: 4, 256, 256>}, {pipeline_mode = #tpu.pipeline_mode<synchronous>, transform_indices = @transform_8, window_bounds = array<i64: 4, 256, 1>}, {transform_indices = @transform_9, window_bounds = array<i64: 1, 1024, 128>}]} {
    %c0 = arith.constant 0 : index
    %c0_0 = arith.constant 0 : index
    %c0_1 = arith.constant 0 : index
    %0 = vector.load %arg1[%c0, %c0_0, %c0_1] : memref<1x256x128xf32, #tpu.memory_space<vmem>>, vector<1x256x128xf32>
    %1 = vector.shape_cast %0 : vector<1x256x128xf32> to vector<256x128xf32>
    %c0_2 = arith.constant 0 : index
    %c0_3 = arith.constant 0 : index
    %c0_4 = arith.constant 0 : index
    %2 = vector.load %arg2[%c0_2, %c0_3, %c0_4] : memref<1x3x128xf32, #tpu.memory_space<vmem>>, vector<1x3x128xf32>
    %3 = vector.shape_cast %2 : vector<1x3x128xf32> to vector<3x128xf32>
    %c0_5 = arith.constant 0 : index
    %c0_6 = arith.constant 0 : index
    %4 = vector.load %arg4[%c0_5, %c0_6] : memref<256x3xf32, #tpu.memory_space<vmem>>, vector<256x3xf32>
    %cst = arith.constant dense<0.000000e+00> : vector<256x128xf32>
    %5 = tpu.matmul %4, %3, %cst {dimension_numbers = #tpu.dot_dimension_numbers<[1], [0], [0], [1], [0, 0, 1, 1], [], []>} : vector<256x3xf32>, vector<3x128xf32>, vector<256x128xf32> -> vector<256x128xf32>
    %c0_7 = arith.constant 0 : index
    %c0_8 = arith.constant 0 : index
    %6 = vector.load %arg5[%c0_7, %c0_8] : memref<256x1xf32, #tpu.memory_space<vmem>>, vector<256x1xf32>
    %7 = vector.broadcast %6 : vector<256x1xf32> to vector<256x128xf32>
    %8 = arith.addf %5, %7 : vector<256x128xf32>
    %c0_9 = arith.constant 0 : index
    %c0_10 = arith.constant 0 : index
    %9 = vector.load %arg3[%c0_9, %c0_10] : memref<256x256xbf16, #tpu.memory_space<vmem>>, vector<256x256xbf16>
    %10 = arith.truncf %1 : vector<256x128xf32> to vector<256x128xbf16>
    %cst_11 = arith.constant dense<0.000000e+00> : vector<256x128xf32>
    %11 = tpu.matmul %9, %10, %cst_11 {dimension_numbers = #tpu.dot_dimension_numbers<[1], [0], [0], [1], [0, 0, 1, 1], [], []>} : vector<256x256xbf16>, vector<256x128xbf16>, vector<256x128xf32> -> vector<256x128xf32>
    %cst_12 = arith.constant 0.000000e+00 : f32
    %12 = vector.broadcast %cst_12 : f32 to vector<256x128xf32>
    %13 = arith.maximumf %11, %12 : vector<256x128xf32>
    %14 = arith.addf %13, %8 : vector<256x128xf32>
    %15 = arith.truncf %14 : vector<256x128xf32> to vector<256x128xbf16>
    %c0_13 = arith.constant 0 : index
    %c0_14 = arith.constant 0 : index
    %c0_15 = arith.constant 0 : index
    %16 = vector.load %arg6[%c0_13, %c0_14, %c0_15] : memref<4x320x256xbf16, #tpu.memory_space<vmem>>, vector<1x320x256xbf16>
    %17 = vector.shape_cast %16 : vector<1x320x256xbf16> to vector<320x256xbf16>
    %cst_16 = arith.constant dense<0.000000e+00> : vector<320x128xf32>
    %18 = tpu.matmul %17, %15, %cst_16 {dimension_numbers = #tpu.dot_dimension_numbers<[1], [0], [0], [1], [0, 0, 1, 1], [], []>} : vector<320x256xbf16>, vector<256x128xbf16>, vector<320x128xf32> -> vector<320x128xf32>
    %c0_17 = arith.constant 0 : index
    %c0_18 = arith.constant 0 : index
    %c0_19 = arith.constant 0 : index
    %19 = vector.load %arg7[%c0_17, %c0_18, %c0_19] : memref<4x320x1xf32, #tpu.memory_space<vmem>>, vector<1x320x1xf32>
    %20 = vector.shape_cast %19 : vector<1x320x1xf32> to vector<320x1xf32>
    %21 = vector.broadcast %20 : vector<320x1xf32> to vector<320x128xf32>
    %22 = arith.addf %18, %21 : vector<320x128xf32>
    %23 = vector.extract_strided_slice %22 {offsets = [0, 0], sizes = [64, 128], strides = [1, 1]} : vector<320x128xf32> to vector<64x128xf32>
    %24 = arith.truncf %23 : vector<64x128xf32> to vector<64x128xbf16>
    %25 = vector.extract_strided_slice %22 {offsets = [64, 0], sizes = [256, 128], strides = [1, 1]} : vector<320x128xf32> to vector<256x128xf32>
    %26 = arith.truncf %25 : vector<256x128xf32> to vector<256x128xbf16>
    %cst_20 = arith.constant dense<0.000000e+00> : vector<128x128xf32>
    %27 = tpu.matmul %24, %24, %cst_20 {dimension_numbers = #tpu.dot_dimension_numbers<[0], [0], [1], [1], [0, 1, 1, 1], [], []>} : vector<64x128xbf16>, vector<64x128xbf16>, vector<128x128xf32> -> vector<128x128xf32>
    %cst_21 = arith.constant dense<0xFF800000> : vector<128xf32>
    %28 = vector.multi_reduction <maximumf>, %27, %cst_21 [1] : vector<128x128xf32> to vector<128xf32>
    %29 = vector.shape_cast %28 : vector<128xf32> to vector<128x1xf32>
    %30 = vector.broadcast %29 : vector<128x1xf32> to vector<128x128xf32>
    %31 = arith.subf %27, %30 : vector<128x128xf32>
    %32 = math.exp %31 : vector<128x128xf32>
    %cst_22 = arith.constant dense<0.000000e+00> : vector<128xf32>
    %33 = vector.multi_reduction <add>, %32, %cst_22 [1] : vector<128x128xf32> to vector<128xf32>
    %34 = vector.shape_cast %33 : vector<128xf32> to vector<128x1xf32>
    %35 = tpu.reciprocal %34 {approx = true} : vector<128x1xf32> -> vector<128x1xf32>
    %36 = vector.broadcast %35 : vector<128x1xf32> to vector<128x128xf32>
    %37 = arith.mulf %32, %36 : vector<128x128xf32>
    %cst_23 = arith.constant dense<0.000000e+00> : vector<128xf32>
    %38 = vector.multi_reduction <add>, %37, %cst_23 [0] : vector<128x128xf32> to vector<128xf32>
    %39 = vector.shape_cast %38 : vector<128xf32> to vector<1x128xf32>
    %40 = arith.truncf %37 : vector<128x128xf32> to vector<128x128xbf16>
    %cst_24 = arith.constant dense<0.000000e+00> : vector<256x128xf32>
    %41 = tpu.matmul %26, %40, %cst_24 {dimension_numbers = #tpu.dot_dimension_numbers<[1], [0], [0], [1], [0, 0, 1, 1], [], []>} : vector<256x128xbf16>, vector<128x128xbf16>, vector<256x128xf32> -> vector<256x128xf32>
    %cst_25 = arith.constant 9.99999971E-10 : f32
    %42 = vector.broadcast %cst_25 : f32 to vector<1x128xf32>
    %43 = arith.addf %42, %39 : vector<1x128xf32>
    %44 = tpu.reciprocal %43 {approx = true} : vector<1x128xf32> -> vector<1x128xf32>
    %45 = vector.broadcast %44 : vector<1x128xf32> to vector<256x128xf32>
    %46 = arith.mulf %41, %45 : vector<256x128xf32>
    %c0_26 = arith.constant 0 : index
    %c0_27 = arith.constant 0 : index
    %c0_28 = arith.constant 0 : index
    %47 = vector.load %arg8[%c0_26, %c0_27, %c0_28] : memref<4x256x256xbf16, #tpu.memory_space<vmem>>, vector<1x256x256xbf16>
    %48 = vector.shape_cast %47 : vector<1x256x256xbf16> to vector<256x256xbf16>
    %49 = arith.subf %14, %46 : vector<256x128xf32>
    %50 = arith.truncf %49 : vector<256x128xf32> to vector<256x128xbf16>
    %cst_29 = arith.constant dense<0.000000e+00> : vector<256x128xf32>
    %51 = tpu.matmul %48, %50, %cst_29 {dimension_numbers = #tpu.dot_dimension_numbers<[1], [0], [0], [1], [0, 0, 1, 1], [], []>} : vector<256x256xbf16>, vector<256x128xbf16>, vector<256x128xf32> -> vector<256x128xf32>
    %c0_30 = arith.constant 0 : index
    %c0_31 = arith.constant 0 : index
    %c0_32 = arith.constant 0 : index
    %52 = vector.load %arg9[%c0_30, %c0_31, %c0_32] : memref<4x256x1xf32, #tpu.memory_space<vmem>>, vector<1x256x1xf32>
    %53 = vector.shape_cast %52 : vector<1x256x1xf32> to vector<256x1xf32>
    %54 = vector.broadcast %53 : vector<256x1xf32> to vector<256x128xf32>
    %55 = arith.addf %51, %54 : vector<256x128xf32>
    %cst_33 = arith.constant 0.000000e+00 : f32
    %56 = vector.broadcast %cst_33 : f32 to vector<256x128xf32>
    %57 = arith.maximumf %55, %56 : vector<256x128xf32>
    %58 = arith.addf %14, %57 : vector<256x128xf32>
    %c0_34 = arith.constant 0 : index
    %c0_35 = arith.constant 0 : index
    %c0_36 = arith.constant 0 : index
    %59 = vector.load %arg10[%c0_34, %c0_35, %c0_36] : memref<1x1024x128xf32, #tpu.memory_space<vmem>>, vector<1x256x128xf32>
    %60 = vector.shape_cast %59 : vector<1x256x128xf32> to vector<256x128xf32>
    %61 = vector.shape_cast %58 : vector<256x128xf32> to vector<1x256x128xf32>
    tpu.vector_store %arg10[%c0_34, %c0_35, %c0_36], %61 {strides = array<i32>} : memref<1x1024x128xf32, #tpu.memory_space<vmem>>, vector<1x256x128xf32>,
    %62 = arith.addf %58, %8 : vector<256x128xf32>
    %63 = arith.truncf %62 : vector<256x128xf32> to vector<256x128xbf16>
    %c1 = arith.constant 1 : index
    %c0_37 = arith.constant 0 : index
    %c0_38 = arith.constant 0 : index
    %64 = vector.load %arg6[%c1, %c0_37, %c0_38] : memref<4x320x256xbf16, #tpu.memory_space<vmem>>, vector<1x320x256xbf16>
    %65 = vector.shape_cast %64 : vector<1x320x256xbf16> to vector<320x256xbf16>
    %cst_39 = arith.constant dense<0.000000e+00> : vector<320x128xf32>
    %66 = tpu.matmul %65, %63, %cst_39 {dimension_numbers = #tpu.dot_dimension_numbers<[1], [0], [0], [1], [0, 0, 1, 1], [], []>} : vector<320x256xbf16>, vector<256x128xbf16>, vector<320x128xf32> -> vector<320x128xf32>
    %c1_40 = arith.constant 1 : index
    %c0_41 = arith.constant 0 : index
    %c0_42 = arith.constant 0 : index
    %67 = vector.load %arg7[%c1_40, %c0_41, %c0_42] : memref<4x320x1xf32, #tpu.memory_space<vmem>>, vector<1x320x1xf32>
    %68 = vector.shape_cast %67 : vector<1x320x1xf32> to vector<320x1xf32>
    %69 = vector.broadcast %68 : vector<320x1xf32> to vector<320x128xf32>
    %70 = arith.addf %66, %69 : vector<320x128xf32>
    %71 = vector.extract_strided_slice %70 {offsets = [0, 0], sizes = [64, 128], strides = [1, 1]} : vector<320x128xf32> to vector<64x128xf32>
    %72 = arith.truncf %71 : vector<64x128xf32> to vector<64x128xbf16>
    %73 = vector.extract_strided_slice %70 {offsets = [64, 0], sizes = [256, 128], strides = [1, 1]} : vector<320x128xf32> to vector<256x128xf32>
    %74 = arith.truncf %73 : vector<256x128xf32> to vector<256x128xbf16>
    %cst_43 = arith.constant dense<0.000000e+00> : vector<128x128xf32>
    %75 = tpu.matmul %72, %72, %cst_43 {dimension_numbers = #tpu.dot_dimension_numbers<[0], [0], [1], [1], [0, 1, 1, 1], [], []>} : vector<64x128xbf16>, vector<64x128xbf16>, vector<128x128xf32> -> vector<128x128xf32>
    %cst_44 = arith.constant dense<0xFF800000> : vector<128xf32>
    %76 = vector.multi_reduction <maximumf>, %75, %cst_44 [1] : vector<128x128xf32> to vector<128xf32>
    %77 = vector.shape_cast %76 : vector<128xf32> to vector<128x1xf32>
    %78 = vector.broadcast %77 : vector<128x1xf32> to vector<128x128xf32>
    %79 = arith.subf %75, %78 : vector<128x128xf32>
    %80 = math.exp %79 : vector<128x128xf32>
    %cst_45 = arith.constant dense<0.000000e+00> : vector<128xf32>
    %81 = vector.multi_reduction <add>, %80, %cst_45 [1] : vector<128x128xf32> to vector<128xf32>
    %82 = vector.shape_cast %81 : vector<128xf32> to vector<128x1xf32>
    %83 = tpu.reciprocal %82 {approx = true} : vector<128x1xf32> -> vector<128x1xf32>
    %84 = vector.broadcast %83 : vector<128x1xf32> to vector<128x128xf32>
    %85 = arith.mulf %80, %84 : vector<128x128xf32>
    %cst_46 = arith.constant dense<0.000000e+00> : vector<128xf32>
    %86 = vector.multi_reduction <add>, %85, %cst_46 [0] : vector<128x128xf32> to vector<128xf32>
    %87 = vector.shape_cast %86 : vector<128xf32> to vector<1x128xf32>
    %88 = arith.truncf %85 : vector<128x128xf32> to vector<128x128xbf16>
    %cst_47 = arith.constant dense<0.000000e+00> : vector<256x128xf32>
    %89 = tpu.matmul %74, %88, %cst_47 {dimension_numbers = #tpu.dot_dimension_numbers<[1], [0], [0], [1], [0, 0, 1, 1], [], []>} : vector<256x128xbf16>, vector<128x128xbf16>, vector<256x128xf32> -> vector<256x128xf32>
    %cst_48 = arith.constant 9.99999971E-10 : f32
    %90 = vector.broadcast %cst_48 : f32 to vector<1x128xf32>
    %91 = arith.addf %90, %87 : vector<1x128xf32>
    %92 = tpu.reciprocal %91 {approx = true} : vector<1x128xf32> -> vector<1x128xf32>
    %93 = vector.broadcast %92 : vector<1x128xf32> to vector<256x128xf32>
    %94 = arith.mulf %89, %93 : vector<256x128xf32>
    %c1_49 = arith.constant 1 : index
    %c0_50 = arith.constant 0 : index
    %c0_51 = arith.constant 0 : index
    %95 = vector.load %arg8[%c1_49, %c0_50, %c0_51] : memref<4x256x256xbf16, #tpu.memory_space<vmem>>, vector<1x256x256xbf16>
    %96 = vector.shape_cast %95 : vector<1x256x256xbf16> to vector<256x256xbf16>
    %97 = arith.subf %62, %94 : vector<256x128xf32>
    %98 = arith.truncf %97 : vector<256x128xf32> to vector<256x128xbf16>
    %cst_52 = arith.constant dense<0.000000e+00> : vector<256x128xf32>
    %99 = tpu.matmul %96, %98, %cst_52 {dimension_numbers = #tpu.dot_dimension_numbers<[1], [0], [0], [1], [0, 0, 1, 1], [], []>} : vector<256x256xbf16>, vector<256x128xbf16>, vector<256x128xf32> -> vector<256x128xf32>
    %c1_53 = arith.constant 1 : index
    %c0_54 = arith.constant 0 : index
    %c0_55 = arith.constant 0 : index
    %100 = vector.load %arg9[%c1_53, %c0_54, %c0_55] : memref<4x256x1xf32, #tpu.memory_space<vmem>>, vector<1x256x1xf32>
    %101 = vector.shape_cast %100 : vector<1x256x1xf32> to vector<256x1xf32>
    %102 = vector.broadcast %101 : vector<256x1xf32> to vector<256x128xf32>
    %103 = arith.addf %99, %102 : vector<256x128xf32>
    %cst_56 = arith.constant 0.000000e+00 : f32
    %104 = vector.broadcast %cst_56 : f32 to vector<256x128xf32>
    %105 = arith.maximumf %103, %104 : vector<256x128xf32>
    %106 = arith.addf %62, %105 : vector<256x128xf32>
    %c0_57 = arith.constant 0 : index
    %c256 = arith.constant 256 : index
    %c0_58 = arith.constant 0 : index
    %107 = vector.load %arg10[%c0_57, %c256, %c0_58] : memref<1x1024x128xf32, #tpu.memory_space<vmem>>, vector<1x256x128xf32>
    %108 = vector.shape_cast %107 : vector<1x256x128xf32> to vector<256x128xf32>
    %109 = vector.shape_cast %106 : vector<256x128xf32> to vector<1x256x128xf32>
    tpu.vector_store %arg10[%c0_57, %c256, %c0_58], %109 {strides = array<i32>} : memref<1x1024x128xf32, #tpu.memory_space<vmem>>, vector<1x256x128xf32>,
    %110 = arith.addf %106, %8 : vector<256x128xf32>
    %111 = arith.truncf %110 : vector<256x128xf32> to vector<256x128xbf16>
    %c2 = arith.constant 2 : index
    %c0_59 = arith.constant 0 : index
    %c0_60 = arith.constant 0 : index
    %112 = vector.load %arg6[%c2, %c0_59, %c0_60] : memref<4x320x256xbf16, #tpu.memory_space<vmem>>, vector<1x320x256xbf16>
    %113 = vector.shape_cast %112 : vector<1x320x256xbf16> to vector<320x256xbf16>
    %cst_61 = arith.constant dense<0.000000e+00> : vector<320x128xf32>
    %114 = tpu.matmul %113, %111, %cst_61 {dimension_numbers = #tpu.dot_dimension_numbers<[1], [0], [0], [1], [0, 0, 1, 1], [], []>} : vector<320x256xbf16>, vector<256x128xbf16>, vector<320x128xf32> -> vector<320x128xf32>
    %c2_62 = arith.constant 2 : index
    %c0_63 = arith.constant 0 : index
    %c0_64 = arith.constant 0 : index
    %115 = vector.load %arg7[%c2_62, %c0_63, %c0_64] : memref<4x320x1xf32, #tpu.memory_space<vmem>>, vector<1x320x1xf32>
    %116 = vector.shape_cast %115 : vector<1x320x1xf32> to vector<320x1xf32>
    %117 = vector.broadcast %116 : vector<320x1xf32> to vector<320x128xf32>
    %118 = arith.addf %114, %117 : vector<320x128xf32>
    %119 = vector.extract_strided_slice %118 {offsets = [0, 0], sizes = [64, 128], strides = [1, 1]} : vector<320x128xf32> to vector<64x128xf32>
    %120 = arith.truncf %119 : vector<64x128xf32> to vector<64x128xbf16>
    %121 = vector.extract_strided_slice %118 {offsets = [64, 0], sizes = [256, 128], strides = [1, 1]} : vector<320x128xf32> to vector<256x128xf32>
    %122 = arith.truncf %121 : vector<256x128xf32> to vector<256x128xbf16>
    %cst_65 = arith.constant dense<0.000000e+00> : vector<128x128xf32>
    %123 = tpu.matmul %120, %120, %cst_65 {dimension_numbers = #tpu.dot_dimension_numbers<[0], [0], [1], [1], [0, 1, 1, 1], [], []>} : vector<64x128xbf16>, vector<64x128xbf16>, vector<128x128xf32> -> vector<128x128xf32>
    %cst_66 = arith.constant dense<0xFF800000> : vector<128xf32>
    %124 = vector.multi_reduction <maximumf>, %123, %cst_66 [1] : vector<128x128xf32> to vector<128xf32>
    %125 = vector.shape_cast %124 : vector<128xf32> to vector<128x1xf32>
    %126 = vector.broadcast %125 : vector<128x1xf32> to vector<128x128xf32>
    %127 = arith.subf %123, %126 : vector<128x128xf32>
    %128 = math.exp %127 : vector<128x128xf32>
    %cst_67 = arith.constant dense<0.000000e+00> : vector<128xf32>
    %129 = vector.multi_reduction <add>, %128, %cst_67 [1] : vector<128x128xf32> to vector<128xf32>
    %130 = vector.shape_cast %129 : vector<128xf32> to vector<128x1xf32>
    %131 = tpu.reciprocal %130 {approx = true} : vector<128x1xf32> -> vector<128x1xf32>
    %132 = vector.broadcast %131 : vector<128x1xf32> to vector<128x128xf32>
    %133 = arith.mulf %128, %132 : vector<128x128xf32>
    %cst_68 = arith.constant dense<0.000000e+00> : vector<128xf32>
    %134 = vector.multi_reduction <add>, %133, %cst_68 [0] : vector<128x128xf32> to vector<128xf32>
    %135 = vector.shape_cast %134 : vector<128xf32> to vector<1x128xf32>
    %136 = arith.truncf %133 : vector<128x128xf32> to vector<128x128xbf16>
    %cst_69 = arith.constant dense<0.000000e+00> : vector<256x128xf32>
    %137 = tpu.matmul %122, %136, %cst_69 {dimension_numbers = #tpu.dot_dimension_numbers<[1], [0], [0], [1], [0, 0, 1, 1], [], []>} : vector<256x128xbf16>, vector<128x128xbf16>, vector<256x128xf32> -> vector<256x128xf32>
    %cst_70 = arith.constant 9.99999971E-10 : f32
    %138 = vector.broadcast %cst_70 : f32 to vector<1x128xf32>
    %139 = arith.addf %138, %135 : vector<1x128xf32>
    %140 = tpu.reciprocal %139 {approx = true} : vector<1x128xf32> -> vector<1x128xf32>
    %141 = vector.broadcast %140 : vector<1x128xf32> to vector<256x128xf32>
    %142 = arith.mulf %137, %141 : vector<256x128xf32>
    %c2_71 = arith.constant 2 : index
    %c0_72 = arith.constant 0 : index
    %c0_73 = arith.constant 0 : index
    %143 = vector.load %arg8[%c2_71, %c0_72, %c0_73] : memref<4x256x256xbf16, #tpu.memory_space<vmem>>, vector<1x256x256xbf16>
    %144 = vector.shape_cast %143 : vector<1x256x256xbf16> to vector<256x256xbf16>
    %145 = arith.subf %110, %142 : vector<256x128xf32>
    %146 = arith.truncf %145 : vector<256x128xf32> to vector<256x128xbf16>
    %cst_74 = arith.constant dense<0.000000e+00> : vector<256x128xf32>
    %147 = tpu.matmul %144, %146, %cst_74 {dimension_numbers = #tpu.dot_dimension_numbers<[1], [0], [0], [1], [0, 0, 1, 1], [], []>} : vector<256x256xbf16>, vector<256x128xbf16>, vector<256x128xf32> -> vector<256x128xf32>
    %c2_75 = arith.constant 2 : index
    %c0_76 = arith.constant 0 : index
    %c0_77 = arith.constant 0 : index
    %148 = vector.load %arg9[%c2_75, %c0_76, %c0_77] : memref<4x256x1xf32, #tpu.memory_space<vmem>>, vector<1x256x1xf32>
    %149 = vector.shape_cast %148 : vector<1x256x1xf32> to vector<256x1xf32>
    %150 = vector.broadcast %149 : vector<256x1xf32> to vector<256x128xf32>
    %151 = arith.addf %147, %150 : vector<256x128xf32>
    %cst_78 = arith.constant 0.000000e+00 : f32
    %152 = vector.broadcast %cst_78 : f32 to vector<256x128xf32>
    %153 = arith.maximumf %151, %152 : vector<256x128xf32>
    %154 = arith.addf %110, %153 : vector<256x128xf32>
    %c0_79 = arith.constant 0 : index
    %c512 = arith.constant 512 : index
    %c0_80 = arith.constant 0 : index
    %155 = vector.load %arg10[%c0_79, %c512, %c0_80] : memref<1x1024x128xf32, #tpu.memory_space<vmem>>, vector<1x256x128xf32>
    %156 = vector.shape_cast %155 : vector<1x256x128xf32> to vector<256x128xf32>
    %157 = vector.shape_cast %154 : vector<256x128xf32> to vector<1x256x128xf32>
    tpu.vector_store %arg10[%c0_79, %c512, %c0_80], %157 {strides = array<i32>} : memref<1x1024x128xf32, #tpu.memory_space<vmem>>, vector<1x256x128xf32>,
    %158 = arith.addf %154, %8 : vector<256x128xf32>
    %159 = arith.truncf %158 : vector<256x128xf32> to vector<256x128xbf16>
    %c3 = arith.constant 3 : index
    %c0_81 = arith.constant 0 : index
    %c0_82 = arith.constant 0 : index
    %160 = vector.load %arg6[%c3, %c0_81, %c0_82] : memref<4x320x256xbf16, #tpu.memory_space<vmem>>, vector<1x320x256xbf16>
    %161 = vector.shape_cast %160 : vector<1x320x256xbf16> to vector<320x256xbf16>
    %cst_83 = arith.constant dense<0.000000e+00> : vector<320x128xf32>
    %162 = tpu.matmul %161, %159, %cst_83 {dimension_numbers = #tpu.dot_dimension_numbers<[1], [0], [0], [1], [0, 0, 1, 1], [], []>} : vector<320x256xbf16>, vector<256x128xbf16>, vector<320x128xf32> -> vector<320x128xf32>
    %c3_84 = arith.constant 3 : index
    %c0_85 = arith.constant 0 : index
    %c0_86 = arith.constant 0 : index
    %163 = vector.load %arg7[%c3_84, %c0_85, %c0_86] : memref<4x320x1xf32, #tpu.memory_space<vmem>>, vector<1x320x1xf32>
    %164 = vector.shape_cast %163 : vector<1x320x1xf32> to vector<320x1xf32>
    %165 = vector.broadcast %164 : vector<320x1xf32> to vector<320x128xf32>
    %166 = arith.addf %162, %165 : vector<320x128xf32>
    %167 = vector.extract_strided_slice %166 {offsets = [0, 0], sizes = [64, 128], strides = [1, 1]} : vector<320x128xf32> to vector<64x128xf32>
    %168 = arith.truncf %167 : vector<64x128xf32> to vector<64x128xbf16>
    %169 = vector.extract_strided_slice %166 {offsets = [64, 0], sizes = [256, 128], strides = [1, 1]} : vector<320x128xf32> to vector<256x128xf32>
    %170 = arith.truncf %169 : vector<256x128xf32> to vector<256x128xbf16>
    %cst_87 = arith.constant dense<0.000000e+00> : vector<128x128xf32>
    %171 = tpu.matmul %168, %168, %cst_87 {dimension_numbers = #tpu.dot_dimension_numbers<[0], [0], [1], [1], [0, 1, 1, 1], [], []>} : vector<64x128xbf16>, vector<64x128xbf16>, vector<128x128xf32> -> vector<128x128xf32>
    %cst_88 = arith.constant dense<0xFF800000> : vector<128xf32>
    %172 = vector.multi_reduction <maximumf>, %171, %cst_88 [1] : vector<128x128xf32> to vector<128xf32>
    %173 = vector.shape_cast %172 : vector<128xf32> to vector<128x1xf32>
    %174 = vector.broadcast %173 : vector<128x1xf32> to vector<128x128xf32>
    %175 = arith.subf %171, %174 : vector<128x128xf32>
    %176 = math.exp %175 : vector<128x128xf32>
    %cst_89 = arith.constant dense<0.000000e+00> : vector<128xf32>
    %177 = vector.multi_reduction <add>, %176, %cst_89 [1] : vector<128x128xf32> to vector<128xf32>
    %178 = vector.shape_cast %177 : vector<128xf32> to vector<128x1xf32>
    %179 = tpu.reciprocal %178 {approx = true} : vector<128x1xf32> -> vector<128x1xf32>
    %180 = vector.broadcast %179 : vector<128x1xf32> to vector<128x128xf32>
    %181 = arith.mulf %176, %180 : vector<128x128xf32>
    %cst_90 = arith.constant dense<0.000000e+00> : vector<128xf32>
    %182 = vector.multi_reduction <add>, %181, %cst_90 [0] : vector<128x128xf32> to vector<128xf32>
    %183 = vector.shape_cast %182 : vector<128xf32> to vector<1x128xf32>
    %184 = arith.truncf %181 : vector<128x128xf32> to vector<128x128xbf16>
    %cst_91 = arith.constant dense<0.000000e+00> : vector<256x128xf32>
    %185 = tpu.matmul %170, %184, %cst_91 {dimension_numbers = #tpu.dot_dimension_numbers<[1], [0], [0], [1], [0, 0, 1, 1], [], []>} : vector<256x128xbf16>, vector<128x128xbf16>, vector<256x128xf32> -> vector<256x128xf32>
    %cst_92 = arith.constant 9.99999971E-10 : f32
    %186 = vector.broadcast %cst_92 : f32 to vector<1x128xf32>
    %187 = arith.addf %186, %183 : vector<1x128xf32>
    %188 = tpu.reciprocal %187 {approx = true} : vector<1x128xf32> -> vector<1x128xf32>
    %189 = vector.broadcast %188 : vector<1x128xf32> to vector<256x128xf32>
    %190 = arith.mulf %185, %189 : vector<256x128xf32>
    %c3_93 = arith.constant 3 : index
    %c0_94 = arith.constant 0 : index
    %c0_95 = arith.constant 0 : index
    %191 = vector.load %arg8[%c3_93, %c0_94, %c0_95] : memref<4x256x256xbf16, #tpu.memory_space<vmem>>, vector<1x256x256xbf16>
    %192 = vector.shape_cast %191 : vector<1x256x256xbf16> to vector<256x256xbf16>
    %193 = arith.subf %158, %190 : vector<256x128xf32>
    %194 = arith.truncf %193 : vector<256x128xf32> to vector<256x128xbf16>
    %cst_96 = arith.constant dense<0.000000e+00> : vector<256x128xf32>
    %195 = tpu.matmul %192, %194, %cst_96 {dimension_numbers = #tpu.dot_dimension_numbers<[1], [0], [0], [1], [0, 0, 1, 1], [], []>} : vector<256x256xbf16>, vector<256x128xbf16>, vector<256x128xf32> -> vector<256x128xf32>
    %c3_97 = arith.constant 3 : index
    %c0_98 = arith.constant 0 : index
    %c0_99 = arith.constant 0 : index
    %196 = vector.load %arg9[%c3_97, %c0_98, %c0_99] : memref<4x256x1xf32, #tpu.memory_space<vmem>>, vector<1x256x1xf32>
    %197 = vector.shape_cast %196 : vector<1x256x1xf32> to vector<256x1xf32>
    %198 = vector.broadcast %197 : vector<256x1xf32> to vector<256x128xf32>
    %199 = arith.addf %195, %198 : vector<256x128xf32>
    %cst_100 = arith.constant 0.000000e+00 : f32
    %200 = vector.broadcast %cst_100 : f32 to vector<256x128xf32>
    %201 = arith.maximumf %199, %200 : vector<256x128xf32>
    %202 = arith.addf %158, %201 : vector<256x128xf32>
    %c0_101 = arith.constant 0 : index
    %c768 = arith.constant 768 : index
    %c0_102 = arith.constant 0 : index
    %203 = vector.load %arg10[%c0_101, %c768, %c0_102] : memref<1x1024x128xf32, #tpu.memory_space<vmem>>, vector<1x256x128xf32>
    %204 = vector.shape_cast %203 : vector<1x256x128xf32> to vector<256x128xf32>
    %205 = vector.shape_cast %202 : vector<256x128xf32> to vector<1x256x128xf32>
    tpu.vector_store %arg10[%c0_101, %c768, %c0_102], %205 {strides = array<i32>} : memref<1x1024x128xf32, #tpu.memory_space<vmem>>, vector<1x256x128xf32>,
    return
  }
  func.func @transform_0(%arg0: i32) -> (i32, i32, i32) {
    %c0_i32 = arith.constant 0 : i32
    %c0_i32_0 = arith.constant 0 : i32
    %c0_i32_1 = arith.constant 0 : i32
    return %arg0, %c0_i32, %c0_i32_0 : i32, i32, i32
  }
  func.func @transform_1(%arg0: i32) -> (i32, i32, i32) {
    %c0_i32 = arith.constant 0 : i32
    %c0_i32_0 = arith.constant 0 : i32
    %c0_i32_1 = arith.constant 0 : i32
    return %arg0, %c0_i32, %c0_i32_0 : i32, i32, i32
  }
  func.func @transform_2(%arg0: i32) -> (i32, i32) {
    %c0_i32 = arith.constant 0 : i32
    %c0_i32_0 = arith.constant 0 : i32
    %c0_i32_1 = arith.constant 0 : i32
    return %c0_i32, %c0_i32_0 : i32, i32
  }
  func.func @transform_3(%arg0: i32) -> (i32, i32) {
    %c0_i32 = arith.constant 0 : i32
    %c0_i32_0 = arith.constant 0 : i32
    %c0_i32_1 = arith.constant 0 : i32
    return %c0_i32, %c0_i32_0 : i32, i32
  }
  func.func @transform_4(%arg0: i32) -> (i32, i32) {
    %c0_i32 = arith.constant 0 : i32
    %c0_i32_0 = arith.constant 0 : i32
    %c0_i32_1 = arith.constant 0 : i32
    return %c0_i32, %c0_i32_0 : i32, i32
  }
  func.func @transform_5(%arg0: i32) -> (i32, i32, i32) {
    %c0_i32 = arith.constant 0 : i32
    %c0_i32_0 = arith.constant 0 : i32
    %c0_i32_1 = arith.constant 0 : i32
    %c0_i32_2 = arith.constant 0 : i32
    return %c0_i32, %c0_i32_0, %c0_i32_1 : i32, i32, i32
  }
  func.func @transform_6(%arg0: i32) -> (i32, i32, i32) {
    %c0_i32 = arith.constant 0 : i32
    %c0_i32_0 = arith.constant 0 : i32
    %c0_i32_1 = arith.constant 0 : i32
    %c0_i32_2 = arith.constant 0 : i32
    return %c0_i32, %c0_i32_0, %c0_i32_1 : i32, i32, i32
  }
  func.func @transform_7(%arg0: i32) -> (i32, i32, i32) {
    %c0_i32 = arith.constant 0 : i32
    %c0_i32_0 = arith.constant 0 : i32
    %c0_i32_1 = arith.constant 0 : i32
    %c0_i32_2 = arith.constant 0 : i32
    return %c0_i32, %c0_i32_0, %c0_i32_1 : i32, i32, i32
  }
  func.func @transform_8(%arg0: i32) -> (i32, i32, i32) {
    %c0_i32 = arith.constant 0 : i32
    %c0_i32_0 = arith.constant 0 : i32
    %c0_i32_1 = arith.constant 0 : i32
    %c0_i32_2 = arith.constant 0 : i32
    return %c0_i32, %c0_i32_0, %c0_i32_1 : i32, i32, i32
  }
  func.func @transform_9(%arg0: i32) -> (i32, i32, i32) {
    %c0_i32 = arith.constant 0 : i32
    %c0_i32_0 = arith.constant 0 : i32
    %c0_i32_1 = arith.constant 0 : i32
    return %arg0, %c0_i32, %c0_i32_0 : i32, i32, i32
  }
}

</mosaic_0001>

<bundles_post_ra>
// kernel: point_transformer_last_forward.1
= control target key start
LH: loop header
LB: loop body
LE: loop exit
PB: predicated region body
PF: predicated region fallthrough
CT: control target
= control target key end

     0   :  { %14 = vsyncpa [#allocation3], 0  ;;  %s16562_s0 = inlined_call_operand.vmem [shape: f32[2,256,128], index: 0, kind: input, shape index: {}]   ;;  %s16563_s1 = inlined_call_operand.vmem [shape: f32[2,3,128], index: 1, kind: input, shape index: {}]   ;;  %s16564_s2 = inlined_call_operand.hbm [shape: bf16[256,256], index: 2, kind: input, shape index: {}]   ;;  %s16565_s3 = inlined_call_operand.vmem [shape: f32[256,3], index: 3, kind: input, shape index: {}]   ;;  %s16566_s4 = inlined_call_operand.vmem [shape: f32[256,1], index: 4, kind: input, shape index: {}]   ;;  %s16567_s5 = inlined_call_operand.vmem [shape: bf16[4,320,256], index: 5, kind: input, shape index: {}]   ;;  %s16568_s6 = inlined_call_operand.vmem [shape: f32[4,320,1], index: 6, kind: input, shape index: {}]   ;;  %s16569_s7 = inlined_call_operand.vmem [shape: bf16[4,256,256], index: 7, kind: input, shape index: {}]   ;;  %s16570_s8 = inlined_call_operand.vmem [shape: f32[4,256,1], index: 8, kind: input, shape index: {}]   ;;  %s16571_s9 = inlined_call_operand.hbm [shape: f32[2,1024,128], index: 9, kind: output, shape index: {}]  }
   0x1   :  { %15 = vsyncpa [#allocation4], 0 }
   0x2   :  { %17 = vsyncpa [#allocation4 + $0x1], 0  ;;  %s12096_s30 = smov 0   ;;  %s12098_s10 = smov 0  }
   0x3   :  { %s12100_s11 = smov 0   ;;  %s12102_s12 = smov 0  }
   0x4 LB: > { %s12117_s13 = sadd.s32 4294967295, %s12037_s12   ;;  %s9201_s14 = sadd.s32 4294967294, %s12037_s12   ;;  %s12037_s12 = sphi %s12102_s12, %s17262_s12   ;;  %s12033_s11 = sphi %s12100_s11, %s17261_s11   ;;  %s12029_s10 = sphi %s12098_s10, %s17260_s10   ;;  %s12025_s30 = sphi %s12096_s30, %s17259_s30  }
   0x5   : > { %s12121_s15 = sadd.s32 1, %s12037_s12   ;;  %s229_s16 = sadd.s32 1, %s12033_s11 }
   0x6   : > { %s226_s17 = ssub.s32 %s12037_s12, %s12121_s15  ;;  %p239_p0 = scmp.ne.s32.totalorder %s12033_s11, %s12029_s10 }
   0x7   : > { %p227_p1 = scmp.eq.s32.totalorder %s226_s17, 0  ;;  %p240_p2 = scmp.eq.s32.totalorder %s12117_s13, 1 }
   0x8   : > { %p245_p3 = scmp.ne.s32.totalorder %s12029_s10, %s12025_s30  ;;  %p246_p4 = scmp.eq.s32.totalorder %s9201_s14, 1 }
   0x9   : > { %s12132_s18 = scalar_select %p227_p1, %s12033_s11, %s229_s16  }
   0xa   : > { %p12134_p5 = por %p240_p2, %p239_p0  ;;  %p12138_p6 = por %p246_p4, %p245_p3 }
   0xb   : > { %p9202_p7 = scmp.ge.s32.totalorder %s12037_s12, 1  ;;  %p253_p8 = scmp.lt.s32.totalorder %s12037_s12, 3 }
   0xc   : > { %s16879_s19 = scalar_select %p12134_p5, 1, 0 }
   0xd   : > { %s16880_s20 = scalar_select %p12138_p6, 1, 0 }
   0xe   : > { %p16572_p9 = scmp.eq.s32.totalorder %s12117_s13, 0  ;;  %p12145_p10 = pnand %p9202_p7, %p253_p8 }
   0xf   : > { %s12039_s22 = smov [#allocation2]   ;;  %s11943_s27 = scalar_lea.hbm %s16564_s2, 4096 }
  0x10   : > { %s16881_s21 = scalar_select %p12145_p10, 1, 0 }
  0x11   : > { %s265_s23 = sshll.u32 %s12039_s22, 4  ;;  %p11148_p11 = pneg %p12145_p10  ;;  %s266_s23 = int_to_ptr.vmem [resolvable:$true] %s265_s23 }
  0x12   : > { %p11944_p13 = scmp.ne.s32.totalorder %s16564_s2, %s11943_s27  ;;  %p11950_p3 = scmp.lt.u32.totalorder %s11943_s27, %s16564_s2 }
  0x13   : > { %p12153_p12 = pnand %p16572_p9, %p11148_p11 }
  0x15   : > { %p11945_p0 = pneg %p12153_p12 }
  0x17   : > { %p11946_p1 = pnand %p11945_p0, %p11944_p13 }
  0x19   : > { %p11947_p2 = pneg %p11946_p1 }
  0x1b   : > { %p11952_p4 = pnand %p11950_p3, %p11947_p2 }
  0x1d   : > { %11955 = shalt.err (!%p11952_p4)
}
  0x1e   : > { %s11956_s17 = scalar_lea.vmem %s266_s23, 4096  ;;  %p11964_p9 = scmp.lt.s32.totalorder %s266_s23, %s266_s23 }
  0x1f   : > { %p11957_p7 = scmp.ne.s32.totalorder %s266_s23, %s11956_s17  ;;  %p11965_p6 = scmp.lt.s32.totalorder %s11956_s17, %s11956_s17 }
  0x21   : > { %p11959_p8 = pnand %p11957_p7, %p11945_p0  ;;  %p11966_p5 = por %p11965_p6, %p11964_p9 }
  0x23   : > { %p11960_p11 = pneg %p11959_p8 }
  0x25   : > { %p11967_p10 = pnand %p11966_p5, %p11960_p11 }
  0x27   : > { %11970 = shalt.err (!%p11967_p10)
}
  0x28   : > { %s12040_s22 = smov 128   ;;  %s12041_s25 = smov 8  }
  0x29   : > { %11151 = dma.hbm_to_vmem [thread:$0]  (!%p12153_p12), %s16564_s2, 4096, %s266_s23, [#allocation3], %s12040_s22, %s12040_s22, %s12041_s25  }
  0x2a   : > { %p16883_p13 = scmp.ne.s32.totalorder %s16881_s21, 0 }
  0x2c   : > { %314 = sbr.rel (%p16883_p13) target bundleno = 6653 (0x19fd), region = 56 }
  0x33   : > { %p16884_p1 = scmp.eq.s32.totalorder %s12117_s13, 0 }
  0x35   : > { %12016 = dma.done.wait (%p16884_p1), [#allocation3], 4096   ;;  %p16885_p0 = pmov %p16884_p1 }
  0x36   : > { %p354_p5 = scmp.lt.s32.totalorder %s12117_s13, 1  ;;  %v16575_v0 = vmov 0   ;;  %vm718_vm0 = vcmask 1042432   ;;  %vm621_vm1 = vcmask 23552   ;;  %v397_v27 = vld [vmem:[%s16565_s3] sm:$0xff]  ;;  %v398_v31 = vld [vmem:[%s16565_s3 + $0x8] sm:$0xff] }
  0x37   : > { %12018 = vsyncadd (%p16885_p0), [#allocation3], 4294963200  ;;  %11197 = vset.pattern.permute.xlu0 %v16575_v0  ;;  %11198 = vset.pattern.permute.xlu1 %v16575_v0  ;;  %v11201_v30 = vld [vmem:[#allocation2 + $0x4] ss:$8 sps:$4 sm:$0xff]   ;;  %v399_v35 = vld [vmem:[%s16565_s3 + $0x10] sm:$0xff]  ;;  %vm2105_vm2 = vcmask 523264  }
  0x38   : > { %s355_s24 = scalar_select %p354_p5, %s12117_s13, 1  ;;  %10774 = vmatprep.mubr.msk.f32.mxu0 %vm621_vm1, %v397_v27  ;;  %1187 = vmatprep.mubr.bf16.mxu1 %v11201_v30  ;;  %v400_v37 = vld [vmem:[%s16565_s3 + $0x18] sm:$0xff]  ;;  %v401_v39 = vld [vmem:[%s16565_s3 + $0x20] sm:$0xff]  ;;  %v402_v45 = vld [vmem:[%s16565_s3 + $0x28] sm:$0xff] }
  0x39   : > { %v403_v47 = vld [vmem:[%s16565_s3 + $0x30] sm:$0xff]  ;;  %v404_v53 = vld [vmem:[%s16565_s3 + $0x38] sm:$0xff]  ;;  %v405_v55 = vld [vmem:[%s16565_s3 + $0x40] sm:$0xff]  ;;  %s351_s26 = sand.u32 1, %s12029_s10   ;;  %s10034_s25 = sshll.u32 %s12117_s13, 14 }
  0x3a   : > { %s10033_s27 = sshll.u32 %s355_s24, 8  ;;  %s9210_s14 = sshll.u32 %s355_s24, 2  ;;  %v406_v59 = vld [vmem:[%s16565_s3 + $0x48] sm:$0xff]  ;;  %v407_v61 = vld [vmem:[%s16565_s3 + $0x50] sm:$0xff] }
  0x3b   : > { %s12186_s21 = scalar_lea.vmem %s16562_s0, %s10033_s27  ;;  %s362_s22 = scalar_lea.vmem %s16563_s1, %s9210_s14  ;;  %v11199_v62 = vld [vmem:[#allocation2] ss:$8 sps:$4 sm:$0xff]   ;;  %v11202_v63 = vld [vmem:[#allocation2 + $0x14] ss:$8 sps:$4 sm:$0xff]   ;;  %v11211_v30 = vld [vmem:[#allocation2 + $0x44] ss:$8 sps:$4 sm:$0xff]  }
  0x3c   : > { %v380_v1 = vld [vmem:[%s12186_s21 + $0x80] sm:$0xff]  ;;  %v381_v2 = vld [vmem:[%s12186_s21 + $0x88] sm:$0xff]  ;;  %v382_v6 = vld [vmem:[%s12186_s21 + $0x90] sm:$0xff]  ;;  %s9207_s28 = sshll.u32 %s351_s26, 10  ;;  %s16512_s29 = scalar_lea.hbm %s16571_s9, %s10034_s25 }
  0x3d   : > { %v364_v3 = vld [vmem:[%s12186_s21] sm:$0xff]  ;;  %v987_v4 = vpack.c.bf16 %v381_v2, %v380_v1  ;;  %v365_v5 = vld [vmem:[%s12186_s21 + $0x8] sm:$0xff]  ;;  %v383_v7 = vld [vmem:[%s12186_s21 + $0x98] sm:$0xff]  ;;  %s13533_s23 = scalar_lea.vmem [#allocation5], %s9207_s28  ;;  %s16521_s13 = scalar_lea.sflag [#allocation4], %s351_s26 }
  0x3e   : > { %v979_v8 = vpack.c.bf16 %v365_v5, %v364_v3  ;;  %v988_v9 = vpack.c.bf16 %v383_v7, %v382_v6  ;;  %v366_v10 = vld [vmem:[%s12186_s21 + $0x10] sm:$0xff]  ;;  %v367_v11 = vld [vmem:[%s12186_s21 + $0x18] sm:$0xff]  ;;  %v384_v12 = vld [vmem:[%s12186_s21 + $0xa0] sm:$0xff]  ;;  %s9115_s28 = sshll.u32 %s13533_s23, 4  ;;  %p17257_p9 = scmp.ne.s32.totalorder %s16879_s19, 0  ;;  %s16514_s28 = int_to_ptr.vmem [resolvable:$true] %s9115_s28 }
  0x3f   : > { %10068 = vmatprep.subr.bf16.mxu1 %v987_v4  ;;  %v385_v13 = vld [vmem:[%s12186_s21 + $0xa8] sm:$0xff]  ;;  %v980_v14 = vpack.c.bf16 %v367_v11, %v366_v10  ;;  %v368_v16 = vld [vmem:[%s12186_s21 + $0x20] sm:$0xff]  ;;  %v386_v18 = vld [vmem:[%s12186_s21 + $0xb0] sm:$0xff]  ;;  %s11971_s14 = scalar_lea.vmem %s16514_s28, 16384  ;;  %s12043_s16 = smov [#allocation5]  }
  0x40   : > { %10069 = vmatpush3.bf16.msra.mxu1 %v979_v8  ;;  %v989_v15 = vpack.c.bf16 %v385_v13, %v384_v12  ;;  %v369_v17 = vld [vmem:[%s12186_s21 + $0x28] sm:$0xff]  ;;  %v387_v19 = vld [vmem:[%s12186_s21 + $0xb8] sm:$0xff]  ;;  %v370_v22 = vld [vmem:[%s12186_s21 + $0x30] sm:$0xff]  ;;  %p11972_p6 = scmp.ne.s32.totalorder %s16514_s28, %s11971_s14  ;;  %s11975_s17 = sshll.u32 %s12043_s16, 4  ;;  %s11976_s17 = int_to_ptr.vmem [resolvable:$false] %s11975_s17 }
  0x41   : > { %10070 = vmatprep.subr.bf16.mxu1 %v988_v9  ;;  %v981_v20 = vpack.c.bf16 %v369_v17, %v368_v16  ;;  %v990_v21 = vpack.c.bf16 %v387_v19, %v386_v18  ;;  %v371_v23 = vld [vmem:[%s12186_s21 + $0x38] sm:$0xff]  ;;  %v388_v24 = vld [vmem:[%s12186_s21 + $0xc0] sm:$0xff]  ;;  %v389_v25 = vld [vmem:[%s12186_s21 + $0xc8] sm:$0xff]  ;;  %p11978_p2 = scmp.lt.s32.totalorder %s16514_s28, %s11976_s17 }
  0x42   : > { %v396_v26 = vld [vmem:[%s362_s22] sm:$0x7]  ;;  %v982_v28 = vpack.c.bf16 %v371_v23, %v370_v22  ;;  %v991_v32 = vpack.c.bf16 %v389_v25, %v388_v24  ;;  %v373_v33 = vld [vmem:[%s12186_s21 + $0x48] sm:$0xff]  ;;  %v390_v34 = vld [vmem:[%s12186_s21 + $0xd0] sm:$0xff]  ;;  %p11973_p10 = pnand %p11972_p6, %p17257_p9  ;;  %s11977_s22 = scalar_lea.vmem %s11976_s17, 32768 }
  0x43   : > { %10772 = vmatprep.subr.msk.mxu0 %vm718_vm0, %v396_v26  ;;  %v372_v29 = vld [vmem:[%s12186_s21 + $0x40] sm:$0xff]  ;;  %v391_v36 = vld [vmem:[%s12186_s21 + $0xd8] sm:$0xff]  ;;  %v374_v41 = vld [vmem:[%s12186_s21 + $0x50] sm:$0xff]  ;;  %p11979_p3 = scmp.lt.s32.totalorder %s11977_s22, %s11971_s14 }
  0x44   : > { %10071 = vmatpush3.bf16.msra.mxu1 %v980_v14  ;;  %10773 = vmatpush3.msk.msra.mxu0 %vm718_vm0, %v396_v26  ;;  %v983_v38 = vpack.c.bf16 %v373_v33, %v372_v29  ;;  %v992_v40 = vpack.c.bf16 %v391_v36, %v390_v34  ;;  %v375_v42 = vld [vmem:[%s12186_s21 + $0x58] sm:$0xff]  ;;  %v392_v43 = vld [vmem:[%s12186_s21 + $0xe0] sm:$0xff]  ;;  %v393_v44 = vld [vmem:[%s12186_s21 + $0xe8] sm:$0xff]  ;;  %p11974_p12 = pneg %p11973_p10 }
  0x45   : > { %10072 = vmatprep.subr.bf16.mxu1 %v989_v15  ;;  %10775 = vmatmul.mubr.msk.f32.vlgmr.msra.gmra.mrb[0].mxu0 %vm621_vm1, %v398_v31  ;;  %v984_v46 = vpack.c.bf16 %v375_v42, %v374_v41  ;;  %v993_v48 = vpack.c.bf16 %v393_v44, %v392_v43  ;;  %v376_v49 = vld [vmem:[%s12186_s21 + $0x60] sm:$0xff]  ;;  %v377_v50 = vld [vmem:[%s12186_s21 + $0x68] sm:$0xff]  ;;  %v394_v51 = vld [vmem:[%s12186_s21 + $0xf0] sm:$0xff]  ;;  %p11980_p4 = por %p11979_p3, %p11978_p2 }
  0x46   : > { %10777 = vmatprep.mubr.msk.f32.mxu0 %vm621_vm1, %v399_v35  ;;  %1876 = vmatprep.subr.bf16.mxu0 %v16575_v0  ;;  %v395_v52 = vld [vmem:[%s12186_s21 + $0xf8] sm:$0xff]  ;;  %v985_v54 = vpack.c.bf16 %v377_v50, %v376_v49  ;;  %v378_v57 = vld [vmem:[%s12186_s21 + $0x70] sm:$0xff]  ;;  %v409_v2 = vld [vmem:[%s16565_s3 + $0x60] sm:$0xff] }
  0x47   : > { %v994_v56 = vpack.c.bf16 %v395_v52, %v394_v51  ;;  %v379_v58 = vld [vmem:[%s12186_s21 + $0x78] sm:$0xff]  ;;  %v429_v3 = vld [vmem:[%s16566_s4] sm:$0xff]  ;;  %v410_v4 = vld [vmem:[%s16565_s3 + $0x68] sm:$0xff]  ;;  %p11981_p7 = pnand %p11980_p4, %p11974_p12 }
  0x48   : > { %10073 = vmatpush3.bf16.msra.mxu1 %v981_v20  ;;  %v986_v60 = vpack.c.bf16 %v379_v58, %v378_v57  ;;  %v408_v1 = vld [vmem:[%s16565_s3 + $0x58] sm:$0xff]  ;;  %463 = vperm.xlu0 %11197, %v429_v3   ;;  %v431_v5 = vld [vmem:[%s16566_s4 + $0x10] sm:$0xff]  ;;  %v430_v6 = vld [vmem:[%s16566_s4 + $0x8] sm:$0xff] }
  0x49   : > { %10074 = vmatprep.subr.bf16.mxu1 %v990_v21  ;;  %10778 = vmatmul.mubr.msk.f32.gmra.mrb[2].mxu0 %vm621_vm1, %v400_v37  ;;  %v411_v7 = vld [vmem:[%s16565_s3 + $0x70] sm:$0xff]  ;;  %v432_v8 = vld [vmem:[%s16566_s4 + $0x18] sm:$0xff]  ;;  %v433_v11 = vld [vmem:[%s16566_s4 + $0x20] sm:$0xff] }
  0x4a   : > { %10780 = vmatprep.mubr.msk.f32.mxu0 %vm621_vm1, %v401_v39  ;;  %473 = vperm.xlu1 %11198, %v431_v5   ;;  %v11204_v9 = vld [vmem:[#allocation2 + $0x10] ss:$8 sps:$4 sm:$0xff]   ;;  %v11205_v12 = vld [vmem:[#allocation2 + $0x24] ss:$8 sps:$4 sm:$0xff]   ;;  %v11207_v19 = vld [vmem:[#allocation2 + $0x20] ss:$8 sps:$4 sm:$0xff]  }
  0x4b   : > { %v412_v10 = vld [vmem:[%s16565_s3 + $0x78] sm:$0xff]  ;;  %v413_v13 = vld [vmem:[%s16565_s3 + $0x80] sm:$0xff]  ;;  %v434_v14 = vld [vmem:[%s16566_s4 + $0x28] sm:$0xff] }
  0x4c   : > { %10075 = vmatpush3.bf16.msra.mxu1 %v982_v28  ;;  %468 = vperm.xlu0 %11197, %v430_v6   ;;  %v414_v15 = vld [vmem:[%s16565_s3 + $0x88] sm:$0xff]  ;;  %v435_v16 = vld [vmem:[%s16566_s4 + $0x30] sm:$0xff]  ;;  %v436_v18 = vld [vmem:[%s16566_s4 + $0x38] sm:$0xff] }
  0x4d   : > { %10076 = vmatprep.subr.bf16.mxu1 %v991_v32  ;;  %10781 = vmatmul.mubr.msk.f32.gmra.mrb[4].mxu0 %vm621_vm1, %v402_v45  ;;  %v415_v17 = vld [vmem:[%s16565_s3 + $0x90] sm:$0xff]  ;;  %v416_v20 = vld [vmem:[%s16565_s3 + $0x98] sm:$0xff]  ;;  %v437_v21 = vld [vmem:[%s16566_s4 + $0x40] sm:$0xff] }
  0x4e   : > { %10783 = vmatprep.mubr.msk.f32.mxu0 %vm621_vm1, %v403_v47  ;;  %478 = vperm.xlu1 %11198, %v432_v8   ;;  %v11208_v22 = vld [vmem:[#allocation2 + $0x34] ss:$8 sps:$4 sm:$0xff]   ;;  %v417_v23 = vld [vmem:[%s16565_s3 + $0xa0] sm:$0xff]  ;;  %v438_v24 = vld [vmem:[%s16566_s4 + $0x48] sm:$0xff] }
  0x4f   : > { %v418_v25 = vld [vmem:[%s16565_s3 + $0xa8] sm:$0xff]  ;;  %v439_v26 = vld [vmem:[%s16566_s4 + $0x50] sm:$0xff]  ;;  %v440_v28 = vld [vmem:[%s16566_s4 + $0x58] sm:$0xff] }
  0x50   : > { %10077 = vmatpush3.bf16.msra.mxu1 %v983_v38  ;;  %483 = vperm.xlu0 %11197, %v433_v11   ;;  %v419_v27 = vld [vmem:[%s16565_s3 + $0xb0] sm:$0xff]  ;;  %v420_v31 = vld [vmem:[%s16565_s3 + $0xb8] sm:$0xff]  ;;  %v421_v32 = vld [vmem:[%s16565_s3 + $0xc0] sm:$0xff] }
  0x51   : > { %10078 = vmatprep.subr.bf16.mxu1 %v992_v40  ;;  %10784 = vmatmul.mubr.msk.f32.gmra.mrb[6].mxu0 %vm621_vm1, %v404_v53  ;;  %v11210_v29 = vld [vmem:[#allocation2 + $0x30] ss:$8 sps:$4 sm:$0xff]   ;;  %v441_v33 = vld [vmem:[%s16566_s4 + $0x60] sm:$0xff]  ;;  %v442_v34 = vld [vmem:[%s16566_s4 + $0x68] sm:$0xff] }
  0x52   : > { %10786 = vmatprep.mubr.msk.f32.mxu0 %vm621_vm1, %v405_v55  ;;  %488 = vperm.xlu1 %11198, %v434_v14   ;;  %v422_v35 = vld [vmem:[%s16565_s3 + $0xc8] sm:$0xff]  ;;  %v443_v36 = vld [vmem:[%s16566_s4 + $0x70] sm:$0xff]  ;;  %v444_v38 = vld [vmem:[%s16566_s4 + $0x78] sm:$0xff] }
  0x53   : > { %v423_v37 = vld [vmem:[%s16565_s3 + $0xd0] sm:$0xff]  ;;  %v11213_v39 = vld [vmem:[#allocation2 + $0x40] ss:$8 sps:$4 sm:$0xff]   ;;  %v424_v40 = vld [vmem:[%s16565_s3 + $0xd8] sm:$0xff] }
  0x54   : > { %10079 = vmatpush3.bf16.msra.mxu1 %v984_v46  ;;  %493 = vperm.xlu0 %11197, %v435_v16   ;;  %v445_v41 = vld [vmem:[%s16566_s4 + $0x80] sm:$0xff]  ;;  %v11214_v42 = vld [vmem:[#allocation2 + $0x54] ss:$8 sps:$4 sm:$0xff]   ;;  %v446_v44 = vld [vmem:[%s16566_s4 + $0x88] sm:$0xff] }
  0x55   : > { %10080 = vmatprep.subr.bf16.mxu1 %v993_v48  ;;  %10787 = vmatmul.mubr.msk.f32.gmra.mrb[8].mxu0 %vm621_vm1, %v406_v59  ;;  %v425_v43 = vld [vmem:[%s16565_s3 + $0xe0] sm:$0xff]  ;;  %v426_v45 = vld [vmem:[%s16565_s3 + $0xe8] sm:$0xff]  ;;  %v447_v46 = vld [vmem:[%s16566_s4 + $0x90] sm:$0xff] }
  0x56   : > { %10789 = vmatprep.mubr.msk.f32.mxu0 %vm621_vm1, %v407_v61  ;;  %498 = vperm.xlu1 %11198, %v436_v18   ;;  %v427_v47 = vld [vmem:[%s16565_s3 + $0xf0] sm:$0xff]  ;;  %v448_v48 = vld [vmem:[%s16566_s4 + $0x98] sm:$0xff]  ;;  %v449_v51 = vld [vmem:[%s16566_s4 + $0xa0] sm:$0xff] }
  0x57   : > { %v11216_v49 = vld [vmem:[#allocation2 + $0x50] ss:$8 sps:$4 sm:$0xff]   ;;  %v11217_v52 = vld [vmem:[#allocation2 + $0x64] ss:$8 sps:$4 sm:$0xff]   ;;  %v11220_v58 = vld [vmem:[#allocation2 + $0x74] ss:$8 sps:$4 sm:$0xff]  }
  0x58   : > { %10081 = vmatpush3.bf16.msra.mxu1 %v985_v54  ;;  %503 = vperm.xlu0 %11197, %v437_v21   ;;  %v428_v50 = vld [vmem:[%s16565_s3 + $0xf8] sm:$0xff]  ;;  %v450_v53 = vld [vmem:[%s16566_s4 + $0xa8] sm:$0xff]  ;;  %v451_v54 = vld [vmem:[%s16566_s4 + $0xb0] sm:$0xff] }
  0x59   : > { %10082 = vmatprep.subr.bf16.mxu1 %v994_v56  ;;  %10790 = vmatmul.mubr.msk.f32.gmra.mrb[10].mxu0 %vm621_vm1, %v408_v1  ;;  %v452_v55 = vld [vmem:[%s16566_s4 + $0xb8] sm:$0xff]  ;;  %v11219_v56 = vld [vmem:[#allocation2 + $0x60] ss:$8 sps:$4 sm:$0xff]   ;;  %v11223_v1 = vld [vmem:[#allocation2 + $0x84] ss:$8 sps:$4 sm:$0xff]  }
  0x5a   : > { %10792 = vmatprep.mubr.msk.f32.mxu0 %vm621_vm1, %v409_v2  ;;  %508 = vperm.xlu1 %11198, %v438_v24   ;;  %v453_v57 = vld [vmem:[%s16566_s4 + $0xc0] sm:$0xff]  ;;  %v454_v59 = vld [vmem:[%s16566_s4 + $0xc8] sm:$0xff]  ;;  %v456_v61 = vld [vmem:[%s16566_s4 + $0xd8] sm:$0xff] }
  0x5b   : > { %v458_v2 = vld [vmem:[%s16566_s4 + $0xe8] sm:$0xff]  ;;  %v459_v3 = vld [vmem:[%s16566_s4 + $0xf0] sm:$0xff]  ;;  %v1436_v6 = vld [vmem:[%s16568_s6] sm:$0xff] }
  0x5c   : > { %10083 = vmatpush3.bf16.msra.mxu1 %v986_v60  ;;  %513 = vperm.xlu0 %11197, %v439_v26   ;;  %v455_v60 = vld [vmem:[%s16566_s4 + $0xd0] sm:$0xff]  ;;  %v11225_v5 = vld [vmem:[#allocation2 + $0x80] ss:$8 sps:$4 sm:$0xff]   ;;  %v1443_v16 = vld [vmem:[%s16568_s6 + $0x38] sm:$0xff] }
  0x5d   : > { %10793 = vmatmul.mubr.msk.f32.gmra.mrb[12].mxu0 %vm621_vm1, %v410_v4  ;;  %v460_v4 = vld [vmem:[%s16566_s4 + $0xf8] sm:$0xff]  ;;  %v1437_v8 = vld [vmem:[%s16568_s6 + $0x8] sm:$0xff] }
  0x5e   : > { %10795 = vmatprep.mubr.msk.f32.mxu0 %vm621_vm1, %v411_v7  ;;  %518 = vperm.xlu1 %11198, %v440_v28   ;;  %v11226_v7 = vld [vmem:[#allocation2 + $0x94] ss:$8 sps:$4 sm:$0xff]   ;;  %v11228_v11 = vld [vmem:[#allocation2 + $0x90] ss:$8 sps:$4 sm:$0xff]   ;;  %v1441_v14 = vld [vmem:[%s16568_s6 + $0x28] sm:$0xff] }
  0x5f   : > { %1188 = vmatmul.mubr.bf16.vlgmr.msra.gmra.mrb[0].mxu1 %v11199_v62  ;;  %v11222_v62 = vld [vmem:[#allocation2 + $0x70] ss:$8 sps:$4 sm:$0xff]   ;;  %v11232_v18 = vld [vmem:[#allocation2 + $0xb4] ss:$8 sps:$4 sm:$0xff]   ;;  %v11237_v21 = vld [vmem:[#allocation2 + $0xc0] ss:$8 sps:$4 sm:$0xff]  }
  0x60   : > { %1195 = vmatprep.mubr.bf16.mxu1 %v11202_v63  ;;  %523 = vperm.xlu0 %11197, %v441_v33   ;;  %v457_v63 = vld [vmem:[%s16566_s4 + $0xe0] sm:$0xff]  ;;  %v11244_v26 = vld [vmem:[#allocation2 + $0xf4] ss:$8 sps:$4 sm:$0xff]  }
  0x61   : > { %10796 = vmatmul.mubr.msk.f32.gmra.mrb[14].mxu0 %vm621_vm1, %v412_v10  ;;  %v1439_v10 = vld [vmem:[%s16568_s6 + $0x18] sm:$0xff]  ;;  %v11241_v24 = vld [vmem:[#allocation2 + $0xe4] ss:$8 sps:$4 sm:$0xff]  }
  0x62   : > { %10798 = vmatprep.mubr.msk.f32.mxu0 %vm621_vm1, %v413_v13  ;;  %528 = vperm.xlu1 %11198, %v442_v34   ;;  %v11229_v13 = vld [vmem:[#allocation2 + $0xa4] ss:$8 sps:$4 sm:$0xff]  }
  0x64   : > { %533 = vperm.xlu0 %11197, %v443_v36  }
  0x65   : > { %10799 = vmatmul.mubr.msk.f32.gmra.mrb[16].mxu0 %vm621_vm1, %v414_v15  ;;  %v1442_v15 = vld [vmem:[%s16568_s6 + $0x30] sm:$0xff] }
  0x66   : > { %10801 = vmatprep.mubr.msk.f32.mxu0 %vm621_vm1, %v415_v17  ;;  %538 = vperm.xlu1 %11198, %v444_v38   ;;  %v11231_v17 = vld [vmem:[#allocation2 + $0xa0] ss:$8 sps:$4 sm:$0xff]  }
  0x67   : > { %1196 = vmatmul.mubr.bf16.gmra.mrb[4].mxu1 %v11204_v9  ;;  %v1438_v9 = vld [vmem:[%s16568_s6 + $0x10] sm:$0xff] }
  0x68   : > { %1203 = vmatprep.mubr.bf16.mxu1 %v11205_v12  ;;  %543 = vperm.xlu0 %11197, %v445_v41   ;;  %v1440_v12 = vld [vmem:[%s16568_s6 + $0x20] sm:$0xff] }
  0x69   : > { %10802 = vmatmul.mubr.msk.f32.gmra.mrb[18].mxu0 %vm621_vm1, %v416_v20  ;;  %v11235_v20 = vld [vmem:[#allocation2 + $0xc4] ss:$8 sps:$4 sm:$0xff]  }
  0x6a   : > { %10804 = vmatprep.mubr.msk.f32.mxu0 %vm621_vm1, %v417_v23  ;;  %548 = vperm.xlu1 %11198, %v446_v44   ;;  %v11240_v23 = vld [vmem:[#allocation2 + $0xd0] ss:$8 sps:$4 sm:$0xff]  }
  0x6c   : > { %553 = vperm.xlu0 %11197, %v447_v46  }
  0x6d   : > { %10805 = vmatmul.mubr.msk.f32.gmra.mrb[20].mxu0 %vm621_vm1, %v418_v25  ;;  %v11243_v25 = vld [vmem:[#allocation2 + $0xe0] ss:$8 sps:$4 sm:$0xff]  }
  0x6e   : > { %10807 = vmatprep.mubr.msk.f32.mxu0 %vm621_vm1, %v419_v27  ;;  %558 = vperm.xlu1 %11198, %v448_v48   ;;  %v11246_v27 = vld [vmem:[#allocation2 + $0xf0] ss:$8 sps:$4 sm:$0xff]  }
  0x6f   : > { %1204 = vmatmul.mubr.bf16.gmra.mrb[8].mxu1 %v11207_v19  ;;  %v11234_v19 = vld [vmem:[#allocation2 + $0xb0] ss:$8 sps:$4 sm:$0xff]  }
  0x70   : > { %1211 = vmatprep.mubr.bf16.mxu1 %v11208_v22  ;;  %563 = vperm.xlu0 %11197, %v449_v51   ;;  %v11238_v22 = vld [vmem:[#allocation2 + $0xd4] ss:$8 sps:$4 sm:$0xff]  }
  0x71   : > { %10808 = vmatmul.mubr.msk.f32.gmra.mrb[22].mxu0 %vm621_vm1, %v420_v31 }
  0x72   : > { %10810 = vmatprep.mubr.msk.f32.mxu0 %vm621_vm1, %v421_v32  ;;  %568 = vperm.xlu1 %11198, %v450_v53  }
  0x74   : > { %573 = vperm.xlu0 %11197, %v451_v54   ;;  %v11249_v54 = vld [vmem:[%s16567_s5 + $0x4] ss:$8 sps:$4 sm:$0xff]  }
  0x75   : > { %10811 = vmatmul.mubr.msk.f32.gmra.mrb[24].mxu0 %vm621_vm1, %v422_v35 }
  0x76   : > { %10813 = vmatprep.mubr.msk.f32.mxu0 %vm621_vm1, %v423_v37  ;;  %578 = vperm.xlu1 %11198, %v452_v55  }
  0x77   : > { %1212 = vmatmul.mubr.bf16.gmra.mrb[12].mxu1 %v11210_v29 }
  0x78   : > { %1219 = vmatprep.mubr.bf16.mxu1 %v11211_v30  ;;  %583 = vperm.xlu0 %11197, %v453_v57  }
  0x79   : > { %10814 = vmatmul.mubr.msk.f32.gmra.mrb[26].mxu0 %vm621_vm1, %v424_v40 }
  0x7a   : > { %10816 = vmatprep.mubr.msk.f32.mxu0 %vm621_vm1, %v425_v43  ;;  %588 = vperm.xlu1 %11198, %v454_v59  }
  0x7c   : > { %593 = vperm.xlu0 %11197, %v455_v60  }
  0x7d   : > { %10817 = vmatmul.mubr.msk.f32.gmra.mrb[28].mxu0 %vm621_vm1, %v426_v45 }
  0x7e   : > { %10819 = vmatprep.mubr.msk.f32.mxu0 %vm621_vm1, %v427_v47  ;;  %598 = vperm.xlu1 %11198, %v456_v61  }
  0x7f   : > { %1220 = vmatmul.mubr.bf16.gmra.mrb[16].mxu1 %v11213_v39 }
  0x80   : > { %1227 = vmatprep.mubr.bf16.mxu1 %v11214_v42  ;;  %603 = vperm.xlu0 %11197, %v457_v63  }
  0x81   : > { %10820 = vmatmul.mubr.msk.f32.gmra.mrb[30].mxu0 %vm621_vm1, %v428_v50 }
  0x82   : > { %608 = vperm.xlu1 %11198, %v458_v2   ;;  %1908 = vmatprep.mubr.bf16.mxu0 %v11249_v54 }
  0x84   : > { %613 = vperm.xlu0 %11197, %v459_v3  }
  0x86   : > { %618 = vperm.xlu1 %11198, %v460_v4  }
  0x87   : > { %1228 = vmatmul.mubr.bf16.gmra.mrb[20].mxu1 %v11216_v49 }
  0x88   : > { %1235 = vmatprep.mubr.bf16.mxu1 %v11217_v52  ;;  %1478 = vperm.xlu0 %11197, %v1436_v6  }
  0x8a   : > { %1483 = vperm.xlu1 %11198, %v1437_v8  }
  0x8c   : > { %1488 = vperm.xlu0 %11197, %v1438_v9  }
  0x8e   : > { %1493 = vperm.xlu1 %11198, %v1439_v10  }
  0x8f   : > { %1236 = vmatmul.mubr.bf16.gmra.mrb[24].mxu1 %v11219_v56 }
  0x90   : > { %1243 = vmatprep.mubr.bf16.mxu1 %v11220_v58  ;;  %1498 = vperm.xlu0 %11197, %v1440_v12  }
  0x92   : > { %1503 = vperm.xlu1 %11198, %v1441_v14  }
  0x94   : > { %1508 = vperm.xlu0 %11197, %v1442_v15  }
  0x96   : > { %1513 = vperm.xlu1 %11198, %v1443_v16  }
  0x97   : > { %1244 = vmatmul.mubr.bf16.gmra.mrb[28].mxu1 %v11222_v62 }
  0x98   : > { %1251 = vmatprep.mubr.bf16.mxu1 %v11223_v1 }
  0x9f   : > { %1252 = vmatmul.mubr.bf16.gmra.mrb[32].mxu1 %v11225_v5 }
  0xa0   : > { %1259 = vmatprep.mubr.bf16.mxu1 %v11226_v7 }
  0xa7   : > { %1260 = vmatmul.mubr.bf16.gmra.mrb[36].mxu1 %v11228_v11 }
  0xa8   : > { %1267 = vmatprep.mubr.bf16.mxu1 %v11229_v13 }
  0xaf   : > { %1268 = vmatmul.mubr.bf16.gmra.mrb[40].mxu1 %v11231_v17 }
  0xb0   : > { %1275 = vmatprep.mubr.bf16.mxu1 %v11232_v18 }
  0xb7   : > { %1276 = vmatmul.mubr.bf16.gmra.mrb[44].mxu1 %v11234_v19 }
  0xb8   : > { %1283 = vmatprep.mubr.bf16.mxu1 %v11235_v20 }
  0xbf   : > { %1284 = vmatmul.mubr.bf16.gmra.mrb[48].mxu1 %v11237_v21 }
  0xc0   : > { %1291 = vmatprep.mubr.bf16.mxu1 %v11238_v22 }
  0xc7   : > { %1292 = vmatmul.mubr.bf16.gmra.mrb[52].mxu1 %v11240_v23  ;;  %v464_v37 = vpop.permute.xlu0 %463 }
  0xc8   : > { %1299 = vmatprep.mubr.bf16.mxu1 %v11241_v24 }
  0xc9   : > { %v474_v48 = vpop.permute.xlu1 %473 }
  0xcb   : > { %v469_v43 = vpop.permute.xlu0 %468 }
  0xcd   : > { %v479_v62 = vpop.permute.xlu1 %478 }
  0xcf   : > { %1300 = vmatmul.mubr.bf16.gmra.mrb[56].mxu1 %v11243_v25  ;;  %v484_v16 = vpop.permute.xlu0 %483 }
  0xd0   : > { %1307 = vmatprep.mubr.bf16.mxu1 %v11244_v26 }
  0xd1   : > { %v489_v18 = vpop.permute.xlu1 %488 }
  0xd7   : > { %1308 = vmatmul.mubr.bf16.gmra.mrb[60].mxu1 %v11246_v27 }
 0x118   : > { %v10776_v28 = vpop.f32.mrb[0].mxu0 }
 0x119   : > { %v788_v29 = vpop.f32.mrb[1].mxu0  ;;  %v12486_v50 = vadd.f32 %v10776_v28, %v469_v43  ;;  %v499_v43 = vpop.permute.xlu1 %498 }
 0x11a   : > { %v12488_v51 = vadd.f32 %v788_v29, %v464_v37 }
 0x11b   : > { %16886 = vst [vmem:[#allocation8_spill] sm:$0xff] %v12486_v50 }
 0x11c   : > { %v10779_v30 = vpop.f32.mrb[2].mxu0  ;;  %16887 = vst [vmem:[#allocation9_spill] sm:$0xff] %v12488_v51 }
 0x11d   : > { %v798_v31 = vpop.f32.mrb[3].mxu0  ;;  %v12509_v6 = vadd.f32 %v10779_v30, %v479_v62 }
 0x11e   : > { %v12511_v7 = vadd.f32 %v798_v31, %v474_v48 }
 0x11f   : > { %16890 = vst [vmem:[#allocation12_spill] sm:$0xff] %v12509_v6 }
 0x120   : > { %v10782_v32 = vpop.f32.mrb[4].mxu0  ;;  %16891 = vst [vmem:[#allocation13_spill] sm:$0xff] %v12511_v7 }
 0x121   : > { %v808_v33 = vpop.f32.mrb[5].mxu0  ;;  %v12530_v25 = vadd.f32 %v10782_v32, %v489_v18 }
 0x122   : > { %v12532_v26 = vadd.f32 %v808_v33, %v484_v16  ;;  %v494_v33 = vpop.permute.xlu0 %493 }
 0x123   : > { %16892 = vst [vmem:[#allocation14_spill] sm:$0xff] %v12530_v25 }
 0x124   : > { %v12472_v34 = vpop.f32.mrb[6].mxu0  ;;  %16893 = vst [vmem:[#allocation15_spill] sm:$0xff] %v12532_v26 }
 0x125   : > { %v12474_v35 = vpop.f32.mrb[7].mxu0  ;;  %v12552_v54 = vadd.f32 %v12472_v34, %v499_v43 }
 0x127   : > { %16896 = vst [vmem:[#allocation18_spill] sm:$0xff] %v12552_v54 }
 0x128   : > { %v12476_v36 = vpop.f32.mrb[8].mxu0 }
 0x129   : > { %v12478_v38 = vpop.f32.mrb[9].mxu0 }
 0x12c   : > { %v12480_v39 = vpop.f32.mrb[10].mxu0 }
 0x12d   : > { %v12482_v41 = vpop.f32.mrb[11].mxu0 }
 0x130   : > { %v12484_v47 = vpop.f32.mrb[12].mxu0 }
 0x131   : > { %v12490_v53 = vpop.f32.mrb[13].mxu0 }
 0x132   : > { %v10084_v40 = vpop.f32.mrb[0].mxu1 }
 0x133   : > { %v10085_v42 = vpop.f32.mrb[1].mxu1 }
 0x134   : > { %v10086_v44 = vadd.f32 %v10085_v42, %v10084_v40  ;;  %v10087_v45 = vpop.f32.mrb[2].mxu1  ;;  %v12495_v56 = vpop.f32.mrb[14].mxu0 }
 0x135   : > { %v10088_v46 = vpop.f32.mrb[3].mxu1  ;;  %v12503_v60 = vpop.f32.mrb[15].mxu0 }
 0x136   : > { %v1316_v49 = vmax.f32 %v10086_v44, 0.0  ;;  %v10089_v52 = vadd.f32 %v10088_v46, %v10087_v45 }
 0x138   : > { %v1317_v55 = vmax.f32 %v10089_v52, 0.0  ;;  %v12498_v57 = vadd.f32 %v1316_v49, %v12488_v51  ;;  %v12507_v4 = vpop.f32.mrb[16].mxu0 }
 0x139   : > { %v12513_v9 = vpop.f32.mrb[17].mxu0 }
 0x13a   : > { %16888 = vst [vmem:[#allocation10_spill] sm:$0xff] %v12498_v57  ;;  %v12501_v58 = vadd.f32 %v1317_v55, %v12486_v50  ;;  %v10090_v59 = vpop.f32.mrb[4].mxu1  ;;  %v12555_v55 = vadd.f32 %v12474_v35, %v494_v33  ;;  %v504_v35 = vpop.permute.xlu0 %503 }
 0x13b   : > { %v10091_v61 = vpop.f32.mrb[5].mxu1 }
 0x13c   : > { %16889 = vst [vmem:[#allocation11_spill] sm:$0xff] %v12501_v58  ;;  %v10092_v63 = vadd.f32 %v10091_v61, %v10090_v59  ;;  %v10093_v1 = vpop.f32.mrb[6].mxu1  ;;  %v1380_v2 = vpack.c.bf16 %v12501_v58, %v12498_v57  ;;  %v12516_v11 = vpop.f32.mrb[18].mxu0  ;;  %16897 = vst [vmem:[#allocation19_spill] sm:$0xff] %v12555_v55  ;;  %v2697_v57 = vld [vmem:[%s16570_s8 + $0xb0] sm:$0xff] }
 0x13d   : > { %v10094_v3 = vpop.f32.mrb[7].mxu1  ;;  %v12524_v15 = vpop.f32.mrb[19].mxu0 }
 0x13e   : > { %v1318_v5 = vmax.f32 %v10092_v63, 0.0  ;;  %v10095_v8 = vadd.f32 %v10094_v3, %v10093_v1  ;;  %1877 = vmatpush1.bf16.msra.mxu0 %v1380_v2  ;;  %v514_v43 = vpop.permute.xlu0 %513 }
 0x13f   : > { %1878 = vmatprep.subr.bf16.mxu0 %v16575_v0 }
 0x140   : > { %v1319_v10 = vmax.f32 %v10095_v8, 0.0  ;;  %v12519_v12 = vadd.f32 %v1318_v5, %v12511_v7  ;;  %v12528_v23 = vpop.f32.mrb[20].mxu0  ;;  %v509_v8 = vpop.permute.xlu1 %508 }
 0x141   : > { %v12534_v28 = vpop.f32.mrb[21].mxu0 }
 0x142   : > { %v12522_v13 = vadd.f32 %v1319_v10, %v12509_v6  ;;  %v10096_v14 = vpop.f32.mrb[8].mxu1 }
 0x143   : > { %v10097_v17 = vpop.f32.mrb[9].mxu1 }
 0x144   : > { %v10098_v19 = vadd.f32 %v10097_v17, %v10096_v14  ;;  %v10099_v20 = vpop.f32.mrb[10].mxu1  ;;  %v1381_v21 = vpack.c.bf16 %v12522_v13, %v12519_v12  ;;  %v12537_v30 = vpop.f32.mrb[22].mxu0 }
 0x145   : > { %v10100_v22 = vpop.f32.mrb[11].mxu1  ;;  %v12545_v32 = vpop.f32.mrb[23].mxu0 }
 0x146   : > { %v1320_v24 = vmax.f32 %v10098_v19, 0.0  ;;  %v10101_v27 = vadd.f32 %v10100_v22, %v10099_v20  ;;  %1879 = vmatpush1.bf16.msra.mxu0 %v1381_v21  ;;  %v12575_v20 = vadd.f32 %v12476_v36, %v509_v8  ;;  %v12578_v21 = vadd.f32 %v12478_v38, %v504_v35 }
 0x147   : > { %1880 = vmatprep.subr.bf16.mxu0 %v16575_v0 }
 0x148   : > { %v1321_v29 = vmax.f32 %v10101_v27, 0.0  ;;  %v12540_v31 = vadd.f32 %v1320_v24, %v12532_v26  ;;  %v12549_v49 = vpop.f32.mrb[24].mxu0  ;;  %16900 = vst [vmem:[#allocation22_spill] sm:$0xff] %v12575_v20  ;;  %16901 = vst [vmem:[#allocation23_spill] sm:$0xff] %v12578_v21 }
 0x149   : > { %v12557_v61 = vpop.f32.mrb[25].mxu0 }
 0x14a   : > { %16894 = vst [vmem:[#allocation16_spill] sm:$0xff] %v12540_v31  ;;  %v12543_v37 = vadd.f32 %v1321_v29, %v12530_v25  ;;  %v10102_v40 = vpop.f32.mrb[12].mxu1 }
 0x14b   : > { %v10103_v42 = vpop.f32.mrb[13].mxu1 }
 0x14c   : > { %16895 = vst [vmem:[#allocation17_spill] sm:$0xff] %v12543_v37  ;;  %v10104_v44 = vadd.f32 %v10103_v42, %v10102_v40  ;;  %v10105_v45 = vpop.f32.mrb[14].mxu1  ;;  %v1382_v46 = vpack.c.bf16 %v12543_v37, %v12540_v31  ;;  %v12560_v63 = vpop.f32.mrb[26].mxu0 }
 0x14d   : > { %v10106_v48 = vpop.f32.mrb[15].mxu1  ;;  %v12568_v3 = vpop.f32.mrb[27].mxu0 }
 0x14e   : > { %v1322_v52 = vmax.f32 %v10104_v44, 0.0  ;;  %v10107_v59 = vadd.f32 %v10106_v48, %v10105_v45  ;;  %1881 = vmatpush1.bf16.msra.mxu0 %v1382_v46  ;;  %v519_v48 = vpop.permute.xlu1 %518 }
 0x14f   : > { %1882 = vmatprep.subr.bf16.mxu0 %v16575_v0 }
 0x150   : > { %v1323_v62 = vmax.f32 %v10107_v59, 0.0  ;;  %v12563_v1 = vadd.f32 %v1322_v52, %v12555_v55  ;;  %v12572_v18 = vpop.f32.mrb[28].mxu0  ;;  %v12596_v59 = vadd.f32 %v12480_v39, %v519_v48  ;;  %v1447_v55 = vld [vmem:[%s16568_s6 + $0x58] sm:$0xff] }
 0x151   : > { %v12580_v24 = vpop.f32.mrb[29].mxu0 }
 0x152   : > { %16898 = vst [vmem:[#allocation20_spill] sm:$0xff] %v12563_v1  ;;  %v12566_v2 = vadd.f32 %v1323_v62, %v12552_v54  ;;  %v10108_v34 = vpop.f32.mrb[16].mxu1  ;;  %16904 = vst [vmem:[#allocation26_spill] sm:$0xff] %v12596_v59  ;;  %v12599_v62 = vadd.f32 %v12482_v41, %v514_v43  ;;  %v11304_v54 = vld [vmem:[%s16567_s5 + $0x134] ss:$8 sps:$4 sm:$0xff]  }
 0x153   : > { %v10109_v5 = vpop.f32.mrb[17].mxu1 }
 0x154   : > { %16899 = vst [vmem:[#allocation21_spill] sm:$0xff] %v12566_v2  ;;  %v10110_v10 = vadd.f32 %v10109_v5, %v10108_v34  ;;  %v10111_v14 = vpop.f32.mrb[18].mxu1  ;;  %v1383_v16 = vpack.c.bf16 %v12566_v2, %v12563_v1  ;;  %v12583_v29 = vpop.f32.mrb[30].mxu0  ;;  %16905 = vst [vmem:[#allocation27_spill] sm:$0xff] %v12599_v62 }
 0x155   : > { %v10112_v17 = vpop.f32.mrb[19].mxu1  ;;  %v12591_v42 = vpop.f32.mrb[31].mxu0 }
 0x156   : > { %v1324_v19 = vmax.f32 %v10110_v10, 0.0  ;;  %v10113_v22 = vadd.f32 %v10112_v17, %v10111_v14  ;;  %1883 = vmatpush1.bf16.msra.mxu0 %v1383_v16  ;;  %v524_v17 = vpop.permute.xlu0 %523 }
 0x157   : > { %1884 = vmatprep.subr.bf16.mxu0 %v16575_v0 }
 0x158   : > { %v1325_v27 = vmax.f32 %v10113_v22, 0.0  ;;  %v12586_v40 = vadd.f32 %v1324_v19, %v12578_v21  ;;  %v529_v22 = vpop.permute.xlu1 %528 }
 0x15a   : > { %16902 = vst [vmem:[#allocation24_spill] sm:$0xff] %v12586_v40  ;;  %v12589_v33 = vadd.f32 %v1325_v27, %v12575_v20  ;;  %v10114_v36 = vpop.f32.mrb[20].mxu1 }
 0x15b   : > { %v10115_v38 = vpop.f32.mrb[21].mxu1 }
 0x15c   : > { %16903 = vst [vmem:[#allocation25_spill] sm:$0xff] %v12589_v33  ;;  %v10116_v44 = vadd.f32 %v10115_v38, %v10114_v36  ;;  %v10117_v45 = vpop.f32.mrb[22].mxu1  ;;  %v1384_v46 = vpack.c.bf16 %v12589_v33, %v12586_v40  ;;  %v12611_v36 = vadd.f32 %v12484_v47, %v529_v22  ;;  %v12614_v38 = vadd.f32 %v12490_v53, %v524_v17 }
 0x15d   : > { %v10118_v52 = vpop.f32.mrb[23].mxu1 }
 0x15e   : > { %v1326_v34 = vmax.f32 %v10116_v44, 0.0  ;;  %v10119_v35 = vadd.f32 %v10118_v52, %v10117_v45  ;;  %1885 = vmatpush1.bf16.msra.mxu0 %v1384_v46  ;;  %16908 = vst [vmem:[#allocation30_spill] sm:$0xff] %v12611_v36  ;;  %16909 = vst [vmem:[#allocation31_spill] sm:$0xff] %v12614_v38 }
 0x15f   : > { %1886 = vmatprep.subr.bf16.mxu0 %v16575_v0 }
 0x160   : > { %v1327_v5 = vmax.f32 %v10119_v35, 0.0  ;;  %v12603_v8 = vadd.f32 %v1326_v34, %v12599_v62  ;;  %v534_v35 = vpop.permute.xlu0 %533  ;;  %v1445_v62 = vld [vmem:[%s16568_s6 + $0x48] sm:$0xff] }
 0x162   : > { %16906 = vst [vmem:[#allocation28_spill] sm:$0xff] %v12603_v8  ;;  %v12606_v10 = vadd.f32 %v1327_v5, %v12596_v59  ;;  %v10120_v14 = vpop.f32.mrb[24].mxu1  ;;  %v11297_v59 = vld [vmem:[%s16567_s5 + $0x100] ss:$8 sps:$4 sm:$0xff]  }
 0x163   : > { %v10121_v16 = vpop.f32.mrb[25].mxu1 }
 0x164   : > { %16907 = vst [vmem:[#allocation29_spill] sm:$0xff] %v12606_v10  ;;  %v10122_v39 = vadd.f32 %v10121_v16, %v10120_v14  ;;  %v10123_v19 = vpop.f32.mrb[26].mxu1  ;;  %v1385_v41 = vpack.c.bf16 %v12606_v10, %v12603_v8  ;;  %v539_v14 = vpop.permute.xlu1 %538  ;;  %v2692_v10 = vld [vmem:[%s16570_s8 + $0x88] sm:$0xff] }
 0x165   : > { %v10124_v27 = vpop.f32.mrb[27].mxu1  ;;  %v12626_v17 = vadd.f32 %v12495_v56, %v539_v14 }
 0x166   : > { %v1328_v43 = vmax.f32 %v10122_v39, 0.0  ;;  %v10125_v44 = vadd.f32 %v10124_v27, %v10123_v19  ;;  %1887 = vmatpush1.bf16.msra.mxu0 %v1385_v41  ;;  %v12629_v39 = vadd.f32 %v12503_v60, %v534_v35 }
 0x167   : > { %1888 = vmatprep.subr.bf16.mxu0 %v16575_v0  ;;  %16912 = vst [vmem:[#allocation34_spill] sm:$0xff] %v12626_v17 }
 0x168   : > { %v1329_v45 = vmax.f32 %v10125_v44, 0.0  ;;  %v12618_v46 = vadd.f32 %v1328_v43, %v12614_v38  ;;  %16913 = vst [vmem:[#allocation35_spill] sm:$0xff] %v12629_v39  ;;  %v11295_v38 = vld [vmem:[%s16567_s5 + $0x104] ss:$8 sps:$4 sm:$0xff]  }
 0x16a   : > { %16910 = vst [vmem:[#allocation32_spill] sm:$0xff] %v12618_v46  ;;  %v12621_v48 = vadd.f32 %v1329_v45, %v12611_v36  ;;  %v10126_v52 = vpop.f32.mrb[28].mxu1 }
 0x16b   : > { %v10127_v34 = vpop.f32.mrb[29].mxu1 }
 0x16c   : > { %16911 = vst [vmem:[#allocation33_spill] sm:$0xff] %v12621_v48  ;;  %v10128_v47 = vadd.f32 %v10127_v34, %v10126_v52  ;;  %v10129_v5 = vpop.f32.mrb[30].mxu1  ;;  %v1386_v53 = vpack.c.bf16 %v12621_v48, %v12618_v46 }
 0x16d   : > { %v10130_v16 = vpop.f32.mrb[31].mxu1 }
 0x16e   : > { %v1330_v19 = vmax.f32 %v10128_v47, 0.0  ;;  %v10131_v41 = vadd.f32 %v10130_v16, %v10129_v5  ;;  %1889 = vmatpush1.bf16.msra.mxu0 %v1386_v53  ;;  %v544_v5 = vpop.permute.xlu0 %543  ;;  %v549_v53 = vpop.permute.xlu1 %548 }
 0x16f   : > { %1890 = vmatprep.subr.bf16.mxu0 %v16575_v0  ;;  %v12642_v14 = vadd.f32 %v12507_v4, %v549_v53  ;;  %v12645_v16 = vadd.f32 %v12513_v9, %v544_v5 }
 0x170   : > { %v1331_v22 = vmax.f32 %v10131_v41, 0.0  ;;  %v12633_v27 = vadd.f32 %v1330_v19, %v12629_v39 }
 0x171   : > { %16916 = vst [vmem:[#allocation38_spill] sm:$0xff] %v12642_v14  ;;  %16917 = vst [vmem:[#allocation39_spill] sm:$0xff] %v12645_v16 }
 0x172   : > { %16914 = vst [vmem:[#allocation36_spill] sm:$0xff] %v12633_v27  ;;  %v12636_v43 = vadd.f32 %v1331_v22, %v12626_v17  ;;  %v10132_v44 = vpop.f32.mrb[32].mxu1  ;;  %v554_v9 = vpop.permute.xlu0 %553 }
 0x173   : > { %v10133_v45 = vpop.f32.mrb[33].mxu1  ;;  %v559_v5 = vpop.permute.xlu1 %558 }
 0x174   : > { %16915 = vst [vmem:[#allocation37_spill] sm:$0xff] %v12636_v43  ;;  %v10134_v52 = vadd.f32 %v10133_v45, %v10132_v44  ;;  %v10135_v56 = vpop.f32.mrb[34].mxu1  ;;  %v1387_v60 = vpack.c.bf16 %v12636_v43, %v12633_v27 }
 0x175   : > { %v10136_v34 = vpop.f32.mrb[35].mxu1 }
 0x176   : > { %v1332_v35 = vmax.f32 %v10134_v52, 0.0  ;;  %v10137_v47 = vadd.f32 %v10136_v34, %v10135_v56  ;;  %1891 = vmatpush1.bf16.msra.mxu0 %v1387_v60 }
 0x177   : > { %1892 = vmatprep.subr.bf16.mxu0 %v16575_v0 }
 0x178   : > { %v1333_v19 = vmax.f32 %v10137_v47, 0.0  ;;  %v12648_v41 = vadd.f32 %v1332_v35, %v12645_v16  ;;  %v12657_v35 = vadd.f32 %v12516_v11, %v559_v5  ;;  %v12660_v47 = vadd.f32 %v12524_v15, %v554_v9  ;;  %v564_v15 = vpop.permute.xlu0 %563  ;;  %v569_v9 = vpop.permute.xlu1 %568 }
 0x17a   : > { %16918 = vst [vmem:[#allocation40_spill] sm:$0xff] %v12648_v41  ;;  %v12651_v22 = vadd.f32 %v1333_v19, %v12642_v14  ;;  %v10138_v44 = vpop.f32.mrb[36].mxu1  ;;  %16920 = vst [vmem:[#allocation42_spill] sm:$0xff] %v12657_v35 }
 0x17b   : > { %v10139_v45 = vpop.f32.mrb[37].mxu1  ;;  %16921 = vst [vmem:[#allocation43_spill] sm:$0xff] %v12660_v47 }
 0x17c   : > { %16919 = vst [vmem:[#allocation41_spill] sm:$0xff] %v12651_v22  ;;  %v10140_v52 = vadd.f32 %v10139_v45, %v10138_v44  ;;  %v10141_v56 = vpop.f32.mrb[38].mxu1  ;;  %v1388_v60 = vpack.c.bf16 %v12651_v22, %v12648_v41  ;;  %v1469_v22 = vld [vmem:[%s16568_s6 + $0x108] sm:$0xff] }
 0x17d   : > { %v10142_v34 = vpop.f32.mrb[39].mxu1 }
 0x17e   : > { %v1334_v4 = vmax.f32 %v10140_v52, 0.0  ;;  %v10143_v53 = vadd.f32 %v10142_v34, %v10141_v56  ;;  %1893 = vmatpush1.bf16.msra.mxu0 %v1388_v60 }
 0x17f   : > { %1894 = vmatprep.subr.bf16.mxu0 %v16575_v0 }
 0x180   : > { %v1335_v19 = vmax.f32 %v10143_v53, 0.0  ;;  %v12663_v44 = vadd.f32 %v1334_v4, %v12660_v47  ;;  %v16924_v53 = vmov 0   ;;  %v12672_v4 = vadd.f32 %v12528_v23, %v569_v9 }
 0x182   : > { %16922 = vst [vmem:[#allocation44_spill] sm:$0xff] %v12663_v44  ;;  %v12666_v45 = vadd.f32 %v1335_v19, %v12657_v35  ;;  %v10144_v52 = vpop.f32.mrb[40].mxu1  ;;  %16925 = vst [vmem:[#allocation46_spill] sm:$0xff] %v12672_v4  ;;  %v12675_v19 = vadd.f32 %v12534_v28, %v564_v15  ;;  %v574_v28 = vpop.permute.xlu0 %573 }
 0x183   : > { %v10145_v56 = vpop.f32.mrb[41].mxu1  ;;  %v579_v15 = vpop.permute.xlu1 %578 }
 0x184   : > { %16923 = vst [vmem:[#allocation45_spill] sm:$0xff] %v12666_v45  ;;  %v10146_v60 = vadd.f32 %v10145_v56, %v10144_v52  ;;  %v10147_v34 = vpop.f32.mrb[42].mxu1  ;;  %v1389_v0 = vpack.c.bf16 %v12666_v45, %v12663_v44  ;;  %16926 = vst [vmem:[#allocation47_spill] sm:$0xff] %v12675_v19 }
 0x185   : > { %v10148_v14 = vpop.f32.mrb[43].mxu1 }
 0x186   : > { %v1336_v11 = vmax.f32 %v10146_v60, 0.0  ;;  %v10149_v5 = vadd.f32 %v10148_v14, %v10147_v34  ;;  %1895 = vmatpush1.bf16.msra.mxu0 %v1389_v0 }
 0x187   : > { %1896 = vmatprep.subr.bf16.mxu0 %v16924_v53 }
 0x188   : > { %v1337_v35 = vmax.f32 %v10149_v5, 0.0  ;;  %v12678_v52 = vadd.f32 %v1336_v11, %v12675_v19  ;;  %v12687_v11 = vadd.f32 %v12537_v30, %v579_v15 }
 0x18a   : > { %16927 = vst [vmem:[#allocation48_spill] sm:$0xff] %v12678_v52  ;;  %v12681_v56 = vadd.f32 %v1337_v35, %v12672_v4  ;;  %v10150_v60 = vpop.f32.mrb[44].mxu1  ;;  %16929 = vst [vmem:[#allocation50_spill] sm:$0xff] %v12687_v11  ;;  %v12690_v35 = vadd.f32 %v12545_v32, %v574_v28  ;;  %v584_v32 = vpop.permute.xlu0 %583 }
 0x18b   : > { %v10151_v14 = vpop.f32.mrb[45].mxu1  ;;  %v589_v28 = vpop.permute.xlu1 %588 }
 0x18c   : > { %16928 = vst [vmem:[#allocation49_spill] sm:$0xff] %v12681_v56  ;;  %v10152_v0 = vadd.f32 %v10151_v14, %v10150_v60  ;;  %v10153_v34 = vpop.f32.mrb[46].mxu1  ;;  %v1390_v47 = vpack.c.bf16 %v12681_v56, %v12678_v52  ;;  %16930 = vst [vmem:[#allocation51_spill] sm:$0xff] %v12690_v35  ;;  %v1461_v56 = vld [vmem:[%s16568_s6 + $0xc8] sm:$0xff]  ;;  %v1463_v52 = vld [vmem:[%s16568_s6 + $0xd8] sm:$0xff] }
 0x18d   : > { %v10154_v16 = vpop.f32.mrb[47].mxu1 }
 0x18e   : > { %v1338_v23 = vmax.f32 %v10152_v0, 0.0  ;;  %v10155_v9 = vadd.f32 %v10154_v16, %v10153_v34  ;;  %1897 = vmatpush1.bf16.msra.mxu0 %v1390_v47 }
 0x18f   : > { %1898 = vmatprep.subr.bf16.mxu0 %v16924_v53 }
 0x190   : > { %v1339_v5 = vmax.f32 %v10155_v9, 0.0  ;;  %v12693_v60 = vadd.f32 %v1338_v23, %v12690_v35  ;;  %v12702_v23 = vadd.f32 %v12549_v49, %v589_v28  ;;  %v12705_v9 = vadd.f32 %v12557_v61, %v584_v32  ;;  %v594_v61 = vpop.permute.xlu0 %593  ;;  %v599_v32 = vpop.permute.xlu1 %598 }
 0x192   : > { %16931 = vst [vmem:[#allocation52_spill] sm:$0xff] %v12693_v60  ;;  %v12696_v14 = vadd.f32 %v1339_v5, %v12687_v11  ;;  %v10156_v0 = vpop.f32.mrb[48].mxu1  ;;  %16933 = vst [vmem:[#allocation54_spill] sm:$0xff] %v12702_v23 }
 0x193   : > { %v10157_v16 = vpop.f32.mrb[49].mxu1  ;;  %16934 = vst [vmem:[#allocation55_spill] sm:$0xff] %v12705_v9 }
 0x194   : > { %16932 = vst [vmem:[#allocation53_spill] sm:$0xff] %v12696_v14  ;;  %v10158_v47 = vadd.f32 %v10157_v16, %v10156_v0  ;;  %v10159_v34 = vpop.f32.mrb[50].mxu1  ;;  %v1391_v4 = vpack.c.bf16 %v12696_v14, %v12693_v60  ;;  %v1465_v14 = vld [vmem:[%s16568_s6 + $0xe8] sm:$0xff]  ;;  %v1467_v60 = vld [vmem:[%s16568_s6 + $0xf8] sm:$0xff] }
 0x195   : > { %v10160_v19 = vpop.f32.mrb[51].mxu1 }
 0x196   : > { %v1340_v30 = vmax.f32 %v10158_v47, 0.0  ;;  %v10161_v15 = vadd.f32 %v10160_v19, %v10159_v34  ;;  %1899 = vmatpush1.bf16.msra.mxu0 %v1391_v4 }
 0x197   : > { %1900 = vmatprep.subr.bf16.mxu0 %v16924_v53 }
 0x198   : > { %v1341_v5 = vmax.f32 %v10161_v15, 0.0  ;;  %v12708_v0 = vadd.f32 %v1340_v30, %v12705_v9  ;;  %v12717_v30 = vadd.f32 %v12560_v63, %v599_v32  ;;  %v12720_v15 = vadd.f32 %v12568_v3, %v594_v61  ;;  %v604_v3 = vpop.permute.xlu0 %603  ;;  %v609_v61 = vpop.permute.xlu1 %608 }
 0x19a   : > { %16935 = vst [vmem:[#allocation56_spill] sm:$0xff] %v12708_v0  ;;  %v12711_v16 = vadd.f32 %v1341_v5, %v12702_v23  ;;  %v10162_v47 = vpop.f32.mrb[52].mxu1  ;;  %16937 = vst [vmem:[#allocation58_spill] sm:$0xff] %v12717_v30 }
 0x19b   : > { %v10163_v19 = vpop.f32.mrb[53].mxu1  ;;  %16938 = vst [vmem:[#allocation59_spill] sm:$0xff] %v12720_v15 }
 0x19c   : > { %16936 = vst [vmem:[#allocation57_spill] sm:$0xff] %v12711_v16  ;;  %v10164_v4 = vadd.f32 %v10163_v19, %v10162_v47  ;;  %v10165_v34 = vpop.f32.mrb[54].mxu1  ;;  %v1392_v11 = vpack.c.bf16 %v12711_v16, %v12708_v0  ;;  %v1455_v0 = vld [vmem:[%s16568_s6 + $0x98] sm:$0xff] }
 0x19d   : > { %v10166_v35 = vpop.f32.mrb[55].mxu1 }
 0x19e   : > { %v1342_v49 = vmax.f32 %v10164_v4, 0.0  ;;  %v10167_v28 = vadd.f32 %v10166_v35, %v10165_v34  ;;  %1901 = vmatpush1.bf16.msra.mxu0 %v1392_v11 }
 0x19f   : > { %1902 = vmatprep.subr.bf16.mxu0 %v16924_v53 }
 0x1a0   : > { %v1343_v5 = vmax.f32 %v10167_v28, 0.0  ;;  %v12723_v47 = vadd.f32 %v1342_v49, %v12720_v15  ;;  %v12732_v49 = vadd.f32 %v12572_v18, %v609_v61  ;;  %v12735_v28 = vadd.f32 %v12580_v24, %v604_v3  ;;  %v614_v24 = vpop.permute.xlu0 %613  ;;  %v619_v3 = vpop.permute.xlu1 %618 }
 0x1a2   : > { %16939 = vst [vmem:[#allocation60_spill] sm:$0xff] %v12723_v47  ;;  %v12726_v19 = vadd.f32 %v1343_v5, %v12717_v30  ;;  %v10168_v4 = vpop.f32.mrb[56].mxu1  ;;  %16941 = vst [vmem:[#allocation62_spill] sm:$0xff] %v12732_v49 }
 0x1a3   : > { %v10169_v35 = vpop.f32.mrb[57].mxu1  ;;  %16942 = vst [vmem:[#allocation63_spill] sm:$0xff] %v12735_v28 }
 0x1a4   : > { %16940 = vst [vmem:[#allocation61_spill] sm:$0xff] %v12726_v19  ;;  %v10170_v11 = vadd.f32 %v10169_v35, %v10168_v4  ;;  %v10171_v34 = vpop.f32.mrb[58].mxu1  ;;  %v1393_v23 = vpack.c.bf16 %v12726_v19, %v12723_v47  ;;  %v1459_v47 = vld [vmem:[%s16568_s6 + $0xb8] sm:$0xff] }
 0x1a5   : > { %v10172_v9 = vpop.f32.mrb[59].mxu1 }
 0x1a6   : > { %v1344_v63 = vmax.f32 %v10170_v11, 0.0  ;;  %v10173_v32 = vadd.f32 %v10172_v9, %v10171_v34  ;;  %1903 = vmatpush1.bf16.msra.mxu0 %v1393_v23 }
 0x1a7   : > { %1904 = vmatprep.subr.bf16.mxu0 %v16924_v53 }
 0x1a8   : > { %v1345_v5 = vmax.f32 %v10173_v32, 0.0  ;;  %v12738_v4 = vadd.f32 %v1344_v63, %v12735_v28  ;;  %v12747_v63 = vadd.f32 %v12583_v29, %v619_v3  ;;  %v12750_v32 = vadd.f32 %v12591_v42, %v614_v24  ;;  %v11250_v29 = vld [vmem:[%s16567_s5 + $0x14] ss:$8 sps:$4 sm:$0xff]   ;;  %v11252_v42 = vld [vmem:[%s16567_s5 + $0x10] ss:$8 sps:$4 sm:$0xff]   ;;  %v1479_v3 = vpop.permute.xlu0 %1478 }
 0x1aa   : > { %16943 = vst [vmem:[#allocation64_spill] sm:$0xff] %v12738_v4  ;;  %v12741_v35 = vadd.f32 %v1345_v5, %v12732_v49  ;;  %v10174_v11 = vpop.f32.mrb[60].mxu1  ;;  %16945 = vst [vmem:[#allocation66_spill] sm:$0xff] %v12747_v63 }
 0x1ab   : > { %v10175_v9 = vpop.f32.mrb[61].mxu1  ;;  %16946 = vst [vmem:[#allocation67_spill] sm:$0xff] %v12750_v32 }
 0x1ac   : > { %16944 = vst [vmem:[#allocation65_spill] sm:$0xff] %v12741_v35  ;;  %v10176_v23 = vadd.f32 %v10175_v9, %v10174_v11  ;;  %v10177_v34 = vpop.f32.mrb[62].mxu1  ;;  %v1394_v30 = vpack.c.bf16 %v12741_v35, %v12738_v4 }
 0x1ad   : > { %v10178_v15 = vpop.f32.mrb[63].mxu1 }
 0x1ae   : > { %v1346_v18 = vmax.f32 %v10176_v23, 0.0  ;;  %v10179_v61 = vadd.f32 %v10178_v15, %v10177_v34  ;;  %1905 = vmatpush1.bf16.msra.mxu0 %v1394_v30  ;;  %v11247_v15 = vld [vmem:[%s16567_s5] ss:$8 sps:$4 sm:$0xff]   ;;  %v11253_v23 = vld [vmem:[%s16567_s5 + $0x24] ss:$8 sps:$4 sm:$0xff]  }
 0x1af   : > { %1906 = vmatprep.subr.bf16.mxu0 %v16924_v53  ;;  %v11255_v34 = vld [vmem:[%s16567_s5 + $0x20] ss:$8 sps:$4 sm:$0xff]  }
 0x1b0   : > { %v1347_v5 = vmax.f32 %v10179_v61, 0.0  ;;  %v12753_v11 = vadd.f32 %v1346_v18, %v12750_v32  ;;  %v11256_v18 = vld [vmem:[%s16567_s5 + $0x34] ss:$8 sps:$4 sm:$0xff]   ;;  %v11258_v61 = vld [vmem:[%s16567_s5 + $0x30] ss:$8 sps:$4 sm:$0xff]  }
 0x1b2   : > { %16947 = vst [vmem:[#allocation68_spill] sm:$0xff] %v12753_v11  ;;  %v12756_v9 = vadd.f32 %v1347_v5, %v12747_v63 }
 0x1b4   : > { %16948 = vst [vmem:[#allocation69_spill] sm:$0xff] %v12756_v9  ;;  %v1395_v30 = vpack.c.bf16 %v12756_v9, %v12753_v11  ;;  %v1451_v9 = vld [vmem:[%s16568_s6 + $0x78] sm:$0xff] }
 0x1b6   : > { %1907 = vmatpush1.bf16.msra.mxu0 %v1395_v30  ;;  %v1484_v30 = vpop.permute.xlu1 %1483 }
 0x1b9   : > { %1909 = vmatmul.mubr.bf16.vlgmr.msra.gmra.mrb[32].mxu0 %v11247_v15 }
 0x1ba   : > { %1916 = vmatprep.mubr.bf16.mxu0 %v11250_v29  ;;  %v1494_v49 = vpop.permute.xlu1 %1493 }
 0x1c1   : > { %1917 = vmatmul.mubr.bf16.gmra.mrb[36].mxu0 %v11252_v42 }
 0x1c2   : > { %1924 = vmatprep.mubr.bf16.mxu0 %v11253_v23 }
 0x1c9   : > { %1925 = vmatmul.mubr.bf16.gmra.mrb[40].mxu0 %v11255_v34  ;;  %v1489_v34 = vpop.permute.xlu0 %1488 }
 0x1ca   : > { %1932 = vmatprep.mubr.bf16.mxu0 %v11256_v18 }
 0x1d1   : > { %1933 = vmatmul.mubr.bf16.gmra.mrb[44].mxu0 %v11258_v61 }
 0x28c   : > { %v1910_v24 = vpop.f32.mrb[32].mxu0 }
 0x28d   : > { %v1912_v5 = vpop.f32.mrb[33].mxu0  ;;  %v1911_v29 = vadd.f32 %v1910_v24, %v1479_v3  ;;  %v1499_v24 = vpop.permute.xlu0 %1498 }
 0x28e   : > { %v1913_v15 = vpop.f32.mrb[34].mxu0 }
 0x28f   : > { %v1914_v42 = vadd.f32 %v1913_v15, %v1484_v30  ;;  %v1915_v23 = vpop.f32.mrb[35].mxu0  ;;  %v1504_v30 = vpop.permute.xlu1 %1503 }
 0x291   : > { %v2069_v63 = vpack.c.bf16 %v1914_v42, %v1911_v29 }
 0x293   : > { %2089 = vxpose.xlu0.c.b16.start [1/4] (short) %v2069_v63, 128  ;;  %10822 = vmatprep.subr.bf16.mxu1 %v2069_v63 }
 0x294   : > { %v1918_v32 = vpop.f32.mrb[36].mxu0  ;;  %10823 = vmatpush3.bf16.msra.mxu1 %v2069_v63 }
 0x295   : > { %v1920_v18 = vpop.f32.mrb[37].mxu0  ;;  %v1919_v17 = vadd.f32 %v1918_v32, %v1489_v34  ;;  %v1514_v32 = vpop.permute.xlu1 %1513 }
 0x296   : > { %v1921_v28 = vpop.f32.mrb[38].mxu0  ;;  %v11259_v18 = vld [vmem:[%s16567_s5 + $0x44] ss:$8 sps:$4 sm:$0xff]  }
 0x297   : > { %v1922_v39 = vadd.f32 %v1921_v28, %v1494_v49  ;;  %v1923_v61 = vpop.f32.mrb[39].mxu0  ;;  %1940 = vmatprep.mubr.bf16.mxu0 %v11259_v18  ;;  %v1509_v49 = vpop.permute.xlu0 %1508 }
 0x299   : > { %v2070_v36 = vpack.c.bf16 %v1922_v39, %v1919_v17  ;;  %v11261_v17 = vld [vmem:[%s16567_s5 + $0x40] ss:$8 sps:$4 sm:$0xff]  }
 0x29a   : > { %1941 = vmatmul.mubr.bf16.gmra.mrb[48].mxu0 %v11261_v17 }
 0x29b   : > { %2090 = vxpose.xlu0.c.b16.cont [2/4] (short) %v2070_v36, 128  ;;  %10824 = vmatprep.subr.bf16.mxu1 %v2070_v36 }
 0x29c   : > { %v1926_v5 = vpop.f32.mrb[40].mxu0  ;;  %10825 = vmatpush3.bf16.msra.mxu1 %v2070_v36  ;;  %v11262_v36 = vld [vmem:[%s16567_s5 + $0x54] ss:$8 sps:$4 sm:$0xff]  }
 0x29d   : > { %v1928_v3 = vpop.f32.mrb[41].mxu0  ;;  %v1927_v29 = vadd.f32 %v1926_v5, %v1499_v24  ;;  %1948 = vmatprep.mubr.bf16.mxu0 %v11262_v36 }
 0x29e   : > { %v1929_v15 = vpop.f32.mrb[42].mxu0 }
 0x29f   : > { %v1930_v42 = vadd.f32 %v1929_v15, %v1504_v30  ;;  %v1931_v23 = vpop.f32.mrb[43].mxu0  ;;  %v11264_v30 = vld [vmem:[%s16567_s5 + $0x50] ss:$8 sps:$4 sm:$0xff]  }
 0x2a1   : > { %v2071_v63 = vpack.c.bf16 %v1930_v42, %v1927_v29 }
 0x2a2   : > { %1949 = vmatmul.mubr.bf16.gmra.mrb[52].mxu0 %v11264_v30  ;;  %v11279_v30 = vld [vmem:[%s16567_s5 + $0xa0] ss:$8 sps:$4 sm:$0xff]  }
 0x2a3   : > { %2091 = vxpose.xlu0.c.b16.cont [3/4] (short) %v2071_v63, 128  ;;  %10826 = vmatprep.subr.bf16.mxu1 %v2071_v63 }
 0x2a4   : > { %v1934_v39 = vpop.f32.mrb[44].mxu0  ;;  %10827 = vmatpush3.bf16.msra.mxu1 %v2071_v63 }
 0x2a5   : > { %v1936_v28 = vpop.f32.mrb[45].mxu0  ;;  %v1935_v61 = vadd.f32 %v1934_v39, %v1509_v49  ;;  %v11265_v39 = vld [vmem:[%s16567_s5 + $0x64] ss:$8 sps:$4 sm:$0xff]   ;;  %v11267_v49 = vld [vmem:[%s16567_s5 + $0x60] ss:$8 sps:$4 sm:$0xff]  }
 0x2a6   : > { %v1937_v34 = vpop.f32.mrb[46].mxu0  ;;  %v11268_v28 = vld [vmem:[%s16567_s5 + $0x74] ss:$8 sps:$4 sm:$0xff]   ;;  %1956 = vmatprep.mubr.bf16.mxu0 %v11265_v39 }
 0x2a7   : > { %v1938_v5 = vadd.f32 %v1937_v34, %v1514_v32  ;;  %v1939_v24 = vpop.f32.mrb[47].mxu0  ;;  %v11270_v32 = vld [vmem:[%s16567_s5 + $0x70] ss:$8 sps:$4 sm:$0xff]   ;;  %v11271_v34 = vld [vmem:[%s16567_s5 + $0x84] ss:$8 sps:$4 sm:$0xff]  }
 0x2a8   : > { %v11276_v24 = vld [vmem:[%s16567_s5 + $0x90] ss:$8 sps:$4 sm:$0xff]  }
 0x2a9   : > { %v2072_v3 = vpack.c.bf16 %v1938_v5, %v1935_v61  ;;  %v11273_v61 = vld [vmem:[%s16567_s5 + $0x80] ss:$8 sps:$4 sm:$0xff]   ;;  %v11274_v5 = vld [vmem:[%s16567_s5 + $0x94] ss:$8 sps:$4 sm:$0xff]  }
 0x2aa   : > { %1957 = vmatmul.mubr.bf16.gmra.mrb[56].mxu0 %v11267_v49 }
 0x2ab   : > { %2092 = vxpose.xlu0.c.b16.end [4/4] (short) %v2072_v3, 128  ;;  %10828 = vmatprep.subr.bf16.mxu1 %v2072_v3 }
 0x2ac   : > { %10829 = vmatpush3.bf16.msra.mxu1 %v2072_v3  ;;  %1964 = vmatprep.mubr.bf16.mxu0 %v11268_v28  ;;  %v11277_v3 = vld [vmem:[%s16567_s5 + $0xa4] ss:$8 sps:$4 sm:$0xff]  }
 0x2b2   : > { %1965 = vmatmul.mubr.bf16.gmra.mrb[60].mxu0 %v11270_v32 }
 0x2b3   : > { %1972 = vmatprep.mubr.bf16.mxu0 %v11271_v34 }
 0x2ba   : > { %1973 = vmatmul.mubr.bf16.gmra.mrb[64].mxu0 %v11273_v61 }
 0x2bb   : > { %1980 = vmatprep.mubr.bf16.mxu0 %v11274_v5  ;;  %v11289_v5 = vld [vmem:[%s16567_s5 + $0xe4] ss:$8 sps:$4 sm:$0xff]  }
 0x2c2   : > { %1981 = vmatmul.mubr.bf16.gmra.mrb[68].mxu0 %v11276_v24 }
 0x2c3   : > { %1988 = vmatprep.mubr.bf16.mxu0 %v11277_v3  ;;  %v11291_v3 = vld [vmem:[%s16567_s5 + $0xe0] ss:$8 sps:$4 sm:$0xff]  }
 0x2ca   : > { %1989 = vmatmul.mubr.bf16.gmra.mrb[72].mxu0 %v11279_v30 }
 0x305   : > { %v2097_v15 = vpop.trf.xlu0 }
 0x306   : > { %10830 = vmatprep.mubr.msk.bf16.mxu1 %vm2105_vm2, %v2097_v15  ;;  %v11280_v15 = vld [vmem:[%s16567_s5 + $0xb4] ss:$8 sps:$4 sm:$0xff]  }
 0x307   : > { %1996 = vmatprep.mubr.bf16.mxu0 %v11280_v15 }
 0x309   : > { %v2098_v29 = vpop.trf.xlu0 }
 0x30a   : > { %10831 = vmatmul.mubr.msk.bf16.vlgmr.msra.gmra.mrb[64].mxu1 %vm2105_vm2, %v2098_v29  ;;  %v11282_v29 = vld [vmem:[%s16567_s5 + $0xb0] ss:$8 sps:$4 sm:$0xff]  }
 0x30b   : > { %1997 = vmatmul.mubr.bf16.gmra.mrb[76].mxu0 %v11282_v29 }
 0x30d   : > { %v2099_v42 = vpop.trf.xlu0 }
 0x30e   : > { %10834 = vmatprep.mubr.msk.bf16.mxu1 %vm2105_vm2, %v2099_v42  ;;  %v11283_v42 = vld [vmem:[%s16567_s5 + $0xc4] ss:$8 sps:$4 sm:$0xff]  }
 0x30f   : > { %2004 = vmatprep.mubr.bf16.mxu0 %v11283_v42  ;;  %v11292_v42 = vld [vmem:[%s16567_s5 + $0xf4] ss:$8 sps:$4 sm:$0xff]  }
 0x311   : > { %v2100_v23 = vpop.trf.xlu0 }
 0x312   : > { %10835 = vmatmul.mubr.msk.bf16.gmra.mrb[68].mxu1 %vm2105_vm2, %v2100_v23  ;;  %v11285_v23 = vld [vmem:[%s16567_s5 + $0xc0] ss:$8 sps:$4 sm:$0xff]  }
 0x313   : > { %2005 = vmatmul.mubr.bf16.gmra.mrb[80].mxu0 %v11285_v23 }
 0x315   : > { %v2101_v63 = vpop.trf.xlu0 }
 0x316   : > { %10838 = vmatprep.mubr.msk.bf16.mxu1 %vm2105_vm2, %v2101_v63  ;;  %v11286_v63 = vld [vmem:[%s16567_s5 + $0xd4] ss:$8 sps:$4 sm:$0xff]  }
 0x317   : > { %2012 = vmatprep.mubr.bf16.mxu0 %v11286_v63  ;;  %v11294_v63 = vld [vmem:[%s16567_s5 + $0xf0] ss:$8 sps:$4 sm:$0xff]  }
 0x319   : > { %v2102_v18 = vpop.trf.xlu0 }
 0x31a   : > { %10839 = vmatmul.mubr.msk.bf16.gmra.mrb[72].mxu1 %vm2105_vm2, %v2102_v18  ;;  %v11288_v18 = vld [vmem:[%s16567_s5 + $0xd0] ss:$8 sps:$4 sm:$0xff]  }
 0x31b   : > { %2013 = vmatmul.mubr.bf16.gmra.mrb[84].mxu0 %v11288_v18 }
 0x31c   : > { %2020 = vmatprep.mubr.bf16.mxu0 %v11289_v5 }
 0x31d   : > { %v2103_v17 = vpop.trf.xlu0 }
 0x31e   : > { %10842 = vmatprep.mubr.msk.bf16.mxu1 %vm2105_vm2, %v2103_v17 }
 0x321   : > { %v2104_v36 = vpop.trf.xlu0 }
 0x322   : > { %10843 = vmatmul.mubr.msk.bf16.gmra.mrb[76].mxu1 %vm2105_vm2, %v2104_v36 }
 0x323   : > { %2021 = vmatmul.mubr.bf16.gmra.mrb[88].mxu0 %v11291_v3 }
 0x324   : > { %2028 = vmatprep.mubr.bf16.mxu0 %v11292_v42  ;;  %v11298_v42 = vld [vmem:[%s16567_s5 + $0x114] ss:$8 sps:$4 sm:$0xff]  }
 0x32b   : > { %2029 = vmatmul.mubr.bf16.gmra.mrb[92].mxu0 %v11294_v63  ;;  %v11300_v63 = vld [vmem:[%s16567_s5 + $0x110] ss:$8 sps:$4 sm:$0xff]  }
 0x32c   : > { %2036 = vmatprep.mubr.bf16.mxu0 %v11295_v38  ;;  %v11303_v38 = vld [vmem:[%s16567_s5 + $0x120] ss:$8 sps:$4 sm:$0xff]  }
 0x333   : > { %2037 = vmatmul.mubr.bf16.gmra.mrb[96].mxu0 %v11297_v59  ;;  %v11301_v59 = vld [vmem:[%s16567_s5 + $0x124] ss:$8 sps:$4 sm:$0xff]  }
 0x334   : > { %2044 = vmatprep.mubr.bf16.mxu0 %v11298_v42 }
 0x33b   : > { %2045 = vmatmul.mubr.bf16.gmra.mrb[100].mxu0 %v11300_v63 }
 0x33c   : > { %2052 = vmatprep.mubr.bf16.mxu0 %v11301_v59  ;;  %v11306_v59 = vld [vmem:[%s16567_s5 + $0x130] ss:$8 sps:$4 sm:$0xff]  }
 0x343   : > { %2053 = vmatmul.mubr.bf16.gmra.mrb[104].mxu0 %v11303_v38  ;;  %v1444_v38 = vld [vmem:[%s16568_s6 + $0x40] sm:$0xff] }
 0x344   : > { %2060 = vmatprep.mubr.bf16.mxu0 %v11304_v54 }
 0x34b   : > { %2061 = vmatmul.mubr.bf16.gmra.mrb[108].mxu0 %v11306_v59 }
 0x36d   : > { %v12930_v20 = vpop.f32.mrb[48].mxu0 }
 0x36e   : > { %v1944_v42 = vpop.f32.mrb[49].mxu0 }
 0x36f   : > { %v12932_v63 = vpop.f32.mrb[50].mxu0 }
 0x370   : > { %v1947_v21 = vpop.f32.mrb[51].mxu0 }
 0x375   : > { %v12946_v21 = vpop.f32.mrb[52].mxu0 }
 0x376   : > { %v1952_v42 = vpop.f32.mrb[53].mxu0 }
 0x377   : > { %v12951_v25 = vpop.f32.mrb[54].mxu0 }
 0x378   : > { %v1955_v54 = vpop.f32.mrb[55].mxu0 }
 0x3dd   : > { %v12849_v17 = vpop.f32.mrb[64].mxu1 }
 0x3de   : > { %2231 = vmax.xlane.f32.xlu1 %v12849_v17  ;;  %v12852_v36 = vpop.f32.mrb[65].mxu1 }
 0x3df   : > { %v12854_v39 = vpop.f32.mrb[66].mxu1 }
 0x3e0   : > { %2233 = vmax.xlane.f32.xlu0 %v12854_v39  ;;  %v12857_v49 = vpop.f32.mrb[67].mxu1 }
 0x3e2   : > { %2227 = vmax.xlane.f32.xlu1 %v12852_v36 }
 0x3e5   : > { %v12860_v28 = vpop.f32.mrb[68].mxu1 }
 0x3e6   : > { %2229 = vmax.xlane.f32.xlu1 %v12857_v49  ;;  %v12863_v32 = vpop.f32.mrb[69].mxu1 }
 0x3e7   : > { %v12865_v34 = vpop.f32.mrb[70].mxu1 }
 0x3e8   : > { %v12867_v61 = vpop.f32.mrb[71].mxu1 }
 0x3ea   : > { %2239 = vmax.xlane.f32.xlu1 %v12860_v28 }
 0x3ed   : > { %v12873_v24 = vpop.f32.mrb[72].mxu1 }
 0x3ee   : > { %2235 = vmax.xlane.f32.xlu1 %v12863_v32  ;;  %v12879_v30 = vpop.f32.mrb[73].mxu1 }
 0x3ef   : > { %v12881_v15 = vpop.f32.mrb[74].mxu1 }
 0x3f0   : > { %2249 = vmax.xlane.f32.xlu0 %v12881_v15  ;;  %v12884_v29 = vpop.f32.mrb[75].mxu1 }
 0x3f2   : > { %2241 = vmax.xlane.f32.xlu1 %v12865_v34 }
 0x3f5   : > { %v12890_v23 = vpop.f32.mrb[76].mxu1 }
 0x3f6   : > { %2237 = vmax.xlane.f32.xlu1 %v12867_v61  ;;  %v12896_v18 = vpop.f32.mrb[77].mxu1 }
 0x3f7   : > { %v12898_v5 = vpop.f32.mrb[78].mxu1 }
 0x3f8   : > { %v12900_v3 = vpop.f32.mrb[79].mxu1 }
 0x3f9   : > { %2253 = vmax.xlane.f32.xlu0 %v12900_v3 }
 0x3fa   : > { %2247 = vmax.xlane.f32.xlu1 %v12873_v24 }
 0x3fd   : > { %2257 = vmax.xlane.f32.xlu0 %v12898_v5 }
 0x3fe   : > { %2243 = vmax.xlane.f32.xlu1 %v12879_v30 }
 0x402   : > { %2245 = vmax.xlane.f32.xlu1 %v12884_v29 }
 0x406   : > { %2255 = vmax.xlane.f32.xlu1 %v12890_v23 }
 0x40a   : > { %2251 = vmax.xlane.f32.xlu1 %v12896_v18 }
 0x413   : > { %1523 = vperm.xlu0 %11197, %v1445_v62   ;;  %v1446_v62 = vld [vmem:[%s16568_s6 + $0x50] sm:$0xff] }
 0x41b   : > { %1518 = vperm.xlu1 %11198, %v1444_v38  }
 0x41f   : > { %1528 = vperm.xlu1 %11198, %v1446_v62  }
 0x423   : > { %1533 = vperm.xlu1 %11198, %v1447_v55  }
 0x46b   : > { %v2232_v59 = vpop.xlane.xlu1 %2231 }
 0x46c   : > { %v2261_v26 = vsub.f32 %v12849_v17, %v2232_v59 }
 0x46d   : > { %v2234_v38 = vpop.xlane.xlu0 %2233 }
 0x46e   : > { %v2279_v6 = vmul.f32 1.442695, %v2261_v26  ;;  %v2262_v7 = vsub.f32 %v12854_v39, %v2234_v38 }
 0x46f   : > { %v2228_v50 = vpop.xlane.xlu1 %2227 }
 0x470   : > { %11679 = vpow2.f32 %v2279_v6  ;;  %v2281_v51 = vmul.f32 1.442695, %v2262_v7  ;;  %v2259_v62 = vsub.f32 %v12852_v36, %v2228_v50 }
 0x472   : > { %11681 = vpow2.f32 %v2281_v51  ;;  %v2275_v42 = vmul.f32 1.442695, %v2259_v62 }
 0x473   : > { %v2230_v35 = vpop.xlane.xlu1 %2229 }
 0x474   : > { %11683 = vpow2.f32 %v2275_v42  ;;  %v2260_v4 = vsub.f32 %v12857_v49, %v2230_v35 }
 0x476   : > { %v2277_v54 = vmul.f32 1.442695, %v2260_v4 }
 0x477   : > { %v2240_v55 = vpop.xlane.xlu1 %2239 }
 0x478   : > { %11685 = vpow2.f32 %v2277_v54  ;;  %v2265_v17 = vsub.f32 %v12860_v28, %v2240_v55 }
 0x47a   : > { %v12958_v59 = vpop.eup %11679  ;;  %v2287_v26 = vmul.f32 1.442695, %v2265_v17 }
 0x47b   : > { %v2236_v39 = vpop.xlane.xlu1 %2235  ;;  %2311 = vadd.xlane.f32.xlu1 %v12958_v59 }
 0x47c   : > { %v12961_v6 = vpop.eup %11681  ;;  %11687 = vpow2.f32 %v2287_v26  ;;  %v2263_v50 = vsub.f32 %v12863_v32, %v2236_v39 }
 0x47d   : > { %2313 = vadd.xlane.f32.xlu0 %v12961_v6  ;;  %v2250_v35 = vpop.xlane.xlu0 %2249 }
 0x47e   : > { %v12965_v51 = vpop.eup %11683  ;;  %v2283_v7 = vmul.f32 1.442695, %v2263_v50  ;;  %v2270_v38 = vsub.f32 %v12881_v15, %v2250_v35 }
 0x47f   : > { %v2242_v4 = vpop.xlane.xlu1 %2241  ;;  %2307 = vadd.xlane.f32.xlu1 %v12965_v51 }
 0x480   : > { %11689 = vpow2.f32 %v2283_v7  ;;  %v2266_v36 = vsub.f32 %v12865_v34, %v2242_v4  ;;  %v2297_v17 = vmul.f32 1.442695, %v2270_v38  ;;  %v12987_v38 = vpop.f32.mrb[56].mxu0 }
 0x482   : > { %v12969_v49 = vpop.eup %11685  ;;  %v2289_v28 = vmul.f32 1.442695, %v2266_v36 }
 0x483   : > { %v2238_v62 = vpop.xlane.xlu1 %2237  ;;  %2309 = vadd.xlane.f32.xlu0 %v12969_v49 }
 0x484   : > { %11691 = vpow2.f32 %v2289_v28  ;;  %v2264_v32 = vsub.f32 %v12867_v61, %v2238_v62 }
 0x486   : > { %v12974_v42 = vpop.eup %11687  ;;  %v2285_v54 = vmul.f32 1.442695, %v2264_v32  ;;  %v2254_v55 = vpop.xlane.xlu0 %2253 }
 0x487   : > { %v2248_v26 = vpop.xlane.xlu1 %2247  ;;  %2319 = vadd.xlane.f32.xlu1 %v12974_v42 }
 0x488   : > { %11693 = vpow2.f32 %v2285_v54  ;;  %v2269_v34 = vsub.f32 %v12873_v24, %v2248_v26  ;;  %v1960_v54 = vpop.f32.mrb[57].mxu0 }
 0x489   : > { %11695 = vpow2.f32 %v2297_v17  ;;  %v2272_v17 = vsub.f32 %v12900_v3, %v2254_v55 }
 0x48a   : > { %v12978_v39 = vpop.eup %11689  ;;  %v2295_v15 = vmul.f32 1.442695, %v2269_v34  ;;  %v2258_v61 = vpop.xlane.xlu0 %2257 }
 0x48b   : > { %v2244_v50 = vpop.xlane.xlu1 %2243  ;;  %2315 = vadd.xlane.f32.xlu1 %v12978_v39  ;;  %v2274_v36 = vsub.f32 %v12898_v5, %v2258_v61  ;;  %v12993_v34 = vpop.f32.mrb[58].mxu0 }
 0x48c   : > { %11697 = vpow2.f32 %v2295_v15  ;;  %v2267_v7 = vsub.f32 %v12879_v30, %v2244_v50  ;;  %v1963_v15 = vpop.f32.mrb[59].mxu0 }
 0x48d   : > { %v2305_v30 = vmul.f32 1.442695, %v2274_v36  ;;  %v13003_v36 = vpop.f32.mrb[60].mxu0 }
 0x48e   : > { %v12982_v4 = vpop.eup %11691  ;;  %v2291_v35 = vmul.f32 1.442695, %v2267_v7  ;;  %v2301_v7 = vmul.f32 1.442695, %v2272_v17 }
 0x48f   : > { %v2246_v28 = vpop.xlane.xlu1 %2245  ;;  %2321 = vadd.xlane.f32.xlu0 %v12982_v4 }
 0x490   : > { %11699 = vpow2.f32 %v2291_v35  ;;  %v2268_v24 = vsub.f32 %v12884_v29, %v2246_v28 }
 0x492   : > { %v12989_v62 = vpop.eup %11693  ;;  %v2293_v32 = vmul.f32 1.442695, %v2268_v24  ;;  %v1524_v35 = vpop.permute.xlu0 %1523 }
 0x493   : > { %v2256_v26 = vpop.xlane.xlu1 %2255  ;;  %2317 = vadd.xlane.f32.xlu0 %v12989_v62  ;;  %v12996_v50 = vpop.eup %11695  ;;  %v1946_v17 = vadd.f32 %v12932_v63, %v1524_v35 }
 0x494   : > { %11701 = vpow2.f32 %v2293_v32  ;;  %v2273_v5 = vsub.f32 %v12890_v23, %v2256_v26  ;;  %v1968_v24 = vpop.f32.mrb[61].mxu0 }
 0x495   : > { %11703 = vpow2.f32 %v2305_v30  ;;  %v13008_v54 = vpop.f32.mrb[62].mxu0 }
 0x496   : > { %v12998_v29 = vpop.eup %11697  ;;  %v2303_v61 = vmul.f32 1.442695, %v2273_v5  ;;  %v1971_v26 = vpop.f32.mrb[63].mxu0 }
 0x497   : > { %2327 = vadd.xlane.f32.xlu1 %v12998_v29  ;;  %v2252_v3 = vpop.xlane.xlu1 %2251  ;;  %2329 = vadd.xlane.f32.xlu0 %v12996_v50 }
 0x498   : > { %11705 = vpow2.f32 %v2303_v61  ;;  %v2271_v55 = vsub.f32 %v12896_v18, %v2252_v3 }
 0x499   : > { %11707 = vpow2.f32 %v2301_v7  ;;  %v13017_v7 = vpop.f32.mrb[64].mxu0 }
 0x49a   : > { %v13005_v23 = vpop.eup %11699  ;;  %v2299_v28 = vmul.f32 1.442695, %v2271_v55  ;;  %v1976_v55 = vpop.f32.mrb[65].mxu0 }
 0x49b   : > { %2323 = vadd.xlane.f32.xlu1 %v13005_v23  ;;  %v1519_v32 = vpop.permute.xlu1 %1518 }
 0x49c   : > { %11709 = vpow2.f32 %v2299_v28  ;;  %v1943_v30 = vadd.f32 %v12930_v20, %v1519_v32  ;;  %v13023_v20 = vpop.f32.mrb[66].mxu0 }
 0x49d   : > { %v1979_v24 = vpop.f32.mrb[67].mxu0 }
 0x49e   : > { %v13012_v18 = vpop.eup %11701  ;;  %v2073_v5 = vpack.c.bf16 %v1946_v17, %v1943_v30  ;;  %v13039_v26 = vpop.f32.mrb[68].mxu0  ;;  %v1449_v24 = vld [vmem:[%s16568_s6 + $0x68] sm:$0xff] }
 0x49f   : > { %v1529_v15 = vpop.permute.xlu1 %1528  ;;  %2325 = vadd.xlane.f32.xlu0 %v13012_v18  ;;  %v13015_v61 = vpop.eup %11703 }
 0x4a0   : > { %10862 = vmatprep.mubr.bf16.mxu1 %v2073_v5  ;;  %v13026_v35 = vadd.f32 %v12946_v21, %v1529_v15  ;;  %v1984_v5 = vpop.f32.mrb[69].mxu0 }
 0x4a1   : > { %v13041_v21 = vpop.f32.mrb[70].mxu0  ;;  %v1448_v5 = vld [vmem:[%s16568_s6 + $0x60] sm:$0xff] }
 0x4a2   : > { %v13019_v3 = vpop.eup %11705  ;;  %v1987_v15 = vpop.f32.mrb[71].mxu0 }
 0x4a3   : > { %2335 = vadd.xlane.f32.xlu1 %v13019_v3  ;;  %v1534_v63 = vpop.permute.xlu1 %1533  ;;  %2337 = vadd.xlane.f32.xlu0 %v13015_v61  ;;  %v13031_v32 = vpop.eup %11707 }
 0x4a4   : > { %v13029_v28 = vadd.f32 %v12951_v25, %v1534_v63  ;;  %v13043_v25 = vpop.f32.mrb[72].mxu0 }
 0x4a5   : > { %v1992_v55 = vpop.f32.mrb[73].mxu0 }
 0x4a6   : > { %v13033_v17 = vpop.eup %11709  ;;  %v13045_v63 = vpop.f32.mrb[74].mxu0 }
 0x4a7   : > { %2331 = vadd.xlane.f32.xlu1 %v13033_v17  ;;  %2333 = vadd.xlane.f32.xlu0 %v13031_v32  ;;  %v1995_v30 = vpop.f32.mrb[75].mxu0 }
 0x4a8   : > { %v13053_v11 = vpop.f32.mrb[76].mxu0  ;;  %v1453_v30 = vld [vmem:[%s16568_s6 + $0x88] sm:$0xff] }
 0x4a9   : > { %v2000_v15 = vpop.f32.mrb[77].mxu0 }
 0x4aa   : > { %v13058_v55 = vpop.f32.mrb[78].mxu0  ;;  %v1457_v15 = vld [vmem:[%s16568_s6 + $0xa8] sm:$0xff] }
 0x4ab   : > { %v2003_v16 = vpop.f32.mrb[79].mxu0 }
 0x4ac   : > { %v13072_v16 = vpop.f32.mrb[80].mxu0 }
 0x4b8   : > { %1543 = vperm.xlu1 %11198, %v1449_v24   ;;  %v1450_v24 = vld [vmem:[%s16568_s6 + $0x70] sm:$0xff] }
 0x4bc   : > { %1553 = vperm.xlu1 %11198, %v1451_v9   ;;  %v1452_v9 = vld [vmem:[%s16568_s6 + $0x80] sm:$0xff] }
 0x4bd   : > { %1538 = vperm.xlu0 %11197, %v1448_v5   ;;  %v2008_v5 = vpop.f32.mrb[81].mxu0 }
 0x4be   : > { %v13077_v19 = vpop.f32.mrb[82].mxu0 }
 0x4c0   : > { %1563 = vperm.xlu1 %11198, %v1453_v30   ;;  %v1454_v30 = vld [vmem:[%s16568_s6 + $0x90] sm:$0xff] }
 0x4c1   : > { %1548 = vperm.xlu0 %11197, %v1450_v24   ;;  %v2011_v24 = vpop.f32.mrb[83].mxu0 }
 0x4c4   : > { %1573 = vperm.xlu1 %11198, %v1455_v0   ;;  %v1456_v0 = vld [vmem:[%s16568_s6 + $0xa0] sm:$0xff] }
 0x4c5   : > { %1558 = vperm.xlu0 %11197, %v1452_v9   ;;  %v13088_v9 = vpop.f32.mrb[84].mxu0 }
 0x4c6   : > { %v2016_v5 = vpop.f32.mrb[85].mxu0 }
 0x4c7   : > { %v13093_v24 = vpop.f32.mrb[86].mxu0 }
 0x4c8   : > { %1583 = vperm.xlu1 %11198, %v1457_v15   ;;  %v1458_v15 = vld [vmem:[%s16568_s6 + $0xb0] sm:$0xff] }
 0x4c9   : > { %1568 = vperm.xlu0 %11197, %v1454_v30   ;;  %v2019_v30 = vpop.f32.mrb[87].mxu0 }
 0x4cc   : > { %1593 = vperm.xlu1 %11198, %v1459_v47   ;;  %v1460_v47 = vld [vmem:[%s16568_s6 + $0xc0] sm:$0xff] }
 0x4cd   : > { %1578 = vperm.xlu0 %11197, %v1456_v0   ;;  %v13104_v0 = vpop.f32.mrb[88].mxu0 }
 0x4ce   : > { %v2024_v5 = vpop.f32.mrb[89].mxu0 }
 0x4cf   : > { %v13109_v30 = vpop.f32.mrb[90].mxu0 }
 0x4d0   : > { %1603 = vperm.xlu1 %11198, %v1461_v56   ;;  %v1462_v56 = vld [vmem:[%s16568_s6 + $0xd0] sm:$0xff] }
 0x4d1   : > { %1588 = vperm.xlu0 %11197, %v1458_v15   ;;  %v2027_v15 = vpop.f32.mrb[91].mxu0 }
 0x4d4   : > { %1613 = vperm.xlu1 %11198, %v1463_v52   ;;  %v1464_v52 = vld [vmem:[%s16568_s6 + $0xe0] sm:$0xff] }
 0x4d5   : > { %1598 = vperm.xlu0 %11197, %v1460_v47   ;;  %v13120_v47 = vpop.f32.mrb[92].mxu0 }
 0x4d6   : > { %v2032_v5 = vpop.f32.mrb[93].mxu0 }
 0x4d7   : > { %v13125_v15 = vpop.f32.mrb[94].mxu0  ;;  %v1468_v5 = vld [vmem:[%s16568_s6 + $0x100] sm:$0xff] }
 0x4d8   : > { %1623 = vperm.xlu1 %11198, %v1465_v14   ;;  %v1466_v14 = vld [vmem:[%s16568_s6 + $0xf0] sm:$0xff] }
 0x4d9   : > { %1608 = vperm.xlu0 %11197, %v1462_v56   ;;  %v2035_v56 = vpop.f32.mrb[95].mxu0 }
 0x4da   : > { %v13130_v41 = vpop.f32.mrb[96].mxu0 }
 0x4db   : > { %v2040_v45 = vpop.f32.mrb[97].mxu0 }
 0x4dc   : > { %1633 = vperm.xlu1 %11198, %v1467_v60   ;;  %v1471_v60 = vld [vmem:[%s16568_s6 + $0x118] sm:$0xff] }
 0x4dd   : > { %1618 = vperm.xlu0 %11197, %v1464_v52   ;;  %v13135_v52 = vpop.f32.mrb[98].mxu0 }
 0x4de   : > { %v2043_v44 = vpop.f32.mrb[99].mxu0 }
 0x4df   : > { %v13140_v48 = vpop.f32.mrb[100].mxu0 }
 0x4e0   : > { %1643 = vperm.xlu1 %11198, %v1469_v22   ;;  %v2048_v56 = vpop.f32.mrb[101].mxu0  ;;  %v1473_v22 = vld [vmem:[%s16568_s6 + $0x128] sm:$0xff] }
 0x4e1   : > { %1628 = vperm.xlu0 %11197, %v1466_v14   ;;  %v13145_v45 = vpop.f32.mrb[102].mxu0  ;;  %v1470_v14 = vld [vmem:[%s16568_s6 + $0x110] sm:$0xff]  ;;  %v1472_v56 = vld [vmem:[%s16568_s6 + $0x120] sm:$0xff] }
 0x4e2   : > { %v2051_v46 = vpop.f32.mrb[103].mxu0 }
 0x4e3   : > { %v13150_v43 = vpop.f32.mrb[104].mxu0 }
 0x4e4   : > { %1653 = vperm.xlu1 %11198, %v1471_v60   ;;  %v2056_v44 = vpop.f32.mrb[105].mxu0  ;;  %v1475_v60 = vld [vmem:[%s16568_s6 + $0x138] sm:$0xff] }
 0x4e5   : > { %1638 = vperm.xlu0 %11197, %v1468_v5   ;;  %v13155_v5 = vpop.f32.mrb[106].mxu0  ;;  %v1474_v44 = vld [vmem:[%s16568_s6 + $0x130] sm:$0xff] }
 0x4e6   : > { %v2059_v27 = vpop.f32.mrb[107].mxu0 }
 0x4e7   : > { %v13160_v33 = vpop.f32.mrb[108].mxu0  ;;  %v2678_v27 = vld [vmem:[%s16570_s8 + $0x18] sm:$0xff] }
 0x4e8   : > { %1663 = vperm.xlu1 %11198, %v1473_v22   ;;  %v2064_v46 = vpop.f32.mrb[109].mxu0  ;;  %v2676_v22 = vld [vmem:[%s16570_s8 + $0x8] sm:$0xff] }
 0x4e9   : > { %1648 = vperm.xlu0 %11197, %v1470_v14   ;;  %v13165_v14 = vpop.f32.mrb[110].mxu0  ;;  %v2682_v46 = vld [vmem:[%s16570_s8 + $0x38] sm:$0xff] }
 0x4ea   : > { %v2067_v40 = vpop.f32.mrb[111].mxu0 }
 0x4eb   : > { %v2677_v40 = vld [vmem:[%s16570_s8 + $0x10] sm:$0xff] }
 0x4ec   : > { %1673 = vperm.xlu1 %11198, %v1475_v60   ;;  %v2675_v60 = vld [vmem:[%s16570_s8] sm:$0xff] }
 0x4ed   : > { %1658 = vperm.xlu0 %11197, %v1472_v56   ;;  %v2680_v56 = vld [vmem:[%s16570_s8 + $0x28] sm:$0xff] }
 0x4f0   : > { %2714 = vperm.xlu1 %11198, %v2676_v22   ;;  %v2679_v22 = vld [vmem:[%s16570_s8 + $0x20] sm:$0xff] }
 0x4f1   : > { %1668 = vperm.xlu0 %11197, %v1474_v44   ;;  %v2684_v44 = vld [vmem:[%s16570_s8 + $0x48] sm:$0xff] }
 0x4f4   : > { %2724 = vperm.xlu1 %11198, %v2678_v27   ;;  %v2681_v27 = vld [vmem:[%s16570_s8 + $0x30] sm:$0xff] }
 0x4f5   : > { %2709 = vperm.xlu0 %11197, %v2675_v60   ;;  %v2686_v60 = vld [vmem:[%s16570_s8 + $0x58] sm:$0xff] }
 0x4f8   : > { %2734 = vperm.xlu1 %11198, %v2680_v56   ;;  %v2683_v56 = vld [vmem:[%s16570_s8 + $0x40] sm:$0xff] }
 0x4f9   : > { %2719 = vperm.xlu0 %11197, %v2677_v40   ;;  %v2688_v40 = vld [vmem:[%s16570_s8 + $0x68] sm:$0xff] }
 0x4fc   : > { %2744 = vperm.xlu1 %11198, %v2682_v46   ;;  %v2685_v46 = vld [vmem:[%s16570_s8 + $0x50] sm:$0xff] }
 0x4fd   : > { %2729 = vperm.xlu0 %11197, %v2679_v22  }
 0x500   : > { %2754 = vperm.xlu1 %11198, %v2684_v44   ;;  %v2690_v44 = vld [vmem:[%s16570_s8 + $0x78] sm:$0xff] }
 0x501   : > { %2739 = vperm.xlu0 %11197, %v2681_v27   ;;  %v2687_v27 = vld [vmem:[%s16570_s8 + $0x60] sm:$0xff] }
 0x504   : > { %2764 = vperm.xlu1 %11198, %v2686_v60  }
 0x505   : > { %2749 = vperm.xlu0 %11197, %v2683_v56  }
 0x508   : > { %2774 = vperm.xlu1 %11198, %v2688_v40   ;;  %v2312_v22 = vpop.xlane.xlu1 %2311  ;;  %v2689_v40 = vld [vmem:[%s16570_s8 + $0x70] sm:$0xff] }
 0x509   : > { %2759 = vperm.xlu0 %11197, %v2685_v46  }
 0x50a   : > { %v2314_v60 = vpop.xlane.xlu0 %2313 }
 0x50b   : > { %11711 = vrcp.f32 %v2314_v60 }
 0x50c   : > { %2784 = vperm.xlu1 %11198, %v2690_v44   ;;  %v2308_v56 = vpop.xlane.xlu1 %2307  ;;  %v2694_v44 = vld [vmem:[%s16570_s8 + $0x98] sm:$0xff] }
 0x50d   : > { %2769 = vperm.xlu0 %11197, %v2687_v27   ;;  %11713 = vrcp.f32 %v2308_v56  ;;  %v2691_v27 = vld [vmem:[%s16570_s8 + $0x80] sm:$0xff]  ;;  %v2696_v56 = vld [vmem:[%s16570_s8 + $0xa8] sm:$0xff] }
 0x50e   : > { %11715 = vrcp.f32 %v2312_v22 }
 0x510   : > { %2794 = vperm.xlu1 %11198, %v2692_v10   ;;  %v2310_v46 = vpop.xlane.xlu0 %2309  ;;  %v2693_v10 = vld [vmem:[%s16570_s8 + $0x90] sm:$0xff] }
 0x511   : > { %11717 = vrcp.f32 %v2310_v46  ;;  %2779 = vperm.xlu0 %11197, %v2689_v40  }
 0x514   : > { %2804 = vperm.xlu1 %11198, %v2694_v44   ;;  %v2320_v60 = vpop.xlane.xlu1 %2319  ;;  %v2698_v44 = vld [vmem:[%s16570_s8 + $0xb8] sm:$0xff] }
 0x515   : > { %2789 = vperm.xlu0 %11197, %v2691_v27   ;;  %v11712_v22 = vpop.eup %11711  ;;  %v2695_v27 = vld [vmem:[%s16570_s8 + $0xa0] sm:$0xff] }
 0x516   : > { %v2358_v1 = vmul.f32 %v11712_v22, %v12961_v6 }
 0x517   : > { %v11714_v46 = vpop.eup %11713 }
 0x518   : > { %2814 = vperm.xlu1 %11198, %v2696_v56   ;;  %v2316_v40 = vpop.xlane.xlu1 %2315  ;;  %v11716_v8 = vpop.eup %11715  ;;  %v2355_v2 = vmul.f32 %v11714_v46, %v12965_v51 }
 0x519   : > { %11719 = vrcp.f32 %v2316_v40  ;;  %2799 = vperm.xlu0 %11197, %v2693_v10   ;;  %v2700_v10 = vld [vmem:[%s16570_s8 + $0xc8] sm:$0xff] }
 0x51b   : > { %v11718_v37 = vpop.eup %11717 }
 0x51c   : > { %2824 = vperm.xlu1 %11198, %v2698_v44   ;;  %v2322_v31 = vpop.xlane.xlu0 %2321  ;;  %v2356_v56 = vmul.f32 %v11718_v37, %v12969_v49  ;;  %v2357_v44 = vmul.f32 %v11716_v8, %v12958_v59  ;;  %v2699_v8 = vld [vmem:[%s16570_s8 + $0xc0] sm:$0xff] }
 0x51d   : > { %2809 = vperm.xlu0 %11197, %v2695_v27   ;;  %11721 = vrcp.f32 %v2322_v31 }
 0x51e   : > { %v2371_v40 = vadd.f32 %v2356_v56, %v2355_v2  ;;  %v2392_v58 = vpack.c.bf16 %v2356_v56, %v2355_v2  ;;  %11723 = vrcp.f32 %v2320_v60  ;;  %v2393_v6 = vpack.c.bf16 %v2358_v1, %v2357_v44  ;;  %v2702_v2 = vld [vmem:[%s16570_s8 + $0xd8] sm:$0xff] }
 0x520   : > { %2834 = vperm.xlu1 %11198, %v2700_v10   ;;  %10846 = vmatprep.subr.bf16.mxu1 %v2392_v58  ;;  %v2318_v37 = vpop.xlane.xlu0 %2317  ;;  %v2372_v51 = vadd.f32 %v2371_v40, %v2357_v44  ;;  %v2703_v10 = vld [vmem:[%s16570_s8 + $0xe0] sm:$0xff] }
 0x521   : > { %11725 = vrcp.f32 %v2318_v37  ;;  %2819 = vperm.xlu0 %11197, %v2697_v57   ;;  %10847 = vmatpush3.bf16.msra.mxu1 %v2392_v58  ;;  %v2704_v57 = vld [vmem:[%s16570_s8 + $0xe8] sm:$0xff]  ;;  %v2701_v58 = vld [vmem:[%s16570_s8 + $0xd0] sm:$0xff] }
 0x522   : > { %v2373_v49 = vadd.f32 %v2372_v51, %v2358_v1  ;;  %10848 = vmatprep.subr.bf16.mxu1 %v2393_v6 }
 0x523   : > { %v11720_v31 = vpop.eup %11719 }
 0x524   : > { %2844 = vperm.xlu1 %11198, %v2702_v2   ;;  %v2328_v59 = vpop.xlane.xlu1 %2327  ;;  %v2359_v60 = vmul.f32 %v11720_v31, %v12978_v39  ;;  %v2330_v22 = vpop.xlane.xlu0 %2329  ;;  %v2706_v39 = vld [vmem:[%s16570_s8 + $0xf8] sm:$0xff] }
 0x525   : > { %2829 = vperm.xlu0 %11197, %v2699_v8   ;;  %10849 = vmatpush3.bf16.msra.mxu1 %v2393_v6  ;;  %v9397_v6 = vld [vmem:[%s16568_s6 + $0x148] sm:$0xff]  ;;  %v2705_v8 = vld [vmem:[%s16570_s8 + $0xf0] sm:$0xff] }
 0x526   : > { %v2374_v1 = vadd.f32 %v2373_v49, %v2359_v60 }
 0x527   : > { %v11722_v27 = vpop.eup %11721 }
 0x528   : > { %2854 = vperm.xlu1 %11198, %v2704_v57   ;;  %v2324_v46 = vpop.xlane.xlu1 %2323  ;;  %v11724_v56 = vpop.eup %11723  ;;  %v2362_v51 = vmul.f32 %v11722_v27, %v12982_v4 }
 0x529   : > { %11727 = vrcp.f32 %v2324_v46  ;;  %2839 = vperm.xlu0 %11197, %v2701_v58   ;;  %v2361_v31 = vmul.f32 %v11724_v56, %v12974_v42  ;;  %v9399_v58 = vld [vmem:[%s16568_s6 + $0x158] sm:$0xff] }
 0x52a   : > { %11729 = vrcp.f32 %v2328_v59 }
 0x52b   : > { %v11726_v40 = vpop.eup %11725  ;;  %11731 = vrcp.f32 %v2330_v22  ;;  %v2395_v4 = vpack.c.bf16 %v2362_v51, %v2361_v31 }
 0x52c   : > { %2864 = vperm.xlu1 %11198, %v2706_v39   ;;  %v2326_v44 = vpop.xlane.xlu0 %2325  ;;  %v2360_v37 = vmul.f32 %v11726_v40, %v12989_v62  ;;  %v9398_v40 = vld [vmem:[%s16568_s6 + $0x150] sm:$0xff] }
 0x52d   : > { %11733 = vrcp.f32 %v2326_v44  ;;  %2849 = vperm.xlu0 %11197, %v2703_v10   ;;  %v9401_v10 = vld [vmem:[%s16568_s6 + $0x168] sm:$0xff] }
 0x52e   : > { %v2375_v2 = vadd.f32 %v2374_v1, %v2360_v37  ;;  %v2394_v49 = vpack.c.bf16 %v2360_v37, %v2359_v60  ;;  %v9396_v60 = vld [vmem:[%s16568_s6 + $0x140] sm:$0xff] }
 0x530   : > { %3421 = vperm.xlu1 %11198, %v9397_v6   ;;  %v2336_v59 = vpop.xlane.xlu1 %2335  ;;  %10850 = vmatprep.subr.bf16.mxu1 %v2394_v49  ;;  %v2338_v62 = vpop.xlane.xlu0 %2337  ;;  %v2376_v57 = vadd.f32 %v2375_v2, %v2361_v31 }
 0x531   : > { %2859 = vperm.xlu0 %11197, %v2705_v8   ;;  %10851 = vmatpush3.bf16.msra.mxu1 %v2394_v49  ;;  %11735 = vrcp.f32 %v2336_v59  ;;  %v9403_v49 = vld [vmem:[%s16568_s6 + $0x178] sm:$0xff]  ;;  %v9400_v59 = vld [vmem:[%s16568_s6 + $0x160] sm:$0xff] }
 0x532   : > { %v2377_v1 = vadd.f32 %v2376_v57, %v2362_v51  ;;  %10852 = vmatprep.subr.bf16.mxu1 %v2395_v4  ;;  %11737 = vrcp.f32 %v2338_v62 }
 0x533   : > { %v11728_v22 = vpop.eup %11727 }
 0x534   : > { %v11730_v42 = vpop.eup %11729  ;;  %3431 = vperm.xlu1 %11198, %v9399_v58   ;;  %v2332_v46 = vpop.xlane.xlu1 %2331  ;;  %v2363_v39 = vmul.f32 %v11728_v22, %v13005_v23  ;;  %v9402_v22 = vld [vmem:[%s16568_s6 + $0x170] sm:$0xff] }
 0x535   : > { %v2334_v27 = vpop.xlane.xlu0 %2333  ;;  %v11732_v56 = vpop.eup %11731  ;;  %11739 = vrcp.f32 %v2332_v46  ;;  %3416 = vperm.xlu0 %11197, %v9396_v60   ;;  %10853 = vmatpush3.bf16.msra.mxu1 %v2395_v4  ;;  %v2365_v23 = vmul.f32 %v11730_v42, %v12998_v29 }
 0x536   : > { %11741 = vrcp.f32 %v2334_v27  ;;  %v2378_v44 = vadd.f32 %v2377_v1, %v2363_v39  ;;  %v2366_v2 = vmul.f32 %v11732_v56, %v12996_v50 }
 0x537   : > { %v11734_v37 = vpop.eup %11733 }
 0x538   : > { %3441 = vperm.xlu1 %11198, %v9401_v10   ;;  %v1544_v51 = vpop.permute.xlu1 %1543  ;;  %v2364_v6 = vmul.f32 %v11734_v37, %v13012_v18  ;;  %v2397_v4 = vpack.c.bf16 %v2366_v2, %v2365_v23 }
 0x539   : > { %3426 = vperm.xlu0 %11197, %v9398_v40   ;;  %v1962_v50 = vadd.f32 %v12993_v34, %v1544_v51 }
 0x53a   : > { %v2379_v8 = vadd.f32 %v2378_v44, %v2364_v6  ;;  %v2396_v31 = vpack.c.bf16 %v2364_v6, %v2363_v39 }
 0x53b   : > { %v11736_v29 = vpop.eup %11735 }
 0x53c   : > { %3451 = vperm.xlu1 %11198, %v9403_v49   ;;  %v1554_v62 = vpop.permute.xlu1 %1553  ;;  %10854 = vmatprep.subr.bf16.mxu1 %v2396_v31  ;;  %v1539_v57 = vpop.permute.xlu0 %1538  ;;  %v2380_v18 = vadd.f32 %v2379_v8, %v2365_v23 }
 0x53d   : > { %v1959_v58 = vadd.f32 %v12987_v38, %v1539_v57  ;;  %3436 = vperm.xlu0 %11197, %v9400_v59   ;;  %10855 = vmatpush3.bf16.msra.mxu1 %v2396_v31  ;;  %v11738_v1 = vpop.eup %11737  ;;  %v1970_v39 = vadd.f32 %v13008_v54, %v1554_v62  ;;  %v2369_v38 = vmul.f32 %v11736_v29, %v13019_v3 }
 0x53e   : > { %v2381_v60 = vadd.f32 %v2380_v18, %v2366_v2  ;;  %10856 = vmatprep.subr.bf16.mxu1 %v2397_v4  ;;  %v2370_v37 = vmul.f32 %v11738_v1, %v13015_v61  ;;  %v16949_v29 = vpack.c.bf16 %v13029_v28, %v13026_v35 }
 0x53f   : > { %v11740_v42 = vpop.eup %11739  ;;  %v2075_v46 = vpack.c.bf16 %v1962_v50, %v1959_v58 }
 0x540   : > { %v11742_v27 = vpop.eup %11741  ;;  %v1564_v56 = vpop.permute.xlu1 %1563  ;;  %v2367_v34 = vmul.f32 %v11740_v42, %v13033_v17  ;;  %v2399_v3 = vpack.c.bf16 %v2370_v37, %v2369_v38 }
 0x541   : > { %v1549_v10 = vpop.permute.xlu0 %1548  ;;  %3446 = vperm.xlu0 %11197, %v9402_v22   ;;  %10857 = vmatpush3.bf16.msra.mxu1 %v2397_v4  ;;  %v2368_v44 = vmul.f32 %v11742_v27, %v13031_v32  ;;  %v1978_v8 = vadd.f32 %v13023_v20, %v1564_v56 }
 0x542   : > { %v1967_v40 = vadd.f32 %v13003_v36, %v1549_v10  ;;  %v2382_v51 = vadd.f32 %v2381_v60, %v2367_v34 }
 0x543   : > { %v2398_v23 = vpack.c.bf16 %v2368_v44, %v2367_v34 }
 0x544   : > { %v2076_v6 = vpack.c.bf16 %v1970_v39, %v1967_v40  ;;  %v1574_v2 = vpop.permute.xlu1 %1573  ;;  %v2383_v49 = vadd.f32 %v2382_v51, %v2368_v44 }
 0x545   : > { %v1559_v54 = vpop.permute.xlu0 %1558  ;;  %10858 = vmatprep.subr.bf16.mxu1 %v2398_v23  ;;  %v1986_v62 = vadd.f32 %v13041_v21, %v1574_v2 }
 0x546   : > { %v1975_v17 = vadd.f32 %v13017_v7, %v1559_v54  ;;  %10859 = vmatpush3.bf16.msra.mxu1 %v2398_v23  ;;  %v2384_v36 = vadd.f32 %v2383_v49, %v2369_v38 }
 0x547   : > { %10860 = vmatprep.subr.bf16.mxu1 %v2399_v3 }
 0x548   : > { %v2077_v31 = vpack.c.bf16 %v1978_v8, %v1975_v17  ;;  %v13309_v59 = vadd.f32 %v2384_v36, %v2370_v37  ;;  %v1584_v32 = vpop.permute.xlu1 %1583 }
 0x549   : > { %v1569_v61 = vpop.permute.xlu0 %1568  ;;  %v1994_v7 = vadd.f32 %v13045_v63, %v1584_v32 }
 0x54a   : > { %v1983_v57 = vadd.f32 %v13039_v26, %v1569_v61  ;;  %10861 = vmatpush3.bf16.msra.mxu1 %v2399_v3 }
 0x54b   : > { %11110 = vmatprep.subr.bf16.mxu1 %v16924_v53 }
 0x54c   : > { %v2078_v18 = vpack.c.bf16 %v1986_v62, %v1983_v57  ;;  %v1594_v20 = vpop.permute.xlu1 %1593 }
 0x54d   : > { %v1579_v4 = vpop.permute.xlu0 %1578  ;;  %10863 = vmatmul.mubr.bf16.vlgmr.msra.gmra.mrb[80].mxu1 %v16949_v29  ;;  %v2002_v26 = vadd.f32 %v13058_v55, %v1594_v20 }
 0x54e   : > { %v1991_v50 = vadd.f32 %v13043_v25, %v1579_v4  ;;  %10866 = vmatprep.mubr.bf16.mxu1 %v2075_v46 }
 0x550   : > { %v2079_v58 = vpack.c.bf16 %v1994_v7, %v1991_v50  ;;  %v1604_v1 = vpop.permute.xlu1 %1603 }
 0x551   : > { %v1589_v21 = vpop.permute.xlu0 %1588  ;;  %v2010_v39 = vadd.f32 %v13077_v19, %v1604_v1 }
 0x552   : > { %v1999_v60 = vadd.f32 %v13053_v11, %v1589_v21 }
 0x554   : > { %v2080_v22 = vpack.c.bf16 %v2002_v26, %v1999_v60  ;;  %v1614_v42 = vpop.permute.xlu1 %1613  ;;  %v16950_v26 = vld [vmem:[#allocation10_spill] sm:$0xff] }
 0x555   : > { %v1599_v27 = vpop.permute.xlu0 %1598  ;;  %10867 = vmatmul.mubr.bf16.gmra.mrb[84].mxu1 %v2076_v6  ;;  %v2018_v46 = vadd.f32 %v13093_v24, %v1614_v42 }
 0x556   : > { %v2007_v63 = vadd.f32 %v13072_v16, %v1599_v27  ;;  %10870 = vmatprep.mubr.bf16.mxu1 %v2077_v31 }
 0x558   : > { %v2081_v35 = vpack.c.bf16 %v2010_v39, %v2007_v63  ;;  %v1624_v28 = vpop.permute.xlu1 %1623 }
 0x559   : > { %v1609_v25 = vpop.permute.xlu0 %1608  ;;  %v2026_v11 = vadd.f32 %v13109_v30, %v1624_v28 }
 0x55a   : > { %v2015_v56 = vadd.f32 %v13088_v9, %v1609_v25 }
 0x55c   : > { %v2082_v10 = vpack.c.bf16 %v2018_v46, %v2015_v56  ;;  %v1634_v55 = vpop.permute.xlu1 %1633 }
 0x55d   : > { %v1619_v34 = vpop.permute.xlu0 %1618  ;;  %10871 = vmatmul.mubr.bf16.gmra.mrb[88].mxu1 %v2078_v18  ;;  %v2034_v44 = vadd.f32 %v13125_v15, %v1634_v55 }
 0x55e   : > { %v2023_v38 = vadd.f32 %v13104_v0, %v1619_v34  ;;  %10874 = vmatprep.mubr.bf16.mxu1 %v2079_v58  ;;  %v16952_v34 = vld [vmem:[#allocation20_spill] sm:$0xff] }
 0x560   : > { %v2083_v19 = vpack.c.bf16 %v2026_v11, %v2023_v38  ;;  %v1644_v40 = vpop.permute.xlu1 %1643  ;;  %v16953_v38 = vld [vmem:[#allocation21_spill] sm:$0xff] }
 0x561   : > { %v1629_v16 = vpop.permute.xlu0 %1628  ;;  %v2042_v9 = vadd.f32 %v13135_v52, %v1644_v40  ;;  %v16954_v40 = vld [vmem:[#allocation16_spill] sm:$0xff] }
 0x562   : > { %v2031_v37 = vadd.f32 %v13120_v47, %v1629_v16 }
 0x564   : > { %v2084_v51 = vpack.c.bf16 %v2034_v44, %v2031_v37  ;;  %v1654_v24 = vpop.permute.xlu1 %1653  ;;  %v16955_v44 = vld [vmem:[#allocation17_spill] sm:$0xff] }
 0x565   : > { %v1639_v6 = vpop.permute.xlu0 %1638  ;;  %10875 = vmatmul.mubr.bf16.gmra.mrb[92].mxu1 %v2080_v22  ;;  %v2050_v49 = vadd.f32 %v13145_v45, %v1654_v24  ;;  %v16951_v22 = vld [vmem:[#allocation11_spill] sm:$0xff] }
 0x566   : > { %v2039_v23 = vadd.f32 %v13130_v41, %v1639_v6  ;;  %10878 = vmatprep.mubr.bf16.mxu1 %v2081_v35 }
 0x568   : > { %v2085_v30 = vpack.c.bf16 %v2042_v9, %v2039_v23  ;;  %v1664_v2 = vpop.permute.xlu1 %1663 }
 0x569   : > { %v1649_v0 = vpop.permute.xlu0 %1648  ;;  %v2058_v47 = vadd.f32 %v13155_v5, %v1664_v2 }
 0x56a   : > { %v2047_v54 = vadd.f32 %v13140_v48, %v1649_v0  ;;  %v11309_v48 = vld [vmem:[%s16569_s7 + $0x4] ss:$8 sps:$4 sm:$0xff]  }
 0x56b   : > { %3059 = vmatprep.mubr.bf16.mxu0 %v11309_v48 }
 0x56c   : > { %v2086_v8 = vpack.c.bf16 %v2050_v49, %v2047_v54  ;;  %v1674_v3 = vpop.permute.xlu1 %1673 }
 0x56d   : > { %v1659_v15 = vpop.permute.xlu0 %1658  ;;  %10879 = vmatmul.mubr.bf16.gmra.mrb[96].mxu1 %v2082_v10  ;;  %v2066_v41 = vadd.f32 %v13165_v14, %v1674_v3  ;;  %v16958_v3 = vld [vmem:[#allocation24_spill] sm:$0xff] }
 0x56e   : > { %v2055_v17 = vadd.f32 %v13150_v43, %v1659_v15  ;;  %10882 = vmatprep.mubr.bf16.mxu1 %v2083_v19  ;;  %v2386_v43 = vrot.slane %v13309_v59, 4 }
 0x570   : > { %v2087_v52 = vpack.c.bf16 %v2058_v47, %v2055_v17  ;;  %v2387_v45 = vadd.f32 %v2386_v43, %v13309_v59  ;;  %v16957_v47 = vld [vmem:[#allocation29_spill] sm:$0xff] }
 0x571   : > { %v1669_v36 = vpop.permute.xlu0 %1668 }
 0x572   : > { %v2063_v31 = vadd.f32 %v13160_v33, %v1669_v36  ;;  %v2388_v5 = vrot.slane %v2387_v45, 2  ;;  %v16959_v36 = vld [vmem:[#allocation25_spill] sm:$0xff] }
 0x574   : > { %v2088_v32 = vpack.c.bf16 %v2066_v41, %v2063_v31  ;;  %v2389_v61 = vadd.f32 %v2388_v5, %v2387_v45 }
 0x575   : > { %10883 = vmatmul.mubr.bf16.gmra.mrb[100].mxu1 %v2084_v51 }
 0x576   : > { %10886 = vmatprep.mubr.bf16.mxu1 %v2085_v30  ;;  %v2390_v14 = vrot.slane %v2389_v61, 1 }
 0x578   : > { %v2391_v62 = vadd.f32 %v2390_v14, %v2389_v61 }
 0x57a   : > { %v2561_v33 = vadd.f32 1e-09, %v2391_v62 }
 0x57c   : > { %11743 = vrcp.f32 %v2561_v33 }
 0x57d   : > { %10887 = vmatmul.mubr.bf16.gmra.mrb[104].mxu1 %v2086_v8  ;;  %v16956_v8 = vld [vmem:[#allocation28_spill] sm:$0xff] }
 0x57e   : > { %10890 = vmatprep.mubr.bf16.mxu1 %v2087_v52 }
 0x585   : > { %10891 = vmatmul.mubr.bf16.gmra.mrb[108].mxu1 %v2088_v32 }
 0x586   : > { %v13342_v57 = vpop.eup %11743 }
 0x620   : > { %v10864_v18 = vpop.f32.mrb[80].mxu1 }
 0x621   : > { %v2565_v20 = vmul.f32 %v13342_v57, %v10864_v18  ;;  %v2434_v4 = vpop.f32.mrb[81].mxu1  ;;  %v16960_v18 = vld [vmem:[#allocation36_spill] sm:$0xff] }
 0x622   : > { %v2563_v7 = vmul.f32 %v13342_v57, %v2434_v4  ;;  %v10865_v29 = vpop.f32.mrb[82].mxu1  ;;  %v16961_v4 = vld [vmem:[#allocation37_spill] sm:$0xff] }
 0x623   : > { %v2566_v50 = vmul.f32 %v13342_v57, %v10865_v29  ;;  %v2437_v58 = vpop.f32.mrb[83].mxu1  ;;  %v2629_v1 = vsub.f32 %v12519_v12, %v2565_v20  ;;  %v16962_v29 = vld [vmem:[#allocation32_spill] sm:$0xff] }
 0x624   : > { %v2564_v59 = vmul.f32 %v13342_v57, %v2437_v58  ;;  %v2627_v60 = vsub.f32 %v16950_v26, %v2563_v7  ;;  %v16963_v58 = vld [vmem:[#allocation33_spill] sm:$0xff] }
 0x625   : > { %v2630_v21 = vsub.f32 %v12522_v13, %v2566_v50 }
 0x626   : > { %v2628_v42 = vsub.f32 %v16951_v22, %v2564_v59 }
 0x627   : > { %v13352_v27 = vpack.c.bf16 %v2630_v21, %v2629_v1 }
 0x628   : > { %v10868_v39 = vpop.f32.mrb[84].mxu1  ;;  %v13354_v63 = vpack.c.bf16 %v2628_v42, %v2627_v60 }
 0x629   : > { %v2569_v35 = vmul.f32 %v13342_v57, %v10868_v39  ;;  %v2450_v28 = vpop.f32.mrb[85].mxu1 }
 0x62a   : > { %v2567_v25 = vmul.f32 %v13342_v57, %v2450_v28  ;;  %v10869_v46 = vpop.f32.mrb[86].mxu1 }
 0x62b   : > { %v2570_v56 = vmul.f32 %v13342_v57, %v10869_v46  ;;  %v2453_v10 = vpop.f32.mrb[87].mxu1  ;;  %v2633_v11 = vsub.f32 %v16952_v34, %v2569_v35 }
 0x62c   : > { %v2568_v55 = vmul.f32 %v13342_v57, %v2453_v10  ;;  %v2631_v16 = vsub.f32 %v16954_v40, %v2567_v25  ;;  %v16964_v10 = vld [vmem:[#allocation44_spill] sm:$0xff] }
 0x62d   : > { %v2634_v19 = vsub.f32 %v16953_v38, %v2570_v56 }
 0x62e   : > { %v2632_v37 = vsub.f32 %v16955_v44, %v2568_v55 }
 0x62f   : > { %v13364_v51 = vpack.c.bf16 %v2634_v19, %v2633_v11  ;;  %v16965_v11 = vld [vmem:[#allocation45_spill] sm:$0xff] }
 0x630   : > { %v10872_v24 = vpop.f32.mrb[88].mxu1  ;;  %v13366_v6 = vpack.c.bf16 %v2632_v37, %v2631_v16  ;;  %v16966_v16 = vld [vmem:[#allocation40_spill] sm:$0xff] }
 0x631   : > { %v2573_v9 = vmul.f32 %v13342_v57, %v10872_v24  ;;  %v2466_v23 = vpop.f32.mrb[89].mxu1  ;;  %v16967_v24 = vld [vmem:[#allocation41_spill] sm:$0xff] }
 0x632   : > { %v2571_v30 = vmul.f32 %v13342_v57, %v2466_v23  ;;  %v10873_v2 = vpop.f32.mrb[90].mxu1 }
 0x633   : > { %v2574_v0 = vmul.f32 %v13342_v57, %v10873_v2  ;;  %v2469_v49 = vpop.f32.mrb[91].mxu1  ;;  %v2637_v15 = vsub.f32 %v16956_v8, %v2573_v9 }
 0x634   : > { %v2572_v54 = vmul.f32 %v13342_v57, %v2469_v49  ;;  %v2635_v52 = vsub.f32 %v16958_v3, %v2571_v30 }
 0x635   : > { %v2638_v17 = vsub.f32 %v16957_v47, %v2574_v0 }
 0x636   : > { %v2636_v41 = vsub.f32 %v16959_v36, %v2572_v54 }
 0x637   : > { %v13376_v31 = vpack.c.bf16 %v2638_v17, %v2637_v15 }
 0x638   : > { %v10876_v32 = vpop.f32.mrb[92].mxu1  ;;  %v13378_v48 = vpack.c.bf16 %v2636_v41, %v2635_v52 }
 0x639   : > { %v2577_v43 = vmul.f32 %v13342_v57, %v10876_v32  ;;  %v2482_v45 = vpop.f32.mrb[93].mxu1  ;;  %v16968_v32 = vld [vmem:[#allocation52_spill] sm:$0xff] }
 0x63a   : > { %v2575_v5 = vmul.f32 %v13342_v57, %v2482_v45  ;;  %v10877_v61 = vpop.f32.mrb[94].mxu1  ;;  %v16969_v45 = vld [vmem:[#allocation53_spill] sm:$0xff] }
 0x63b   : > { %v2578_v14 = vmul.f32 %v13342_v57, %v10877_v61  ;;  %v2485_v62 = vpop.f32.mrb[95].mxu1  ;;  %v2641_v20 = vsub.f32 %v16960_v18, %v2577_v43  ;;  %v16970_v61 = vld [vmem:[#allocation48_spill] sm:$0xff] }
 0x63c   : > { %v2576_v33 = vmul.f32 %v13342_v57, %v2485_v62  ;;  %v2639_v50 = vsub.f32 %v16962_v29, %v2575_v5  ;;  %v16971_v62 = vld [vmem:[#allocation49_spill] sm:$0xff] }
 0x63d   : > { %v2642_v7 = vsub.f32 %v16961_v4, %v2578_v14 }
 0x63e   : > { %v2640_v59 = vsub.f32 %v16963_v58, %v2576_v33 }
 0x63f   : > { %v13388_v1 = vpack.c.bf16 %v2642_v7, %v2641_v20 }
 0x640   : > { %v10880_v21 = vpop.f32.mrb[96].mxu1  ;;  %v13390_v60 = vpack.c.bf16 %v2640_v59, %v2639_v50 }
 0x641   : > { %v2581_v42 = vmul.f32 %v13342_v57, %v10880_v21  ;;  %v2498_v39 = vpop.f32.mrb[97].mxu1 }
 0x642   : > { %v2579_v35 = vmul.f32 %v13342_v57, %v2498_v39  ;;  %v10881_v28 = vpop.f32.mrb[98].mxu1 }
 0x643   : > { %v2582_v25 = vmul.f32 %v13342_v57, %v10881_v28  ;;  %v2501_v46 = vpop.f32.mrb[99].mxu1  ;;  %v2645_v55 = vsub.f32 %v16964_v10, %v2581_v42 }
 0x644   : > { %v2580_v56 = vmul.f32 %v13342_v57, %v2501_v46  ;;  %v2643_v37 = vsub.f32 %v16966_v16, %v2579_v35  ;;  %v16973_v46 = vld [vmem:[#allocation61_spill] sm:$0xff] }
 0x645   : > { %v2646_v19 = vsub.f32 %v16965_v11, %v2582_v25  ;;  %v16972_v25 = vld [vmem:[#allocation60_spill] sm:$0xff] }
 0x646   : > { %v2644_v9 = vsub.f32 %v16967_v24, %v2580_v56 }
 0x647   : > { %v2668_v23 = vpack.c.bf16 %v2646_v19, %v2645_v55  ;;  %v16974_v55 = vld [vmem:[#allocation56_spill] sm:$0xff] }
 0x648   : > { %v10884_v30 = vpop.f32.mrb[100].mxu1  ;;  %v2667_v2 = vpack.c.bf16 %v2644_v9, %v2643_v37  ;;  %v16975_v37 = vld [vmem:[#allocation57_spill] sm:$0xff] }
 0x649   : > { %v2585_v0 = vmul.f32 %v13342_v57, %v10884_v30  ;;  %v2514_v49 = vpop.f32.mrb[101].mxu1 }
 0x64a   : > { %v2583_v54 = vmul.f32 %v13342_v57, %v2514_v49  ;;  %v10885_v15 = vpop.f32.mrb[102].mxu1  ;;  %10216 = vmatprep.subr.bf16.mxu0 %v2667_v2 }
 0x64b   : > { %v2586_v17 = vmul.f32 %v13342_v57, %v10885_v15  ;;  %v2517_v52 = vpop.f32.mrb[103].mxu1  ;;  %10217 = vmatpush3.bf16.msra.mxu0 %v13354_v63  ;;  %v2649_v43 = vsub.f32 %v16968_v32, %v2585_v0 }
 0x64c   : > { %v2584_v41 = vmul.f32 %v13342_v57, %v2517_v52  ;;  %10218 = vmatprep.subr.bf16.mxu0 %v2668_v23  ;;  %v2647_v14 = vsub.f32 %v16970_v61, %v2583_v54 }
 0x64d   : > { %v2650_v5 = vsub.f32 %v16969_v45, %v2586_v17 }
 0x64e   : > { %v2648_v33 = vsub.f32 %v16971_v62, %v2584_v41  ;;  %v16976_v41 = vld [vmem:[#allocation68_spill] sm:$0xff] }
 0x64f   : > { %10219 = vmatpush3.bf16.msra.mxu0 %v13352_v27  ;;  %v2670_v20 = vpack.c.bf16 %v2650_v5, %v2649_v43  ;;  %v16977_v43 = vld [vmem:[#allocation69_spill] sm:$0xff] }
 0x650   : > { %v10888_v7 = vpop.f32.mrb[104].mxu1  ;;  %v2669_v50 = vpack.c.bf16 %v2648_v33, %v2647_v14  ;;  %v16978_v14 = vld [vmem:[#allocation64_spill] sm:$0xff] }
 0x651   : > { %v2589_v59 = vmul.f32 %v13342_v57, %v10888_v7  ;;  %v2530_v21 = vpop.f32.mrb[105].mxu1 }
 0x652   : > { %v2587_v63 = vmul.f32 %v13342_v57, %v2530_v21  ;;  %v10889_v42 = vpop.f32.mrb[106].mxu1  ;;  %10220 = vmatprep.subr.bf16.mxu0 %v2669_v50  ;;  %v11316_v21 = vld [vmem:[%s16569_s7 + $0x34] ss:$8 sps:$4 sm:$0xff]  }
 0x653   : > { %v2590_v39 = vmul.f32 %v13342_v57, %v10889_v42  ;;  %v2533_v35 = vpop.f32.mrb[107].mxu1  ;;  %10221 = vmatpush3.bf16.msra.mxu0 %v13366_v6  ;;  %v2653_v27 = vsub.f32 %v16972_v25, %v2589_v59  ;;  %v11319_v42 = vld [vmem:[%s16569_s7 + $0x44] ss:$8 sps:$4 sm:$0xff]  }
 0x654   : > { %v2588_v28 = vmul.f32 %v13342_v57, %v2533_v35  ;;  %10222 = vmatprep.subr.bf16.mxu0 %v2670_v20  ;;  %v2651_v19 = vsub.f32 %v16974_v55, %v2587_v63  ;;  %v16979_v20 = vld [vmem:[#allocation65_spill] sm:$0xff]  ;;  %v11318_v63 = vld [vmem:[%s16569_s7 + $0x30] ss:$8 sps:$4 sm:$0xff]   ;;  %v11322_v35 = vld [vmem:[%s16569_s7 + $0x54] ss:$8 sps:$4 sm:$0xff]  }
 0x655   : > { %v2654_v56 = vsub.f32 %v16973_v46, %v2590_v39  ;;  %v11321_v39 = vld [vmem:[%s16569_s7 + $0x40] ss:$8 sps:$4 sm:$0xff]  }
 0x656   : > { %v2652_v9 = vsub.f32 %v16975_v37, %v2588_v28  ;;  %v11324_v28 = vld [vmem:[%s16569_s7 + $0x50] ss:$8 sps:$4 sm:$0xff]  }
 0x657   : > { %10223 = vmatpush3.bf16.msra.mxu0 %v13364_v51  ;;  %v2672_v23 = vpack.c.bf16 %v2654_v56, %v2653_v27  ;;  %v11325_v27 = vld [vmem:[%s16569_s7 + $0x64] ss:$8 sps:$4 sm:$0xff]   ;;  %v11327_v56 = vld [vmem:[%s16569_s7 + $0x60] ss:$8 sps:$4 sm:$0xff]  }
 0x658   : > { %v10892_v30 = vpop.f32.mrb[108].mxu1  ;;  %v2671_v2 = vpack.c.bf16 %v2652_v9, %v2651_v19  ;;  %v11328_v19 = vld [vmem:[%s16569_s7 + $0x74] ss:$8 sps:$4 sm:$0xff]   ;;  %v11330_v9 = vld [vmem:[%s16569_s7 + $0x70] ss:$8 sps:$4 sm:$0xff]  }
 0x659   : > { %v2593_v0 = vmul.f32 %v13342_v57, %v10892_v30  ;;  %v2546_v49 = vpop.f32.mrb[109].mxu1  ;;  %v11333_v30 = vld [vmem:[%s16569_s7 + $0x80] ss:$8 sps:$4 sm:$0xff]  }
 0x65a   : > { %v2591_v6 = vmul.f32 %v13342_v57, %v2546_v49  ;;  %v10893_v54 = vpop.f32.mrb[110].mxu1  ;;  %10224 = vmatprep.subr.bf16.mxu0 %v2671_v2  ;;  %v11334_v2 = vld [vmem:[%s16569_s7 + $0x94] ss:$8 sps:$4 sm:$0xff]   ;;  %v11337_v49 = vld [vmem:[%s16569_s7 + $0xa4] ss:$8 sps:$4 sm:$0xff]  }
 0x65b   : > { %v2594_v15 = vmul.f32 %v13342_v57, %v10893_v54  ;;  %v2549_v17 = vpop.f32.mrb[111].mxu1  ;;  %10225 = vmatpush3.bf16.msra.mxu0 %v13378_v48  ;;  %v2657_v51 = vsub.f32 %v16976_v41, %v2593_v0  ;;  %v11310_v48 = vld [vmem:[%s16569_s7 + $0x14] ss:$8 sps:$4 sm:$0xff]   ;;  %v11336_v0 = vld [vmem:[%s16569_s7 + $0x90] ss:$8 sps:$4 sm:$0xff]  }
 0x65c   : > { %v2592_v52 = vmul.f32 %v13342_v57, %v2549_v17  ;;  %10226 = vmatprep.subr.bf16.mxu0 %v2672_v23  ;;  %v2655_v33 = vsub.f32 %v16978_v14, %v2591_v6  ;;  %v11307_v57 = vld [vmem:[%s16569_s7] ss:$8 sps:$4 sm:$0xff]   ;;  %v11331_v23 = vld [vmem:[%s16569_s7 + $0x84] ss:$8 sps:$4 sm:$0xff]   ;;  %v11340_v54 = vld [vmem:[%s16569_s7 + $0xb4] ss:$8 sps:$4 sm:$0xff]  }
 0x65d   : > { %v2658_v5 = vsub.f32 %v16977_v43, %v2594_v15  ;;  %v11339_v6 = vld [vmem:[%s16569_s7 + $0xa0] ss:$8 sps:$4 sm:$0xff]   ;;  %v11342_v15 = vld [vmem:[%s16569_s7 + $0xb0] ss:$8 sps:$4 sm:$0xff]   ;;  %v11343_v17 = vld [vmem:[%s16569_s7 + $0xc4] ss:$8 sps:$4 sm:$0xff]  }
 0x65e   : > { %v2656_v7 = vsub.f32 %v16979_v20, %v2592_v52  ;;  %v11345_v52 = vld [vmem:[%s16569_s7 + $0xc0] ss:$8 sps:$4 sm:$0xff]  }
 0x65f   : > { %10227 = vmatpush3.bf16.msra.mxu0 %v13376_v31  ;;  %v2674_v50 = vpack.c.bf16 %v2658_v5, %v2657_v51  ;;  %v11312_v31 = vld [vmem:[%s16569_s7 + $0x10] ss:$8 sps:$4 sm:$0xff]   ;;  %v11346_v51 = vld [vmem:[%s16569_s7 + $0xd4] ss:$8 sps:$4 sm:$0xff]  }
 0x660   : > { %v2673_v59 = vpack.c.bf16 %v2656_v7, %v2655_v33  ;;  %v11348_v5 = vld [vmem:[%s16569_s7 + $0xd0] ss:$8 sps:$4 sm:$0xff]   ;;  %v11349_v33 = vld [vmem:[%s16569_s7 + $0xe4] ss:$8 sps:$4 sm:$0xff]   ;;  %v11351_v7 = vld [vmem:[%s16569_s7 + $0xe0] ss:$8 sps:$4 sm:$0xff]  }
 0x662   : > { %10228 = vmatprep.subr.bf16.mxu0 %v2673_v59  ;;  %v11354_v59 = vld [vmem:[%s16569_s7 + $0xf0] ss:$8 sps:$4 sm:$0xff]  }
 0x663   : > { %10229 = vmatpush3.bf16.msra.mxu0 %v13390_v60  ;;  %v11313_v60 = vld [vmem:[%s16569_s7 + $0x24] ss:$8 sps:$4 sm:$0xff]  }
 0x664   : > { %10230 = vmatprep.subr.bf16.mxu0 %v2674_v50  ;;  %v11352_v50 = vld [vmem:[%s16569_s7 + $0xf4] ss:$8 sps:$4 sm:$0xff]  }
 0x667   : > { %10231 = vmatpush3.bf16.msra.mxu0 %v13388_v1  ;;  %v11315_v1 = vld [vmem:[%s16569_s7 + $0x20] ss:$8 sps:$4 sm:$0xff]  }
 0x668   : > { %3814 = vmatprep.subr.bf16.mxu0 %v16924_v53 }
 0x66a   : > { %3060 = vmatmul.mubr.bf16.vlgmr.msra.gmra.mrb[112].mxu0 %v11307_v57 }
 0x66b   : > { %3067 = vmatprep.mubr.bf16.mxu0 %v11310_v48 }
 0x672   : > { %3068 = vmatmul.mubr.bf16.gmra.mrb[116].mxu0 %v11312_v31 }
 0x673   : > { %3075 = vmatprep.mubr.bf16.mxu0 %v11313_v60 }
 0x67a   : > { %3076 = vmatmul.mubr.bf16.gmra.mrb[120].mxu0 %v11315_v1  ;;  %v2710_v1 = vpop.permute.xlu0 %2709 }
 0x67b   : > { %3083 = vmatprep.mubr.bf16.mxu0 %v11316_v21 }
 0x682   : > { %3084 = vmatmul.mubr.bf16.gmra.mrb[124].mxu0 %v11318_v63 }
 0x683   : > { %3091 = vmatprep.mubr.bf16.mxu0 %v11319_v42 }
 0x68a   : > { %3092 = vmatmul.mubr.bf16.gmra.mrb[128].mxu0 %v11321_v39  ;;  %v2715_v39 = vpop.permute.xlu1 %2714 }
 0x68b   : > { %3099 = vmatprep.mubr.bf16.mxu0 %v11322_v35 }
 0x692   : > { %3100 = vmatmul.mubr.bf16.gmra.mrb[132].mxu0 %v11324_v28 }
 0x693   : > { %3107 = vmatprep.mubr.bf16.mxu0 %v11325_v27 }
 0x69a   : > { %3108 = vmatmul.mubr.bf16.gmra.mrb[136].mxu0 %v11327_v56 }
 0x69b   : > { %3115 = vmatprep.mubr.bf16.mxu0 %v11328_v19 }
 0x6a2   : > { %3116 = vmatmul.mubr.bf16.gmra.mrb[140].mxu0 %v11330_v9  ;;  %v11357_v9 = vld [vmem:[%s16567_s5 + $0x144] ss:$8 sps:$4 sm:$0xff]  }
 0x6a3   : > { %3123 = vmatprep.mubr.bf16.mxu0 %v11331_v23 }
 0x6aa   : > { %3124 = vmatmul.mubr.bf16.gmra.mrb[144].mxu0 %v11333_v30 }
 0x6ab   : > { %3131 = vmatprep.mubr.bf16.mxu0 %v11334_v2 }
 0x6b2   : > { %3132 = vmatmul.mubr.bf16.gmra.mrb[148].mxu0 %v11336_v0 }
 0x6b3   : > { %3139 = vmatprep.mubr.bf16.mxu0 %v11337_v49  ;;  %v2720_v49 = vpop.permute.xlu0 %2719 }
 0x6ba   : > { %3140 = vmatmul.mubr.bf16.gmra.mrb[152].mxu0 %v11339_v6 }
 0x6bb   : > { %3147 = vmatprep.mubr.bf16.mxu0 %v11340_v54 }
 0x6c2   : > { %3148 = vmatmul.mubr.bf16.gmra.mrb[156].mxu0 %v11342_v15  ;;  %v16982_v15 = vld [vmem:[#allocation8_spill] sm:$0xff] }
 0x6c3   : > { %3155 = vmatprep.mubr.bf16.mxu0 %v11343_v17 }
 0x6ca   : > { %3156 = vmatmul.mubr.bf16.gmra.mrb[160].mxu0 %v11345_v52 }
 0x6cb   : > { %3163 = vmatprep.mubr.bf16.mxu0 %v11346_v51 }
 0x6d2   : > { %3164 = vmatmul.mubr.bf16.gmra.mrb[164].mxu0 %v11348_v5  ;;  %v2725_v5 = vpop.permute.xlu1 %2724 }
 0x6d3   : > { %3171 = vmatprep.mubr.bf16.mxu0 %v11349_v33 }
 0x6da   : > { %3172 = vmatmul.mubr.bf16.gmra.mrb[168].mxu0 %v11351_v7 }
 0x6db   : > { %3179 = vmatprep.mubr.bf16.mxu0 %v11352_v50 }
 0x6e2   : > { %3180 = vmatmul.mubr.bf16.gmra.mrb[172].mxu0 %v11354_v59 }
 0x6e3   : > { %3846 = vmatprep.mubr.bf16.mxu0 %v11357_v9 }
 0x73d   : > { %v10232_v57 = vpop.f32.mrb[112].mxu0 }
 0x73e   : > { %v10233_v48 = vpop.f32.mrb[113].mxu0 }
 0x73f   : > { %v10234_v31 = vadd.f32 %v10233_v48, %v10232_v57  ;;  %v10235_v60 = vpop.f32.mrb[114].mxu0 }
 0x740   : > { %v10236_v21 = vpop.f32.mrb[115].mxu0 }
 0x741   : > { %v3062_v63 = vadd.f32 %v10234_v31, %v2710_v1  ;;  %v10237_v42 = vadd.f32 %v10236_v21, %v10235_v60  ;;  %v2730_v21 = vpop.permute.xlu0 %2729 }
 0x743   : > { %v3188_v35 = vmax.f32 %v3062_v63, 0.0  ;;  %v3065_v28 = vadd.f32 %v10237_v42, %v2715_v39  ;;  %v16984_v42 = vld [vmem:[#allocation13_spill] sm:$0xff] }
 0x745   : > { %v3220_v27 = vadd.f32 %v3188_v35, %v16950_v26  ;;  %v3189_v56 = vmax.f32 %v3065_v28, 0.0  ;;  %v10238_v19 = vpop.f32.mrb[116].mxu0  ;;  %v16980_v26 = vld [vmem:[#allocation9_spill] sm:$0xff] }
 0x746   : > { %v10239_v23 = vpop.f32.mrb[117].mxu0 }
 0x747   : > { %3252 = vst [vmem:[%s13533_s23] sm:$0xff] %v3220_v27  ;;  %v3221_v30 = vadd.f32 %v3189_v56, %v16951_v22  ;;  %v10240_v2 = vadd.f32 %v10239_v23, %v10238_v19  ;;  %v10241_v0 = vpop.f32.mrb[118].mxu0  ;;  %v13538_v54 = vadd.f32 %v3220_v27, %v16980_v26  ;;  %v2735_v56 = vpop.permute.xlu1 %2734 }
 0x748   : > { %v10242_v6 = vpop.f32.mrb[119].mxu0 }
 0x749   : > { %16981 = vst [vmem:[#allocation10_spill] sm:$0xff] %v13538_v54  ;;  %3253 = vst [vmem:[%s13533_s23 + $0x8] sm:$0xff] %v3221_v30  ;;  %v13542_v17 = vadd.f32 %v3221_v30, %v16982_v15  ;;  %v3070_v52 = vadd.f32 %v10240_v2, %v2720_v49  ;;  %v10243_v51 = vadd.f32 %v10242_v6, %v10241_v0 }
 0x74b   : > { %16983 = vst [vmem:[#allocation11_spill] sm:$0xff] %v13542_v17  ;;  %v3190_v33 = vmax.f32 %v3070_v52, 0.0  ;;  %v3073_v7 = vadd.f32 %v10243_v51, %v2725_v5  ;;  %v3316_v22 = vpack.c.bf16 %v13542_v17, %v13538_v54  ;;  %v2740_v51 = vpop.permute.xlu0 %2739  ;;  %v9538_v54 = vld [vmem:[%s16570_s8 + $0x1b0] sm:$0xff] }
 0x74d   : > { %v3222_v50 = vadd.f32 %v3190_v33, %v12519_v12  ;;  %v3191_v59 = vmax.f32 %v3073_v7, 0.0  ;;  %v10244_v57 = vpop.f32.mrb[120].mxu0  ;;  %3815 = vmatpush1.bf16.msra.mxu0 %v3316_v22  ;;  %11126 = vmatpush1.bf16.msra.mxu1 %v3316_v22  ;;  %v16985_v12 = vld [vmem:[#allocation12_spill] sm:$0xff]  ;;  %v16986_v33 = vld [vmem:[#allocation15_spill] sm:$0xff] }
 0x74e   : > { %v10245_v48 = vpop.f32.mrb[121].mxu0  ;;  %3816 = vmatprep.subr.bf16.mxu0 %v16924_v53  ;;  %11111 = vmatprep.subr.bf16.mxu1 %v16924_v53 }
 0x74f   : > { %3254 = vst [vmem:[%s13533_s23 + $0x10] sm:$0xff] %v3222_v50  ;;  %v3223_v31 = vadd.f32 %v3191_v59, %v12522_v13  ;;  %v10246_v60 = vadd.f32 %v10245_v48, %v10244_v57  ;;  %v10247_v1 = vpop.f32.mrb[122].mxu0  ;;  %v13552_v39 = vadd.f32 %v3222_v50, %v16984_v42  ;;  %v2745_v57 = vpop.permute.xlu1 %2744 }
 0x750   : > { %v10248_v63 = vpop.f32.mrb[123].mxu0 }
 0x751   : > { %3255 = vst [vmem:[%s13533_s23 + $0x18] sm:$0xff] %v3223_v31  ;;  %v13556_v35 = vadd.f32 %v3223_v31, %v16985_v12  ;;  %v3078_v28 = vadd.f32 %v10246_v60, %v2730_v21  ;;  %v10249_v27 = vadd.f32 %v10248_v63, %v10247_v1 }
 0x753   : > { %v3192_v19 = vmax.f32 %v3078_v28, 0.0  ;;  %v3081_v9 = vadd.f32 %v10249_v27, %v2735_v56  ;;  %v3317_v13 = vpack.c.bf16 %v13556_v35, %v13552_v39 }
 0x755   : > { %v3224_v23 = vadd.f32 %v3192_v19, %v16954_v40  ;;  %v3193_v30 = vmax.f32 %v3081_v9, 0.0  ;;  %v10250_v2 = vpop.f32.mrb[124].mxu0  ;;  %3817 = vmatpush1.bf16.msra.mxu0 %v3317_v13  ;;  %11127 = vmatpush1.bf16.msra.mxu1 %v3317_v13  ;;  %v16988_v40 = vld [vmem:[#allocation14_spill] sm:$0xff]  ;;  %v2750_v19 = vpop.permute.xlu0 %2749  ;;  %v16990_v13 = vld [vmem:[#allocation19_spill] sm:$0xff] }
 0x756   : > { %v10251_v0 = vpop.f32.mrb[125].mxu0  ;;  %3818 = vmatprep.subr.bf16.mxu0 %v16924_v53  ;;  %11112 = vmatprep.subr.bf16.mxu1 %v16924_v53 }
 0x757   : > { %3256 = vst [vmem:[%s13533_s23 + $0x20] sm:$0xff] %v3224_v23  ;;  %v3225_v49 = vadd.f32 %v3193_v30, %v16955_v44  ;;  %v10252_v6 = vadd.f32 %v10251_v0, %v10250_v2  ;;  %v10253_v52 = vpop.f32.mrb[126].mxu0  ;;  %v13566_v7 = vadd.f32 %v3224_v23, %v16986_v33 }
 0x758   : > { %v10254_v5 = vpop.f32.mrb[127].mxu0 }
 0x759   : > { %16987 = vst [vmem:[#allocation20_spill] sm:$0xff] %v13566_v7  ;;  %3257 = vst [vmem:[%s13533_s23 + $0x28] sm:$0xff] %v3225_v49  ;;  %v13570_v22 = vadd.f32 %v3225_v49, %v16988_v40  ;;  %v3086_v50 = vadd.f32 %v10252_v6, %v2740_v51  ;;  %v10255_v59 = vadd.f32 %v10254_v5, %v10253_v52  ;;  %v2755_v49 = vpop.permute.xlu1 %2754 }
 0x75b   : > { %16989 = vst [vmem:[#allocation21_spill] sm:$0xff] %v13570_v22  ;;  %v3194_v48 = vmax.f32 %v3086_v50, 0.0  ;;  %v3089_v31 = vadd.f32 %v10255_v59, %v2745_v57  ;;  %v3318_v44 = vpack.c.bf16 %v13570_v22, %v13566_v7 }
 0x75d   : > { %v3226_v60 = vadd.f32 %v3194_v48, %v16952_v34  ;;  %v3195_v1 = vmax.f32 %v3089_v31, 0.0  ;;  %v10256_v21 = vpop.f32.mrb[128].mxu0  ;;  %3819 = vmatpush1.bf16.msra.mxu0 %v3318_v44  ;;  %11128 = vmatpush1.bf16.msra.mxu1 %v3318_v44  ;;  %v16992_v34 = vld [vmem:[#allocation18_spill] sm:$0xff]  ;;  %v2760_v44 = vpop.permute.xlu0 %2759 }
 0x75e   : > { %v10257_v63 = vpop.f32.mrb[129].mxu0  ;;  %3820 = vmatprep.subr.bf16.mxu0 %v16924_v53  ;;  %11113 = vmatprep.subr.bf16.mxu1 %v16924_v53 }
 0x75f   : > { %3258 = vst [vmem:[%s13533_s23 + $0x30] sm:$0xff] %v3226_v60  ;;  %v3227_v28 = vadd.f32 %v3195_v1, %v16953_v38  ;;  %v10258_v27 = vadd.f32 %v10257_v63, %v10256_v21  ;;  %v10259_v56 = vpop.f32.mrb[130].mxu0  ;;  %v13580_v23 = vadd.f32 %v3226_v60, %v16990_v13  ;;  %v16994_v1 = vld [vmem:[#allocation23_spill] sm:$0xff] }
 0x760   : > { %v10260_v9 = vpop.f32.mrb[131].mxu0  ;;  %v9407_v13 = vld [vmem:[%s16568_s6 + $0x198] sm:$0xff] }
 0x761   : > { %16991 = vst [vmem:[#allocation16_spill] sm:$0xff] %v13580_v23  ;;  %3259 = vst [vmem:[%s13533_s23 + $0x38] sm:$0xff] %v3227_v28  ;;  %v13584_v30 = vadd.f32 %v3227_v28, %v16992_v34  ;;  %v3094_v2 = vadd.f32 %v10258_v27, %v2750_v19  ;;  %v10261_v0 = vadd.f32 %v10260_v9, %v10259_v56  ;;  %v2765_v56 = vpop.permute.xlu1 %2764 }
 0x763   : > { %16993 = vst [vmem:[#allocation17_spill] sm:$0xff] %v13584_v30  ;;  %v3196_v6 = vmax.f32 %v3094_v2, 0.0  ;;  %v3097_v52 = vadd.f32 %v10261_v0, %v2755_v49  ;;  %v3319_v38 = vpack.c.bf16 %v13584_v30, %v13580_v23 }
 0x765   : > { %v3228_v51 = vadd.f32 %v3196_v6, %v16958_v3  ;;  %v3197_v5 = vmax.f32 %v3097_v52, 0.0  ;;  %v10262_v50 = vpop.f32.mrb[132].mxu0  ;;  %3821 = vmatpush1.bf16.msra.mxu0 %v3319_v38  ;;  %11129 = vmatpush1.bf16.msra.mxu1 %v3319_v38  ;;  %v16996_v3 = vld [vmem:[#allocation22_spill] sm:$0xff] }
 0x766   : > { %v10263_v59 = vpop.f32.mrb[133].mxu0  ;;  %3822 = vmatprep.subr.bf16.mxu0 %v16924_v53  ;;  %11114 = vmatprep.subr.bf16.mxu1 %v16924_v53 }
 0x767   : > { %3260 = vst [vmem:[%s13533_s23 + $0x40] sm:$0xff] %v3228_v51  ;;  %v3229_v57 = vadd.f32 %v3197_v5, %v16959_v36  ;;  %v10264_v48 = vadd.f32 %v10263_v59, %v10262_v50  ;;  %v10265_v31 = vpop.f32.mrb[134].mxu0  ;;  %v13594_v21 = vadd.f32 %v3228_v51, %v16994_v1  ;;  %v2770_v5 = vpop.permute.xlu0 %2769  ;;  %v16998_v59 = vld [vmem:[#allocation27_spill] sm:$0xff]  ;;  %v9405_v1 = vld [vmem:[%s16568_s6 + $0x188] sm:$0xff] }
 0x768   : > { %v10266_v60 = vpop.f32.mrb[135].mxu0 }
 0x769   : > { %16995 = vst [vmem:[#allocation28_spill] sm:$0xff] %v13594_v21  ;;  %3261 = vst [vmem:[%s13533_s23 + $0x48] sm:$0xff] %v3229_v57  ;;  %v13598_v63 = vadd.f32 %v3229_v57, %v16996_v3  ;;  %v3102_v28 = vadd.f32 %v10264_v48, %v2760_v44  ;;  %v10267_v27 = vadd.f32 %v10266_v60, %v10265_v31  ;;  %v2775_v60 = vpop.permute.xlu1 %2774  ;;  %v11405_v3 = vld [vmem:[%s16567_s5 + $0x240] ss:$8 sps:$4 sm:$0xff]  }
 0x76b   : > { %16997 = vst [vmem:[#allocation29_spill] sm:$0xff] %v13598_v63  ;;  %v3198_v19 = vmax.f32 %v3102_v28, 0.0  ;;  %v3105_v9 = vadd.f32 %v10267_v27, %v2765_v56  ;;  %v3320_v36 = vpack.c.bf16 %v13598_v63, %v13594_v21 }
 0x76d   : > { %v3230_v2 = vadd.f32 %v3198_v19, %v16956_v8  ;;  %v3199_v0 = vmax.f32 %v3105_v9, 0.0  ;;  %v10268_v49 = vpop.f32.mrb[136].mxu0  ;;  %3823 = vmatpush1.bf16.msra.mxu0 %v3320_v36  ;;  %11130 = vmatpush1.bf16.msra.mxu1 %v3320_v36  ;;  %v17000_v8 = vld [vmem:[#allocation26_spill] sm:$0xff] }
 0x76e   : > { %v10269_v6 = vpop.f32.mrb[137].mxu0  ;;  %3824 = vmatprep.subr.bf16.mxu0 %v16924_v53  ;;  %11115 = vmatprep.subr.bf16.mxu1 %v16924_v53 }
 0x76f   : > { %3262 = vst [vmem:[%s13533_s23 + $0x50] sm:$0xff] %v3230_v2  ;;  %v3231_v52 = vadd.f32 %v3199_v0, %v16957_v47  ;;  %v10270_v38 = vadd.f32 %v10269_v6, %v10268_v49  ;;  %v10271_v51 = vpop.f32.mrb[138].mxu0  ;;  %v13608_v57 = vadd.f32 %v3230_v2, %v16998_v59  ;;  %v2780_v6 = vpop.permute.xlu0 %2779  ;;  %v11403_v59 = vld [vmem:[%s16567_s5 + $0x244] ss:$8 sps:$4 sm:$0xff]  }
 0x770   : > { %v10272_v50 = vpop.f32.mrb[139].mxu0 }
 0x771   : > { %16999 = vst [vmem:[#allocation24_spill] sm:$0xff] %v13608_v57  ;;  %3263 = vst [vmem:[%s13533_s23 + $0x58] sm:$0xff] %v3231_v52  ;;  %v13612_v48 = vadd.f32 %v3231_v52, %v17000_v8  ;;  %v3110_v31 = vadd.f32 %v10270_v38, %v2770_v5  ;;  %v10273_v44 = vadd.f32 %v10272_v50, %v10271_v51  ;;  %v17002_v38 = vld [vmem:[#allocation31_spill] sm:$0xff] }
 0x773   : > { %17001 = vst [vmem:[#allocation25_spill] sm:$0xff] %v13612_v48  ;;  %v3200_v28 = vmax.f32 %v3110_v31, 0.0  ;;  %v3113_v27 = vadd.f32 %v10273_v44, %v2775_v60  ;;  %v3321_v47 = vpack.c.bf16 %v13612_v48, %v13608_v57  ;;  %v2785_v44 = vpop.permute.xlu1 %2784  ;;  %v9533_v48 = vld [vmem:[%s16570_s8 + $0x188] sm:$0xff] }
 0x775   : > { %v3232_v56 = vadd.f32 %v3200_v28, %v16962_v29  ;;  %v3201_v19 = vmax.f32 %v3113_v27, 0.0  ;;  %v10274_v9 = vpop.f32.mrb[140].mxu0  ;;  %3825 = vmatpush1.bf16.msra.mxu0 %v3321_v47  ;;  %11131 = vmatpush1.bf16.msra.mxu1 %v3321_v47  ;;  %v17004_v29 = vld [vmem:[#allocation30_spill] sm:$0xff] }
 0x776   : > { %v10275_v36 = vpop.f32.mrb[141].mxu0  ;;  %3826 = vmatprep.subr.bf16.mxu0 %v16924_v53  ;;  %11116 = vmatprep.subr.bf16.mxu1 %v16924_v53 }
 0x777   : > { %3264 = vst [vmem:[%s13533_s23 + $0x60] sm:$0xff] %v3232_v56  ;;  %v3233_v2 = vadd.f32 %v3201_v19, %v16963_v58  ;;  %v10276_v0 = vadd.f32 %v10275_v36, %v10274_v9  ;;  %v10277_v49 = vpop.f32.mrb[142].mxu0  ;;  %v13622_v51 = vadd.f32 %v3232_v56, %v17002_v38  ;;  %v11402_v38 = vld [vmem:[%s16567_s5 + $0x230] ss:$8 sps:$4 sm:$0xff]  }
 0x778   : > { %v10278_v52 = vpop.f32.mrb[143].mxu0 }
 0x779   : > { %17003 = vst [vmem:[#allocation36_spill] sm:$0xff] %v13622_v51  ;;  %3265 = vst [vmem:[%s13533_s23 + $0x68] sm:$0xff] %v3233_v2  ;;  %v13626_v5 = vadd.f32 %v3233_v2, %v17004_v29  ;;  %v3118_v50 = vadd.f32 %v10276_v0, %v2780_v6  ;;  %v10279_v31 = vadd.f32 %v10278_v52, %v10277_v49  ;;  %v2790_v0 = vpop.permute.xlu0 %2789  ;;  %v17006_v6 = vld [vmem:[#allocation35_spill] sm:$0xff] }
 0x77b   : > { %17005 = vst [vmem:[#allocation37_spill] sm:$0xff] %v13626_v5  ;;  %v3202_v60 = vmax.f32 %v3118_v50, 0.0  ;;  %v3121_v28 = vadd.f32 %v10279_v31, %v2785_v44  ;;  %v3322_v58 = vpack.c.bf16 %v13626_v5, %v13622_v51 }
 0x77d   : > { %v3234_v27 = vadd.f32 %v3202_v60, %v16960_v18  ;;  %v3203_v47 = vmax.f32 %v3121_v28, 0.0  ;;  %v10280_v19 = vpop.f32.mrb[144].mxu0  ;;  %3827 = vmatpush1.bf16.msra.mxu0 %v3322_v58  ;;  %11132 = vmatpush1.bf16.msra.mxu1 %v3322_v58  ;;  %v17008_v18 = vld [vmem:[#allocation34_spill] sm:$0xff]  ;;  %v2795_v60 = vpop.permute.xlu1 %2794 }
 0x77e   : > { %v10281_v56 = vpop.f32.mrb[145].mxu0  ;;  %3828 = vmatprep.subr.bf16.mxu0 %v16924_v53  ;;  %11117 = vmatprep.subr.bf16.mxu1 %v16924_v53 }
 0x77f   : > { %3266 = vst [vmem:[%s13533_s23 + $0x70] sm:$0xff] %v3234_v27  ;;  %v3235_v9 = vadd.f32 %v3203_v47, %v16961_v4  ;;  %v10282_v36 = vadd.f32 %v10281_v56, %v10280_v19  ;;  %v10283_v2 = vpop.f32.mrb[146].mxu0  ;;  %v13636_v52 = vadd.f32 %v3234_v27, %v17006_v6 }
 0x780   : > { %v10284_v49 = vpop.f32.mrb[147].mxu0 }
 0x781   : > { %17007 = vst [vmem:[#allocation32_spill] sm:$0xff] %v13636_v52  ;;  %3267 = vst [vmem:[%s13533_s23 + $0x78] sm:$0xff] %v3235_v9  ;;  %v13640_v50 = vadd.f32 %v3235_v9, %v17008_v18  ;;  %v3126_v31 = vadd.f32 %v10282_v36, %v2790_v0  ;;  %v10285_v44 = vadd.f32 %v10284_v49, %v10283_v2  ;;  %v2800_v0 = vpop.permute.xlu0 %2799 }
 0x783   : > { %17009 = vst [vmem:[#allocation33_spill] sm:$0xff] %v13640_v50  ;;  %v3204_v28 = vmax.f32 %v3126_v31, 0.0  ;;  %v3129_v58 = vadd.f32 %v10285_v44, %v2795_v60  ;;  %v3323_v4 = vpack.c.bf16 %v13640_v50, %v13636_v52  ;;  %v17010_v31 = vld [vmem:[#allocation39_spill] sm:$0xff] }
 0x785   : > { %v3236_v47 = vadd.f32 %v3204_v28, %v16966_v16  ;;  %v3205_v19 = vmax.f32 %v3129_v58, 0.0  ;;  %v10286_v56 = vpop.f32.mrb[148].mxu0  ;;  %3829 = vmatpush1.bf16.msra.mxu0 %v3323_v4  ;;  %11133 = vmatpush1.bf16.msra.mxu1 %v3323_v4  ;;  %v17012_v16 = vld [vmem:[#allocation38_spill] sm:$0xff]  ;;  %v2805_v4 = vpop.permute.xlu1 %2804 }
 0x786   : > { %v10287_v27 = vpop.f32.mrb[149].mxu0  ;;  %3830 = vmatprep.subr.bf16.mxu0 %v16924_v53  ;;  %11118 = vmatprep.subr.bf16.mxu1 %v16924_v53 }
 0x787   : > { %3268 = vst [vmem:[%s13533_s23 + $0x80] sm:$0xff] %v3236_v47  ;;  %v3237_v9 = vadd.f32 %v3205_v19, %v16967_v24  ;;  %v10288_v36 = vadd.f32 %v10287_v27, %v10286_v56  ;;  %v10289_v2 = vpop.f32.mrb[150].mxu0  ;;  %v13650_v44 = vadd.f32 %v3236_v47, %v17010_v31 }
 0x788   : > { %v10290_v49 = vpop.f32.mrb[151].mxu0 }
 0x789   : > { %17011 = vst [vmem:[#allocation44_spill] sm:$0xff] %v13650_v44  ;;  %3269 = vst [vmem:[%s13533_s23 + $0x88] sm:$0xff] %v3237_v9  ;;  %v13654_v60 = vadd.f32 %v3237_v9, %v17012_v16  ;;  %v3134_v28 = vadd.f32 %v10288_v36, %v2800_v0  ;;  %v10291_v58 = vadd.f32 %v10290_v49, %v10289_v2  ;;  %v2810_v0 = vpop.permute.xlu0 %2809 }
 0x78b   : > { %17013 = vst [vmem:[#allocation45_spill] sm:$0xff] %v13654_v60  ;;  %v3206_v18 = vmax.f32 %v3134_v28, 0.0  ;;  %v3137_v6 = vadd.f32 %v10291_v58, %v2805_v4  ;;  %v3324_v24 = vpack.c.bf16 %v13654_v60, %v13650_v44  ;;  %v17014_v28 = vld [vmem:[#allocation43_spill] sm:$0xff]  ;;  %v9429_v60 = vld [vmem:[%s16568_s6 + $0x248] sm:$0xff] }
 0x78d   : > { %v3238_v19 = vadd.f32 %v3206_v18, %v16964_v10  ;;  %v3207_v56 = vmax.f32 %v3137_v6, 0.0  ;;  %v10292_v27 = vpop.f32.mrb[152].mxu0  ;;  %3831 = vmatpush1.bf16.msra.mxu0 %v3324_v24  ;;  %11134 = vmatpush1.bf16.msra.mxu1 %v3324_v24  ;;  %v17016_v10 = vld [vmem:[#allocation42_spill] sm:$0xff]  ;;  %v2815_v24 = vpop.permute.xlu1 %2814 }
 0x78e   : > { %v10293_v47 = vpop.f32.mrb[153].mxu0  ;;  %3832 = vmatprep.subr.bf16.mxu0 %v16924_v53  ;;  %11119 = vmatprep.subr.bf16.mxu1 %v16924_v53 }
 0x78f   : > { %3270 = vst [vmem:[%s13533_s23 + $0x90] sm:$0xff] %v3238_v19  ;;  %v3239_v9 = vadd.f32 %v3207_v56, %v16965_v11  ;;  %v10294_v36 = vadd.f32 %v10293_v47, %v10292_v27  ;;  %v10295_v2 = vpop.f32.mrb[154].mxu0  ;;  %v13664_v58 = vadd.f32 %v3238_v19, %v17014_v28 }
 0x790   : > { %v10296_v49 = vpop.f32.mrb[155].mxu0 }
 0x791   : > { %17015 = vst [vmem:[#allocation40_spill] sm:$0xff] %v13664_v58  ;;  %3271 = vst [vmem:[%s13533_s23 + $0x98] sm:$0xff] %v3239_v9  ;;  %v13668_v6 = vadd.f32 %v3239_v9, %v17016_v10  ;;  %v3142_v18 = vadd.f32 %v10294_v36, %v2810_v0  ;;  %v10297_v4 = vadd.f32 %v10296_v49, %v10295_v2  ;;  %v2820_v0 = vpop.permute.xlu0 %2819 }
 0x793   : > { %17017 = vst [vmem:[#allocation41_spill] sm:$0xff] %v13668_v6  ;;  %v3208_v16 = vmax.f32 %v3142_v18, 0.0  ;;  %v3145_v31 = vadd.f32 %v10297_v4, %v2815_v24  ;;  %v3325_v11 = vpack.c.bf16 %v13668_v6, %v13664_v58  ;;  %v17018_v18 = vld [vmem:[#allocation47_spill] sm:$0xff] }
 0x795   : > { %v3240_v56 = vadd.f32 %v3208_v16, %v16970_v61  ;;  %v3209_v27 = vmax.f32 %v3145_v31, 0.0  ;;  %v10298_v47 = vpop.f32.mrb[156].mxu0  ;;  %3833 = vmatpush1.bf16.msra.mxu0 %v3325_v11  ;;  %11135 = vmatpush1.bf16.msra.mxu1 %v3325_v11  ;;  %v17020_v61 = vld [vmem:[#allocation46_spill] sm:$0xff]  ;;  %v2825_v11 = vpop.permute.xlu1 %2824 }
 0x796   : > { %v10299_v19 = vpop.f32.mrb[157].mxu0  ;;  %3834 = vmatprep.subr.bf16.mxu0 %v16924_v53  ;;  %11120 = vmatprep.subr.bf16.mxu1 %v16924_v53 }
 0x797   : > { %3272 = vst [vmem:[%s13533_s23 + $0xa0] sm:$0xff] %v3240_v56  ;;  %v3241_v9 = vadd.f32 %v3209_v27, %v16971_v62  ;;  %v10300_v36 = vadd.f32 %v10299_v19, %v10298_v47  ;;  %v10301_v2 = vpop.f32.mrb[158].mxu0  ;;  %v13678_v4 = vadd.f32 %v3240_v56, %v17018_v18 }
 0x798   : > { %v10302_v49 = vpop.f32.mrb[159].mxu0 }
 0x799   : > { %17019 = vst [vmem:[#allocation52_spill] sm:$0xff] %v13678_v4  ;;  %3273 = vst [vmem:[%s13533_s23 + $0xa8] sm:$0xff] %v3241_v9  ;;  %v13682_v31 = vadd.f32 %v3241_v9, %v17020_v61  ;;  %v3150_v16 = vadd.f32 %v10300_v36, %v2820_v0  ;;  %v10303_v24 = vadd.f32 %v10302_v49, %v10301_v2  ;;  %v2830_v0 = vpop.permute.xlu0 %2829 }
 0x79b   : > { %17021 = vst [vmem:[#allocation53_spill] sm:$0xff] %v13682_v31  ;;  %v3210_v10 = vmax.f32 %v3150_v16, 0.0  ;;  %v3153_v28 = vadd.f32 %v10303_v24, %v2825_v11  ;;  %v3326_v62 = vpack.c.bf16 %v13682_v31, %v13678_v4  ;;  %v17022_v16 = vld [vmem:[#allocation51_spill] sm:$0xff]  ;;  %v9421_v31 = vld [vmem:[%s16568_s6 + $0x208] sm:$0xff] }
 0x79c   : > { %v9423_v4 = vld [vmem:[%s16568_s6 + $0x218] sm:$0xff] }
 0x79d   : > { %v3242_v27 = vadd.f32 %v3210_v10, %v16968_v32  ;;  %v3211_v47 = vmax.f32 %v3153_v28, 0.0  ;;  %v10304_v19 = vpop.f32.mrb[160].mxu0  ;;  %3835 = vmatpush1.bf16.msra.mxu0 %v3326_v62  ;;  %11136 = vmatpush1.bf16.msra.mxu1 %v3326_v62  ;;  %v17024_v32 = vld [vmem:[#allocation50_spill] sm:$0xff]  ;;  %v2835_v62 = vpop.permute.xlu1 %2834 }
 0x79e   : > { %v10305_v56 = vpop.f32.mrb[161].mxu0  ;;  %3836 = vmatprep.subr.bf16.mxu0 %v16924_v53  ;;  %11121 = vmatprep.subr.bf16.mxu1 %v16924_v53 }
 0x79f   : > { %3274 = vst [vmem:[%s13533_s23 + $0xb0] sm:$0xff] %v3242_v27  ;;  %v3243_v9 = vadd.f32 %v3211_v47, %v16969_v45  ;;  %v10306_v36 = vadd.f32 %v10305_v56, %v10304_v19  ;;  %v10307_v2 = vpop.f32.mrb[162].mxu0  ;;  %v13692_v24 = vadd.f32 %v3242_v27, %v17022_v16 }
 0x7a0   : > { %v10308_v49 = vpop.f32.mrb[163].mxu0 }
 0x7a1   : > { %17023 = vst [vmem:[#allocation48_spill] sm:$0xff] %v13692_v24  ;;  %3275 = vst [vmem:[%s13533_s23 + $0xb8] sm:$0xff] %v3243_v9  ;;  %v13696_v28 = vadd.f32 %v3243_v9, %v17024_v32  ;;  %v3158_v10 = vadd.f32 %v10306_v36, %v2830_v0  ;;  %v10309_v11 = vadd.f32 %v10308_v49, %v10307_v2  ;;  %v2840_v0 = vpop.permute.xlu0 %2839 }
 0x7a3   : > { %17025 = vst [vmem:[#allocation49_spill] sm:$0xff] %v13696_v28  ;;  %v3212_v61 = vmax.f32 %v3158_v10, 0.0  ;;  %v3161_v18 = vadd.f32 %v10309_v11, %v2835_v62  ;;  %v3327_v45 = vpack.c.bf16 %v13696_v28, %v13692_v24  ;;  %v17026_v10 = vld [vmem:[#allocation55_spill] sm:$0xff]  ;;  %v9425_v28 = vld [vmem:[%s16568_s6 + $0x228] sm:$0xff] }
 0x7a4   : > { %v9427_v24 = vld [vmem:[%s16568_s6 + $0x238] sm:$0xff] }
 0x7a5   : > { %v3244_v47 = vadd.f32 %v3212_v61, %v16974_v55  ;;  %v3213_v19 = vmax.f32 %v3161_v18, 0.0  ;;  %v10310_v56 = vpop.f32.mrb[164].mxu0  ;;  %3837 = vmatpush1.bf16.msra.mxu0 %v3327_v45  ;;  %11137 = vmatpush1.bf16.msra.mxu1 %v3327_v45  ;;  %v17028_v55 = vld [vmem:[#allocation54_spill] sm:$0xff]  ;;  %v2845_v45 = vpop.permute.xlu1 %2844 }
 0x7a6   : > { %v10311_v27 = vpop.f32.mrb[165].mxu0  ;;  %3838 = vmatprep.subr.bf16.mxu0 %v16924_v53  ;;  %11122 = vmatprep.subr.bf16.mxu1 %v16924_v53 }
 0x7a7   : > { %3276 = vst [vmem:[%s13533_s23 + $0xc0] sm:$0xff] %v3244_v47  ;;  %v3245_v9 = vadd.f32 %v3213_v19, %v16975_v37  ;;  %v10312_v36 = vadd.f32 %v10311_v27, %v10310_v56  ;;  %v10313_v2 = vpop.f32.mrb[166].mxu0  ;;  %v13706_v11 = vadd.f32 %v3244_v47, %v17026_v10 }
 0x7a8   : > { %v10314_v49 = vpop.f32.mrb[167].mxu0 }
 0x7a9   : > { %17027 = vst [vmem:[#allocation60_spill] sm:$0xff] %v13706_v11  ;;  %3277 = vst [vmem:[%s13533_s23 + $0xc8] sm:$0xff] %v3245_v9  ;;  %v13710_v18 = vadd.f32 %v3245_v9, %v17028_v55  ;;  %v3166_v61 = vadd.f32 %v10312_v36, %v2840_v0  ;;  %v10315_v62 = vadd.f32 %v10314_v49, %v10313_v2  ;;  %v2850_v0 = vpop.permute.xlu0 %2849 }
 0x7ab   : > { %17029 = vst [vmem:[#allocation61_spill] sm:$0xff] %v13710_v18  ;;  %v3214_v32 = vmax.f32 %v3166_v61, 0.0  ;;  %v3169_v16 = vadd.f32 %v10315_v62, %v2845_v45  ;;  %v3328_v37 = vpack.c.bf16 %v13710_v18, %v13706_v11  ;;  %v17030_v61 = vld [vmem:[#allocation59_spill] sm:$0xff] }
 0x7ac   : > { %v9415_v11 = vld [vmem:[%s16568_s6 + $0x1d8] sm:$0xff] }
 0x7ad   : > { %v3246_v19 = vadd.f32 %v3214_v32, %v16972_v25  ;;  %v3215_v56 = vmax.f32 %v3169_v16, 0.0  ;;  %v10316_v27 = vpop.f32.mrb[168].mxu0  ;;  %3839 = vmatpush1.bf16.msra.mxu0 %v3328_v37  ;;  %11138 = vmatpush1.bf16.msra.mxu1 %v3328_v37  ;;  %v17032_v25 = vld [vmem:[#allocation58_spill] sm:$0xff]  ;;  %v2855_v37 = vpop.permute.xlu1 %2854 }
 0x7ae   : > { %v10317_v47 = vpop.f32.mrb[169].mxu0  ;;  %3840 = vmatprep.subr.bf16.mxu0 %v16924_v53  ;;  %11123 = vmatprep.subr.bf16.mxu1 %v16924_v53 }
 0x7af   : > { %3278 = vst [vmem:[%s13533_s23 + $0xd0] sm:$0xff] %v3246_v19  ;;  %v3247_v9 = vadd.f32 %v3215_v56, %v16973_v46  ;;  %v10318_v36 = vadd.f32 %v10317_v47, %v10316_v27  ;;  %v10319_v2 = vpop.f32.mrb[170].mxu0  ;;  %v13720_v62 = vadd.f32 %v3246_v19, %v17030_v61 }
 0x7b0   : > { %v10320_v49 = vpop.f32.mrb[171].mxu0 }
 0x7b1   : > { %17031 = vst [vmem:[#allocation56_spill] sm:$0xff] %v13720_v62  ;;  %3279 = vst [vmem:[%s13533_s23 + $0xd8] sm:$0xff] %v3247_v9  ;;  %v13724_v16 = vadd.f32 %v3247_v9, %v17032_v25  ;;  %v3174_v32 = vadd.f32 %v10318_v36, %v2850_v0  ;;  %v10321_v45 = vadd.f32 %v10320_v49, %v10319_v2  ;;  %v2860_v0 = vpop.permute.xlu0 %2859 }
 0x7b3   : > { %17033 = vst [vmem:[#allocation57_spill] sm:$0xff] %v13724_v16  ;;  %v3216_v55 = vmax.f32 %v3174_v32, 0.0  ;;  %v3177_v10 = vadd.f32 %v10321_v45, %v2855_v37  ;;  %v3329_v46 = vpack.c.bf16 %v13724_v16, %v13720_v62  ;;  %v17034_v32 = vld [vmem:[#allocation63_spill] sm:$0xff] }
 0x7b4   : > { %v9419_v62 = vld [vmem:[%s16568_s6 + $0x1f8] sm:$0xff] }
 0x7b5   : > { %v3248_v56 = vadd.f32 %v3216_v55, %v16978_v14  ;;  %v3217_v27 = vmax.f32 %v3177_v10, 0.0  ;;  %v10322_v47 = vpop.f32.mrb[172].mxu0  ;;  %3841 = vmatpush1.bf16.msra.mxu0 %v3329_v46  ;;  %11139 = vmatpush1.bf16.msra.mxu1 %v3329_v46  ;;  %v17036_v14 = vld [vmem:[#allocation62_spill] sm:$0xff]  ;;  %v2865_v46 = vpop.permute.xlu1 %2864 }
 0x7b6   : > { %v10323_v19 = vpop.f32.mrb[173].mxu0  ;;  %3842 = vmatprep.subr.bf16.mxu0 %v16924_v53  ;;  %11124 = vmatprep.subr.bf16.mxu1 %v16924_v53 }
 0x7b7   : > { %3280 = vst [vmem:[%s13533_s23 + $0xe0] sm:$0xff] %v3248_v56  ;;  %v3249_v9 = vadd.f32 %v3217_v27, %v16979_v20  ;;  %v10324_v36 = vadd.f32 %v10323_v19, %v10322_v47  ;;  %v10325_v2 = vpop.f32.mrb[174].mxu0  ;;  %v13734_v45 = vadd.f32 %v3248_v56, %v17034_v32  ;;  %v17038_v19 = vld [vmem:[#allocation67_spill] sm:$0xff] }
 0x7b8   : > { %v10326_v49 = vpop.f32.mrb[175].mxu0 }
 0x7b9   : > { %17035 = vst [vmem:[#allocation68_spill] sm:$0xff] %v13734_v45  ;;  %3281 = vst [vmem:[%s13533_s23 + $0xe8] sm:$0xff] %v3249_v9  ;;  %v13738_v10 = vadd.f32 %v3249_v9, %v17036_v14  ;;  %v3182_v55 = vadd.f32 %v10324_v36, %v2860_v0  ;;  %v10327_v37 = vadd.f32 %v10326_v49, %v10325_v2  ;;  %v17040_v36 = vld [vmem:[#allocation66_spill] sm:$0xff]  ;;  %v11361_v0 = vld [vmem:[%s16567_s5 + $0x164] ss:$8 sps:$4 sm:$0xff]  }
 0x7ba   : > { %v11363_v49 = vld [vmem:[%s16567_s5 + $0x160] ss:$8 sps:$4 sm:$0xff]  }
 0x7bb   : > { %17037 = vst [vmem:[#allocation69_spill] sm:$0xff] %v13738_v10  ;;  %v3218_v25 = vmax.f32 %v3182_v55, 0.0  ;;  %v3185_v61 = vadd.f32 %v10327_v37, %v2865_v46  ;;  %v3330_v20 = vpack.c.bf16 %v13738_v10, %v13734_v45  ;;  %v11364_v55 = vld [vmem:[%s16567_s5 + $0x174] ss:$8 sps:$4 sm:$0xff]   ;;  %v11366_v37 = vld [vmem:[%s16567_s5 + $0x170] ss:$8 sps:$4 sm:$0xff]  }
 0x7bc   : > { %v11367_v46 = vld [vmem:[%s16567_s5 + $0x184] ss:$8 sps:$4 sm:$0xff]  }
 0x7bd   : > { %v3250_v27 = vadd.f32 %v3218_v25, %v16976_v41  ;;  %v3219_v47 = vmax.f32 %v3185_v61, 0.0  ;;  %3843 = vmatpush1.bf16.msra.mxu0 %v3330_v20  ;;  %11140 = vmatpush1.bf16.msra.mxu1 %v3330_v20  ;;  %v11355_v61 = vld [vmem:[%s16567_s5 + $0x140] ss:$8 sps:$4 sm:$0xff]   ;;  %v11360_v25 = vld [vmem:[%s16567_s5 + $0x150] ss:$8 sps:$4 sm:$0xff]  }
 0x7be   : > { %3844 = vmatprep.subr.bf16.mxu0 %v16924_v53  ;;  %11125 = vmatprep.subr.bf16.mxu1 %v16924_v53  ;;  %v11369_v20 = vld [vmem:[%s16567_s5 + $0x180] ss:$8 sps:$4 sm:$0xff]  }
 0x7bf   : > { %3282 = vst [vmem:[%s13533_s23 + $0xf0] sm:$0xff] %v3250_v27  ;;  %v3251_v56 = vadd.f32 %v3219_v47, %v16977_v43  ;;  %v13748_v9 = vadd.f32 %v3250_v27, %v17038_v19  ;;  %v11358_v43 = vld [vmem:[%s16567_s5 + $0x154] ss:$8 sps:$4 sm:$0xff]   ;;  %v3422_v47 = vpop.permute.xlu1 %3421 }
 0x7c1   : > { %17039 = vst [vmem:[#allocation64_spill] sm:$0xff] %v13748_v9  ;;  %3283 = vst [vmem:[%s13533_s23 + $0xf8] sm:$0xff] %v3251_v56  ;;  %v13752_v2 = vadd.f32 %v3251_v56, %v17040_v36 }
 0x7c3   : > { %17041 = vst [vmem:[#allocation65_spill] sm:$0xff] %v13752_v2  ;;  %v3331_v41 = vpack.c.bf16 %v13752_v2, %v13748_v9  ;;  %v9411_v2 = vld [vmem:[%s16568_s6 + $0x1b8] sm:$0xff] }
 0x7c5   : > { %3845 = vmatpush1.bf16.msra.mxu0 %v3331_v41  ;;  %11141 = vmatpush1.bf16.msra.mxu1 %v3331_v41  ;;  %v3417_v41 = vpop.permute.xlu0 %3416 }
 0x7c8   : > { %3847 = vmatmul.mubr.bf16.vlgmr.msra.gmra.mrb[176].mxu0 %v11355_v61 }
 0x7c9   : > { %3854 = vmatprep.mubr.bf16.mxu0 %v11358_v43  ;;  %v3427_v19 = vpop.permute.xlu0 %3426 }
 0x7d0   : > { %3855 = vmatmul.mubr.bf16.gmra.mrb[180].mxu0 %v11360_v25 }
 0x7d1   : > { %3862 = vmatprep.mubr.bf16.mxu0 %v11361_v0 }
 0x7d8   : > { %3863 = vmatmul.mubr.bf16.gmra.mrb[184].mxu0 %v11363_v49 }
 0x7d9   : > { %3870 = vmatprep.mubr.bf16.mxu0 %v11364_v55 }
 0x7e0   : > { %3871 = vmatmul.mubr.bf16.gmra.mrb[188].mxu0 %v11366_v37  ;;  %v3432_v37 = vpop.permute.xlu1 %3431 }
 0x7e1   : > { %3878 = vmatprep.mubr.bf16.mxu0 %v11367_v46 }
 0x7e8   : > { %3879 = vmatmul.mubr.bf16.gmra.mrb[192].mxu0 %v11369_v20 }
 0x89b   : > { %v3848_v27 = vpop.f32.mrb[176].mxu0 }
 0x89c   : > { %v3850_v56 = vpop.f32.mrb[177].mxu0  ;;  %v3849_v43 = vadd.f32 %v3848_v27, %v3417_v41  ;;  %v3442_v27 = vpop.permute.xlu1 %3441 }
 0x89d   : > { %v3851_v61 = vpop.f32.mrb[178].mxu0  ;;  %v3437_v41 = vpop.permute.xlu0 %3436 }
 0x89e   : > { %v3852_v25 = vadd.f32 %v3851_v61, %v3422_v47  ;;  %v3853_v0 = vpop.f32.mrb[179].mxu0 }
 0x8a0   : > { %v4007_v49 = vpack.c.bf16 %v3852_v25, %v3849_v43 }
 0x8a2   : > { %4027 = vxpose.xlu0.c.b16.start [1/4] (short) %v4007_v49, 128  ;;  %10894 = vmatprep.subr.bf16.mxu0 %v4007_v49 }
 0x8a3   : > { %v3856_v55 = vpop.f32.mrb[180].mxu0  ;;  %10895 = vmatpush3.bf16.msra.mxu0 %v4007_v49 }
 0x8a4   : > { %v3858_v36 = vpop.f32.mrb[181].mxu0  ;;  %v3857_v32 = vadd.f32 %v3856_v55, %v3427_v19  ;;  %v3447_v55 = vpop.permute.xlu0 %3446 }
 0x8a5   : > { %v3859_v14 = vpop.f32.mrb[182].mxu0  ;;  %v11370_v36 = vld [vmem:[%s16567_s5 + $0x190] ss:$8 sps:$4 sm:$0xff]  }
 0x8a6   : > { %v3860_v46 = vadd.f32 %v3859_v14, %v3432_v37  ;;  %v3861_v20 = vpop.f32.mrb[183].mxu0 }
 0x8a8   : > { %v4008_v29 = vpack.c.bf16 %v3860_v46, %v3857_v32  ;;  %v11372_v32 = vld [vmem:[%s16567_s5 + $0x194] ss:$8 sps:$4 sm:$0xff]  }
 0x8a9   : > { %3886 = vmatprep.mubr.bf16.mxu1 %v11372_v32 }
 0x8aa   : > { %4028 = vxpose.xlu0.c.b16.cont [2/4] (short) %v4008_v29, 128  ;;  %10896 = vmatprep.subr.bf16.mxu0 %v4008_v29 }
 0x8ab   : > { %v3864_v56 = vpop.f32.mrb[184].mxu0  ;;  %10897 = vmatpush3.bf16.msra.mxu0 %v4008_v29  ;;  %v3452_v29 = vpop.permute.xlu1 %3451  ;;  %3887 = vmatmul.mubr.bf16.vlgmr.msra.gmra.mrb[112].mxu1 %v11370_v36 }
 0x8ac   : > { %v3866_v47 = vpop.f32.mrb[185].mxu0  ;;  %v3865_v43 = vadd.f32 %v3864_v56, %v3437_v41 }
 0x8ad   : > { %v3867_v61 = vpop.f32.mrb[186].mxu0 }
 0x8ae   : > { %v3868_v25 = vadd.f32 %v3867_v61, %v3442_v27  ;;  %v3869_v0 = vpop.f32.mrb[187].mxu0 }
 0x8b0   : > { %v4009_v49 = vpack.c.bf16 %v3868_v25, %v3865_v43 }
 0x8b2   : > { %4029 = vxpose.xlu0.c.b16.cont [3/4] (short) %v4009_v49, 128  ;;  %10898 = vmatprep.subr.bf16.mxu0 %v4009_v49 }
 0x8b3   : > { %v3872_v14 = vpop.f32.mrb[188].mxu0  ;;  %10899 = vmatpush3.bf16.msra.mxu0 %v4009_v49 }
 0x8b4   : > { %v3874_v19 = vpop.f32.mrb[189].mxu0  ;;  %v3873_v46 = vadd.f32 %v3872_v14, %v3447_v55  ;;  %v11373_v55 = vld [vmem:[%s16567_s5 + $0x1a4] ss:$8 sps:$4 sm:$0xff]  }
 0x8b5   : > { %v3875_v37 = vpop.f32.mrb[190].mxu0  ;;  %3894 = vmatprep.mubr.bf16.mxu1 %v11373_v55 }
 0x8b6   : > { %v3876_v20 = vadd.f32 %v3875_v37, %v3452_v29  ;;  %v3877_v56 = vpop.f32.mrb[191].mxu0  ;;  %v11375_v37 = vld [vmem:[%s16567_s5 + $0x1a0] ss:$8 sps:$4 sm:$0xff]  }
 0x8b7   : > { %3895 = vmatmul.mubr.bf16.gmra.mrb[116].mxu1 %v11375_v37  ;;  %v11379_v56 = vld [vmem:[%s16567_s5 + $0x1c4] ss:$8 sps:$4 sm:$0xff]  }
 0x8b8   : > { %v4010_v27 = vpack.c.bf16 %v3876_v20, %v3873_v46  ;;  %v11376_v46 = vld [vmem:[%s16567_s5 + $0x1b4] ss:$8 sps:$4 sm:$0xff]   ;;  %v11378_v20 = vld [vmem:[%s16567_s5 + $0x1b0] ss:$8 sps:$4 sm:$0xff]  }
 0x8b9   : > { %3902 = vmatprep.mubr.bf16.mxu1 %v11376_v46 }
 0x8ba   : > { %4030 = vxpose.xlu0.c.b16.end [4/4] (short) %v4010_v27, 128  ;;  %10900 = vmatprep.subr.bf16.mxu0 %v4010_v27 }
 0x8bb   : > { %10901 = vmatpush3.bf16.msra.mxu0 %v4010_v27  ;;  %v13789_v47 = vpop.f32.mrb[192].mxu0  ;;  %v11381_v27 = vld [vmem:[%s16567_s5 + $0x1c0] ss:$8 sps:$4 sm:$0xff]  }
 0x8bc   : > { %v3882_v41 = vpop.f32.mrb[193].mxu0 }
 0x8bd   : > { %v13791_v61 = vpop.f32.mrb[194].mxu0  ;;  %v11382_v41 = vld [vmem:[%s16567_s5 + $0x1d4] ss:$8 sps:$4 sm:$0xff]  }
 0x8be   : > { %v3885_v25 = vpop.f32.mrb[195].mxu0 }
 0x8bf   : > { %3903 = vmatmul.mubr.bf16.gmra.mrb[120].mxu1 %v11378_v20  ;;  %v11385_v25 = vld [vmem:[%s16567_s5 + $0x1e4] ss:$8 sps:$4 sm:$0xff]  }
 0x8c0   : > { %3910 = vmatprep.mubr.bf16.mxu1 %v11379_v56 }
 0x8c7   : > { %3911 = vmatmul.mubr.bf16.gmra.mrb[124].mxu1 %v11381_v27 }
 0x8c8   : > { %3918 = vmatprep.mubr.bf16.mxu1 %v11382_v41 }
 0x914   : > { %v4035_v43 = vpop.trf.xlu0 }
 0x915   : > { %10902 = vmatprep.mubr.msk.bf16.mxu0 %vm2105_vm2, %v4035_v43  ;;  %v11384_v43 = vld [vmem:[%s16567_s5 + $0x1d0] ss:$8 sps:$4 sm:$0xff]  }
 0x916   : > { %3919 = vmatmul.mubr.bf16.gmra.mrb[128].mxu1 %v11384_v43 }
 0x917   : > { %3926 = vmatprep.mubr.bf16.mxu1 %v11385_v25  ;;  %v11397_v25 = vld [vmem:[%s16567_s5 + $0x224] ss:$8 sps:$4 sm:$0xff]  }
 0x918   : > { %v4036_v0 = vpop.trf.xlu0 }
 0x919   : > { %10903 = vmatmul.mubr.msk.bf16.vlgmr.msra.gmra.mrb[196].mxu0 %vm2105_vm2, %v4036_v0  ;;  %v11387_v0 = vld [vmem:[%s16567_s5 + $0x1e0] ss:$8 sps:$4 sm:$0xff]  }
 0x91c   : > { %v4037_v49 = vpop.trf.xlu0 }
 0x91d   : > { %10906 = vmatprep.mubr.msk.bf16.mxu0 %vm2105_vm2, %v4037_v49  ;;  %v11388_v49 = vld [vmem:[%s16567_s5 + $0x1f4] ss:$8 sps:$4 sm:$0xff]  }
 0x91e   : > { %3927 = vmatmul.mubr.bf16.gmra.mrb[132].mxu1 %v11387_v0 }
 0x91f   : > { %3934 = vmatprep.mubr.bf16.mxu1 %v11388_v49  ;;  %v11399_v49 = vld [vmem:[%s16567_s5 + $0x220] ss:$8 sps:$4 sm:$0xff]  }
 0x920   : > { %v4038_v36 = vpop.trf.xlu0 }
 0x921   : > { %10907 = vmatmul.mubr.msk.bf16.gmra.mrb[200].mxu0 %vm2105_vm2, %v4038_v36  ;;  %v11390_v36 = vld [vmem:[%s16567_s5 + $0x1f0] ss:$8 sps:$4 sm:$0xff]  }
 0x924   : > { %v4039_v32 = vpop.trf.xlu0 }
 0x925   : > { %10910 = vmatprep.mubr.msk.bf16.mxu0 %vm2105_vm2, %v4039_v32  ;;  %v11391_v32 = vld [vmem:[%s16567_s5 + $0x204] ss:$8 sps:$4 sm:$0xff]  }
 0x926   : > { %3935 = vmatmul.mubr.bf16.gmra.mrb[136].mxu1 %v11390_v36 }
 0x927   : > { %3942 = vmatprep.mubr.bf16.mxu1 %v11391_v32 }
 0x928   : > { %v4040_v14 = vpop.trf.xlu0 }
 0x929   : > { %10911 = vmatmul.mubr.msk.bf16.gmra.mrb[204].mxu0 %vm2105_vm2, %v4040_v14  ;;  %v11393_v14 = vld [vmem:[%s16567_s5 + $0x200] ss:$8 sps:$4 sm:$0xff]  }
 0x92c   : > { %v4041_v29 = vpop.trf.xlu0 }
 0x92d   : > { %10914 = vmatprep.mubr.msk.bf16.mxu0 %vm2105_vm2, %v4041_v29  ;;  %v11394_v29 = vld [vmem:[%s16567_s5 + $0x214] ss:$8 sps:$4 sm:$0xff]  }
 0x92e   : > { %3943 = vmatmul.mubr.bf16.gmra.mrb[140].mxu1 %v11393_v14 }
 0x92f   : > { %3950 = vmatprep.mubr.bf16.mxu1 %v11394_v29  ;;  %v11400_v29 = vld [vmem:[%s16567_s5 + $0x234] ss:$8 sps:$4 sm:$0xff]  }
 0x930   : > { %v4042_v19 = vpop.trf.xlu0 }
 0x931   : > { %10915 = vmatmul.mubr.msk.bf16.gmra.mrb[208].mxu0 %vm2105_vm2, %v4042_v19  ;;  %v11396_v19 = vld [vmem:[%s16567_s5 + $0x210] ss:$8 sps:$4 sm:$0xff]  }
 0x936   : > { %3951 = vmatmul.mubr.bf16.gmra.mrb[144].mxu1 %v11396_v19 }
 0x937   : > { %3958 = vmatprep.mubr.bf16.mxu1 %v11397_v25 }
 0x93e   : > { %3959 = vmatmul.mubr.bf16.gmra.mrb[148].mxu1 %v11399_v49 }
 0x93f   : > { %3966 = vmatprep.mubr.bf16.mxu1 %v11400_v29  ;;  %v11408_v29 = vld [vmem:[%s16567_s5 + $0x250] ss:$8 sps:$4 sm:$0xff]  }
 0x946   : > { %3967 = vmatmul.mubr.bf16.gmra.mrb[152].mxu1 %v11402_v38  ;;  %v11406_v38 = vld [vmem:[%s16567_s5 + $0x254] ss:$8 sps:$4 sm:$0xff]  }
 0x947   : > { %3974 = vmatprep.mubr.bf16.mxu1 %v11403_v59  ;;  %v11411_v59 = vld [vmem:[%s16567_s5 + $0x260] ss:$8 sps:$4 sm:$0xff]  }
 0x94e   : > { %3975 = vmatmul.mubr.bf16.gmra.mrb[156].mxu1 %v11405_v3  ;;  %v11409_v3 = vld [vmem:[%s16567_s5 + $0x264] ss:$8 sps:$4 sm:$0xff]  }
 0x94f   : > { %3982 = vmatprep.mubr.bf16.mxu1 %v11406_v38  ;;  %v11412_v38 = vld [vmem:[%s16567_s5 + $0x274] ss:$8 sps:$4 sm:$0xff]  }
 0x956   : > { %3983 = vmatmul.mubr.bf16.gmra.mrb[160].mxu1 %v11408_v29  ;;  %v11414_v29 = vld [vmem:[%s16567_s5 + $0x270] ss:$8 sps:$4 sm:$0xff]  }
 0x957   : > { %3990 = vmatprep.mubr.bf16.mxu1 %v11409_v3  ;;  %v9404_v3 = vld [vmem:[%s16568_s6 + $0x180] sm:$0xff] }
 0x95e   : > { %3991 = vmatmul.mubr.bf16.gmra.mrb[164].mxu1 %v11411_v59  ;;  %v9406_v59 = vld [vmem:[%s16568_s6 + $0x190] sm:$0xff] }
 0x95f   : > { %3998 = vmatprep.mubr.bf16.mxu1 %v11412_v38 }
 0x966   : > { %3999 = vmatmul.mubr.bf16.gmra.mrb[168].mxu1 %v11414_v29 }
 0x9ec   : > { %v13849_v55 = vpop.f32.mrb[196].mxu0 }
 0x9ed   : > { %4168 = vmax.xlane.f32.xlu1 %v13849_v55  ;;  %v13852_v37 = vpop.f32.mrb[197].mxu0 }
 0x9ee   : > { %v13854_v46 = vpop.f32.mrb[198].mxu0 }
 0x9ef   : > { %4170 = vmax.xlane.f32.xlu0 %v13854_v46  ;;  %v13857_v20 = vpop.f32.mrb[199].mxu0 }
 0x9f1   : > { %4164 = vmax.xlane.f32.xlu1 %v13852_v37 }
 0x9f4   : > { %v13860_v56 = vpop.f32.mrb[200].mxu0 }
 0x9f5   : > { %4166 = vmax.xlane.f32.xlu1 %v13857_v20  ;;  %v13863_v27 = vpop.f32.mrb[201].mxu0 }
 0x9f6   : > { %v13865_v41 = vpop.f32.mrb[202].mxu0 }
 0x9f7   : > { %v13867_v43 = vpop.f32.mrb[203].mxu0 }
 0x9f9   : > { %4176 = vmax.xlane.f32.xlu1 %v13860_v56 }
 0x9fc   : > { %v13873_v0 = vpop.f32.mrb[204].mxu0 }
 0x9fd   : > { %4172 = vmax.xlane.f32.xlu1 %v13863_v27  ;;  %v13879_v36 = vpop.f32.mrb[205].mxu0 }
 0x9fe   : > { %v13881_v32 = vpop.f32.mrb[206].mxu0 }
 0x9ff   : > { %4186 = vmax.xlane.f32.xlu0 %v13881_v32  ;;  %v13884_v14 = vpop.f32.mrb[207].mxu0 }
 0xa01   : > { %4178 = vmax.xlane.f32.xlu1 %v13865_v41 }
 0xa04   : > { %v13890_v19 = vpop.f32.mrb[208].mxu0 }
 0xa05   : > { %4174 = vmax.xlane.f32.xlu1 %v13867_v43  ;;  %v13896_v25 = vpop.f32.mrb[209].mxu0 }
 0xa06   : > { %v13898_v49 = vpop.f32.mrb[210].mxu0 }
 0xa07   : > { %v13900_v8 = vpop.f32.mrb[211].mxu0 }
 0xa08   : > { %4190 = vmax.xlane.f32.xlu0 %v13900_v8 }
 0xa09   : > { %4184 = vmax.xlane.f32.xlu1 %v13873_v0 }
 0xa0c   : > { %4194 = vmax.xlane.f32.xlu0 %v13898_v49 }
 0xa0d   : > { %4180 = vmax.xlane.f32.xlu1 %v13879_v36 }
 0xa11   : > { %4182 = vmax.xlane.f32.xlu1 %v13884_v14 }
 0xa15   : > { %4192 = vmax.xlane.f32.xlu1 %v13890_v19 }
 0xa19   : > { %4188 = vmax.xlane.f32.xlu1 %v13896_v25 }
 0xa22   : > { %3461 = vperm.xlu0 %11197, %v9405_v1   ;;  %v13942_v1 = vpop.f32.mrb[112].mxu1 }
 0xa23   : > { %v3890_v34 = vpop.f32.mrb[113].mxu1 }
 0xa24   : > { %v13947_v40 = vpop.f32.mrb[114].mxu1 }
 0xa25   : > { %v3893_v38 = vpop.f32.mrb[115].mxu1 }
 0xa2a   : > { %3456 = vperm.xlu1 %11198, %v9404_v3  }
 0xa2e   : > { %3466 = vperm.xlu1 %11198, %v9406_v59  }
 0xa32   : > { %3471 = vperm.xlu1 %11198, %v9407_v13  }
 0xa7a   : > { %v4169_v29 = vpop.xlane.xlu1 %4168 }
 0xa7b   : > { %v4198_v33 = vsub.f32 %v13849_v55, %v4169_v29 }
 0xa7c   : > { %v4171_v3 = vpop.xlane.xlu0 %4170 }
 0xa7d   : > { %v4216_v12 = vmul.f32 1.442695, %v4198_v33  ;;  %v4199_v42 = vsub.f32 %v13854_v46, %v4171_v3 }
 0xa7e   : > { %v4165_v15 = vpop.xlane.xlu1 %4164 }
 0xa7f   : > { %11745 = vpow2.f32 %v4216_v12  ;;  %v4218_v26 = vmul.f32 1.442695, %v4199_v42  ;;  %v4196_v34 = vsub.f32 %v13852_v37, %v4165_v15 }
 0xa81   : > { %11747 = vpow2.f32 %v4218_v26  ;;  %v4212_v59 = vmul.f32 1.442695, %v4196_v34 }
 0xa82   : > { %v4167_v10 = vpop.xlane.xlu1 %4166 }
 0xa83   : > { %11749 = vpow2.f32 %v4212_v59  ;;  %v4197_v45 = vsub.f32 %v13857_v20, %v4167_v10 }
 0xa85   : > { %v4214_v38 = vmul.f32 1.442695, %v4197_v45 }
 0xa86   : > { %v4177_v13 = vpop.xlane.xlu1 %4176 }
 0xa87   : > { %11751 = vpow2.f32 %v4214_v38  ;;  %v4202_v55 = vsub.f32 %v13860_v56, %v4177_v13 }
 0xa89   : > { %v13954_v29 = vpop.eup %11745  ;;  %v4224_v33 = vmul.f32 1.442695, %v4202_v55 }
 0xa8a   : > { %v4173_v46 = vpop.xlane.xlu1 %4172  ;;  %4248 = vadd.xlane.f32.xlu1 %v13954_v29 }
 0xa8b   : > { %v13957_v42 = vpop.eup %11747  ;;  %11753 = vpow2.f32 %v4224_v33  ;;  %v4200_v26 = vsub.f32 %v13863_v27, %v4173_v46 }
 0xa8c   : > { %4250 = vadd.xlane.f32.xlu0 %v13957_v42  ;;  %v4187_v10 = vpop.xlane.xlu0 %4186 }
 0xa8d   : > { %v13961_v15 = vpop.eup %11749  ;;  %v4220_v12 = vmul.f32 1.442695, %v4200_v26  ;;  %v4207_v3 = vsub.f32 %v13881_v32, %v4187_v10 }
 0xa8e   : > { %v4179_v45 = vpop.xlane.xlu1 %4178  ;;  %4244 = vadd.xlane.f32.xlu1 %v13961_v15 }
 0xa8f   : > { %11755 = vpow2.f32 %v4220_v12  ;;  %v4203_v37 = vsub.f32 %v13865_v41, %v4179_v45  ;;  %v4234_v55 = vmul.f32 1.442695, %v4207_v3  ;;  %v13983_v3 = vpop.f32.mrb[116].mxu1 }
 0xa91   : > { %v13965_v20 = vpop.eup %11751  ;;  %v4226_v56 = vmul.f32 1.442695, %v4203_v37 }
 0xa92   : > { %v4175_v34 = vpop.xlane.xlu1 %4174  ;;  %4246 = vadd.xlane.f32.xlu0 %v13965_v20 }
 0xa93   : > { %11757 = vpow2.f32 %v4226_v56  ;;  %v4201_v27 = vsub.f32 %v13867_v43, %v4175_v34 }
 0xa95   : > { %v13970_v59 = vpop.eup %11753  ;;  %v4222_v38 = vmul.f32 1.442695, %v4201_v27  ;;  %v4191_v13 = vpop.xlane.xlu0 %4190 }
 0xa96   : > { %v4185_v33 = vpop.xlane.xlu1 %4184  ;;  %4256 = vadd.xlane.f32.xlu1 %v13970_v59 }
 0xa97   : > { %11759 = vpow2.f32 %v4222_v38  ;;  %v4206_v41 = vsub.f32 %v13873_v0, %v4185_v33  ;;  %v3898_v38 = vpop.f32.mrb[117].mxu1 }
 0xa98   : > { %11761 = vpow2.f32 %v4234_v55  ;;  %v4209_v55 = vsub.f32 %v13900_v8, %v4191_v13 }
 0xa99   : > { %v13974_v46 = vpop.eup %11755  ;;  %v4232_v32 = vmul.f32 1.442695, %v4206_v41  ;;  %v4195_v43 = vpop.xlane.xlu0 %4194 }
 0xa9a   : > { %v4181_v26 = vpop.xlane.xlu1 %4180  ;;  %4252 = vadd.xlane.f32.xlu1 %v13974_v46  ;;  %v4211_v37 = vsub.f32 %v13898_v49, %v4195_v43  ;;  %v13989_v41 = vpop.f32.mrb[118].mxu1 }
 0xa9b   : > { %11763 = vpow2.f32 %v4232_v32  ;;  %v4204_v12 = vsub.f32 %v13879_v36, %v4181_v26  ;;  %v3901_v32 = vpop.f32.mrb[119].mxu1 }
 0xa9c   : > { %v4242_v36 = vmul.f32 1.442695, %v4211_v37  ;;  %v13999_v37 = vpop.f32.mrb[120].mxu1 }
 0xa9d   : > { %v13978_v45 = vpop.eup %11757  ;;  %v4228_v10 = vmul.f32 1.442695, %v4204_v12  ;;  %v4238_v12 = vmul.f32 1.442695, %v4209_v55 }
 0xa9e   : > { %v4183_v56 = vpop.xlane.xlu1 %4182  ;;  %4258 = vadd.xlane.f32.xlu0 %v13978_v45 }
 0xa9f   : > { %11765 = vpow2.f32 %v4228_v10  ;;  %v4205_v0 = vsub.f32 %v13884_v14, %v4183_v56 }
 0xaa1   : > { %v13985_v34 = vpop.eup %11759  ;;  %v4230_v27 = vmul.f32 1.442695, %v4205_v0  ;;  %v3462_v10 = vpop.permute.xlu0 %3461 }
 0xaa2   : > { %v4193_v33 = vpop.xlane.xlu1 %4192  ;;  %4254 = vadd.xlane.f32.xlu0 %v13985_v34  ;;  %v13992_v26 = vpop.eup %11761  ;;  %v3884_v55 = vadd.f32 %v13791_v61, %v3462_v10 }
 0xaa3   : > { %11767 = vpow2.f32 %v4230_v27  ;;  %v4210_v49 = vsub.f32 %v13890_v19, %v4193_v33  ;;  %v3906_v0 = vpop.f32.mrb[121].mxu1 }
 0xaa4   : > { %11769 = vpow2.f32 %v4242_v36  ;;  %v14004_v38 = vpop.f32.mrb[122].mxu1 }
 0xaa5   : > { %v13994_v14 = vpop.eup %11763  ;;  %v4240_v43 = vmul.f32 1.442695, %v4210_v49  ;;  %v3909_v33 = vpop.f32.mrb[123].mxu1 }
 0xaa6   : > { %4264 = vadd.xlane.f32.xlu1 %v13994_v14  ;;  %v4189_v8 = vpop.xlane.xlu1 %4188  ;;  %4266 = vadd.xlane.f32.xlu0 %v13992_v26 }
 0xaa7   : > { %11771 = vpow2.f32 %v4240_v43  ;;  %v4208_v13 = vsub.f32 %v13896_v25, %v4189_v8 }
 0xaa8   : > { %11773 = vpow2.f32 %v4238_v12  ;;  %v14013_v12 = vpop.f32.mrb[124].mxu1 }
 0xaa9   : > { %v14001_v19 = vpop.eup %11765  ;;  %v4236_v56 = vmul.f32 1.442695, %v4208_v13  ;;  %v3914_v13 = vpop.f32.mrb[125].mxu1 }
 0xaaa   : > { %4260 = vadd.xlane.f32.xlu1 %v14001_v19  ;;  %v3457_v27 = vpop.permute.xlu1 %3456 }
 0xaab   : > { %11775 = vpow2.f32 %v4236_v56  ;;  %v3881_v36 = vadd.f32 %v13789_v47, %v3457_v27  ;;  %v14019_v47 = vpop.f32.mrb[126].mxu1 }
 0xaac   : > { %v3917_v0 = vpop.f32.mrb[127].mxu1 }
 0xaad   : > { %v14008_v25 = vpop.eup %11767  ;;  %v4011_v49 = vpack.c.bf16 %v3884_v55, %v3881_v36  ;;  %v14035_v33 = vpop.f32.mrb[128].mxu1  ;;  %v9409_v0 = vld [vmem:[%s16568_s6 + $0x1a8] sm:$0xff] }
 0xaae   : > { %v3467_v32 = vpop.permute.xlu1 %3466  ;;  %4262 = vadd.xlane.f32.xlu0 %v14008_v25  ;;  %v14011_v43 = vpop.eup %11769 }
 0xaaf   : > { %10934 = vmatprep.mubr.bf16.mxu0 %v4011_v49  ;;  %v14022_v10 = vadd.f32 %v13942_v1, %v3467_v32  ;;  %v3922_v49 = vpop.f32.mrb[129].mxu1 }
 0xab0   : > { %v14037_v1 = vpop.f32.mrb[130].mxu1  ;;  %v9408_v49 = vld [vmem:[%s16568_s6 + $0x1a0] sm:$0xff] }
 0xab1   : > { %v14015_v8 = vpop.eup %11771  ;;  %v3925_v32 = vpop.f32.mrb[131].mxu1 }
 0xab2   : > { %4272 = vadd.xlane.f32.xlu1 %v14015_v8  ;;  %v3472_v61 = vpop.permute.xlu1 %3471  ;;  %4274 = vadd.xlane.f32.xlu0 %v14011_v43  ;;  %v14027_v27 = vpop.eup %11773 }
 0xab3   : > { %v14025_v56 = vadd.f32 %v13947_v40, %v3472_v61  ;;  %v14039_v40 = vpop.f32.mrb[132].mxu1 }
 0xab4   : > { %v3930_v13 = vpop.f32.mrb[133].mxu1 }
 0xab5   : > { %v14029_v55 = vpop.eup %11775  ;;  %v14041_v61 = vpop.f32.mrb[134].mxu1 }
 0xab6   : > { %4268 = vadd.xlane.f32.xlu1 %v14029_v55  ;;  %4270 = vadd.xlane.f32.xlu0 %v14027_v27  ;;  %v3933_v36 = vpop.f32.mrb[135].mxu1 }
 0xab7   : > { %v14049_v9 = vpop.f32.mrb[136].mxu1  ;;  %v9413_v36 = vld [vmem:[%s16568_s6 + $0x1c8] sm:$0xff] }
 0xab8   : > { %v3938_v32 = vpop.f32.mrb[137].mxu1 }
 0xab9   : > { %v14054_v13 = vpop.f32.mrb[138].mxu1  ;;  %v9417_v32 = vld [vmem:[%s16568_s6 + $0x1e8] sm:$0xff] }
 0xaba   : > { %v3941_v18 = vpop.f32.mrb[139].mxu1 }
 0xabb   : > { %v14068_v18 = vpop.f32.mrb[140].mxu1 }
 0xac7   : > { %3481 = vperm.xlu1 %11198, %v9409_v0   ;;  %v9410_v0 = vld [vmem:[%s16568_s6 + $0x1b0] sm:$0xff] }
 0xacb   : > { %3491 = vperm.xlu1 %11198, %v9411_v2   ;;  %v9412_v2 = vld [vmem:[%s16568_s6 + $0x1c0] sm:$0xff] }
 0xacc   : > { %3476 = vperm.xlu0 %11197, %v9408_v49   ;;  %v3946_v49 = vpop.f32.mrb[141].mxu1 }
 0xacd   : > { %v14073_v16 = vpop.f32.mrb[142].mxu1 }
 0xacf   : > { %3501 = vperm.xlu1 %11198, %v9413_v36   ;;  %v9414_v36 = vld [vmem:[%s16568_s6 + $0x1d0] sm:$0xff] }
 0xad0   : > { %3486 = vperm.xlu0 %11197, %v9410_v0   ;;  %v3949_v0 = vpop.f32.mrb[143].mxu1 }
 0xad3   : > { %3511 = vperm.xlu1 %11198, %v9415_v11   ;;  %v9416_v11 = vld [vmem:[%s16568_s6 + $0x1e0] sm:$0xff] }
 0xad4   : > { %3496 = vperm.xlu0 %11197, %v9412_v2   ;;  %v14084_v2 = vpop.f32.mrb[144].mxu1 }
 0xad5   : > { %v3954_v49 = vpop.f32.mrb[145].mxu1 }
 0xad6   : > { %v14089_v0 = vpop.f32.mrb[146].mxu1 }
 0xad7   : > { %3521 = vperm.xlu1 %11198, %v9417_v32   ;;  %v9418_v32 = vld [vmem:[%s16568_s6 + $0x1f0] sm:$0xff] }
 0xad8   : > { %3506 = vperm.xlu0 %11197, %v9414_v36   ;;  %v3957_v36 = vpop.f32.mrb[147].mxu1 }
 0xadb   : > { %3531 = vperm.xlu1 %11198, %v9419_v62   ;;  %v9420_v62 = vld [vmem:[%s16568_s6 + $0x200] sm:$0xff] }
 0xadc   : > { %3516 = vperm.xlu0 %11197, %v9416_v11   ;;  %v14100_v11 = vpop.f32.mrb[148].mxu1 }
 0xadd   : > { %v3962_v49 = vpop.f32.mrb[149].mxu1 }
 0xade   : > { %v14105_v36 = vpop.f32.mrb[150].mxu1 }
 0xadf   : > { %3541 = vperm.xlu1 %11198, %v9421_v31   ;;  %v9422_v31 = vld [vmem:[%s16568_s6 + $0x210] sm:$0xff] }
 0xae0   : > { %3526 = vperm.xlu0 %11197, %v9418_v32   ;;  %v3965_v32 = vpop.f32.mrb[151].mxu1 }
 0xae3   : > { %3551 = vperm.xlu1 %11198, %v9423_v4   ;;  %v9424_v4 = vld [vmem:[%s16568_s6 + $0x220] sm:$0xff] }
 0xae4   : > { %3536 = vperm.xlu0 %11197, %v9420_v62   ;;  %v14116_v62 = vpop.f32.mrb[152].mxu1 }
 0xae5   : > { %v3970_v49 = vpop.f32.mrb[153].mxu1 }
 0xae6   : > { %v14121_v32 = vpop.f32.mrb[154].mxu1  ;;  %v9428_v49 = vld [vmem:[%s16568_s6 + $0x240] sm:$0xff] }
 0xae7   : > { %3561 = vperm.xlu1 %11198, %v9425_v28   ;;  %v9426_v28 = vld [vmem:[%s16568_s6 + $0x230] sm:$0xff] }
 0xae8   : > { %3546 = vperm.xlu0 %11197, %v9422_v31   ;;  %v3973_v31 = vpop.f32.mrb[155].mxu1 }
 0xae9   : > { %v14126_v44 = vpop.f32.mrb[156].mxu1 }
 0xaea   : > { %v3978_v6 = vpop.f32.mrb[157].mxu1 }
 0xaeb   : > { %3571 = vperm.xlu1 %11198, %v9427_v24   ;;  %v9431_v24 = vld [vmem:[%s16568_s6 + $0x258] sm:$0xff] }
 0xaec   : > { %3556 = vperm.xlu0 %11197, %v9424_v4   ;;  %v14131_v4 = vpop.f32.mrb[158].mxu1 }
 0xaed   : > { %v3981_v58 = vpop.f32.mrb[159].mxu1 }
 0xaee   : > { %v14136_v5 = vpop.f32.mrb[160].mxu1 }
 0xaef   : > { %3581 = vperm.xlu1 %11198, %v9429_v60   ;;  %v3986_v31 = vpop.f32.mrb[161].mxu1  ;;  %v9433_v60 = vld [vmem:[%s16568_s6 + $0x268] sm:$0xff] }
 0xaf0   : > { %3566 = vperm.xlu0 %11197, %v9426_v28   ;;  %v14141_v6 = vpop.f32.mrb[162].mxu1  ;;  %v9430_v28 = vld [vmem:[%s16568_s6 + $0x250] sm:$0xff]  ;;  %v9432_v31 = vld [vmem:[%s16568_s6 + $0x260] sm:$0xff] }
 0xaf1   : > { %v3989_v51 = vpop.f32.mrb[163].mxu1 }
 0xaf2   : > { %v14146_v50 = vpop.f32.mrb[164].mxu1 }
 0xaf3   : > { %3591 = vperm.xlu1 %11198, %v9431_v24   ;;  %v3994_v58 = vpop.f32.mrb[165].mxu1  ;;  %v9435_v24 = vld [vmem:[%s16568_s6 + $0x278] sm:$0xff] }
 0xaf4   : > { %3576 = vperm.xlu0 %11197, %v9428_v49   ;;  %v14151_v49 = vpop.f32.mrb[166].mxu1  ;;  %v9434_v58 = vld [vmem:[%s16568_s6 + $0x270] sm:$0xff] }
 0xaf5   : > { %v3997_v52 = vpop.f32.mrb[167].mxu1 }
 0xaf6   : > { %v14156_v63 = vpop.f32.mrb[168].mxu1  ;;  %v9519_v52 = vld [vmem:[%s16570_s8 + $0x118] sm:$0xff] }
 0xaf7   : > { %3601 = vperm.xlu1 %11198, %v9433_v60   ;;  %v4002_v51 = vpop.f32.mrb[169].mxu1  ;;  %v9517_v60 = vld [vmem:[%s16570_s8 + $0x108] sm:$0xff] }
 0xaf8   : > { %3586 = vperm.xlu0 %11197, %v9430_v28   ;;  %v14161_v28 = vpop.f32.mrb[170].mxu1  ;;  %v9523_v51 = vld [vmem:[%s16570_s8 + $0x138] sm:$0xff] }
 0xaf9   : > { %v4005_v21 = vpop.f32.mrb[171].mxu1 }
 0xafa   : > { %v9518_v21 = vld [vmem:[%s16570_s8 + $0x110] sm:$0xff] }
 0xafb   : > { %3611 = vperm.xlu1 %11198, %v9435_v24   ;;  %v9516_v24 = vld [vmem:[%s16570_s8 + $0x100] sm:$0xff] }
 0xafc   : > { %3596 = vperm.xlu0 %11197, %v9432_v31   ;;  %v9521_v31 = vld [vmem:[%s16570_s8 + $0x128] sm:$0xff] }
 0xaff   : > { %4653 = vperm.xlu1 %11198, %v9517_v60   ;;  %v9520_v60 = vld [vmem:[%s16570_s8 + $0x120] sm:$0xff] }
 0xb00   : > { %3606 = vperm.xlu0 %11197, %v9434_v58   ;;  %v9525_v58 = vld [vmem:[%s16570_s8 + $0x148] sm:$0xff] }
 0xb03   : > { %4663 = vperm.xlu1 %11198, %v9519_v52   ;;  %v9522_v52 = vld [vmem:[%s16570_s8 + $0x130] sm:$0xff] }
 0xb04   : > { %4648 = vperm.xlu0 %11197, %v9516_v24   ;;  %v9527_v24 = vld [vmem:[%s16570_s8 + $0x158] sm:$0xff] }
 0xb07   : > { %4673 = vperm.xlu1 %11198, %v9521_v31   ;;  %v9524_v31 = vld [vmem:[%s16570_s8 + $0x140] sm:$0xff] }
 0xb08   : > { %4658 = vperm.xlu0 %11197, %v9518_v21   ;;  %v9529_v21 = vld [vmem:[%s16570_s8 + $0x168] sm:$0xff] }
 0xb0b   : > { %4683 = vperm.xlu1 %11198, %v9523_v51   ;;  %v9526_v51 = vld [vmem:[%s16570_s8 + $0x150] sm:$0xff] }
 0xb0c   : > { %4668 = vperm.xlu0 %11197, %v9520_v60  }
 0xb0f   : > { %4693 = vperm.xlu1 %11198, %v9525_v58   ;;  %v9531_v58 = vld [vmem:[%s16570_s8 + $0x178] sm:$0xff] }
 0xb10   : > { %4678 = vperm.xlu0 %11197, %v9522_v52   ;;  %v9528_v52 = vld [vmem:[%s16570_s8 + $0x160] sm:$0xff] }
 0xb13   : > { %4703 = vperm.xlu1 %11198, %v9527_v24  }
 0xb14   : > { %4688 = vperm.xlu0 %11197, %v9524_v31  }
 0xb17   : > { %4713 = vperm.xlu1 %11198, %v9529_v21   ;;  %v4249_v60 = vpop.xlane.xlu1 %4248  ;;  %v9530_v21 = vld [vmem:[%s16570_s8 + $0x170] sm:$0xff] }
 0xb18   : > { %4698 = vperm.xlu0 %11197, %v9526_v51  }
 0xb19   : > { %v4251_v24 = vpop.xlane.xlu0 %4250 }
 0xb1a   : > { %11777 = vrcp.f32 %v4251_v24 }
 0xb1b   : > { %4723 = vperm.xlu1 %11198, %v9531_v58   ;;  %v4245_v31 = vpop.xlane.xlu1 %4244  ;;  %v9535_v58 = vld [vmem:[%s16570_s8 + $0x198] sm:$0xff] }
 0xb1c   : > { %4708 = vperm.xlu0 %11197, %v9528_v52   ;;  %11779 = vrcp.f32 %v4245_v31  ;;  %v9532_v52 = vld [vmem:[%s16570_s8 + $0x180] sm:$0xff]  ;;  %v9537_v31 = vld [vmem:[%s16570_s8 + $0x1a8] sm:$0xff] }
 0xb1d   : > { %11781 = vrcp.f32 %v4249_v60 }
 0xb1f   : > { %4733 = vperm.xlu1 %11198, %v9533_v48   ;;  %v4247_v51 = vpop.xlane.xlu0 %4246  ;;  %v9534_v48 = vld [vmem:[%s16570_s8 + $0x190] sm:$0xff] }
 0xb20   : > { %11783 = vrcp.f32 %v4247_v51  ;;  %4718 = vperm.xlu0 %11197, %v9530_v21  }
 0xb23   : > { %4743 = vperm.xlu1 %11198, %v9535_v58   ;;  %v4257_v24 = vpop.xlane.xlu1 %4256  ;;  %v9539_v58 = vld [vmem:[%s16570_s8 + $0x1b8] sm:$0xff] }
 0xb24   : > { %4728 = vperm.xlu0 %11197, %v9532_v52   ;;  %v11778_v60 = vpop.eup %11777  ;;  %v9536_v52 = vld [vmem:[%s16570_s8 + $0x1a0] sm:$0xff] }
 0xb25   : > { %v4295_v23 = vmul.f32 %v11778_v60, %v13957_v42 }
 0xb26   : > { %v11780_v51 = vpop.eup %11779 }
 0xb27   : > { %4753 = vperm.xlu1 %11198, %v9537_v31   ;;  %v4253_v21 = vpop.xlane.xlu1 %4252  ;;  %v11782_v57 = vpop.eup %11781  ;;  %v4292_v30 = vmul.f32 %v11780_v51, %v13961_v15 }
 0xb28   : > { %11785 = vrcp.f32 %v4253_v21  ;;  %4738 = vperm.xlu0 %11197, %v9534_v48   ;;  %v9541_v48 = vld [vmem:[%s16570_s8 + $0x1c8] sm:$0xff] }
 0xb2a   : > { %v11784_v22 = vpop.eup %11783 }
 0xb2b   : > { %4763 = vperm.xlu1 %11198, %v9539_v58   ;;  %v4259_v7 = vpop.xlane.xlu0 %4258  ;;  %v4293_v31 = vmul.f32 %v11784_v22, %v13965_v20  ;;  %v4294_v58 = vmul.f32 %v11782_v57, %v13954_v29  ;;  %v9540_v57 = vld [vmem:[%s16570_s8 + $0x1c0] sm:$0xff] }
 0xb2c   : > { %4748 = vperm.xlu0 %11197, %v9536_v52   ;;  %11787 = vrcp.f32 %v4259_v7 }
 0xb2d   : > { %v4308_v21 = vadd.f32 %v4293_v31, %v4292_v30  ;;  %v4329_v17 = vpack.c.bf16 %v4293_v31, %v4292_v30  ;;  %11789 = vrcp.f32 %v4257_v24  ;;  %v4330_v42 = vpack.c.bf16 %v4295_v23, %v4294_v58  ;;  %v9543_v30 = vld [vmem:[%s16570_s8 + $0x1d8] sm:$0xff] }
 0xb2f   : > { %4773 = vperm.xlu1 %11198, %v9541_v48   ;;  %10918 = vmatprep.subr.bf16.mxu0 %v4329_v17  ;;  %v4255_v22 = vpop.xlane.xlu0 %4254  ;;  %v4309_v15 = vadd.f32 %v4308_v21, %v4294_v58  ;;  %v9544_v48 = vld [vmem:[%s16570_s8 + $0x1e0] sm:$0xff] }
 0xb30   : > { %11791 = vrcp.f32 %v4255_v22  ;;  %4758 = vperm.xlu0 %11197, %v9538_v54   ;;  %10919 = vmatpush3.bf16.msra.mxu0 %v4329_v17  ;;  %v9545_v54 = vld [vmem:[%s16570_s8 + $0x1e8] sm:$0xff]  ;;  %v9542_v17 = vld [vmem:[%s16570_s8 + $0x1d0] sm:$0xff] }
 0xb31   : > { %v4310_v20 = vadd.f32 %v4309_v15, %v4295_v23  ;;  %10920 = vmatprep.subr.bf16.mxu0 %v4330_v42 }
 0xb32   : > { %v11786_v7 = vpop.eup %11785 }
 0xb33   : > { %4783 = vperm.xlu1 %11198, %v9543_v30   ;;  %v4265_v29 = vpop.xlane.xlu1 %4264  ;;  %v4296_v24 = vmul.f32 %v11786_v7, %v13974_v46  ;;  %v4267_v60 = vpop.xlane.xlu0 %4266  ;;  %v9547_v46 = vld [vmem:[%s16570_s8 + $0x1f8] sm:$0xff] }
 0xb34   : > { %4768 = vperm.xlu0 %11197, %v9540_v57   ;;  %10921 = vmatpush3.bf16.msra.mxu0 %v4330_v42  ;;  %v9621_v42 = vld [vmem:[%s16568_s6 + $0x288] sm:$0xff]  ;;  %v9546_v57 = vld [vmem:[%s16570_s8 + $0x1f0] sm:$0xff] }
 0xb35   : > { %v4311_v23 = vadd.f32 %v4310_v20, %v4296_v24 }
 0xb36   : > { %v11788_v52 = vpop.eup %11787 }
 0xb37   : > { %4793 = vperm.xlu1 %11198, %v9545_v54   ;;  %v4261_v51 = vpop.xlane.xlu1 %4260  ;;  %v11790_v31 = vpop.eup %11789  ;;  %v4299_v15 = vmul.f32 %v11788_v52, %v13978_v45 }
 0xb38   : > { %11793 = vrcp.f32 %v4261_v51  ;;  %4778 = vperm.xlu0 %11197, %v9542_v17   ;;  %v4298_v7 = vmul.f32 %v11790_v31, %v13970_v59  ;;  %v9623_v17 = vld [vmem:[%s16568_s6 + $0x298] sm:$0xff] }
 0xb39   : > { %11795 = vrcp.f32 %v4265_v29 }
 0xb3a   : > { %v11792_v21 = vpop.eup %11791  ;;  %11797 = vrcp.f32 %v4267_v60  ;;  %v4332_v45 = vpack.c.bf16 %v4299_v15, %v4298_v7 }
 0xb3b   : > { %4803 = vperm.xlu1 %11198, %v9547_v46   ;;  %v4263_v58 = vpop.xlane.xlu0 %4262  ;;  %v4297_v22 = vmul.f32 %v11792_v21, %v13985_v34  ;;  %v9622_v21 = vld [vmem:[%s16568_s6 + $0x290] sm:$0xff] }
 0xb3c   : > { %11799 = vrcp.f32 %v4263_v58  ;;  %4788 = vperm.xlu0 %11197, %v9544_v48   ;;  %v9625_v48 = vld [vmem:[%s16568_s6 + $0x2a8] sm:$0xff] }
 0xb3d   : > { %v4312_v30 = vadd.f32 %v4311_v23, %v4297_v22  ;;  %v4331_v20 = vpack.c.bf16 %v4297_v22, %v4296_v24  ;;  %v9620_v24 = vld [vmem:[%s16568_s6 + $0x280] sm:$0xff] }
 0xb3f   : > { %5360 = vperm.xlu1 %11198, %v9621_v42   ;;  %v4273_v29 = vpop.xlane.xlu1 %4272  ;;  %10922 = vmatprep.subr.bf16.mxu0 %v4331_v20  ;;  %v4275_v34 = vpop.xlane.xlu0 %4274  ;;  %v4313_v54 = vadd.f32 %v4312_v30, %v4298_v7 }
 0xb40   : > { %4798 = vperm.xlu0 %11197, %v9546_v57   ;;  %10923 = vmatpush3.bf16.msra.mxu0 %v4331_v20  ;;  %11801 = vrcp.f32 %v4273_v29  ;;  %v9627_v20 = vld [vmem:[%s16568_s6 + $0x2b8] sm:$0xff]  ;;  %v9624_v29 = vld [vmem:[%s16568_s6 + $0x2a0] sm:$0xff] }
 0xb41   : > { %v4314_v23 = vadd.f32 %v4313_v54, %v4299_v15  ;;  %10924 = vmatprep.subr.bf16.mxu0 %v4332_v45  ;;  %11803 = vrcp.f32 %v4275_v34 }
 0xb42   : > { %v11794_v60 = vpop.eup %11793 }
 0xb43   : > { %v11796_v59 = vpop.eup %11795  ;;  %5370 = vperm.xlu1 %11198, %v9623_v17   ;;  %v4269_v51 = vpop.xlane.xlu1 %4268  ;;  %v4300_v46 = vmul.f32 %v11794_v60, %v14001_v19  ;;  %v9626_v60 = vld [vmem:[%s16568_s6 + $0x2b0] sm:$0xff] }
 0xb44   : > { %v4271_v52 = vpop.xlane.xlu0 %4270  ;;  %v11798_v31 = vpop.eup %11797  ;;  %11805 = vrcp.f32 %v4269_v51  ;;  %5355 = vperm.xlu0 %11197, %v9620_v24   ;;  %10925 = vmatpush3.bf16.msra.mxu0 %v4332_v45  ;;  %v4302_v19 = vmul.f32 %v11796_v59, %v13994_v14 }
 0xb45   : > { %11807 = vrcp.f32 %v4271_v52  ;;  %v4315_v58 = vadd.f32 %v4314_v23, %v4300_v46  ;;  %v4303_v30 = vmul.f32 %v11798_v31, %v13992_v26 }
 0xb46   : > { %v11800_v22 = vpop.eup %11799 }
 0xb47   : > { %5380 = vperm.xlu1 %11198, %v9625_v48   ;;  %v3482_v15 = vpop.permute.xlu1 %3481  ;;  %v4301_v42 = vmul.f32 %v11800_v22, %v14008_v25  ;;  %v4334_v45 = vpack.c.bf16 %v4303_v30, %v4302_v19 }
 0xb48   : > { %5365 = vperm.xlu0 %11197, %v9622_v21   ;;  %v3900_v26 = vadd.f32 %v13989_v41, %v3482_v15 }
 0xb49   : > { %v4316_v57 = vadd.f32 %v4315_v58, %v4301_v42  ;;  %v4333_v7 = vpack.c.bf16 %v4301_v42, %v4300_v46 }
 0xb4a   : > { %v11802_v14 = vpop.eup %11801 }
 0xb4b   : > { %5390 = vperm.xlu1 %11198, %v9627_v20   ;;  %v3492_v34 = vpop.permute.xlu1 %3491  ;;  %10926 = vmatprep.subr.bf16.mxu0 %v4333_v7  ;;  %v3477_v54 = vpop.permute.xlu0 %3476  ;;  %v4317_v25 = vadd.f32 %v4316_v57, %v4302_v19 }
 0xb4c   : > { %v3897_v17 = vadd.f32 %v13983_v3, %v3477_v54  ;;  %5375 = vperm.xlu0 %11197, %v9624_v29   ;;  %10927 = vmatpush3.bf16.msra.mxu0 %v4333_v7  ;;  %v11804_v23 = vpop.eup %11803  ;;  %v3908_v46 = vadd.f32 %v14004_v38, %v3492_v34  ;;  %v4306_v3 = vmul.f32 %v11802_v14, %v14015_v8 }
 0xb4d   : > { %v4318_v24 = vadd.f32 %v4317_v25, %v4303_v30  ;;  %10928 = vmatprep.subr.bf16.mxu0 %v4334_v45  ;;  %v4307_v22 = vmul.f32 %v11804_v23, %v14011_v43  ;;  %v17042_v14 = vpack.c.bf16 %v14025_v56, %v14022_v10 }
 0xb4e   : > { %v11806_v59 = vpop.eup %11805  ;;  %v4013_v51 = vpack.c.bf16 %v3900_v26, %v3897_v17 }
 0xb4f   : > { %v11808_v52 = vpop.eup %11807  ;;  %v3502_v31 = vpop.permute.xlu1 %3501  ;;  %v4304_v41 = vmul.f32 %v11806_v59, %v14029_v55  ;;  %v4336_v8 = vpack.c.bf16 %v4307_v22, %v4306_v3 }
 0xb50   : > { %v3487_v48 = vpop.permute.xlu0 %3486  ;;  %5385 = vperm.xlu0 %11197, %v9626_v60   ;;  %10929 = vmatpush3.bf16.msra.mxu0 %v4334_v45  ;;  %v4305_v58 = vmul.f32 %v11808_v52, %v14027_v27  ;;  %v3916_v57 = vadd.f32 %v14019_v47, %v3502_v31 }
 0xb51   : > { %v3905_v21 = vadd.f32 %v13999_v37, %v3487_v48  ;;  %v4319_v15 = vadd.f32 %v4318_v24, %v4304_v41 }
 0xb52   : > { %v4335_v19 = vpack.c.bf16 %v4305_v58, %v4304_v41 }
 0xb53   : > { %v4014_v42 = vpack.c.bf16 %v3908_v46, %v3905_v21  ;;  %v3512_v30 = vpop.permute.xlu1 %3511  ;;  %v4320_v20 = vadd.f32 %v4319_v15, %v4305_v58 }
 0xb54   : > { %v3497_v38 = vpop.permute.xlu0 %3496  ;;  %10930 = vmatprep.subr.bf16.mxu0 %v4335_v19  ;;  %v3924_v34 = vadd.f32 %v14037_v1, %v3512_v30 }
 0xb55   : > { %v3913_v55 = vadd.f32 %v14013_v12, %v3497_v38  ;;  %10931 = vmatpush3.bf16.msra.mxu0 %v4335_v19  ;;  %v4321_v37 = vadd.f32 %v4320_v20, %v4306_v3 }
 0xb56   : > { %10932 = vmatprep.subr.bf16.mxu0 %v4336_v8 }
 0xb57   : > { %v4015_v7 = vpack.c.bf16 %v3916_v57, %v3913_v55  ;;  %v14305_v29 = vadd.f32 %v4321_v37, %v4307_v22  ;;  %v3522_v27 = vpop.permute.xlu1 %3521 }
 0xb58   : > { %v3507_v43 = vpop.permute.xlu0 %3506  ;;  %v3932_v12 = vadd.f32 %v14041_v61, %v3522_v27 }
 0xb59   : > { %v3921_v54 = vadd.f32 %v14035_v33, %v3507_v43  ;;  %10933 = vmatpush3.bf16.msra.mxu0 %v4336_v8 }
 0xb5a   : > { %5753 = vmatprep.subr.bf16.mxu0 %v16924_v53 }
 0xb5b   : > { %v4016_v25 = vpack.c.bf16 %v3924_v34, %v3921_v54  ;;  %v3532_v47 = vpop.permute.xlu1 %3531 }
 0xb5c   : > { %v3517_v45 = vpop.permute.xlu0 %3516  ;;  %10935 = vmatmul.mubr.bf16.vlgmr.msra.gmra.mrb[212].mxu0 %v17042_v14  ;;  %v3940_v33 = vadd.f32 %v14054_v13, %v3532_v47 }
 0xb5d   : > { %v3929_v26 = vadd.f32 %v14039_v40, %v3517_v45  ;;  %10938 = vmatprep.mubr.bf16.mxu0 %v4013_v51 }
 0xb5f   : > { %v4017_v17 = vpack.c.bf16 %v3932_v12, %v3929_v26  ;;  %v3542_v23 = vpop.permute.xlu1 %3541 }
 0xb60   : > { %v3527_v1 = vpop.permute.xlu0 %3526  ;;  %v3948_v46 = vadd.f32 %v14073_v16, %v3542_v23 }
 0xb61   : > { %v3937_v24 = vadd.f32 %v14049_v9, %v3527_v1 }
 0xb63   : > { %v4018_v60 = vpack.c.bf16 %v3940_v33, %v3937_v24  ;;  %v3552_v59 = vpop.permute.xlu1 %3551  ;;  %v17043_v33 = vld [vmem:[#allocation10_spill] sm:$0xff] }
 0xb64   : > { %v3537_v52 = vpop.permute.xlu0 %3536  ;;  %10939 = vmatmul.mubr.bf16.gmra.mrb[216].mxu0 %v4014_v42  ;;  %v3956_v51 = vadd.f32 %v14089_v0, %v3552_v59 }
 0xb65   : > { %v3945_v61 = vadd.f32 %v14068_v18, %v3537_v52  ;;  %10942 = vmatprep.mubr.bf16.mxu0 %v4015_v7 }
 0xb67   : > { %v4019_v10 = vpack.c.bf16 %v3948_v46, %v3945_v61  ;;  %v3562_v56 = vpop.permute.xlu1 %3561 }
 0xb68   : > { %v3547_v40 = vpop.permute.xlu0 %3546  ;;  %v3964_v9 = vadd.f32 %v14105_v36, %v3562_v56 }
 0xb69   : > { %v3953_v31 = vadd.f32 %v14084_v2, %v3547_v40 }
 0xb6b   : > { %v4020_v48 = vpack.c.bf16 %v3956_v51, %v3953_v31  ;;  %v3572_v13 = vpop.permute.xlu1 %3571 }
 0xb6c   : > { %v3557_v41 = vpop.permute.xlu0 %3556  ;;  %10943 = vmatmul.mubr.bf16.gmra.mrb[220].mxu0 %v4016_v25  ;;  %v3972_v58 = vadd.f32 %v14121_v32, %v3572_v13 }
 0xb6d   : > { %v3961_v3 = vadd.f32 %v14100_v11, %v3557_v41  ;;  %10946 = vmatprep.mubr.bf16.mxu0 %v4017_v17  ;;  %v17045_v41 = vld [vmem:[#allocation16_spill] sm:$0xff] }
 0xb6f   : > { %v4021_v16 = vpack.c.bf16 %v3964_v9, %v3961_v3  ;;  %v3582_v21 = vpop.permute.xlu1 %3581  ;;  %v17046_v3 = vld [vmem:[#allocation17_spill] sm:$0xff] }
 0xb70   : > { %v3567_v18 = vpop.permute.xlu0 %3566  ;;  %v3980_v2 = vadd.f32 %v14131_v4, %v3582_v21  ;;  %v17047_v21 = vld [vmem:[#allocation20_spill] sm:$0xff] }
 0xb71   : > { %v3969_v22 = vadd.f32 %v14116_v62, %v3567_v18 }
 0xb73   : > { %v4022_v15 = vpack.c.bf16 %v3972_v58, %v3969_v22  ;;  %v3592_v0 = vpop.permute.xlu1 %3591  ;;  %v17048_v58 = vld [vmem:[#allocation21_spill] sm:$0xff] }
 0xb74   : > { %v3577_v42 = vpop.permute.xlu0 %3576  ;;  %10947 = vmatmul.mubr.bf16.gmra.mrb[224].mxu0 %v4018_v60  ;;  %v3988_v20 = vadd.f32 %v14141_v6, %v3592_v0  ;;  %v17044_v60 = vld [vmem:[#allocation11_spill] sm:$0xff] }
 0xb75   : > { %v3977_v19 = vadd.f32 %v14126_v44, %v3577_v42  ;;  %10950 = vmatprep.mubr.bf16.mxu0 %v4019_v10 }
 0xb77   : > { %v4023_v36 = vpack.c.bf16 %v3980_v2, %v3977_v19  ;;  %v3602_v30 = vpop.permute.xlu1 %3601 }
 0xb78   : > { %v3587_v11 = vpop.permute.xlu0 %3586  ;;  %v3996_v62 = vadd.f32 %v14151_v49, %v3602_v30 }
 0xb79   : > { %v3985_v38 = vadd.f32 %v14136_v5, %v3587_v11  ;;  %v11417_v5 = vld [vmem:[%s16569_s7 + $0x104] ss:$8 sps:$4 sm:$0xff]  }
 0xb7a   : > { %4998 = vmatprep.mubr.bf16.mxu1 %v11417_v5 }
 0xb7b   : > { %v4024_v57 = vpack.c.bf16 %v3988_v20, %v3985_v38  ;;  %v3612_v8 = vpop.permute.xlu1 %3611 }
 0xb7c   : > { %v3597_v32 = vpop.permute.xlu0 %3596  ;;  %10951 = vmatmul.mubr.bf16.gmra.mrb[228].mxu0 %v4020_v48  ;;  %v4004_v44 = vadd.f32 %v14161_v28, %v3612_v8  ;;  %v17051_v8 = vld [vmem:[#allocation28_spill] sm:$0xff] }
 0xb7d   : > { %v3993_v55 = vadd.f32 %v14146_v50, %v3597_v32  ;;  %10954 = vmatprep.mubr.bf16.mxu0 %v4021_v16  ;;  %v4323_v50 = vrot.slane %v14305_v29, 4 }
 0xb7f   : > { %v4025_v4 = vpack.c.bf16 %v3996_v62, %v3993_v55  ;;  %v4324_v6 = vadd.f32 %v4323_v50, %v14305_v29  ;;  %v17050_v62 = vld [vmem:[#allocation25_spill] sm:$0xff] }
 0xb80   : > { %v3607_v37 = vpop.permute.xlu0 %3606 }
 0xb81   : > { %v4001_v7 = vadd.f32 %v14156_v63, %v3607_v37  ;;  %v4325_v49 = vrot.slane %v4324_v6, 2  ;;  %v17052_v37 = vld [vmem:[#allocation29_spill] sm:$0xff] }
 0xb83   : > { %v4026_v27 = vpack.c.bf16 %v4004_v44, %v4001_v7  ;;  %v4326_v43 = vadd.f32 %v4325_v49, %v4324_v6 }
 0xb84   : > { %10955 = vmatmul.mubr.bf16.gmra.mrb[232].mxu0 %v4022_v15 }
 0xb85   : > { %10958 = vmatprep.mubr.bf16.mxu0 %v4023_v36  ;;  %v4327_v28 = vrot.slane %v4326_v43, 1 }
 0xb87   : > { %v4328_v34 = vadd.f32 %v4327_v28, %v4326_v43 }
 0xb89   : > { %v4498_v63 = vadd.f32 1e-09, %v4328_v34 }
 0xb8b   : > { %11809 = vrcp.f32 %v4498_v63 }
 0xb8c   : > { %10959 = vmatmul.mubr.bf16.gmra.mrb[236].mxu0 %v4024_v57  ;;  %v17049_v57 = vld [vmem:[#allocation24_spill] sm:$0xff] }
 0xb8d   : > { %10962 = vmatprep.mubr.bf16.mxu0 %v4025_v4 }
 0xb94   : > { %10963 = vmatmul.mubr.bf16.gmra.mrb[240].mxu0 %v4026_v27 }
 0xb95   : > { %v14338_v54 = vpop.eup %11809 }
 0xc2f   : > { %v10936_v25 = vpop.f32.mrb[212].mxu0 }
 0xc30   : > { %v4502_v47 = vmul.f32 %v14338_v54, %v10936_v25  ;;  %v4371_v45 = vpop.f32.mrb[213].mxu0  ;;  %v17053_v25 = vld [vmem:[#allocation32_spill] sm:$0xff] }
 0xc31   : > { %v4500_v12 = vmul.f32 %v14338_v54, %v4371_v45  ;;  %v10937_v14 = vpop.f32.mrb[214].mxu0  ;;  %v17054_v45 = vld [vmem:[#allocation33_spill] sm:$0xff] }
 0xc32   : > { %v4503_v26 = vmul.f32 %v14338_v54, %v10937_v14  ;;  %v4374_v17 = vpop.f32.mrb[215].mxu0  ;;  %v4567_v23 = vsub.f32 %v13552_v39, %v4502_v47  ;;  %v17055_v14 = vld [vmem:[#allocation36_spill] sm:$0xff] }
 0xc33   : > { %v4501_v29 = vmul.f32 %v14338_v54, %v4374_v17  ;;  %v4565_v24 = vsub.f32 %v17043_v33, %v4500_v12  ;;  %v17056_v17 = vld [vmem:[#allocation37_spill] sm:$0xff] }
 0xc34   : > { %v4568_v1 = vsub.f32 %v13556_v35, %v4503_v26 }
 0xc35   : > { %v4566_v59 = vsub.f32 %v17044_v60, %v4501_v29 }
 0xc36   : > { %v14348_v52 = vpack.c.bf16 %v4568_v1, %v4567_v23 }
 0xc37   : > { %v14350_v46 = vpack.c.bf16 %v4566_v59, %v4565_v24  ;;  %v10940_v61 = vpop.f32.mrb[216].mxu0 }
 0xc38   : > { %v4506_v10 = vmul.f32 %v14338_v54, %v10940_v61  ;;  %v4387_v56 = vpop.f32.mrb[217].mxu0 }
 0xc39   : > { %v4504_v40 = vmul.f32 %v14338_v54, %v4387_v56  ;;  %v10941_v51 = vpop.f32.mrb[218].mxu0 }
 0xc3a   : > { %v4507_v31 = vmul.f32 %v14338_v54, %v10941_v51  ;;  %v4390_v48 = vpop.f32.mrb[219].mxu0  ;;  %v4571_v9 = vsub.f32 %v17045_v41, %v4506_v10 }
 0xc3b   : > { %v4505_v13 = vmul.f32 %v14338_v54, %v4390_v48  ;;  %v4569_v18 = vsub.f32 %v17047_v21, %v4504_v40  ;;  %v17057_v48 = vld [vmem:[#allocation40_spill] sm:$0xff] }
 0xc3c   : > { %v4572_v16 = vsub.f32 %v17046_v3, %v4507_v31 }
 0xc3d   : > { %v4570_v22 = vsub.f32 %v17048_v58, %v4505_v13 }
 0xc3e   : > { %v14360_v15 = vpack.c.bf16 %v4572_v16, %v4571_v9  ;;  %v17058_v9 = vld [vmem:[#allocation41_spill] sm:$0xff] }
 0xc3f   : > { %v14362_v0 = vpack.c.bf16 %v4570_v22, %v4569_v18  ;;  %v10944_v42 = vpop.f32.mrb[220].mxu0  ;;  %v17059_v18 = vld [vmem:[#allocation44_spill] sm:$0xff] }
 0xc40   : > { %v4510_v2 = vmul.f32 %v14338_v54, %v10944_v42  ;;  %v4403_v19 = vpop.f32.mrb[221].mxu0  ;;  %v17060_v42 = vld [vmem:[#allocation45_spill] sm:$0xff] }
 0xc41   : > { %v4508_v36 = vmul.f32 %v14338_v54, %v4403_v19  ;;  %v10945_v30 = vpop.f32.mrb[222].mxu0 }
 0xc42   : > { %v4511_v11 = vmul.f32 %v14338_v54, %v10945_v30  ;;  %v4406_v20 = vpop.f32.mrb[223].mxu0  ;;  %v4575_v32 = vsub.f32 %v17049_v57, %v4510_v2 }
 0xc43   : > { %v4509_v38 = vmul.f32 %v14338_v54, %v4406_v20  ;;  %v4573_v4 = vsub.f32 %v17051_v8, %v4508_v36 }
 0xc44   : > { %v4576_v55 = vsub.f32 %v17050_v62, %v4511_v11 }
 0xc45   : > { %v4574_v44 = vsub.f32 %v17052_v37, %v4509_v38 }
 0xc46   : > { %v14372_v7 = vpack.c.bf16 %v4576_v55, %v4575_v32 }
 0xc47   : > { %v14374_v27 = vpack.c.bf16 %v4574_v44, %v4573_v4  ;;  %v10948_v5 = vpop.f32.mrb[224].mxu0 }
 0xc48   : > { %v4514_v50 = vmul.f32 %v14338_v54, %v10948_v5  ;;  %v4419_v6 = vpop.f32.mrb[225].mxu0  ;;  %v17061_v5 = vld [vmem:[#allocation48_spill] sm:$0xff] }
 0xc49   : > { %v4512_v49 = vmul.f32 %v14338_v54, %v4419_v6  ;;  %v10949_v43 = vpop.f32.mrb[226].mxu0  ;;  %v17062_v6 = vld [vmem:[#allocation49_spill] sm:$0xff] }
 0xc4a   : > { %v4515_v28 = vmul.f32 %v14338_v54, %v10949_v43  ;;  %v4422_v34 = vpop.f32.mrb[227].mxu0  ;;  %v4579_v47 = vsub.f32 %v17053_v25, %v4514_v50  ;;  %v17063_v43 = vld [vmem:[#allocation52_spill] sm:$0xff] }
 0xc4b   : > { %v4513_v63 = vmul.f32 %v14338_v54, %v4422_v34  ;;  %v4577_v26 = vsub.f32 %v17055_v14, %v4512_v49  ;;  %v17064_v34 = vld [vmem:[#allocation53_spill] sm:$0xff] }
 0xc4c   : > { %v4580_v12 = vsub.f32 %v17054_v45, %v4515_v28 }
 0xc4d   : > { %v4578_v29 = vsub.f32 %v17056_v17, %v4513_v63 }
 0xc4e   : > { %v14384_v23 = vpack.c.bf16 %v4580_v12, %v4579_v47 }
 0xc4f   : > { %v14386_v1 = vpack.c.bf16 %v4578_v29, %v4577_v26  ;;  %v10952_v24 = vpop.f32.mrb[228].mxu0 }
 0xc50   : > { %v4518_v59 = vmul.f32 %v14338_v54, %v10952_v24  ;;  %v4435_v61 = vpop.f32.mrb[229].mxu0 }
 0xc51   : > { %v4516_v10 = vmul.f32 %v14338_v54, %v4435_v61  ;;  %v10953_v56 = vpop.f32.mrb[230].mxu0 }
 0xc52   : > { %v4519_v40 = vmul.f32 %v14338_v54, %v10953_v56  ;;  %v4438_v51 = vpop.f32.mrb[231].mxu0  ;;  %v4583_v13 = vsub.f32 %v17057_v48, %v4518_v59 }
 0xc53   : > { %v4517_v31 = vmul.f32 %v14338_v54, %v4438_v51  ;;  %v4581_v22 = vsub.f32 %v17059_v18, %v4516_v10  ;;  %v17066_v51 = vld [vmem:[#allocation57_spill] sm:$0xff] }
 0xc54   : > { %v4584_v16 = vsub.f32 %v17058_v9, %v4519_v40  ;;  %v17065_v40 = vld [vmem:[#allocation56_spill] sm:$0xff] }
 0xc55   : > { %v4582_v2 = vsub.f32 %v17060_v42, %v4517_v31 }
 0xc56   : > { %v4606_v19 = vpack.c.bf16 %v4584_v16, %v4583_v13  ;;  %v17067_v13 = vld [vmem:[#allocation60_spill] sm:$0xff] }
 0xc57   : > { %v10956_v36 = vpop.f32.mrb[232].mxu0  ;;  %v4605_v30 = vpack.c.bf16 %v4582_v2, %v4581_v22  ;;  %v17068_v22 = vld [vmem:[#allocation61_spill] sm:$0xff] }
 0xc58   : > { %v4522_v11 = vmul.f32 %v14338_v54, %v10956_v36  ;;  %v4451_v20 = vpop.f32.mrb[233].mxu0 }
 0xc59   : > { %v4520_v38 = vmul.f32 %v14338_v54, %v4451_v20  ;;  %v10957_v32 = vpop.f32.mrb[234].mxu0  ;;  %10364 = vmatprep.subr.bf16.mxu1 %v4605_v30 }
 0xc5a   : > { %v4523_v55 = vmul.f32 %v14338_v54, %v10957_v32  ;;  %v4454_v4 = vpop.f32.mrb[235].mxu0  ;;  %10365 = vmatpush3.bf16.msra.mxu1 %v14350_v46  ;;  %v4587_v50 = vsub.f32 %v17061_v5, %v4522_v11 }
 0xc5b   : > { %v4521_v44 = vmul.f32 %v14338_v54, %v4454_v4  ;;  %10366 = vmatprep.subr.bf16.mxu1 %v4606_v19  ;;  %v4585_v28 = vsub.f32 %v17063_v43, %v4520_v38 }
 0xc5c   : > { %v4588_v49 = vsub.f32 %v17062_v6, %v4523_v55 }
 0xc5d   : > { %v4586_v63 = vsub.f32 %v17064_v34, %v4521_v44  ;;  %v17069_v44 = vld [vmem:[#allocation64_spill] sm:$0xff] }
 0xc5e   : > { %10367 = vmatpush3.bf16.msra.mxu1 %v14348_v52  ;;  %v4608_v47 = vpack.c.bf16 %v4588_v49, %v4587_v50  ;;  %v17070_v50 = vld [vmem:[#allocation65_spill] sm:$0xff] }
 0xc5f   : > { %v10960_v12 = vpop.f32.mrb[236].mxu0  ;;  %v4607_v26 = vpack.c.bf16 %v4586_v63, %v4585_v28  ;;  %v17071_v28 = vld [vmem:[#allocation68_spill] sm:$0xff] }
 0xc60   : > { %v4526_v29 = vmul.f32 %v14338_v54, %v10960_v12  ;;  %v4467_v24 = vpop.f32.mrb[237].mxu0 }
 0xc61   : > { %v4524_v46 = vmul.f32 %v14338_v54, %v4467_v24  ;;  %v10961_v59 = vpop.f32.mrb[238].mxu0  ;;  %10368 = vmatprep.subr.bf16.mxu1 %v4607_v26  ;;  %v11424_v24 = vld [vmem:[%s16569_s7 + $0x134] ss:$8 sps:$4 sm:$0xff]  }
 0xc62   : > { %v4527_v61 = vmul.f32 %v14338_v54, %v10961_v59  ;;  %v4470_v10 = vpop.f32.mrb[239].mxu0  ;;  %10369 = vmatpush3.bf16.msra.mxu1 %v14362_v0  ;;  %v4591_v52 = vsub.f32 %v17065_v40, %v4526_v29  ;;  %v11427_v59 = vld [vmem:[%s16569_s7 + $0x144] ss:$8 sps:$4 sm:$0xff]  }
 0xc63   : > { %v4525_v56 = vmul.f32 %v14338_v54, %v4470_v10  ;;  %10370 = vmatprep.subr.bf16.mxu1 %v4608_v47  ;;  %v4589_v16 = vsub.f32 %v17067_v13, %v4524_v46  ;;  %v17072_v47 = vld [vmem:[#allocation69_spill] sm:$0xff]  ;;  %v11426_v46 = vld [vmem:[%s16569_s7 + $0x130] ss:$8 sps:$4 sm:$0xff]   ;;  %v11430_v10 = vld [vmem:[%s16569_s7 + $0x154] ss:$8 sps:$4 sm:$0xff]  }
 0xc64   : > { %v4592_v31 = vsub.f32 %v17066_v51, %v4527_v61  ;;  %v11429_v61 = vld [vmem:[%s16569_s7 + $0x140] ss:$8 sps:$4 sm:$0xff]  }
 0xc65   : > { %v4590_v2 = vsub.f32 %v17068_v22, %v4525_v56  ;;  %v11432_v56 = vld [vmem:[%s16569_s7 + $0x150] ss:$8 sps:$4 sm:$0xff]  }
 0xc66   : > { %10371 = vmatpush3.bf16.msra.mxu1 %v14360_v15  ;;  %v4610_v19 = vpack.c.bf16 %v4592_v31, %v4591_v52  ;;  %v11433_v52 = vld [vmem:[%s16569_s7 + $0x164] ss:$8 sps:$4 sm:$0xff]   ;;  %v11435_v31 = vld [vmem:[%s16569_s7 + $0x160] ss:$8 sps:$4 sm:$0xff]  }
 0xc67   : > { %v10964_v36 = vpop.f32.mrb[240].mxu0  ;;  %v4609_v30 = vpack.c.bf16 %v4590_v2, %v4589_v16  ;;  %v11436_v16 = vld [vmem:[%s16569_s7 + $0x174] ss:$8 sps:$4 sm:$0xff]   ;;  %v11438_v2 = vld [vmem:[%s16569_s7 + $0x170] ss:$8 sps:$4 sm:$0xff]  }
 0xc68   : > { %v4530_v11 = vmul.f32 %v14338_v54, %v10964_v36  ;;  %v4483_v20 = vpop.f32.mrb[241].mxu0  ;;  %v11441_v36 = vld [vmem:[%s16569_s7 + $0x180] ss:$8 sps:$4 sm:$0xff]  }
 0xc69   : > { %v4528_v0 = vmul.f32 %v14338_v54, %v4483_v20  ;;  %v10965_v38 = vpop.f32.mrb[242].mxu0  ;;  %10372 = vmatprep.subr.bf16.mxu1 %v4609_v30  ;;  %v11442_v30 = vld [vmem:[%s16569_s7 + $0x194] ss:$8 sps:$4 sm:$0xff]   ;;  %v11445_v20 = vld [vmem:[%s16569_s7 + $0x1a4] ss:$8 sps:$4 sm:$0xff]  }
 0xc6a   : > { %v4531_v32 = vmul.f32 %v14338_v54, %v10965_v38  ;;  %v4486_v55 = vpop.f32.mrb[243].mxu0  ;;  %10373 = vmatpush3.bf16.msra.mxu1 %v14374_v27  ;;  %v4595_v15 = vsub.f32 %v17069_v44, %v4530_v11  ;;  %v11418_v27 = vld [vmem:[%s16569_s7 + $0x114] ss:$8 sps:$4 sm:$0xff]   ;;  %v11444_v11 = vld [vmem:[%s16569_s7 + $0x190] ss:$8 sps:$4 sm:$0xff]  }
 0xc6b   : > { %v4529_v4 = vmul.f32 %v14338_v54, %v4486_v55  ;;  %10374 = vmatprep.subr.bf16.mxu1 %v4610_v19  ;;  %v4593_v63 = vsub.f32 %v17071_v28, %v4528_v0  ;;  %v11415_v54 = vld [vmem:[%s16569_s7 + $0x100] ss:$8 sps:$4 sm:$0xff]   ;;  %v11439_v19 = vld [vmem:[%s16569_s7 + $0x184] ss:$8 sps:$4 sm:$0xff]   ;;  %v11448_v38 = vld [vmem:[%s16569_s7 + $0x1b4] ss:$8 sps:$4 sm:$0xff]  }
 0xc6c   : > { %v4596_v49 = vsub.f32 %v17070_v50, %v4531_v32  ;;  %v11447_v0 = vld [vmem:[%s16569_s7 + $0x1a0] ss:$8 sps:$4 sm:$0xff]   ;;  %v11450_v32 = vld [vmem:[%s16569_s7 + $0x1b0] ss:$8 sps:$4 sm:$0xff]   ;;  %v11451_v55 = vld [vmem:[%s16569_s7 + $0x1c4] ss:$8 sps:$4 sm:$0xff]  }
 0xc6d   : > { %v4594_v12 = vsub.f32 %v17072_v47, %v4529_v4  ;;  %v11453_v4 = vld [vmem:[%s16569_s7 + $0x1c0] ss:$8 sps:$4 sm:$0xff]  }
 0xc6e   : > { %10375 = vmatpush3.bf16.msra.mxu1 %v14372_v7  ;;  %v4612_v26 = vpack.c.bf16 %v4596_v49, %v4595_v15  ;;  %v11420_v7 = vld [vmem:[%s16569_s7 + $0x110] ss:$8 sps:$4 sm:$0xff]   ;;  %v11454_v15 = vld [vmem:[%s16569_s7 + $0x1d4] ss:$8 sps:$4 sm:$0xff]  }
 0xc6f   : > { %v4611_v29 = vpack.c.bf16 %v4594_v12, %v4593_v63  ;;  %v11456_v49 = vld [vmem:[%s16569_s7 + $0x1d0] ss:$8 sps:$4 sm:$0xff]   ;;  %v11457_v63 = vld [vmem:[%s16569_s7 + $0x1e4] ss:$8 sps:$4 sm:$0xff]   ;;  %v11459_v12 = vld [vmem:[%s16569_s7 + $0x1e0] ss:$8 sps:$4 sm:$0xff]  }
 0xc71   : > { %10376 = vmatprep.subr.bf16.mxu1 %v4611_v29  ;;  %v11462_v29 = vld [vmem:[%s16569_s7 + $0x1f0] ss:$8 sps:$4 sm:$0xff]  }
 0xc72   : > { %10377 = vmatpush3.bf16.msra.mxu1 %v14386_v1  ;;  %v11421_v1 = vld [vmem:[%s16569_s7 + $0x124] ss:$8 sps:$4 sm:$0xff]  }
 0xc73   : > { %10378 = vmatprep.subr.bf16.mxu1 %v4612_v26  ;;  %v11460_v26 = vld [vmem:[%s16569_s7 + $0x1f4] ss:$8 sps:$4 sm:$0xff]  }
 0xc76   : > { %10379 = vmatpush3.bf16.msra.mxu1 %v14384_v23  ;;  %v11423_v23 = vld [vmem:[%s16569_s7 + $0x120] ss:$8 sps:$4 sm:$0xff]  }
 0xc79   : > { %4999 = vmatmul.mubr.bf16.vlgmr.msra.gmra.mrb[172].mxu1 %v11415_v54 }
 0xc7a   : > { %5006 = vmatprep.mubr.bf16.mxu1 %v11418_v27 }
 0xc81   : > { %5007 = vmatmul.mubr.bf16.gmra.mrb[176].mxu1 %v11420_v7 }
 0xc82   : > { %5014 = vmatprep.mubr.bf16.mxu1 %v11421_v1 }
 0xc89   : > { %5015 = vmatmul.mubr.bf16.gmra.mrb[180].mxu1 %v11423_v23  ;;  %v4649_v23 = vpop.permute.xlu0 %4648 }
 0xc8a   : > { %5022 = vmatprep.mubr.bf16.mxu1 %v11424_v24 }
 0xc91   : > { %5023 = vmatmul.mubr.bf16.gmra.mrb[184].mxu1 %v11426_v46 }
 0xc92   : > { %5030 = vmatprep.mubr.bf16.mxu1 %v11427_v59 }
 0xc99   : > { %5031 = vmatmul.mubr.bf16.gmra.mrb[188].mxu1 %v11429_v61  ;;  %v4654_v61 = vpop.permute.xlu1 %4653 }
 0xc9a   : > { %5038 = vmatprep.mubr.bf16.mxu1 %v11430_v10 }
 0xca1   : > { %5039 = vmatmul.mubr.bf16.gmra.mrb[192].mxu1 %v11432_v56 }
 0xca2   : > { %5046 = vmatprep.mubr.bf16.mxu1 %v11433_v52 }
 0xca9   : > { %5047 = vmatmul.mubr.bf16.gmra.mrb[196].mxu1 %v11435_v31 }
 0xcaa   : > { %5054 = vmatprep.mubr.bf16.mxu1 %v11436_v16 }
 0xcb1   : > { %5055 = vmatmul.mubr.bf16.gmra.mrb[200].mxu1 %v11438_v2  ;;  %v11465_v2 = vld [vmem:[%s16567_s5 + $0x284] ss:$8 sps:$4 sm:$0xff]  }
 0xcb2   : > { %5062 = vmatprep.mubr.bf16.mxu1 %v11439_v19  ;;  %5785 = vmatprep.mubr.bf16.mxu0 %v11465_v2 }
 0xcb9   : > { %5063 = vmatmul.mubr.bf16.gmra.mrb[204].mxu1 %v11441_v36 }
 0xcba   : > { %5070 = vmatprep.mubr.bf16.mxu1 %v11442_v30 }
 0xcc1   : > { %5071 = vmatmul.mubr.bf16.gmra.mrb[208].mxu1 %v11444_v11 }
 0xcc2   : > { %5078 = vmatprep.mubr.bf16.mxu1 %v11445_v20  ;;  %v4659_v20 = vpop.permute.xlu0 %4658 }
 0xcc9   : > { %5079 = vmatmul.mubr.bf16.gmra.mrb[212].mxu1 %v11447_v0 }
 0xcca   : > { %5086 = vmatprep.mubr.bf16.mxu1 %v11448_v38  ;;  %v17073_v38 = vld [vmem:[#allocation9_spill] sm:$0xff] }
 0xcd1   : > { %5087 = vmatmul.mubr.bf16.gmra.mrb[216].mxu1 %v11450_v32 }
 0xcd2   : > { %5094 = vmatprep.mubr.bf16.mxu1 %v11451_v55 }
 0xcd9   : > { %5095 = vmatmul.mubr.bf16.gmra.mrb[220].mxu1 %v11453_v4 }
 0xcda   : > { %5102 = vmatprep.mubr.bf16.mxu1 %v11454_v15 }
 0xce1   : > { %5103 = vmatmul.mubr.bf16.gmra.mrb[224].mxu1 %v11456_v49  ;;  %v4664_v49 = vpop.permute.xlu1 %4663 }
 0xce2   : > { %5110 = vmatprep.mubr.bf16.mxu1 %v11457_v63 }
 0xce9   : > { %5111 = vmatmul.mubr.bf16.gmra.mrb[228].mxu1 %v11459_v12 }
 0xcea   : > { %5118 = vmatprep.mubr.bf16.mxu1 %v11460_v26 }
 0xcf1   : > { %5119 = vmatmul.mubr.bf16.gmra.mrb[232].mxu1 %v11462_v29 }
 0xd4c   : > { %v10380_v54 = vpop.f32.mrb[172].mxu1 }
 0xd4d   : > { %v10381_v27 = vpop.f32.mrb[173].mxu1 }
 0xd4e   : > { %v10382_v7 = vadd.f32 %v10381_v27, %v10380_v54  ;;  %v10383_v1 = vpop.f32.mrb[174].mxu1 }
 0xd4f   : > { %v10384_v24 = vpop.f32.mrb[175].mxu1 }
 0xd50   : > { %v5001_v46 = vadd.f32 %v10382_v7, %v4649_v23  ;;  %v10385_v59 = vadd.f32 %v10384_v24, %v10383_v1  ;;  %v4669_v24 = vpop.permute.xlu0 %4668 }
 0xd52   : > { %v5127_v10 = vmax.f32 %v5001_v46, 0.0  ;;  %v5004_v56 = vadd.f32 %v10385_v59, %v4654_v61  ;;  %v17077_v59 = vld [vmem:[#allocation13_spill] sm:$0xff] }
 0xd54   : > { %v5159_v52 = vadd.f32 %v5127_v10, %v17043_v33  ;;  %v5128_v31 = vmax.f32 %v5004_v56, 0.0  ;;  %v10386_v16 = vpop.f32.mrb[176].mxu1  ;;  %v17075_v33 = vld [vmem:[#allocation8_spill] sm:$0xff] }
 0xd55   : > { %v10387_v19 = vpop.f32.mrb[177].mxu1  ;;  %v17078_v10 = vld [vmem:[#allocation12_spill] sm:$0xff] }
 0xd56   : > { %5191 = vst [vmem:[%s13533_s23 + $0x100] sm:$0xff] %v5159_v52  ;;  %v5160_v36 = vadd.f32 %v5128_v31, %v17044_v60  ;;  %v10388_v30 = vadd.f32 %v10387_v19, %v10386_v16  ;;  %v10389_v11 = vpop.f32.mrb[178].mxu1  ;;  %v14528_v32 = vadd.f32 %v5159_v52, %v17073_v38  ;;  %v4674_v31 = vpop.permute.xlu1 %4673 }
 0xd57   : > { %v10390_v0 = vpop.f32.mrb[179].mxu1 }
 0xd58   : > { %17074 = vst [vmem:[#allocation10_spill] sm:$0xff] %v14528_v32  ;;  %5192 = vst [vmem:[%s13533_s23 + $0x108] sm:$0xff] %v5160_v36  ;;  %v14532_v55 = vadd.f32 %v5160_v36, %v17075_v33  ;;  %v5009_v4 = vadd.f32 %v10388_v30, %v4659_v20  ;;  %v10391_v15 = vadd.f32 %v10390_v0, %v10389_v11 }
 0xd5a   : > { %17076 = vst [vmem:[#allocation11_spill] sm:$0xff] %v14532_v55  ;;  %v5129_v63 = vmax.f32 %v5009_v4, 0.0  ;;  %v5012_v12 = vadd.f32 %v10391_v15, %v4664_v49  ;;  %v5255_v60 = vpack.c.bf16 %v14532_v55, %v14528_v32  ;;  %v4679_v15 = vpop.permute.xlu0 %4678  ;;  %v9762_v32 = vld [vmem:[%s16570_s8 + $0x2b0] sm:$0xff] }
 0xd5c   : > { %v5161_v26 = vadd.f32 %v5129_v63, %v13552_v39  ;;  %v5130_v29 = vmax.f32 %v5012_v12, 0.0  ;;  %v10392_v54 = vpop.f32.mrb[180].mxu1  ;;  %5754 = vmatpush1.bf16.msra.mxu0 %v5255_v60  ;;  %v17079_v63 = vld [vmem:[#allocation15_spill] sm:$0xff]  ;;  %v17081_v60 = vld [vmem:[#allocation14_spill] sm:$0xff] }
 0xd5d   : > { %v10393_v27 = vpop.f32.mrb[181].mxu1  ;;  %5755 = vmatprep.subr.bf16.mxu0 %v16924_v53 }
 0xd5e   : > { %5193 = vst [vmem:[%s13533_s23 + $0x110] sm:$0xff] %v5161_v26  ;;  %v5162_v7 = vadd.f32 %v5130_v29, %v13556_v35  ;;  %v10394_v1 = vadd.f32 %v10393_v27, %v10392_v54  ;;  %v10395_v23 = vpop.f32.mrb[182].mxu1  ;;  %v14541_v61 = vadd.f32 %v5161_v26, %v17077_v59  ;;  %v4684_v54 = vpop.permute.xlu1 %4683 }
 0xd5f   : > { %v10396_v46 = vpop.f32.mrb[183].mxu1 }
 0xd60   : > { %5194 = vst [vmem:[%s13533_s23 + $0x118] sm:$0xff] %v5162_v7  ;;  %v14545_v39 = vadd.f32 %v5162_v7, %v17078_v10  ;;  %v5017_v56 = vadd.f32 %v10394_v1, %v4669_v24  ;;  %v10397_v52 = vadd.f32 %v10396_v46, %v10395_v23 }
 0xd62   : > { %v5131_v16 = vmax.f32 %v5017_v56, 0.0  ;;  %v5020_v2 = vadd.f32 %v10397_v52, %v4674_v31  ;;  %v5256_v35 = vpack.c.bf16 %v14545_v39, %v14541_v61 }
 0xd64   : > { %v5163_v19 = vadd.f32 %v5131_v16, %v17047_v21  ;;  %v5132_v36 = vmax.f32 %v5020_v2, 0.0  ;;  %v10398_v30 = vpop.f32.mrb[184].mxu1  ;;  %5756 = vmatpush1.bf16.msra.mxu0 %v5256_v35  ;;  %v4689_v16 = vpop.permute.xlu0 %4688  ;;  %v17083_v35 = vld [vmem:[#allocation19_spill] sm:$0xff] }
 0xd65   : > { %v10399_v11 = vpop.f32.mrb[185].mxu1  ;;  %5757 = vmatprep.subr.bf16.mxu0 %v16924_v53 }
 0xd66   : > { %5195 = vst [vmem:[%s13533_s23 + $0x120] sm:$0xff] %v5163_v19  ;;  %v5164_v20 = vadd.f32 %v5132_v36, %v17048_v58  ;;  %v10400_v0 = vadd.f32 %v10399_v11, %v10398_v30  ;;  %v10401_v4 = vpop.f32.mrb[186].mxu1  ;;  %v14554_v12 = vadd.f32 %v5163_v19, %v17079_v63  ;;  %v17085_v36 = vld [vmem:[#allocation18_spill] sm:$0xff] }
 0xd67   : > { %v10402_v49 = vpop.f32.mrb[187].mxu1 }
 0xd68   : > { %17080 = vst [vmem:[#allocation16_spill] sm:$0xff] %v14554_v12  ;;  %5196 = vst [vmem:[%s13533_s23 + $0x128] sm:$0xff] %v5164_v20  ;;  %v14558_v21 = vadd.f32 %v5164_v20, %v17081_v60  ;;  %v5025_v26 = vadd.f32 %v10400_v0, %v4679_v15  ;;  %v10403_v29 = vadd.f32 %v10402_v49, %v10401_v4  ;;  %v4694_v20 = vpop.permute.xlu1 %4693 }
 0xd6a   : > { %17082 = vst [vmem:[#allocation17_spill] sm:$0xff] %v14558_v21  ;;  %v5133_v27 = vmax.f32 %v5025_v26, 0.0  ;;  %v5028_v7 = vadd.f32 %v10403_v29, %v4684_v54  ;;  %v5257_v58 = vpack.c.bf16 %v14558_v21, %v14554_v12 }
 0xd6c   : > { %v5165_v1 = vadd.f32 %v5133_v27, %v17045_v41  ;;  %v5134_v23 = vmax.f32 %v5028_v7, 0.0  ;;  %v10404_v24 = vpop.f32.mrb[188].mxu1  ;;  %5758 = vmatpush1.bf16.msra.mxu0 %v5257_v58  ;;  %v4699_v58 = vpop.permute.xlu0 %4698 }
 0xd6d   : > { %v10405_v46 = vpop.f32.mrb[189].mxu1  ;;  %5759 = vmatprep.subr.bf16.mxu0 %v16924_v53 }
 0xd6e   : > { %5197 = vst [vmem:[%s13533_s23 + $0x130] sm:$0xff] %v5165_v1  ;;  %v5166_v56 = vadd.f32 %v5134_v23, %v17046_v3  ;;  %v10406_v52 = vadd.f32 %v10405_v46, %v10404_v24  ;;  %v10407_v31 = vpop.f32.mrb[190].mxu1  ;;  %v14567_v19 = vadd.f32 %v5165_v1, %v17083_v35  ;;  %v17087_v23 = vld [vmem:[#allocation23_spill] sm:$0xff]  ;;  %v17089_v46 = vld [vmem:[#allocation22_spill] sm:$0xff] }
 0xd6f   : > { %v10408_v2 = vpop.f32.mrb[191].mxu1  ;;  %v9631_v35 = vld [vmem:[%s16568_s6 + $0x2d8] sm:$0xff] }
 0xd70   : > { %17084 = vst [vmem:[#allocation20_spill] sm:$0xff] %v14567_v19  ;;  %5198 = vst [vmem:[%s13533_s23 + $0x138] sm:$0xff] %v5166_v56  ;;  %v14571_v41 = vadd.f32 %v5166_v56, %v17085_v36  ;;  %v5033_v30 = vadd.f32 %v10406_v52, %v4689_v16  ;;  %v10409_v11 = vadd.f32 %v10408_v2, %v10407_v31  ;;  %v4704_v31 = vpop.permute.xlu1 %4703  ;;  %v11522_v36 = vld [vmem:[%s16567_s5 + $0x3b4] ss:$8 sps:$4 sm:$0xff]  }
 0xd72   : > { %17086 = vst [vmem:[#allocation21_spill] sm:$0xff] %v14571_v41  ;;  %v5135_v0 = vmax.f32 %v5033_v30, 0.0  ;;  %v5036_v4 = vadd.f32 %v10409_v11, %v4694_v20  ;;  %v5258_v3 = vpack.c.bf16 %v14571_v41, %v14567_v19 }
 0xd74   : > { %v5167_v15 = vadd.f32 %v5135_v0, %v17051_v8  ;;  %v5136_v49 = vmax.f32 %v5036_v4, 0.0  ;;  %v10410_v26 = vpop.f32.mrb[192].mxu1  ;;  %5760 = vmatpush1.bf16.msra.mxu0 %v5258_v3 }
 0xd75   : > { %v10411_v29 = vpop.f32.mrb[193].mxu1  ;;  %5761 = vmatprep.subr.bf16.mxu0 %v16924_v53 }
 0xd76   : > { %5199 = vst [vmem:[%s13533_s23 + $0x140] sm:$0xff] %v5167_v15  ;;  %v5168_v54 = vadd.f32 %v5136_v49, %v17052_v37  ;;  %v10412_v27 = vadd.f32 %v10411_v29, %v10410_v26  ;;  %v10413_v7 = vpop.f32.mrb[194].mxu1  ;;  %v14580_v24 = vadd.f32 %v5167_v15, %v17087_v23  ;;  %v4709_v49 = vpop.permute.xlu0 %4708  ;;  %v17091_v29 = vld [vmem:[#allocation27_spill] sm:$0xff] }
 0xd77   : > { %v10414_v1 = vpop.f32.mrb[195].mxu1 }
 0xd78   : > { %17088 = vst [vmem:[#allocation24_spill] sm:$0xff] %v14580_v24  ;;  %5200 = vst [vmem:[%s13533_s23 + $0x148] sm:$0xff] %v5168_v54  ;;  %v14584_v8 = vadd.f32 %v5168_v54, %v17089_v46  ;;  %v5041_v56 = vadd.f32 %v10412_v27, %v4699_v58  ;;  %v10415_v52 = vadd.f32 %v10414_v1, %v10413_v7  ;;  %v17093_v27 = vld [vmem:[#allocation26_spill] sm:$0xff]  ;;  %v4714_v1 = vpop.permute.xlu1 %4713 }
 0xd7a   : > { %17090 = vst [vmem:[#allocation25_spill] sm:$0xff] %v14584_v8  ;;  %v5137_v16 = vmax.f32 %v5041_v56, 0.0  ;;  %v5044_v2 = vadd.f32 %v10415_v52, %v4704_v31  ;;  %v5259_v37 = vpack.c.bf16 %v14584_v8, %v14580_v24 }
 0xd7c   : > { %v5169_v30 = vadd.f32 %v5137_v16, %v17049_v57  ;;  %v5138_v11 = vmax.f32 %v5044_v2, 0.0  ;;  %v10416_v20 = vpop.f32.mrb[196].mxu1  ;;  %5762 = vmatpush1.bf16.msra.mxu0 %v5259_v37 }
 0xd7d   : > { %v10417_v0 = vpop.f32.mrb[197].mxu1  ;;  %5763 = vmatprep.subr.bf16.mxu0 %v16924_v53 }
 0xd7e   : > { %5201 = vst [vmem:[%s13533_s23 + $0x150] sm:$0xff] %v5169_v30  ;;  %v5170_v4 = vadd.f32 %v5138_v11, %v17050_v62  ;;  %v10418_v3 = vadd.f32 %v10417_v0, %v10416_v20  ;;  %v10419_v15 = vpop.f32.mrb[198].mxu1  ;;  %v14593_v54 = vadd.f32 %v5169_v30, %v17091_v29  ;;  %v4719_v0 = vpop.permute.xlu0 %4718  ;;  %v9629_v29 = vld [vmem:[%s16568_s6 + $0x2c8] sm:$0xff] }
 0xd7f   : > { %v10420_v26 = vpop.f32.mrb[199].mxu1 }
 0xd80   : > { %17092 = vst [vmem:[#allocation28_spill] sm:$0xff] %v14593_v54  ;;  %5202 = vst [vmem:[%s13533_s23 + $0x158] sm:$0xff] %v5170_v4  ;;  %v14597_v57 = vadd.f32 %v5170_v4, %v17093_v27  ;;  %v5049_v7 = vadd.f32 %v10418_v3, %v4709_v49  ;;  %v10421_v58 = vadd.f32 %v10420_v26, %v10419_v15  ;;  %v17095_v3 = vld [vmem:[#allocation31_spill] sm:$0xff]  ;;  %v17097_v49 = vld [vmem:[#allocation30_spill] sm:$0xff] }
 0xd81   : > { %v11511_v27 = vld [vmem:[%s16567_s5 + $0x380] ss:$8 sps:$4 sm:$0xff]  }
 0xd82   : > { %17094 = vst [vmem:[#allocation29_spill] sm:$0xff] %v14597_v57  ;;  %v5139_v56 = vmax.f32 %v5049_v7, 0.0  ;;  %v5052_v52 = vadd.f32 %v10421_v58, %v4714_v1  ;;  %v5260_v62 = vpack.c.bf16 %v14597_v57, %v14593_v54  ;;  %v4724_v58 = vpop.permute.xlu1 %4723  ;;  %v9757_v57 = vld [vmem:[%s16570_s8 + $0x288] sm:$0xff] }
 0xd84   : > { %v5171_v31 = vadd.f32 %v5139_v56, %v17055_v14  ;;  %v5140_v16 = vmax.f32 %v5052_v52, 0.0  ;;  %v10422_v2 = vpop.f32.mrb[200].mxu1  ;;  %5764 = vmatpush1.bf16.msra.mxu0 %v5260_v62 }
 0xd85   : > { %v10423_v37 = vpop.f32.mrb[201].mxu1  ;;  %5765 = vmatprep.subr.bf16.mxu0 %v16924_v53 }
 0xd86   : > { %5203 = vst [vmem:[%s13533_s23 + $0x160] sm:$0xff] %v5171_v31  ;;  %v5172_v30 = vadd.f32 %v5140_v16, %v17056_v17  ;;  %v10424_v11 = vadd.f32 %v10423_v37, %v10422_v2  ;;  %v10425_v20 = vpop.f32.mrb[202].mxu1  ;;  %v14606_v15 = vadd.f32 %v5171_v31, %v17095_v3  ;;  %v11513_v3 = vld [vmem:[%s16567_s5 + $0x384] ss:$8 sps:$4 sm:$0xff]  }
 0xd87   : > { %v10426_v4 = vpop.f32.mrb[203].mxu1 }
 0xd88   : > { %17096 = vst [vmem:[#allocation32_spill] sm:$0xff] %v14606_v15  ;;  %5204 = vst [vmem:[%s13533_s23 + $0x168] sm:$0xff] %v5172_v30  ;;  %v14610_v14 = vadd.f32 %v5172_v30, %v17097_v49  ;;  %v5057_v26 = vadd.f32 %v10424_v11, %v4719_v0  ;;  %v10427_v7 = vadd.f32 %v10426_v4, %v10425_v20  ;;  %v4729_v11 = vpop.permute.xlu0 %4728  ;;  %v17099_v0 = vld [vmem:[#allocation35_spill] sm:$0xff] }
 0xd8a   : > { %17098 = vst [vmem:[#allocation33_spill] sm:$0xff] %v14610_v14  ;;  %v5141_v1 = vmax.f32 %v5057_v26, 0.0  ;;  %v5060_v56 = vadd.f32 %v10427_v7, %v4724_v58  ;;  %v5261_v17 = vpack.c.bf16 %v14610_v14, %v14606_v15  ;;  %v17101_v26 = vld [vmem:[#allocation34_spill] sm:$0xff] }
 0xd8c   : > { %v5173_v52 = vadd.f32 %v5141_v1, %v17053_v25  ;;  %v5142_v62 = vmax.f32 %v5060_v56, 0.0  ;;  %v10428_v16 = vpop.f32.mrb[204].mxu1  ;;  %5766 = vmatpush1.bf16.msra.mxu0 %v5261_v17  ;;  %v4734_v1 = vpop.permute.xlu1 %4733 }
 0xd8d   : > { %v10429_v31 = vpop.f32.mrb[205].mxu1  ;;  %5767 = vmatprep.subr.bf16.mxu0 %v16924_v53 }
 0xd8e   : > { %5205 = vst [vmem:[%s13533_s23 + $0x170] sm:$0xff] %v5173_v52  ;;  %v5174_v2 = vadd.f32 %v5142_v62, %v17054_v45  ;;  %v10430_v37 = vadd.f32 %v10429_v31, %v10428_v16  ;;  %v10431_v30 = vpop.f32.mrb[206].mxu1  ;;  %v14619_v4 = vadd.f32 %v5173_v52, %v17099_v0 }
 0xd8f   : > { %v10432_v20 = vpop.f32.mrb[207].mxu1 }
 0xd90   : > { %17100 = vst [vmem:[#allocation36_spill] sm:$0xff] %v14619_v4  ;;  %5206 = vst [vmem:[%s13533_s23 + $0x178] sm:$0xff] %v5174_v2  ;;  %v14623_v25 = vadd.f32 %v5174_v2, %v17101_v26  ;;  %v5065_v7 = vadd.f32 %v10430_v37, %v4729_v11  ;;  %v10433_v58 = vadd.f32 %v10432_v20, %v10431_v30  ;;  %v4739_v11 = vpop.permute.xlu0 %4738 }
 0xd92   : > { %17102 = vst [vmem:[#allocation37_spill] sm:$0xff] %v14623_v25  ;;  %v5143_v56 = vmax.f32 %v5065_v7, 0.0  ;;  %v5068_v17 = vadd.f32 %v10433_v58, %v4734_v1  ;;  %v5262_v45 = vpack.c.bf16 %v14623_v25, %v14619_v4  ;;  %v17103_v7 = vld [vmem:[#allocation39_spill] sm:$0xff]  ;;  %v17105_v1 = vld [vmem:[#allocation38_spill] sm:$0xff] }
 0xd94   : > { %v5175_v62 = vadd.f32 %v5143_v56, %v17059_v18  ;;  %v5144_v16 = vmax.f32 %v5068_v17, 0.0  ;;  %v10434_v31 = vpop.f32.mrb[208].mxu1  ;;  %5768 = vmatpush1.bf16.msra.mxu0 %v5262_v45  ;;  %v4744_v45 = vpop.permute.xlu1 %4743 }
 0xd95   : > { %v10435_v52 = vpop.f32.mrb[209].mxu1  ;;  %5769 = vmatprep.subr.bf16.mxu0 %v16924_v53 }
 0xd96   : > { %5207 = vst [vmem:[%s13533_s23 + $0x180] sm:$0xff] %v5175_v62  ;;  %v5176_v2 = vadd.f32 %v5144_v16, %v17060_v42  ;;  %v10436_v37 = vadd.f32 %v10435_v52, %v10434_v31  ;;  %v10437_v30 = vpop.f32.mrb[210].mxu1  ;;  %v14632_v58 = vadd.f32 %v5175_v62, %v17103_v7 }
 0xd97   : > { %v10438_v20 = vpop.f32.mrb[211].mxu1 }
 0xd98   : > { %17104 = vst [vmem:[#allocation40_spill] sm:$0xff] %v14632_v58  ;;  %5208 = vst [vmem:[%s13533_s23 + $0x188] sm:$0xff] %v5176_v2  ;;  %v14636_v18 = vadd.f32 %v5176_v2, %v17105_v1  ;;  %v5073_v56 = vadd.f32 %v10436_v37, %v4739_v11  ;;  %v10439_v17 = vadd.f32 %v10438_v20, %v10437_v30  ;;  %v4749_v11 = vpop.permute.xlu0 %4748 }
 0xd9a   : > { %17106 = vst [vmem:[#allocation41_spill] sm:$0xff] %v14636_v18  ;;  %v5145_v26 = vmax.f32 %v5073_v56, 0.0  ;;  %v5076_v0 = vadd.f32 %v10439_v17, %v4744_v45  ;;  %v5263_v42 = vpack.c.bf16 %v14636_v18, %v14632_v58  ;;  %v17107_v56 = vld [vmem:[#allocation43_spill] sm:$0xff]  ;;  %v17109_v45 = vld [vmem:[#allocation42_spill] sm:$0xff]  ;;  %v9653_v18 = vld [vmem:[%s16568_s6 + $0x388] sm:$0xff] }
 0xd9c   : > { %v5177_v16 = vadd.f32 %v5145_v26, %v17057_v48  ;;  %v5146_v31 = vmax.f32 %v5076_v0, 0.0  ;;  %v10440_v52 = vpop.f32.mrb[212].mxu1  ;;  %5770 = vmatpush1.bf16.msra.mxu0 %v5263_v42  ;;  %v4754_v42 = vpop.permute.xlu1 %4753 }
 0xd9d   : > { %v10441_v62 = vpop.f32.mrb[213].mxu1  ;;  %5771 = vmatprep.subr.bf16.mxu0 %v16924_v53 }
 0xd9e   : > { %5209 = vst [vmem:[%s13533_s23 + $0x190] sm:$0xff] %v5177_v16  ;;  %v5178_v2 = vadd.f32 %v5146_v31, %v17058_v9  ;;  %v10442_v37 = vadd.f32 %v10441_v62, %v10440_v52  ;;  %v10443_v30 = vpop.f32.mrb[214].mxu1  ;;  %v14645_v17 = vadd.f32 %v5177_v16, %v17107_v56 }
 0xd9f   : > { %v10444_v20 = vpop.f32.mrb[215].mxu1 }
 0xda0   : > { %17108 = vst [vmem:[#allocation44_spill] sm:$0xff] %v14645_v17  ;;  %5210 = vst [vmem:[%s13533_s23 + $0x198] sm:$0xff] %v5178_v2  ;;  %v14649_v48 = vadd.f32 %v5178_v2, %v17109_v45  ;;  %v5081_v0 = vadd.f32 %v10442_v37, %v4749_v11  ;;  %v10445_v26 = vadd.f32 %v10444_v20, %v10443_v30  ;;  %v4759_v11 = vpop.permute.xlu0 %4758 }
 0xda2   : > { %17110 = vst [vmem:[#allocation45_spill] sm:$0xff] %v14649_v48  ;;  %v5147_v1 = vmax.f32 %v5081_v0, 0.0  ;;  %v5084_v7 = vadd.f32 %v10445_v26, %v4754_v42  ;;  %v5264_v9 = vpack.c.bf16 %v14649_v48, %v14645_v17  ;;  %v17111_v0 = vld [vmem:[#allocation47_spill] sm:$0xff]  ;;  %v17113_v42 = vld [vmem:[#allocation46_spill] sm:$0xff] }
 0xda4   : > { %v5179_v31 = vadd.f32 %v5147_v1, %v17063_v43  ;;  %v5148_v52 = vmax.f32 %v5084_v7, 0.0  ;;  %v10446_v62 = vpop.f32.mrb[216].mxu1  ;;  %5772 = vmatpush1.bf16.msra.mxu0 %v5264_v9  ;;  %v4764_v9 = vpop.permute.xlu1 %4763 }
 0xda5   : > { %v10447_v16 = vpop.f32.mrb[217].mxu1  ;;  %5773 = vmatprep.subr.bf16.mxu0 %v16924_v53 }
 0xda6   : > { %5211 = vst [vmem:[%s13533_s23 + $0x1a0] sm:$0xff] %v5179_v31  ;;  %v5180_v2 = vadd.f32 %v5148_v52, %v17064_v34  ;;  %v10448_v37 = vadd.f32 %v10447_v16, %v10446_v62  ;;  %v10449_v30 = vpop.f32.mrb[218].mxu1  ;;  %v14658_v26 = vadd.f32 %v5179_v31, %v17111_v0 }
 0xda7   : > { %v10450_v20 = vpop.f32.mrb[219].mxu1 }
 0xda8   : > { %17112 = vst [vmem:[#allocation48_spill] sm:$0xff] %v14658_v26  ;;  %5212 = vst [vmem:[%s13533_s23 + $0x1a8] sm:$0xff] %v5180_v2  ;;  %v14662_v43 = vadd.f32 %v5180_v2, %v17113_v42  ;;  %v5089_v7 = vadd.f32 %v10448_v37, %v4759_v11  ;;  %v10451_v1 = vadd.f32 %v10450_v20, %v10449_v30  ;;  %v4769_v11 = vpop.permute.xlu0 %4768 }
 0xdaa   : > { %17114 = vst [vmem:[#allocation49_spill] sm:$0xff] %v14662_v43  ;;  %v5149_v45 = vmax.f32 %v5089_v7, 0.0  ;;  %v5092_v56 = vadd.f32 %v10451_v1, %v4764_v9  ;;  %v5265_v34 = vpack.c.bf16 %v14662_v43, %v14658_v26  ;;  %v17115_v7 = vld [vmem:[#allocation51_spill] sm:$0xff]  ;;  %v17117_v9 = vld [vmem:[#allocation50_spill] sm:$0xff]  ;;  %v9645_v43 = vld [vmem:[%s16568_s6 + $0x348] sm:$0xff] }
 0xdab   : > { %v9647_v26 = vld [vmem:[%s16568_s6 + $0x358] sm:$0xff] }
 0xdac   : > { %v5181_v52 = vadd.f32 %v5149_v45, %v17061_v5  ;;  %v5150_v62 = vmax.f32 %v5092_v56, 0.0  ;;  %v10452_v16 = vpop.f32.mrb[220].mxu1  ;;  %5774 = vmatpush1.bf16.msra.mxu0 %v5265_v34  ;;  %v4774_v34 = vpop.permute.xlu1 %4773 }
 0xdad   : > { %v10453_v31 = vpop.f32.mrb[221].mxu1  ;;  %5775 = vmatprep.subr.bf16.mxu0 %v16924_v53 }
 0xdae   : > { %5213 = vst [vmem:[%s13533_s23 + $0x1b0] sm:$0xff] %v5181_v52  ;;  %v5182_v2 = vadd.f32 %v5150_v62, %v17062_v6  ;;  %v10454_v37 = vadd.f32 %v10453_v31, %v10452_v16  ;;  %v10455_v30 = vpop.f32.mrb[222].mxu1  ;;  %v14671_v1 = vadd.f32 %v5181_v52, %v17115_v7 }
 0xdaf   : > { %v10456_v20 = vpop.f32.mrb[223].mxu1 }
 0xdb0   : > { %17116 = vst [vmem:[#allocation52_spill] sm:$0xff] %v14671_v1  ;;  %5214 = vst [vmem:[%s13533_s23 + $0x1b8] sm:$0xff] %v5182_v2  ;;  %v14675_v5 = vadd.f32 %v5182_v2, %v17117_v9  ;;  %v5097_v56 = vadd.f32 %v10454_v37, %v4769_v11  ;;  %v10457_v45 = vadd.f32 %v10456_v20, %v10455_v30  ;;  %v4779_v11 = vpop.permute.xlu0 %4778 }
 0xdb2   : > { %17118 = vst [vmem:[#allocation53_spill] sm:$0xff] %v14675_v5  ;;  %v5151_v42 = vmax.f32 %v5097_v56, 0.0  ;;  %v5100_v0 = vadd.f32 %v10457_v45, %v4774_v34  ;;  %v5266_v6 = vpack.c.bf16 %v14675_v5, %v14671_v1  ;;  %v17119_v56 = vld [vmem:[#allocation55_spill] sm:$0xff]  ;;  %v17121_v34 = vld [vmem:[#allocation54_spill] sm:$0xff]  ;;  %v9649_v5 = vld [vmem:[%s16568_s6 + $0x368] sm:$0xff] }
 0xdb3   : > { %v9651_v1 = vld [vmem:[%s16568_s6 + $0x378] sm:$0xff] }
 0xdb4   : > { %v5183_v62 = vadd.f32 %v5151_v42, %v17067_v13  ;;  %v5152_v16 = vmax.f32 %v5100_v0, 0.0  ;;  %v10458_v31 = vpop.f32.mrb[224].mxu1  ;;  %5776 = vmatpush1.bf16.msra.mxu0 %v5266_v6  ;;  %v4784_v6 = vpop.permute.xlu1 %4783 }
 0xdb5   : > { %v10459_v52 = vpop.f32.mrb[225].mxu1  ;;  %5777 = vmatprep.subr.bf16.mxu0 %v16924_v53 }
 0xdb6   : > { %5215 = vst [vmem:[%s13533_s23 + $0x1c0] sm:$0xff] %v5183_v62  ;;  %v5184_v2 = vadd.f32 %v5152_v16, %v17068_v22  ;;  %v10460_v37 = vadd.f32 %v10459_v52, %v10458_v31  ;;  %v10461_v30 = vpop.f32.mrb[226].mxu1  ;;  %v14684_v45 = vadd.f32 %v5183_v62, %v17119_v56 }
 0xdb7   : > { %v10462_v20 = vpop.f32.mrb[227].mxu1 }
 0xdb8   : > { %17120 = vst [vmem:[#allocation56_spill] sm:$0xff] %v14684_v45  ;;  %5216 = vst [vmem:[%s13533_s23 + $0x1c8] sm:$0xff] %v5184_v2  ;;  %v14688_v13 = vadd.f32 %v5184_v2, %v17121_v34  ;;  %v5105_v0 = vadd.f32 %v10460_v37, %v4779_v11  ;;  %v10463_v42 = vadd.f32 %v10462_v20, %v10461_v30  ;;  %v4789_v11 = vpop.permute.xlu0 %4788 }
 0xdba   : > { %17122 = vst [vmem:[#allocation57_spill] sm:$0xff] %v14688_v13  ;;  %v5153_v9 = vmax.f32 %v5105_v0, 0.0  ;;  %v5108_v7 = vadd.f32 %v10463_v42, %v4784_v6  ;;  %v5267_v22 = vpack.c.bf16 %v14688_v13, %v14684_v45  ;;  %v17123_v0 = vld [vmem:[#allocation59_spill] sm:$0xff]  ;;  %v17125_v6 = vld [vmem:[#allocation58_spill] sm:$0xff] }
 0xdbb   : > { %v9639_v45 = vld [vmem:[%s16568_s6 + $0x318] sm:$0xff] }
 0xdbc   : > { %v5185_v16 = vadd.f32 %v5153_v9, %v17065_v40  ;;  %v5154_v31 = vmax.f32 %v5108_v7, 0.0  ;;  %v10464_v52 = vpop.f32.mrb[228].mxu1  ;;  %5778 = vmatpush1.bf16.msra.mxu0 %v5267_v22  ;;  %v4794_v22 = vpop.permute.xlu1 %4793 }
 0xdbd   : > { %v10465_v62 = vpop.f32.mrb[229].mxu1  ;;  %5779 = vmatprep.subr.bf16.mxu0 %v16924_v53 }
 0xdbe   : > { %5217 = vst [vmem:[%s13533_s23 + $0x1d0] sm:$0xff] %v5185_v16  ;;  %v5186_v2 = vadd.f32 %v5154_v31, %v17066_v51  ;;  %v10466_v37 = vadd.f32 %v10465_v62, %v10464_v52  ;;  %v10467_v30 = vpop.f32.mrb[230].mxu1  ;;  %v14697_v42 = vadd.f32 %v5185_v16, %v17123_v0 }
 0xdbf   : > { %v10468_v20 = vpop.f32.mrb[231].mxu1 }
 0xdc0   : > { %17124 = vst [vmem:[#allocation60_spill] sm:$0xff] %v14697_v42  ;;  %5218 = vst [vmem:[%s13533_s23 + $0x1d8] sm:$0xff] %v5186_v2  ;;  %v14701_v40 = vadd.f32 %v5186_v2, %v17125_v6  ;;  %v5113_v7 = vadd.f32 %v10466_v37, %v4789_v11  ;;  %v10469_v9 = vadd.f32 %v10468_v20, %v10467_v30  ;;  %v4799_v11 = vpop.permute.xlu0 %4798 }
 0xdc2   : > { %17126 = vst [vmem:[#allocation61_spill] sm:$0xff] %v14701_v40  ;;  %v5155_v34 = vmax.f32 %v5113_v7, 0.0  ;;  %v5116_v56 = vadd.f32 %v10469_v9, %v4794_v22  ;;  %v5268_v51 = vpack.c.bf16 %v14701_v40, %v14697_v42  ;;  %v17127_v7 = vld [vmem:[#allocation63_spill] sm:$0xff] }
 0xdc3   : > { %v9643_v42 = vld [vmem:[%s16568_s6 + $0x338] sm:$0xff] }
 0xdc4   : > { %v5187_v31 = vadd.f32 %v5155_v34, %v17071_v28  ;;  %v5156_v52 = vmax.f32 %v5116_v56, 0.0  ;;  %v10470_v62 = vpop.f32.mrb[232].mxu1  ;;  %5780 = vmatpush1.bf16.msra.mxu0 %v5268_v51  ;;  %v17129_v28 = vld [vmem:[#allocation62_spill] sm:$0xff]  ;;  %v4804_v51 = vpop.permute.xlu1 %4803 }
 0xdc5   : > { %v10471_v16 = vpop.f32.mrb[233].mxu1  ;;  %5781 = vmatprep.subr.bf16.mxu0 %v16924_v53 }
 0xdc6   : > { %5219 = vst [vmem:[%s13533_s23 + $0x1e0] sm:$0xff] %v5187_v31  ;;  %v5188_v2 = vadd.f32 %v5156_v52, %v17072_v47  ;;  %v10472_v37 = vadd.f32 %v10471_v16, %v10470_v62  ;;  %v10473_v30 = vpop.f32.mrb[234].mxu1  ;;  %v14710_v9 = vadd.f32 %v5187_v31, %v17127_v7  ;;  %v17131_v16 = vld [vmem:[#allocation67_spill] sm:$0xff] }
 0xdc7   : > { %v10474_v20 = vpop.f32.mrb[235].mxu1 }
 0xdc8   : > { %17128 = vst [vmem:[#allocation64_spill] sm:$0xff] %v14710_v9  ;;  %5220 = vst [vmem:[%s13533_s23 + $0x1e8] sm:$0xff] %v5188_v2  ;;  %v14714_v56 = vadd.f32 %v5188_v2, %v17129_v28  ;;  %v5121_v34 = vadd.f32 %v10472_v37, %v4799_v11  ;;  %v10475_v22 = vadd.f32 %v10474_v20, %v10473_v30  ;;  %v17133_v37 = vld [vmem:[#allocation66_spill] sm:$0xff]  ;;  %v11471_v20 = vld [vmem:[%s16567_s5 + $0x2a0] ss:$8 sps:$4 sm:$0xff]  }
 0xdca   : > { %17130 = vst [vmem:[#allocation65_spill] sm:$0xff] %v14714_v56  ;;  %v5157_v6 = vmax.f32 %v5121_v34, 0.0  ;;  %v5124_v0 = vadd.f32 %v10475_v22, %v4804_v51  ;;  %v5269_v47 = vpack.c.bf16 %v14714_v56, %v14710_v9  ;;  %v11474_v34 = vld [vmem:[%s16567_s5 + $0x2b4] ss:$8 sps:$4 sm:$0xff]   ;;  %v11472_v22 = vld [vmem:[%s16567_s5 + $0x2b0] ss:$8 sps:$4 sm:$0xff]  }
 0xdcc   : > { %v5189_v52 = vadd.f32 %v5157_v6, %v17069_v44  ;;  %v5158_v62 = vmax.f32 %v5124_v0, 0.0  ;;  %5782 = vmatpush1.bf16.msra.mxu0 %v5269_v47  ;;  %v11463_v44 = vld [vmem:[%s16567_s5 + $0x280] ss:$8 sps:$4 sm:$0xff]   ;;  %v11466_v0 = vld [vmem:[%s16567_s5 + $0x294] ss:$8 sps:$4 sm:$0xff]   ;;  %v5361_v47 = vpop.permute.xlu1 %5360 }
 0xdcd   : > { %5783 = vmatprep.subr.bf16.mxu0 %v16924_v53  ;;  %v11469_v6 = vld [vmem:[%s16567_s5 + $0x2a4] ss:$8 sps:$4 sm:$0xff]  }
 0xdce   : > { %5221 = vst [vmem:[%s13533_s23 + $0x1f0] sm:$0xff] %v5189_v52  ;;  %v5190_v31 = vadd.f32 %v5158_v62, %v17070_v50  ;;  %v14723_v2 = vadd.f32 %v5189_v52, %v17131_v16  ;;  %v11468_v50 = vld [vmem:[%s16567_s5 + $0x290] ss:$8 sps:$4 sm:$0xff]   ;;  %v5356_v62 = vpop.permute.xlu0 %5355 }
 0xdd0   : > { %17132 = vst [vmem:[#allocation68_spill] sm:$0xff] %v14723_v2  ;;  %5222 = vst [vmem:[%s13533_s23 + $0x1f8] sm:$0xff] %v5190_v31  ;;  %v14727_v30 = vadd.f32 %v5190_v31, %v17133_v37 }
 0xdd2   : > { %17134 = vst [vmem:[#allocation69_spill] sm:$0xff] %v14727_v30  ;;  %v5270_v11 = vpack.c.bf16 %v14727_v30, %v14723_v2  ;;  %v5366_v37 = vpop.permute.xlu0 %5365  ;;  %v9635_v30 = vld [vmem:[%s16568_s6 + $0x2f8] sm:$0xff] }
 0xdd4   : > { %5784 = vmatpush1.bf16.msra.mxu0 %v5270_v11 }
 0xdd7   : > { %5786 = vmatmul.mubr.bf16.vlgmr.msra.gmra.mrb[244].mxu0 %v11463_v44 }
 0xdd8   : > { %5793 = vmatprep.mubr.bf16.mxu0 %v11466_v0 }
 0xddf   : > { %5794 = vmatmul.mubr.bf16.gmra.mrb[248].mxu0 %v11468_v50 }
 0xde0   : > { %5801 = vmatprep.mubr.bf16.mxu0 %v11469_v6 }
 0xde7   : > { %5802 = vmatmul.mubr.bf16.gmra.mrb[252].mxu0 %v11471_v20  ;;  %v5371_v20 = vpop.permute.xlu1 %5370 }
 0xde8   : > { %5809 = vmatprep.mubr.bf16.mxu0 %v11474_v34 }
 0xdef   : > { %5810 = vmatmul.mubr.bf16.gmra.mrb[0].mxu0 %v11472_v22 }
 0xeaa   : > { %v5787_v51 = vpop.f32.mrb[244].mxu0 }
 0xeab   : > { %v5789_v52 = vpop.f32.mrb[245].mxu0  ;;  %v5788_v11 = vadd.f32 %v5787_v51, %v5356_v62  ;;  %v5381_v51 = vpop.permute.xlu1 %5380 }
 0xeac   : > { %v5790_v31 = vpop.f32.mrb[246].mxu0  ;;  %v5376_v62 = vpop.permute.xlu0 %5375 }
 0xead   : > { %v5791_v44 = vadd.f32 %v5790_v31, %v5361_v47  ;;  %v5792_v0 = vpop.f32.mrb[247].mxu0 }
 0xeaf   : > { %v5946_v50 = vpack.c.bf16 %v5791_v44, %v5788_v11 }
 0xeb1   : > { %5966 = vxpose.xlu0.c.b16.start [1/4] (short) %v5946_v50, 128  ;;  %10966 = vmatprep.subr.bf16.mxu1 %v5946_v50 }
 0xeb2   : > { %v5795_v6 = vpop.f32.mrb[248].mxu0  ;;  %10967 = vmatpush3.bf16.msra.mxu1 %v5946_v50 }
 0xeb3   : > { %v5797_v34 = vpop.f32.mrb[249].mxu0  ;;  %v5796_v28 = vadd.f32 %v5795_v6, %v5366_v37  ;;  %v5386_v6 = vpop.permute.xlu0 %5385 }
 0xeb4   : > { %v5798_v16 = vpop.f32.mrb[250].mxu0  ;;  %v11475_v34 = vld [vmem:[%s16567_s5 + $0x2c0] ss:$8 sps:$4 sm:$0xff]  }
 0xeb5   : > { %v5799_v7 = vadd.f32 %v5798_v16, %v5371_v20  ;;  %v5800_v22 = vpop.f32.mrb[251].mxu0  ;;  %v5391_v16 = vpop.permute.xlu1 %5390 }
 0xeb7   : > { %v5947_v49 = vpack.c.bf16 %v5799_v7, %v5796_v28  ;;  %v11477_v7 = vld [vmem:[%s16567_s5 + $0x2c4] ss:$8 sps:$4 sm:$0xff]  }
 0xeb8   : > { %5817 = vmatprep.mubr.bf16.mxu0 %v11477_v7 }
 0xeb9   : > { %5967 = vxpose.xlu0.c.b16.cont [2/4] (short) %v5947_v49, 128  ;;  %10968 = vmatprep.subr.bf16.mxu1 %v5947_v49 }
 0xeba   : > { %v5803_v52 = vpop.f32.mrb[252].mxu0  ;;  %10969 = vmatpush3.bf16.msra.mxu1 %v5947_v49  ;;  %v11480_v49 = vld [vmem:[%s16567_s5 + $0x2d4] ss:$8 sps:$4 sm:$0xff]   ;;  %5818 = vmatmul.mubr.bf16.gmra.mrb[4].mxu0 %v11475_v34 }
 0xebb   : > { %v5805_v47 = vpop.f32.mrb[253].mxu0  ;;  %v5804_v11 = vadd.f32 %v5803_v52, %v5376_v62  ;;  %5825 = vmatprep.mubr.bf16.mxu0 %v11480_v49  ;;  %v11478_v62 = vld [vmem:[%s16567_s5 + $0x2d0] ss:$8 sps:$4 sm:$0xff]  }
 0xebc   : > { %v5806_v31 = vpop.f32.mrb[254].mxu0 }
 0xebd   : > { %v5807_v44 = vadd.f32 %v5806_v31, %v5381_v51  ;;  %v5808_v0 = vpop.f32.mrb[255].mxu0 }
 0xebf   : > { %v5948_v50 = vpack.c.bf16 %v5807_v44, %v5804_v11 }
 0xec1   : > { %5968 = vxpose.xlu0.c.b16.cont [3/4] (short) %v5948_v50, 128  ;;  %10970 = vmatprep.subr.bf16.mxu1 %v5948_v50 }
 0xec2   : > { %v5811_v28 = vpop.f32.mrb[0].mxu0  ;;  %10971 = vmatpush3.bf16.msra.mxu1 %v5948_v50  ;;  %5826 = vmatmul.mubr.bf16.gmra.mrb[8].mxu0 %v11478_v62  ;;  %v11493_v62 = vld [vmem:[%s16567_s5 + $0x320] ss:$8 sps:$4 sm:$0xff]  }
 0xec3   : > { %v5813_v37 = vpop.f32.mrb[1].mxu0  ;;  %v5812_v22 = vadd.f32 %v5811_v28, %v5386_v6  ;;  %v11481_v28 = vld [vmem:[%s16567_s5 + $0x2e0] ss:$8 sps:$4 sm:$0xff]   ;;  %v11484_v6 = vld [vmem:[%s16567_s5 + $0x2f0] ss:$8 sps:$4 sm:$0xff]  }
 0xec4   : > { %v5814_v20 = vpop.f32.mrb[2].mxu0  ;;  %v11486_v37 = vld [vmem:[%s16567_s5 + $0x2f4] ss:$8 sps:$4 sm:$0xff]  }
 0xec5   : > { %v5815_v52 = vadd.f32 %v5814_v20, %v5391_v16  ;;  %v5816_v51 = vpop.f32.mrb[3].mxu0  ;;  %v11483_v16 = vld [vmem:[%s16567_s5 + $0x2e4] ss:$8 sps:$4 sm:$0xff]  }
 0xec6   : > { %5833 = vmatprep.mubr.bf16.mxu0 %v11483_v16  ;;  %v11489_v20 = vld [vmem:[%s16567_s5 + $0x304] ss:$8 sps:$4 sm:$0xff]   ;;  %v11490_v51 = vld [vmem:[%s16567_s5 + $0x310] ss:$8 sps:$4 sm:$0xff]  }
 0xec7   : > { %v5949_v47 = vpack.c.bf16 %v5815_v52, %v5812_v22  ;;  %v11487_v22 = vld [vmem:[%s16567_s5 + $0x300] ss:$8 sps:$4 sm:$0xff]   ;;  %v11492_v52 = vld [vmem:[%s16567_s5 + $0x314] ss:$8 sps:$4 sm:$0xff]  }
 0xec9   : > { %5969 = vxpose.xlu0.c.b16.end [4/4] (short) %v5949_v47, 128  ;;  %10972 = vmatprep.subr.bf16.mxu1 %v5949_v47 }
 0xeca   : > { %10973 = vmatpush3.bf16.msra.mxu1 %v5949_v47  ;;  %5834 = vmatmul.mubr.bf16.gmra.mrb[12].mxu0 %v11481_v28  ;;  %v11495_v47 = vld [vmem:[%s16567_s5 + $0x324] ss:$8 sps:$4 sm:$0xff]  }
 0xecb   : > { %5841 = vmatprep.mubr.bf16.mxu0 %v11486_v37 }
 0xed2   : > { %5842 = vmatmul.mubr.bf16.gmra.mrb[16].mxu0 %v11484_v6 }
 0xed3   : > { %5849 = vmatprep.mubr.bf16.mxu0 %v11489_v20 }
 0xeda   : > { %5850 = vmatmul.mubr.bf16.gmra.mrb[20].mxu0 %v11487_v22 }
 0xedb   : > { %5857 = vmatprep.mubr.bf16.mxu0 %v11492_v52  ;;  %v11507_v52 = vld [vmem:[%s16567_s5 + $0x364] ss:$8 sps:$4 sm:$0xff]  }
 0xee2   : > { %5858 = vmatmul.mubr.bf16.gmra.mrb[24].mxu0 %v11490_v51 }
 0xee3   : > { %5865 = vmatprep.mubr.bf16.mxu0 %v11495_v47  ;;  %v11505_v47 = vld [vmem:[%s16567_s5 + $0x360] ss:$8 sps:$4 sm:$0xff]  }
 0xeea   : > { %5866 = vmatmul.mubr.bf16.gmra.mrb[28].mxu0 %v11493_v62 }
 0xf23   : > { %v5974_v31 = vpop.trf.xlu0 }
 0xf24   : > { %10974 = vmatprep.mubr.msk.bf16.mxu1 %vm2105_vm2, %v5974_v31  ;;  %v11498_v31 = vld [vmem:[%s16567_s5 + $0x334] ss:$8 sps:$4 sm:$0xff]  }
 0xf25   : > { %5873 = vmatprep.mubr.bf16.mxu0 %v11498_v31 }
 0xf27   : > { %v5975_v11 = vpop.trf.xlu0 }
 0xf28   : > { %10975 = vmatmul.mubr.msk.bf16.vlgmr.msra.gmra.mrb[236].mxu1 %vm2105_vm2, %v5975_v11  ;;  %v11496_v11 = vld [vmem:[%s16567_s5 + $0x330] ss:$8 sps:$4 sm:$0xff]  }
 0xf29   : > { %5874 = vmatmul.mubr.bf16.gmra.mrb[32].mxu0 %v11496_v11 }
 0xf2b   : > { %v5976_v44 = vpop.trf.xlu0 }
 0xf2c   : > { %10978 = vmatprep.mubr.msk.bf16.mxu1 %vm2105_vm2, %v5976_v44  ;;  %v11501_v44 = vld [vmem:[%s16567_s5 + $0x344] ss:$8 sps:$4 sm:$0xff]  }
 0xf2d   : > { %5881 = vmatprep.mubr.bf16.mxu0 %v11501_v44  ;;  %v11510_v44 = vld [vmem:[%s16567_s5 + $0x374] ss:$8 sps:$4 sm:$0xff]  }
 0xf2f   : > { %v5977_v0 = vpop.trf.xlu0 }
 0xf30   : > { %10979 = vmatmul.mubr.msk.bf16.gmra.mrb[240].mxu1 %vm2105_vm2, %v5977_v0  ;;  %v11499_v0 = vld [vmem:[%s16567_s5 + $0x340] ss:$8 sps:$4 sm:$0xff]  }
 0xf31   : > { %5882 = vmatmul.mubr.bf16.gmra.mrb[36].mxu0 %v11499_v0 }
 0xf33   : > { %v5978_v50 = vpop.trf.xlu0 }
 0xf34   : > { %10982 = vmatprep.mubr.msk.bf16.mxu1 %vm2105_vm2, %v5978_v50  ;;  %v11504_v50 = vld [vmem:[%s16567_s5 + $0x354] ss:$8 sps:$4 sm:$0xff]  }
 0xf35   : > { %5889 = vmatprep.mubr.bf16.mxu0 %v11504_v50  ;;  %v11508_v50 = vld [vmem:[%s16567_s5 + $0x370] ss:$8 sps:$4 sm:$0xff]  }
 0xf37   : > { %v5979_v34 = vpop.trf.xlu0 }
 0xf38   : > { %10983 = vmatmul.mubr.msk.bf16.gmra.mrb[244].mxu1 %vm2105_vm2, %v5979_v34  ;;  %v11502_v34 = vld [vmem:[%s16567_s5 + $0x350] ss:$8 sps:$4 sm:$0xff]  }
 0xf39   : > { %5890 = vmatmul.mubr.bf16.gmra.mrb[40].mxu0 %v11502_v34 }
 0xf3a   : > { %5897 = vmatprep.mubr.bf16.mxu0 %v11507_v52 }
 0xf3b   : > { %v5980_v7 = vpop.trf.xlu0 }
 0xf3c   : > { %10986 = vmatprep.mubr.msk.bf16.mxu1 %vm2105_vm2, %v5980_v7 }
 0xf3f   : > { %v5981_v49 = vpop.trf.xlu0 }
 0xf40   : > { %10987 = vmatmul.mubr.msk.bf16.gmra.mrb[248].mxu1 %vm2105_vm2, %v5981_v49 }
 0xf41   : > { %5898 = vmatmul.mubr.bf16.gmra.mrb[44].mxu0 %v11505_v47 }
 0xf42   : > { %5905 = vmatprep.mubr.bf16.mxu0 %v11510_v44  ;;  %v11516_v44 = vld [vmem:[%s16567_s5 + $0x394] ss:$8 sps:$4 sm:$0xff]  }
 0xf49   : > { %5906 = vmatmul.mubr.bf16.gmra.mrb[48].mxu0 %v11508_v50  ;;  %v11514_v50 = vld [vmem:[%s16567_s5 + $0x390] ss:$8 sps:$4 sm:$0xff]  }
 0xf4a   : > { %5913 = vmatprep.mubr.bf16.mxu0 %v11513_v3  ;;  %v11517_v3 = vld [vmem:[%s16567_s5 + $0x3a0] ss:$8 sps:$4 sm:$0xff]  }
 0xf51   : > { %5914 = vmatmul.mubr.bf16.gmra.mrb[52].mxu0 %v11511_v27  ;;  %v11519_v27 = vld [vmem:[%s16567_s5 + $0x3a4] ss:$8 sps:$4 sm:$0xff]  }
 0xf52   : > { %5921 = vmatprep.mubr.bf16.mxu0 %v11516_v44 }
 0xf59   : > { %5922 = vmatmul.mubr.bf16.gmra.mrb[56].mxu0 %v11514_v50 }
 0xf5a   : > { %5929 = vmatprep.mubr.bf16.mxu0 %v11519_v27  ;;  %v11520_v27 = vld [vmem:[%s16567_s5 + $0x3b0] ss:$8 sps:$4 sm:$0xff]  }
 0xf61   : > { %5930 = vmatmul.mubr.bf16.gmra.mrb[60].mxu0 %v11517_v3  ;;  %v9628_v3 = vld [vmem:[%s16568_s6 + $0x2c0] sm:$0xff] }
 0xf62   : > { %5937 = vmatprep.mubr.bf16.mxu0 %v11522_v36 }
 0xf69   : > { %5938 = vmatmul.mubr.bf16.gmra.mrb[64].mxu0 %v11520_v27 }
 0xf8d   : > { %v14901_v46 = vpop.f32.mrb[4].mxu0 }
 0xf8e   : > { %v5821_v44 = vpop.f32.mrb[5].mxu0 }
 0xf8f   : > { %v14903_v50 = vpop.f32.mrb[6].mxu0 }
 0xf90   : > { %v5824_v23 = vpop.f32.mrb[7].mxu0 }
 0xf95   : > { %v14917_v23 = vpop.f32.mrb[8].mxu0 }
 0xf96   : > { %v5829_v44 = vpop.f32.mrb[9].mxu0 }
 0xf97   : > { %v14922_v60 = vpop.f32.mrb[10].mxu0 }
 0xf98   : > { %v5832_v36 = vpop.f32.mrb[11].mxu0 }
 0xffb   : > { %v14820_v7 = vpop.f32.mrb[236].mxu1 }
 0xffc   : > { %6107 = vmax.xlane.f32.xlu1 %v14820_v7  ;;  %v14823_v49 = vpop.f32.mrb[237].mxu1 }
 0xffd   : > { %v14825_v28 = vpop.f32.mrb[238].mxu1 }
 0xffe   : > { %6109 = vmax.xlane.f32.xlu0 %v14825_v28  ;;  %v14828_v16 = vpop.f32.mrb[239].mxu1 }
0x1000   : > { %6103 = vmax.xlane.f32.xlu1 %v14823_v49 }
0x1003   : > { %v14831_v37 = vpop.f32.mrb[240].mxu1 }
0x1004   : > { %6105 = vmax.xlane.f32.xlu1 %v14828_v16  ;;  %v14834_v6 = vpop.f32.mrb[241].mxu1 }
0x1005   : > { %v14836_v20 = vpop.f32.mrb[242].mxu1 }
0x1006   : > { %v14838_v22 = vpop.f32.mrb[243].mxu1 }
0x1008   : > { %6115 = vmax.xlane.f32.xlu1 %v14831_v37 }
0x100b   : > { %v14844_v51 = vpop.f32.mrb[244].mxu1 }
0x100c   : > { %6111 = vmax.xlane.f32.xlu1 %v14834_v6  ;;  %v14850_v62 = vpop.f32.mrb[245].mxu1 }
0x100d   : > { %v14852_v31 = vpop.f32.mrb[246].mxu1 }
0x100e   : > { %6125 = vmax.xlane.f32.xlu0 %v14852_v31  ;;  %v14855_v11 = vpop.f32.mrb[247].mxu1 }
0x1010   : > { %6117 = vmax.xlane.f32.xlu1 %v14836_v20 }
0x1013   : > { %v14861_v0 = vpop.f32.mrb[248].mxu1 }
0x1014   : > { %6113 = vmax.xlane.f32.xlu1 %v14838_v22  ;;  %v14867_v34 = vpop.f32.mrb[249].mxu1 }
0x1015   : > { %v14869_v52 = vpop.f32.mrb[250].mxu1 }
0x1016   : > { %v14871_v47 = vpop.f32.mrb[251].mxu1 }
0x1017   : > { %6129 = vmax.xlane.f32.xlu0 %v14871_v47 }
0x1018   : > { %6123 = vmax.xlane.f32.xlu1 %v14844_v51 }
0x101b   : > { %6133 = vmax.xlane.f32.xlu0 %v14869_v52 }
0x101c   : > { %6119 = vmax.xlane.f32.xlu1 %v14850_v62 }
0x1020   : > { %6121 = vmax.xlane.f32.xlu1 %v14855_v11 }
0x1024   : > { %6131 = vmax.xlane.f32.xlu1 %v14861_v0 }
0x1028   : > { %6127 = vmax.xlane.f32.xlu1 %v14867_v34 }
0x1031   : > { %5400 = vperm.xlu0 %11197, %v9629_v29   ;;  %v9630_v29 = vld [vmem:[%s16568_s6 + $0x2d0] sm:$0xff] }
0x1039   : > { %5395 = vperm.xlu1 %11198, %v9628_v3  }
0x103d   : > { %5405 = vperm.xlu1 %11198, %v9630_v29  }
0x1041   : > { %5410 = vperm.xlu1 %11198, %v9631_v35  }
0x1089   : > { %v6108_v27 = vpop.xlane.xlu1 %6107 }
0x108a   : > { %v6137_v63 = vsub.f32 %v14820_v7, %v6108_v27 }
0x108b   : > { %v6110_v3 = vpop.xlane.xlu0 %6109 }
0x108c   : > { %v6155_v10 = vmul.f32 1.442695, %v6137_v63  ;;  %v6138_v59 = vsub.f32 %v14825_v28, %v6110_v3 }
0x108d   : > { %v6104_v33 = vpop.xlane.xlu1 %6103 }
0x108e   : > { %11811 = vpow2.f32 %v6155_v10  ;;  %v6157_v38 = vmul.f32 1.442695, %v6138_v59  ;;  %v6135_v29 = vsub.f32 %v14823_v49, %v6104_v33 }
0x1090   : > { %11813 = vpow2.f32 %v6157_v38  ;;  %v6151_v44 = vmul.f32 1.442695, %v6135_v29 }
0x1091   : > { %v6106_v56 = vpop.xlane.xlu1 %6105 }
0x1092   : > { %11815 = vpow2.f32 %v6151_v44  ;;  %v6136_v9 = vsub.f32 %v14828_v16, %v6106_v56 }
0x1094   : > { %v6153_v36 = vmul.f32 1.442695, %v6136_v9 }
0x1095   : > { %v6116_v35 = vpop.xlane.xlu1 %6115 }
0x1096   : > { %11817 = vpow2.f32 %v6153_v36  ;;  %v6141_v7 = vsub.f32 %v14831_v37, %v6116_v35 }
0x1098   : > { %v14929_v27 = vpop.eup %11811  ;;  %v6163_v63 = vmul.f32 1.442695, %v6141_v7 }
0x1099   : > { %v6112_v28 = vpop.xlane.xlu1 %6111  ;;  %6187 = vadd.xlane.f32.xlu1 %v14929_v27 }
0x109a   : > { %v14932_v59 = vpop.eup %11813  ;;  %11819 = vpow2.f32 %v6163_v63  ;;  %v6139_v38 = vsub.f32 %v14834_v6, %v6112_v28 }
0x109b   : > { %6189 = vadd.xlane.f32.xlu0 %v14932_v59  ;;  %v6126_v56 = vpop.xlane.xlu0 %6125 }
0x109c   : > { %v14936_v33 = vpop.eup %11815  ;;  %v6159_v10 = vmul.f32 1.442695, %v6139_v38  ;;  %v6146_v3 = vsub.f32 %v14852_v31, %v6126_v56 }
0x109d   : > { %v6118_v9 = vpop.xlane.xlu1 %6117  ;;  %6183 = vadd.xlane.f32.xlu1 %v14936_v33 }
0x109e   : > { %11821 = vpow2.f32 %v6159_v10  ;;  %v6142_v49 = vsub.f32 %v14836_v20, %v6118_v9  ;;  %v6173_v7 = vmul.f32 1.442695, %v6146_v3  ;;  %v14958_v3 = vpop.f32.mrb[12].mxu0 }
0x10a0   : > { %v14940_v16 = vpop.eup %11817  ;;  %v6165_v37 = vmul.f32 1.442695, %v6142_v49 }
0x10a1   : > { %v6114_v29 = vpop.xlane.xlu1 %6113  ;;  %6185 = vadd.xlane.f32.xlu0 %v14940_v16 }
0x10a2   : > { %11823 = vpow2.f32 %v6165_v37  ;;  %v6140_v6 = vsub.f32 %v14838_v22, %v6114_v29 }
0x10a4   : > { %v14945_v44 = vpop.eup %11819  ;;  %v6161_v36 = vmul.f32 1.442695, %v6140_v6  ;;  %v6130_v35 = vpop.xlane.xlu0 %6129 }
0x10a5   : > { %v6124_v63 = vpop.xlane.xlu1 %6123  ;;  %6195 = vadd.xlane.f32.xlu1 %v14945_v44 }
0x10a6   : > { %11825 = vpow2.f32 %v6161_v36  ;;  %v6145_v20 = vsub.f32 %v14844_v51, %v6124_v63  ;;  %v5837_v36 = vpop.f32.mrb[13].mxu0 }
0x10a7   : > { %11827 = vpow2.f32 %v6173_v7  ;;  %v6148_v7 = vsub.f32 %v14871_v47, %v6130_v35 }
0x10a8   : > { %v14949_v28 = vpop.eup %11821  ;;  %v6171_v31 = vmul.f32 1.442695, %v6145_v20  ;;  %v6134_v22 = vpop.xlane.xlu0 %6133 }
0x10a9   : > { %v6120_v38 = vpop.xlane.xlu1 %6119  ;;  %6191 = vadd.xlane.f32.xlu1 %v14949_v28  ;;  %v6150_v49 = vsub.f32 %v14869_v52, %v6134_v22  ;;  %v14964_v20 = vpop.f32.mrb[14].mxu0 }
0x10aa   : > { %11829 = vpow2.f32 %v6171_v31  ;;  %v6143_v10 = vsub.f32 %v14850_v62, %v6120_v38  ;;  %v5840_v31 = vpop.f32.mrb[15].mxu0 }
0x10ab   : > { %v6181_v62 = vmul.f32 1.442695, %v6150_v49  ;;  %v14974_v49 = vpop.f32.mrb[16].mxu0 }
0x10ac   : > { %v14953_v9 = vpop.eup %11823  ;;  %v6167_v56 = vmul.f32 1.442695, %v6143_v10  ;;  %v6177_v10 = vmul.f32 1.442695, %v6148_v7 }
0x10ad   : > { %v6122_v37 = vpop.xlane.xlu1 %6121  ;;  %6197 = vadd.xlane.f32.xlu0 %v14953_v9 }
0x10ae   : > { %11831 = vpow2.f32 %v6167_v56  ;;  %v6144_v51 = vsub.f32 %v14855_v11, %v6122_v37 }
0x10b0   : > { %v14960_v29 = vpop.eup %11825  ;;  %v6169_v6 = vmul.f32 1.442695, %v6144_v51  ;;  %v5401_v56 = vpop.permute.xlu0 %5400 }
0x10b1   : > { %v6132_v63 = vpop.xlane.xlu1 %6131  ;;  %6193 = vadd.xlane.f32.xlu0 %v14960_v29  ;;  %v14967_v38 = vpop.eup %11827  ;;  %v5823_v7 = vadd.f32 %v14903_v50, %v5401_v56 }
0x10b2   : > { %11833 = vpow2.f32 %v6169_v6  ;;  %v6149_v52 = vsub.f32 %v14861_v0, %v6132_v63  ;;  %v5845_v51 = vpop.f32.mrb[17].mxu0 }
0x10b3   : > { %11835 = vpow2.f32 %v6181_v62  ;;  %v14979_v36 = vpop.f32.mrb[18].mxu0 }
0x10b4   : > { %v14969_v11 = vpop.eup %11829  ;;  %v6179_v22 = vmul.f32 1.442695, %v6149_v52  ;;  %v5848_v63 = vpop.f32.mrb[19].mxu0 }
0x10b5   : > { %6203 = vadd.xlane.f32.xlu1 %v14969_v11  ;;  %v6128_v47 = vpop.xlane.xlu1 %6127  ;;  %6205 = vadd.xlane.f32.xlu0 %v14967_v38 }
0x10b6   : > { %11837 = vpow2.f32 %v6179_v22  ;;  %v6147_v35 = vsub.f32 %v14867_v34, %v6128_v47 }
0x10b7   : > { %11839 = vpow2.f32 %v6177_v10  ;;  %v14988_v10 = vpop.f32.mrb[20].mxu0 }
0x10b8   : > { %v14976_v0 = vpop.eup %11831  ;;  %v6175_v37 = vmul.f32 1.442695, %v6147_v35  ;;  %v5853_v35 = vpop.f32.mrb[21].mxu0 }
0x10b9   : > { %6199 = vadd.xlane.f32.xlu1 %v14976_v0  ;;  %v5396_v6 = vpop.permute.xlu1 %5395 }
0x10ba   : > { %11841 = vpow2.f32 %v6175_v37  ;;  %v5820_v62 = vadd.f32 %v14901_v46, %v5396_v6  ;;  %v14994_v46 = vpop.f32.mrb[22].mxu0 }
0x10bb   : > { %v5856_v51 = vpop.f32.mrb[23].mxu0 }
0x10bc   : > { %v14983_v34 = vpop.eup %11833  ;;  %v5950_v52 = vpack.c.bf16 %v5823_v7, %v5820_v62  ;;  %v15010_v63 = vpop.f32.mrb[24].mxu0  ;;  %v9633_v51 = vld [vmem:[%s16568_s6 + $0x2e8] sm:$0xff] }
0x10bd   : > { %v5406_v31 = vpop.permute.xlu1 %5405  ;;  %6201 = vadd.xlane.f32.xlu0 %v14983_v34  ;;  %v14986_v22 = vpop.eup %11835 }
0x10be   : > { %11006 = vmatprep.mubr.bf16.mxu1 %v5950_v52  ;;  %v14997_v56 = vadd.f32 %v14917_v23, %v5406_v31  ;;  %v5861_v52 = vpop.f32.mrb[25].mxu0 }
0x10bf   : > { %v15012_v23 = vpop.f32.mrb[26].mxu0  ;;  %v9632_v52 = vld [vmem:[%s16568_s6 + $0x2e0] sm:$0xff] }
0x10c0   : > { %v14990_v47 = vpop.eup %11837  ;;  %v5864_v31 = vpop.f32.mrb[27].mxu0 }
0x10c1   : > { %6211 = vadd.xlane.f32.xlu1 %v14990_v47  ;;  %v5411_v50 = vpop.permute.xlu1 %5410  ;;  %6213 = vadd.xlane.f32.xlu0 %v14986_v22  ;;  %v15002_v6 = vpop.eup %11839 }
0x10c2   : > { %v15000_v37 = vadd.f32 %v14922_v60, %v5411_v50  ;;  %v15014_v60 = vpop.f32.mrb[28].mxu0 }
0x10c3   : > { %v5869_v35 = vpop.f32.mrb[29].mxu0 }
0x10c4   : > { %v15004_v7 = vpop.eup %11841  ;;  %v15016_v50 = vpop.f32.mrb[30].mxu0 }
0x10c5   : > { %6207 = vadd.xlane.f32.xlu1 %v15004_v7  ;;  %6209 = vadd.xlane.f32.xlu0 %v15002_v6  ;;  %v5872_v62 = vpop.f32.mrb[31].mxu0 }
0x10c6   : > { %v15024_v2 = vpop.f32.mrb[32].mxu0  ;;  %v9637_v62 = vld [vmem:[%s16568_s6 + $0x308] sm:$0xff] }
0x10c7   : > { %v5877_v31 = vpop.f32.mrb[33].mxu0 }
0x10c8   : > { %v15029_v35 = vpop.f32.mrb[34].mxu0  ;;  %v9641_v31 = vld [vmem:[%s16568_s6 + $0x328] sm:$0xff] }
0x10c9   : > { %v5880_v13 = vpop.f32.mrb[35].mxu0 }
0x10ca   : > { %v15043_v13 = vpop.f32.mrb[36].mxu0 }
0x10d6   : > { %5420 = vperm.xlu1 %11198, %v9633_v51   ;;  %v9634_v51 = vld [vmem:[%s16568_s6 + $0x2f0] sm:$0xff] }
0x10da   : > { %5430 = vperm.xlu1 %11198, %v9635_v30   ;;  %v9636_v30 = vld [vmem:[%s16568_s6 + $0x300] sm:$0xff] }
0x10db   : > { %5415 = vperm.xlu0 %11197, %v9632_v52   ;;  %v5885_v52 = vpop.f32.mrb[37].mxu0 }
0x10dc   : > { %v15048_v40 = vpop.f32.mrb[38].mxu0 }
0x10de   : > { %5440 = vperm.xlu1 %11198, %v9637_v62   ;;  %v9638_v62 = vld [vmem:[%s16568_s6 + $0x310] sm:$0xff] }
0x10df   : > { %5425 = vperm.xlu0 %11197, %v9634_v51   ;;  %v5888_v51 = vpop.f32.mrb[39].mxu0 }
0x10e2   : > { %5450 = vperm.xlu1 %11198, %v9639_v45   ;;  %v9640_v45 = vld [vmem:[%s16568_s6 + $0x320] sm:$0xff] }
0x10e3   : > { %5435 = vperm.xlu0 %11197, %v9636_v30   ;;  %v15059_v30 = vpop.f32.mrb[40].mxu0 }
0x10e4   : > { %v5893_v52 = vpop.f32.mrb[41].mxu0 }
0x10e5   : > { %v15064_v51 = vpop.f32.mrb[42].mxu0 }
0x10e6   : > { %5460 = vperm.xlu1 %11198, %v9641_v31   ;;  %v9642_v31 = vld [vmem:[%s16568_s6 + $0x330] sm:$0xff] }
0x10e7   : > { %5445 = vperm.xlu0 %11197, %v9638_v62   ;;  %v5896_v62 = vpop.f32.mrb[43].mxu0 }
0x10ea   : > { %5470 = vperm.xlu1 %11198, %v9643_v42   ;;  %v9644_v42 = vld [vmem:[%s16568_s6 + $0x340] sm:$0xff] }
0x10eb   : > { %5455 = vperm.xlu0 %11197, %v9640_v45   ;;  %v15075_v45 = vpop.f32.mrb[44].mxu0 }
0x10ec   : > { %v5901_v52 = vpop.f32.mrb[45].mxu0 }
0x10ed   : > { %v15080_v62 = vpop.f32.mrb[46].mxu0 }
0x10ee   : > { %5480 = vperm.xlu1 %11198, %v9645_v43   ;;  %v9646_v43 = vld [vmem:[%s16568_s6 + $0x350] sm:$0xff] }
0x10ef   : > { %5465 = vperm.xlu0 %11197, %v9642_v31   ;;  %v5904_v31 = vpop.f32.mrb[47].mxu0 }
0x10f2   : > { %5490 = vperm.xlu1 %11198, %v9647_v26   ;;  %v9648_v26 = vld [vmem:[%s16568_s6 + $0x360] sm:$0xff] }
0x10f3   : > { %5475 = vperm.xlu0 %11197, %v9644_v42   ;;  %v15091_v42 = vpop.f32.mrb[48].mxu0 }
0x10f4   : > { %v5909_v52 = vpop.f32.mrb[49].mxu0 }
0x10f5   : > { %v15096_v31 = vpop.f32.mrb[50].mxu0  ;;  %v9652_v52 = vld [vmem:[%s16568_s6 + $0x380] sm:$0xff] }
0x10f6   : > { %5500 = vperm.xlu1 %11198, %v9649_v5   ;;  %v9650_v5 = vld [vmem:[%s16568_s6 + $0x370] sm:$0xff] }
0x10f7   : > { %5485 = vperm.xlu0 %11197, %v9646_v43   ;;  %v5912_v43 = vpop.f32.mrb[51].mxu0 }
0x10f8   : > { %v15101_v58 = vpop.f32.mrb[52].mxu0 }
0x10f9   : > { %v5917_v48 = vpop.f32.mrb[53].mxu0 }
0x10fa   : > { %5510 = vperm.xlu1 %11198, %v9651_v1   ;;  %v9655_v1 = vld [vmem:[%s16568_s6 + $0x398] sm:$0xff] }
0x10fb   : > { %5495 = vperm.xlu0 %11197, %v9648_v26   ;;  %v15106_v26 = vpop.f32.mrb[54].mxu0 }
0x10fc   : > { %v5920_v17 = vpop.f32.mrb[55].mxu0 }
0x10fd   : > { %v15111_v14 = vpop.f32.mrb[56].mxu0 }
0x10fe   : > { %5520 = vperm.xlu1 %11198, %v9653_v18   ;;  %v5925_v43 = vpop.f32.mrb[57].mxu0  ;;  %v9657_v18 = vld [vmem:[%s16568_s6 + $0x3a8] sm:$0xff] }
0x10ff   : > { %5505 = vperm.xlu0 %11197, %v9650_v5   ;;  %v15116_v48 = vpop.f32.mrb[58].mxu0  ;;  %v9654_v5 = vld [vmem:[%s16568_s6 + $0x390] sm:$0xff]  ;;  %v9656_v43 = vld [vmem:[%s16568_s6 + $0x3a0] sm:$0xff] }
0x1100   : > { %v5928_v15 = vpop.f32.mrb[59].mxu0 }
0x1101   : > { %v15121_v25 = vpop.f32.mrb[60].mxu0 }
0x1102   : > { %5530 = vperm.xlu1 %11198, %v9655_v1   ;;  %v5933_v17 = vpop.f32.mrb[61].mxu0  ;;  %v9659_v1 = vld [vmem:[%s16568_s6 + $0x3b8] sm:$0xff] }
0x1103   : > { %5515 = vperm.xlu0 %11197, %v9652_v52   ;;  %v15126_v52 = vpop.f32.mrb[62].mxu0  ;;  %v9658_v17 = vld [vmem:[%s16568_s6 + $0x3b0] sm:$0xff] }
0x1104   : > { %v5936_v4 = vpop.f32.mrb[63].mxu0 }
0x1105   : > { %v15131_v8 = vpop.f32.mrb[64].mxu0  ;;  %v9743_v4 = vld [vmem:[%s16570_s8 + $0x218] sm:$0xff] }
0x1106   : > { %5540 = vperm.xlu1 %11198, %v9657_v18   ;;  %v5941_v15 = vpop.f32.mrb[65].mxu0  ;;  %v9741_v18 = vld [vmem:[%s16570_s8 + $0x208] sm:$0xff] }
0x1107   : > { %5525 = vperm.xlu0 %11197, %v9654_v5   ;;  %v15136_v5 = vpop.f32.mrb[66].mxu0  ;;  %v9747_v15 = vld [vmem:[%s16570_s8 + $0x238] sm:$0xff] }
0x1108   : > { %v5944_v24 = vpop.f32.mrb[67].mxu0 }
0x1109   : > { %v9742_v24 = vld [vmem:[%s16570_s8 + $0x210] sm:$0xff] }
0x110a   : > { %5550 = vperm.xlu1 %11198, %v9659_v1   ;;  %v9740_v1 = vld [vmem:[%s16570_s8 + $0x200] sm:$0xff] }
0x110b   : > { %5535 = vperm.xlu0 %11197, %v9656_v43   ;;  %v9745_v43 = vld [vmem:[%s16570_s8 + $0x228] sm:$0xff] }
0x110e   : > { %6592 = vperm.xlu1 %11198, %v9741_v18   ;;  %v9744_v18 = vld [vmem:[%s16570_s8 + $0x220] sm:$0xff] }
0x110f   : > { %5545 = vperm.xlu0 %11197, %v9658_v17   ;;  %v9749_v17 = vld [vmem:[%s16570_s8 + $0x248] sm:$0xff] }
0x1112   : > { %6602 = vperm.xlu1 %11198, %v9743_v4   ;;  %v9746_v4 = vld [vmem:[%s16570_s8 + $0x230] sm:$0xff] }
0x1113   : > { %6587 = vperm.xlu0 %11197, %v9740_v1   ;;  %v9751_v1 = vld [vmem:[%s16570_s8 + $0x258] sm:$0xff] }
0x1116   : > { %6612 = vperm.xlu1 %11198, %v9745_v43   ;;  %v9748_v43 = vld [vmem:[%s16570_s8 + $0x240] sm:$0xff] }
0x1117   : > { %6597 = vperm.xlu0 %11197, %v9742_v24   ;;  %v9753_v24 = vld [vmem:[%s16570_s8 + $0x268] sm:$0xff] }
0x111a   : > { %6622 = vperm.xlu1 %11198, %v9747_v15   ;;  %v9750_v15 = vld [vmem:[%s16570_s8 + $0x250] sm:$0xff] }
0x111b   : > { %6607 = vperm.xlu0 %11197, %v9744_v18  }
0x111e   : > { %6632 = vperm.xlu1 %11198, %v9749_v17   ;;  %v9755_v17 = vld [vmem:[%s16570_s8 + $0x278] sm:$0xff] }
0x111f   : > { %6617 = vperm.xlu0 %11197, %v9746_v4   ;;  %v9752_v4 = vld [vmem:[%s16570_s8 + $0x260] sm:$0xff] }
0x1122   : > { %6642 = vperm.xlu1 %11198, %v9751_v1  }
0x1123   : > { %6627 = vperm.xlu0 %11197, %v9748_v43  }
0x1126   : > { %6652 = vperm.xlu1 %11198, %v9753_v24   ;;  %v6188_v18 = vpop.xlane.xlu1 %6187  ;;  %v9754_v24 = vld [vmem:[%s16570_s8 + $0x270] sm:$0xff] }
0x1127   : > { %6637 = vperm.xlu0 %11197, %v9750_v15  }
0x1128   : > { %v6190_v1 = vpop.xlane.xlu0 %6189 }
0x1129   : > { %11843 = vrcp.f32 %v6190_v1 }
0x112a   : > { %6662 = vperm.xlu1 %11198, %v9755_v17   ;;  %v6184_v43 = vpop.xlane.xlu1 %6183  ;;  %v9759_v17 = vld [vmem:[%s16570_s8 + $0x298] sm:$0xff] }
0x112b   : > { %6647 = vperm.xlu0 %11197, %v9752_v4   ;;  %11845 = vrcp.f32 %v6184_v43  ;;  %v9756_v4 = vld [vmem:[%s16570_s8 + $0x280] sm:$0xff]  ;;  %v9761_v43 = vld [vmem:[%s16570_s8 + $0x2a8] sm:$0xff] }
0x112c   : > { %11847 = vrcp.f32 %v6188_v18 }
0x112e   : > { %6672 = vperm.xlu1 %11198, %v9757_v57   ;;  %v6186_v15 = vpop.xlane.xlu0 %6185  ;;  %v9758_v57 = vld [vmem:[%s16570_s8 + $0x290] sm:$0xff] }
0x112f   : > { %11849 = vrcp.f32 %v6186_v15  ;;  %6657 = vperm.xlu0 %11197, %v9754_v24  }
0x1132   : > { %6682 = vperm.xlu1 %11198, %v9759_v17   ;;  %v6196_v1 = vpop.xlane.xlu1 %6195  ;;  %v9763_v17 = vld [vmem:[%s16570_s8 + $0x2b8] sm:$0xff] }
0x1133   : > { %6667 = vperm.xlu0 %11197, %v9756_v4   ;;  %v11844_v18 = vpop.eup %11843  ;;  %v9760_v4 = vld [vmem:[%s16570_s8 + $0x2a0] sm:$0xff] }
0x1134   : > { %v6234_v19 = vmul.f32 %v11844_v18, %v14932_v59 }
0x1135   : > { %v11846_v15 = vpop.eup %11845 }
0x1136   : > { %6692 = vperm.xlu1 %11198, %v9761_v43   ;;  %v6192_v24 = vpop.xlane.xlu1 %6191  ;;  %v11848_v54 = vpop.eup %11847  ;;  %v6231_v41 = vmul.f32 %v11846_v15, %v14936_v33 }
0x1137   : > { %11851 = vrcp.f32 %v6192_v24  ;;  %6677 = vperm.xlu0 %11197, %v9758_v57   ;;  %v9765_v57 = vld [vmem:[%s16570_s8 + $0x2c8] sm:$0xff] }
0x1139   : > { %v11850_v21 = vpop.eup %11849 }
0x113a   : > { %6702 = vperm.xlu1 %11198, %v9763_v17   ;;  %v6198_v12 = vpop.xlane.xlu0 %6197  ;;  %v6232_v43 = vmul.f32 %v11850_v21, %v14940_v16  ;;  %v6233_v17 = vmul.f32 %v11848_v54, %v14929_v27  ;;  %v9764_v54 = vld [vmem:[%s16570_s8 + $0x2c0] sm:$0xff] }
0x113b   : > { %6687 = vperm.xlu0 %11197, %v9760_v4   ;;  %11853 = vrcp.f32 %v6198_v12 }
0x113c   : > { %v6247_v24 = vadd.f32 %v6232_v43, %v6231_v41  ;;  %v6268_v55 = vpack.c.bf16 %v6232_v43, %v6231_v41  ;;  %11855 = vrcp.f32 %v6196_v1  ;;  %v6269_v59 = vpack.c.bf16 %v6234_v19, %v6233_v17  ;;  %v9767_v41 = vld [vmem:[%s16570_s8 + $0x2d8] sm:$0xff] }
0x113e   : > { %6712 = vperm.xlu1 %11198, %v9765_v57   ;;  %10990 = vmatprep.subr.bf16.mxu1 %v6268_v55  ;;  %v6194_v21 = vpop.xlane.xlu0 %6193  ;;  %v6248_v33 = vadd.f32 %v6247_v24, %v6233_v17  ;;  %v9768_v57 = vld [vmem:[%s16570_s8 + $0x2e0] sm:$0xff] }
0x113f   : > { %11857 = vrcp.f32 %v6194_v21  ;;  %6697 = vperm.xlu0 %11197, %v9762_v32   ;;  %10991 = vmatpush3.bf16.msra.mxu1 %v6268_v55  ;;  %v9769_v32 = vld [vmem:[%s16570_s8 + $0x2e8] sm:$0xff]  ;;  %v9766_v55 = vld [vmem:[%s16570_s8 + $0x2d0] sm:$0xff] }
0x1140   : > { %v6249_v16 = vadd.f32 %v6248_v33, %v6234_v19  ;;  %10992 = vmatprep.subr.bf16.mxu1 %v6269_v59 }
0x1141   : > { %v11852_v12 = vpop.eup %11851 }
0x1142   : > { %6722 = vperm.xlu1 %11198, %v9767_v41   ;;  %v6204_v27 = vpop.xlane.xlu1 %6203  ;;  %v6235_v1 = vmul.f32 %v11852_v12, %v14949_v28  ;;  %v6206_v18 = vpop.xlane.xlu0 %6205  ;;  %v9771_v28 = vld [vmem:[%s16570_s8 + $0x2f8] sm:$0xff] }
0x1143   : > { %6707 = vperm.xlu0 %11197, %v9764_v54   ;;  %10993 = vmatpush3.bf16.msra.mxu1 %v6269_v59  ;;  %v9845_v59 = vld [vmem:[%s16568_s6 + $0x3c8] sm:$0xff]  ;;  %v9770_v54 = vld [vmem:[%s16570_s8 + $0x2f0] sm:$0xff] }
0x1144   : > { %v6250_v19 = vadd.f32 %v6249_v16, %v6235_v1 }
0x1145   : > { %v11854_v4 = vpop.eup %11853 }
0x1146   : > { %6732 = vperm.xlu1 %11198, %v9769_v32   ;;  %v6200_v15 = vpop.xlane.xlu1 %6199  ;;  %v11856_v43 = vpop.eup %11855  ;;  %v6238_v33 = vmul.f32 %v11854_v4, %v14953_v9 }
0x1147   : > { %11859 = vrcp.f32 %v6200_v15  ;;  %6717 = vperm.xlu0 %11197, %v9766_v55   ;;  %v6237_v12 = vmul.f32 %v11856_v43, %v14945_v44  ;;  %v9847_v55 = vld [vmem:[%s16568_s6 + $0x3d8] sm:$0xff] }
0x1148   : > { %11861 = vrcp.f32 %v6204_v27 }
0x1149   : > { %v11858_v24 = vpop.eup %11857  ;;  %11863 = vrcp.f32 %v6206_v18  ;;  %v6271_v9 = vpack.c.bf16 %v6238_v33, %v6237_v12 }
0x114a   : > { %6742 = vperm.xlu1 %11198, %v9771_v28   ;;  %v6202_v17 = vpop.xlane.xlu0 %6201  ;;  %v6236_v21 = vmul.f32 %v11858_v24, %v14960_v29  ;;  %v9846_v24 = vld [vmem:[%s16568_s6 + $0x3d0] sm:$0xff] }
0x114b   : > { %11865 = vrcp.f32 %v6202_v17  ;;  %6727 = vperm.xlu0 %11197, %v9768_v57   ;;  %v9849_v57 = vld [vmem:[%s16568_s6 + $0x3e8] sm:$0xff] }
0x114c   : > { %v6251_v41 = vadd.f32 %v6250_v19, %v6236_v21  ;;  %v6270_v16 = vpack.c.bf16 %v6236_v21, %v6235_v1  ;;  %v9844_v1 = vld [vmem:[%s16568_s6 + $0x3c0] sm:$0xff] }
0x114e   : > { %7299 = vperm.xlu1 %11198, %v9845_v59   ;;  %v6212_v27 = vpop.xlane.xlu1 %6211  ;;  %10994 = vmatprep.subr.bf16.mxu1 %v6270_v16  ;;  %v6214_v29 = vpop.xlane.xlu0 %6213  ;;  %v6252_v32 = vadd.f32 %v6251_v41, %v6237_v12 }
0x114f   : > { %6737 = vperm.xlu0 %11197, %v9770_v54   ;;  %10995 = vmatpush3.bf16.msra.mxu1 %v6270_v16  ;;  %11867 = vrcp.f32 %v6212_v27  ;;  %v9851_v16 = vld [vmem:[%s16568_s6 + $0x3f8] sm:$0xff]  ;;  %v9848_v27 = vld [vmem:[%s16568_s6 + $0x3e0] sm:$0xff] }
0x1150   : > { %v6253_v19 = vadd.f32 %v6252_v32, %v6238_v33  ;;  %10996 = vmatprep.subr.bf16.mxu1 %v6271_v9  ;;  %11869 = vrcp.f32 %v6214_v29 }
0x1151   : > { %v11860_v18 = vpop.eup %11859 }
0x1152   : > { %v11862_v44 = vpop.eup %11861  ;;  %7309 = vperm.xlu1 %11198, %v9847_v55   ;;  %v6208_v15 = vpop.xlane.xlu1 %6207  ;;  %v6239_v28 = vmul.f32 %v11860_v18, %v14976_v0  ;;  %v9850_v18 = vld [vmem:[%s16568_s6 + $0x3f0] sm:$0xff] }
0x1153   : > { %v6210_v4 = vpop.xlane.xlu0 %6209  ;;  %v11864_v43 = vpop.eup %11863  ;;  %11871 = vrcp.f32 %v6208_v15  ;;  %7294 = vperm.xlu0 %11197, %v9844_v1   ;;  %10997 = vmatpush3.bf16.msra.mxu1 %v6271_v9  ;;  %v6241_v0 = vmul.f32 %v11862_v44, %v14969_v11 }
0x1154   : > { %11873 = vrcp.f32 %v6210_v4  ;;  %v6254_v17 = vadd.f32 %v6253_v19, %v6239_v28  ;;  %v6242_v41 = vmul.f32 %v11864_v43, %v14967_v38 }
0x1155   : > { %v11866_v21 = vpop.eup %11865 }
0x1156   : > { %7319 = vperm.xlu1 %11198, %v9849_v57   ;;  %v5421_v33 = vpop.permute.xlu1 %5420  ;;  %v6240_v59 = vmul.f32 %v11866_v21, %v14983_v34  ;;  %v6273_v9 = vpack.c.bf16 %v6242_v41, %v6241_v0 }
0x1157   : > { %7304 = vperm.xlu0 %11197, %v9846_v24   ;;  %v5839_v38 = vadd.f32 %v14964_v20, %v5421_v33 }
0x1158   : > { %v6255_v54 = vadd.f32 %v6254_v17, %v6240_v59  ;;  %v6272_v12 = vpack.c.bf16 %v6240_v59, %v6239_v28 }
0x1159   : > { %v11868_v11 = vpop.eup %11867 }
0x115a   : > { %7329 = vperm.xlu1 %11198, %v9851_v16   ;;  %v5431_v29 = vpop.permute.xlu1 %5430  ;;  %10998 = vmatprep.subr.bf16.mxu1 %v6272_v12  ;;  %v5416_v32 = vpop.permute.xlu0 %5415  ;;  %v6256_v34 = vadd.f32 %v6255_v54, %v6241_v0 }
0x115b   : > { %v5836_v55 = vadd.f32 %v14958_v3, %v5416_v32  ;;  %7314 = vperm.xlu0 %11197, %v9848_v27   ;;  %10999 = vmatpush3.bf16.msra.mxu1 %v6272_v12  ;;  %v11870_v19 = vpop.eup %11869  ;;  %v5847_v28 = vadd.f32 %v14979_v36, %v5431_v29  ;;  %v6245_v3 = vmul.f32 %v11868_v11, %v14990_v47 }
0x115c   : > { %v6257_v1 = vadd.f32 %v6256_v34, %v6242_v41  ;;  %11000 = vmatprep.subr.bf16.mxu1 %v6273_v9  ;;  %v6246_v21 = vmul.f32 %v11870_v19, %v14986_v22  ;;  %v17135_v11 = vpack.c.bf16 %v15000_v37, %v14997_v56 }
0x115d   : > { %v11872_v44 = vpop.eup %11871  ;;  %v5952_v15 = vpack.c.bf16 %v5839_v38, %v5836_v55 }
0x115e   : > { %v11874_v4 = vpop.eup %11873  ;;  %v5441_v43 = vpop.permute.xlu1 %5440  ;;  %v6243_v20 = vmul.f32 %v11872_v44, %v15004_v7  ;;  %v6275_v47 = vpack.c.bf16 %v6246_v21, %v6245_v3 }
0x115f   : > { %v5426_v57 = vpop.permute.xlu0 %5425  ;;  %7324 = vperm.xlu0 %11197, %v9850_v18   ;;  %11001 = vmatpush3.bf16.msra.mxu1 %v6273_v9  ;;  %v6244_v17 = vmul.f32 %v11874_v4, %v15002_v6  ;;  %v5855_v54 = vadd.f32 %v14994_v46, %v5441_v43 }
0x1160   : > { %v5844_v24 = vadd.f32 %v14974_v49, %v5426_v57  ;;  %v6258_v33 = vadd.f32 %v6257_v1, %v6243_v20 }
0x1161   : > { %v6274_v0 = vpack.c.bf16 %v6244_v17, %v6243_v20 }
0x1162   : > { %v5953_v59 = vpack.c.bf16 %v5847_v28, %v5844_v24  ;;  %v5451_v41 = vpop.permute.xlu1 %5450  ;;  %v6259_v16 = vadd.f32 %v6258_v33, %v6244_v17 }
0x1163   : > { %v5436_v36 = vpop.permute.xlu0 %5435  ;;  %11002 = vmatprep.subr.bf16.mxu1 %v6274_v0  ;;  %v5863_v29 = vadd.f32 %v15012_v23, %v5451_v41 }
0x1164   : > { %v5852_v7 = vadd.f32 %v14988_v10, %v5436_v36  ;;  %11003 = vmatpush3.bf16.msra.mxu1 %v6274_v0  ;;  %v6260_v49 = vadd.f32 %v6259_v16, %v6245_v3 }
0x1165   : > { %11004 = vmatprep.subr.bf16.mxu1 %v6275_v47 }
0x1166   : > { %v5954_v12 = vpack.c.bf16 %v5855_v54, %v5852_v7  ;;  %v15280_v27 = vadd.f32 %v6260_v49, %v6246_v21  ;;  %v5461_v6 = vpop.permute.xlu1 %5460 }
0x1167   : > { %v5446_v22 = vpop.permute.xlu0 %5445  ;;  %v5871_v10 = vadd.f32 %v15016_v50, %v5461_v6 }
0x1168   : > { %v5860_v32 = vadd.f32 %v15010_v63, %v5446_v22  ;;  %11005 = vmatpush3.bf16.msra.mxu1 %v6275_v47 }
0x1169   : > { %7692 = vmatprep.subr.bf16.mxu1 %v16924_v53 }
0x116a   : > { %v5955_v34 = vpack.c.bf16 %v5863_v29, %v5860_v32  ;;  %v5471_v46 = vpop.permute.xlu1 %5470 }
0x116b   : > { %v5456_v9 = vpop.permute.xlu0 %5455  ;;  %11007 = vmatmul.mubr.bf16.vlgmr.msra.gmra.mrb[252].mxu1 %v17135_v11  ;;  %v5879_v63 = vadd.f32 %v15029_v35, %v5471_v46 }
0x116c   : > { %v5868_v38 = vadd.f32 %v15014_v60, %v5456_v9  ;;  %11010 = vmatprep.mubr.bf16.mxu1 %v5952_v15 }
0x116e   : > { %v5956_v55 = vpack.c.bf16 %v5871_v10, %v5868_v38  ;;  %v5481_v19 = vpop.permute.xlu1 %5480 }
0x116f   : > { %v5466_v23 = vpop.permute.xlu0 %5465  ;;  %v5887_v28 = vadd.f32 %v15048_v40, %v5481_v19 }
0x1170   : > { %v5876_v1 = vadd.f32 %v15024_v2, %v5466_v23 }
0x1172   : > { %v5957_v18 = vpack.c.bf16 %v5879_v63, %v5876_v1  ;;  %v5491_v44 = vpop.permute.xlu1 %5490  ;;  %v17136_v63 = vld [vmem:[#allocation10_spill] sm:$0xff] }
0x1173   : > { %v5476_v4 = vpop.permute.xlu0 %5475  ;;  %11011 = vmatmul.mubr.bf16.gmra.mrb[0].mxu1 %v5953_v59  ;;  %v5895_v15 = vadd.f32 %v15064_v51, %v5491_v44 }
0x1174   : > { %v5884_v50 = vadd.f32 %v15043_v13, %v5476_v4  ;;  %11014 = vmatprep.mubr.bf16.mxu1 %v5954_v12 }
0x1176   : > { %v5958_v56 = vpack.c.bf16 %v5887_v28, %v5884_v50  ;;  %v5501_v37 = vpop.permute.xlu1 %5500 }
0x1177   : > { %v5486_v60 = vpop.permute.xlu0 %5485  ;;  %v5903_v2 = vadd.f32 %v15080_v62, %v5501_v37 }
0x1178   : > { %v5892_v43 = vadd.f32 %v15059_v30, %v5486_v60 }
0x117a   : > { %v5959_v57 = vpack.c.bf16 %v5895_v15, %v5892_v43  ;;  %v5511_v35 = vpop.permute.xlu1 %5510 }
0x117b   : > { %v5496_v20 = vpop.permute.xlu0 %5495  ;;  %11015 = vmatmul.mubr.bf16.gmra.mrb[4].mxu1 %v5955_v34  ;;  %v5911_v17 = vadd.f32 %v15096_v31, %v5511_v35 }
0x117c   : > { %v5900_v3 = vadd.f32 %v15075_v45, %v5496_v20  ;;  %11018 = vmatprep.mubr.bf16.mxu1 %v5956_v55  ;;  %v17138_v20 = vld [vmem:[#allocation20_spill] sm:$0xff] }
0x117e   : > { %v5960_v40 = vpack.c.bf16 %v5903_v2, %v5900_v3  ;;  %v5521_v24 = vpop.permute.xlu1 %5520  ;;  %v17139_v3 = vld [vmem:[#allocation21_spill] sm:$0xff] }
0x117f   : > { %v5506_v13 = vpop.permute.xlu0 %5505  ;;  %v5919_v30 = vadd.f32 %v15106_v26, %v5521_v24  ;;  %v17140_v24 = vld [vmem:[#allocation16_spill] sm:$0xff] }
0x1180   : > { %v5908_v21 = vadd.f32 %v15091_v42, %v5506_v13 }
0x1182   : > { %v5961_v33 = vpack.c.bf16 %v5911_v17, %v5908_v21  ;;  %v5531_v51 = vpop.permute.xlu1 %5530  ;;  %v17141_v17 = vld [vmem:[#allocation17_spill] sm:$0xff] }
0x1183   : > { %v5516_v59 = vpop.permute.xlu0 %5515  ;;  %11019 = vmatmul.mubr.bf16.gmra.mrb[8].mxu1 %v5957_v18  ;;  %v5927_v16 = vadd.f32 %v15116_v48, %v5531_v51  ;;  %v17137_v18 = vld [vmem:[#allocation11_spill] sm:$0xff] }
0x1184   : > { %v5916_v0 = vadd.f32 %v15101_v58, %v5516_v59  ;;  %11022 = vmatprep.mubr.bf16.mxu1 %v5958_v56 }
0x1186   : > { %v5962_v62 = vpack.c.bf16 %v5919_v30, %v5916_v0  ;;  %v5541_v41 = vpop.permute.xlu1 %5540 }
0x1187   : > { %v5526_v45 = vpop.permute.xlu0 %5525  ;;  %v5935_v42 = vadd.f32 %v15126_v52, %v5541_v41 }
0x1188   : > { %v5924_v36 = vadd.f32 %v15111_v14, %v5526_v45  ;;  %v11525_v14 = vld [vmem:[%s16569_s7 + $0x204] ss:$8 sps:$4 sm:$0xff]  }
0x1189   : > { %6937 = vmatprep.mubr.bf16.mxu0 %v11525_v14 }
0x118a   : > { %v5963_v54 = vpack.c.bf16 %v5927_v16, %v5924_v36  ;;  %v5551_v47 = vpop.permute.xlu1 %5550 }
0x118b   : > { %v5536_v31 = vpop.permute.xlu0 %5535  ;;  %11023 = vmatmul.mubr.bf16.gmra.mrb[12].mxu1 %v5959_v57  ;;  %v5943_v58 = vadd.f32 %v15136_v5, %v5551_v47  ;;  %v17144_v47 = vld [vmem:[#allocation24_spill] sm:$0xff] }
0x118c   : > { %v5932_v7 = vadd.f32 %v15121_v25, %v5536_v31  ;;  %11026 = vmatprep.mubr.bf16.mxu1 %v5960_v40  ;;  %v6262_v25 = vrot.slane %v15280_v27, 4 }
0x118e   : > { %v5964_v26 = vpack.c.bf16 %v5935_v42, %v5932_v7  ;;  %v6263_v48 = vadd.f32 %v6262_v25, %v15280_v27  ;;  %v17143_v42 = vld [vmem:[#allocation29_spill] sm:$0xff] }
0x118f   : > { %v5546_v49 = vpop.permute.xlu0 %5545 }
0x1190   : > { %v5940_v12 = vadd.f32 %v15131_v8, %v5546_v49  ;;  %v6264_v52 = vrot.slane %v6263_v48, 2  ;;  %v17145_v49 = vld [vmem:[#allocation25_spill] sm:$0xff] }
0x1192   : > { %v5965_v6 = vpack.c.bf16 %v5943_v58, %v5940_v12  ;;  %v6265_v22 = vadd.f32 %v6264_v52, %v6263_v48 }
0x1193   : > { %11027 = vmatmul.mubr.bf16.gmra.mrb[16].mxu1 %v5961_v33 }
0x1194   : > { %11030 = vmatprep.mubr.bf16.mxu1 %v5962_v62  ;;  %v6266_v5 = vrot.slane %v6265_v22, 1 }
0x1196   : > { %v6267_v29 = vadd.f32 %v6266_v5, %v6265_v22 }
0x1198   : > { %v6437_v8 = vadd.f32 1e-09, %v6267_v29 }
0x119a   : > { %11875 = vrcp.f32 %v6437_v8 }
0x119b   : > { %11031 = vmatmul.mubr.bf16.gmra.mrb[20].mxu1 %v5963_v54  ;;  %v17142_v54 = vld [vmem:[#allocation28_spill] sm:$0xff] }
0x119c   : > { %11034 = vmatprep.mubr.bf16.mxu1 %v5964_v26 }
0x11a3   : > { %11035 = vmatmul.mubr.bf16.gmra.mrb[24].mxu1 %v5965_v6 }
0x11a4   : > { %v15313_v32 = vpop.eup %11875 }
0x123e   : > { %v11008_v34 = vpop.f32.mrb[252].mxu1 }
0x123f   : > { %v6441_v46 = vmul.f32 %v15313_v32, %v11008_v34  ;;  %v6310_v9 = vpop.f32.mrb[253].mxu1  ;;  %v17146_v34 = vld [vmem:[#allocation36_spill] sm:$0xff] }
0x1240   : > { %v6439_v10 = vmul.f32 %v15313_v32, %v6310_v9  ;;  %v11009_v11 = vpop.f32.mrb[254].mxu1  ;;  %v17147_v9 = vld [vmem:[#allocation37_spill] sm:$0xff] }
0x1241   : > { %v6442_v38 = vmul.f32 %v15313_v32, %v11009_v11  ;;  %v6313_v55 = vpop.f32.mrb[255].mxu1  ;;  %v6506_v19 = vsub.f32 %v14541_v61, %v6441_v46  ;;  %v17148_v11 = vld [vmem:[#allocation32_spill] sm:$0xff] }
0x1242   : > { %v6440_v27 = vmul.f32 %v15313_v32, %v6313_v55  ;;  %v6504_v1 = vsub.f32 %v17136_v63, %v6439_v10  ;;  %v17149_v55 = vld [vmem:[#allocation33_spill] sm:$0xff] }
0x1243   : > { %v6507_v23 = vsub.f32 %v14545_v39, %v6442_v38 }
0x1244   : > { %v6505_v44 = vsub.f32 %v17137_v18, %v6440_v27 }
0x1245   : > { %v15323_v4 = vpack.c.bf16 %v6507_v23, %v6506_v19 }
0x1246   : > { %v15325_v28 = vpack.c.bf16 %v6505_v44, %v6504_v1  ;;  %v11012_v50 = vpop.f32.mrb[0].mxu1 }
0x1247   : > { %v6445_v56 = vmul.f32 %v15313_v32, %v11012_v50  ;;  %v6326_v37 = vpop.f32.mrb[1].mxu1 }
0x1248   : > { %v6443_v60 = vmul.f32 %v15313_v32, %v6326_v37  ;;  %v11013_v15 = vpop.f32.mrb[2].mxu1 }
0x1249   : > { %v6446_v43 = vmul.f32 %v15313_v32, %v11013_v15  ;;  %v6329_v57 = vpop.f32.mrb[3].mxu1  ;;  %v6510_v2 = vsub.f32 %v17138_v20, %v6445_v56 }
0x124a   : > { %v6444_v35 = vmul.f32 %v15313_v32, %v6329_v57  ;;  %v6508_v13 = vsub.f32 %v17140_v24, %v6443_v60  ;;  %v17150_v57 = vld [vmem:[#allocation44_spill] sm:$0xff] }
0x124b   : > { %v6511_v40 = vsub.f32 %v17139_v3, %v6446_v43 }
0x124c   : > { %v6509_v21 = vsub.f32 %v17141_v17, %v6444_v35 }
0x124d   : > { %v15335_v33 = vpack.c.bf16 %v6511_v40, %v6510_v2  ;;  %v17151_v2 = vld [vmem:[#allocation45_spill] sm:$0xff] }
0x124e   : > { %v15337_v51 = vpack.c.bf16 %v6509_v21, %v6508_v13  ;;  %v11016_v59 = vpop.f32.mrb[4].mxu1  ;;  %v17152_v13 = vld [vmem:[#allocation40_spill] sm:$0xff] }
0x124f   : > { %v6449_v30 = vmul.f32 %v15313_v32, %v11016_v59  ;;  %v6342_v0 = vpop.f32.mrb[5].mxu1  ;;  %v17153_v59 = vld [vmem:[#allocation41_spill] sm:$0xff] }
0x1250   : > { %v6447_v62 = vmul.f32 %v15313_v32, %v6342_v0  ;;  %v11017_v41 = vpop.f32.mrb[6].mxu1 }
0x1251   : > { %v6450_v45 = vmul.f32 %v15313_v32, %v11017_v41  ;;  %v6345_v16 = vpop.f32.mrb[7].mxu1  ;;  %v6514_v31 = vsub.f32 %v17142_v54, %v6449_v30 }
0x1252   : > { %v6448_v36 = vmul.f32 %v15313_v32, %v6345_v16  ;;  %v6512_v26 = vsub.f32 %v17144_v47, %v6447_v62 }
0x1253   : > { %v6515_v7 = vsub.f32 %v17143_v42, %v6450_v45 }
0x1254   : > { %v6513_v58 = vsub.f32 %v17145_v49, %v6448_v36 }
0x1255   : > { %v15347_v12 = vpack.c.bf16 %v6515_v7, %v6514_v31 }
0x1256   : > { %v15349_v6 = vpack.c.bf16 %v6513_v58, %v6512_v26  ;;  %v11020_v14 = vpop.f32.mrb[8].mxu1 }
0x1257   : > { %v6453_v25 = vmul.f32 %v15313_v32, %v11020_v14  ;;  %v6358_v48 = vpop.f32.mrb[9].mxu1  ;;  %v17154_v14 = vld [vmem:[#allocation52_spill] sm:$0xff] }
0x1258   : > { %v6451_v52 = vmul.f32 %v15313_v32, %v6358_v48  ;;  %v11021_v22 = vpop.f32.mrb[10].mxu1  ;;  %v17155_v48 = vld [vmem:[#allocation53_spill] sm:$0xff] }
0x1259   : > { %v6454_v5 = vmul.f32 %v15313_v32, %v11021_v22  ;;  %v6361_v29 = vpop.f32.mrb[11].mxu1  ;;  %v6518_v46 = vsub.f32 %v17146_v34, %v6453_v25  ;;  %v17156_v22 = vld [vmem:[#allocation48_spill] sm:$0xff] }
0x125a   : > { %v6452_v8 = vmul.f32 %v15313_v32, %v6361_v29  ;;  %v6516_v38 = vsub.f32 %v17148_v11, %v6451_v52  ;;  %v17157_v29 = vld [vmem:[#allocation49_spill] sm:$0xff] }
0x125b   : > { %v6519_v10 = vsub.f32 %v17147_v9, %v6454_v5 }
0x125c   : > { %v6517_v27 = vsub.f32 %v17149_v55, %v6452_v8 }
0x125d   : > { %v15359_v19 = vpack.c.bf16 %v6519_v10, %v6518_v46 }
0x125e   : > { %v15361_v23 = vpack.c.bf16 %v6517_v27, %v6516_v38  ;;  %v11024_v1 = vpop.f32.mrb[12].mxu1 }
0x125f   : > { %v6457_v44 = vmul.f32 %v15313_v32, %v11024_v1  ;;  %v6374_v50 = vpop.f32.mrb[13].mxu1 }
0x1260   : > { %v6455_v56 = vmul.f32 %v15313_v32, %v6374_v50  ;;  %v11025_v37 = vpop.f32.mrb[14].mxu1 }
0x1261   : > { %v6458_v60 = vmul.f32 %v15313_v32, %v11025_v37  ;;  %v6377_v15 = vpop.f32.mrb[15].mxu1  ;;  %v6522_v35 = vsub.f32 %v17150_v57, %v6457_v44 }
0x1262   : > { %v6456_v43 = vmul.f32 %v15313_v32, %v6377_v15  ;;  %v6520_v21 = vsub.f32 %v17152_v13, %v6455_v56  ;;  %v17159_v15 = vld [vmem:[#allocation61_spill] sm:$0xff] }
0x1263   : > { %v6523_v40 = vsub.f32 %v17151_v2, %v6458_v60  ;;  %v17158_v60 = vld [vmem:[#allocation60_spill] sm:$0xff] }
0x1264   : > { %v6521_v30 = vsub.f32 %v17153_v59, %v6456_v43 }
0x1265   : > { %v6545_v0 = vpack.c.bf16 %v6523_v40, %v6522_v35  ;;  %v17160_v35 = vld [vmem:[#allocation56_spill] sm:$0xff] }
0x1266   : > { %v11028_v62 = vpop.f32.mrb[16].mxu1  ;;  %v6544_v41 = vpack.c.bf16 %v6521_v30, %v6520_v21  ;;  %v17161_v21 = vld [vmem:[#allocation57_spill] sm:$0xff] }
0x1267   : > { %v6461_v45 = vmul.f32 %v15313_v32, %v11028_v62  ;;  %v6390_v16 = vpop.f32.mrb[17].mxu1 }
0x1268   : > { %v6459_v36 = vmul.f32 %v15313_v32, %v6390_v16  ;;  %v11029_v31 = vpop.f32.mrb[18].mxu1  ;;  %10512 = vmatprep.subr.bf16.mxu0 %v6544_v41 }
0x1269   : > { %v6462_v7 = vmul.f32 %v15313_v32, %v11029_v31  ;;  %v6393_v26 = vpop.f32.mrb[19].mxu1  ;;  %10513 = vmatpush3.bf16.msra.mxu0 %v15325_v28  ;;  %v6526_v25 = vsub.f32 %v17154_v14, %v6461_v45 }
0x126a   : > { %v6460_v58 = vmul.f32 %v15313_v32, %v6393_v26  ;;  %10514 = vmatprep.subr.bf16.mxu0 %v6545_v0  ;;  %v6524_v5 = vsub.f32 %v17156_v22, %v6459_v36 }
0x126b   : > { %v6527_v52 = vsub.f32 %v17155_v48, %v6462_v7 }
0x126c   : > { %v6525_v8 = vsub.f32 %v17157_v29, %v6460_v58  ;;  %v17162_v58 = vld [vmem:[#allocation68_spill] sm:$0xff] }
0x126d   : > { %10515 = vmatpush3.bf16.msra.mxu0 %v15323_v4  ;;  %v6547_v46 = vpack.c.bf16 %v6527_v52, %v6526_v25  ;;  %v17163_v25 = vld [vmem:[#allocation69_spill] sm:$0xff] }
0x126e   : > { %v11032_v10 = vpop.f32.mrb[20].mxu1  ;;  %v6546_v38 = vpack.c.bf16 %v6525_v8, %v6524_v5  ;;  %v17164_v5 = vld [vmem:[#allocation64_spill] sm:$0xff] }
0x126f   : > { %v6465_v27 = vmul.f32 %v15313_v32, %v11032_v10  ;;  %v6406_v1 = vpop.f32.mrb[21].mxu1 }
0x1270   : > { %v6463_v28 = vmul.f32 %v15313_v32, %v6406_v1  ;;  %v11033_v44 = vpop.f32.mrb[22].mxu1  ;;  %10516 = vmatprep.subr.bf16.mxu0 %v6546_v38  ;;  %v11534_v1 = vld [vmem:[%s16569_s7 + $0x234] ss:$8 sps:$4 sm:$0xff]  }
0x1271   : > { %v6466_v50 = vmul.f32 %v15313_v32, %v11033_v44  ;;  %v6409_v56 = vpop.f32.mrb[23].mxu1  ;;  %10517 = vmatpush3.bf16.msra.mxu0 %v15337_v51  ;;  %v6530_v4 = vsub.f32 %v17158_v60, %v6465_v27  ;;  %v11537_v44 = vld [vmem:[%s16569_s7 + $0x244] ss:$8 sps:$4 sm:$0xff]  }
0x1272   : > { %v6464_v37 = vmul.f32 %v15313_v32, %v6409_v56  ;;  %10518 = vmatprep.subr.bf16.mxu0 %v6547_v46  ;;  %v6528_v40 = vsub.f32 %v17160_v35, %v6463_v28  ;;  %v17165_v46 = vld [vmem:[#allocation65_spill] sm:$0xff]  ;;  %v11532_v28 = vld [vmem:[%s16569_s7 + $0x230] ss:$8 sps:$4 sm:$0xff]   ;;  %v11540_v56 = vld [vmem:[%s16569_s7 + $0x254] ss:$8 sps:$4 sm:$0xff]  }
0x1273   : > { %v6531_v43 = vsub.f32 %v17159_v15, %v6466_v50  ;;  %v11535_v50 = vld [vmem:[%s16569_s7 + $0x240] ss:$8 sps:$4 sm:$0xff]  }
0x1274   : > { %v6529_v30 = vsub.f32 %v17161_v21, %v6464_v37  ;;  %v11538_v37 = vld [vmem:[%s16569_s7 + $0x250] ss:$8 sps:$4 sm:$0xff]  }
0x1275   : > { %10519 = vmatpush3.bf16.msra.mxu0 %v15335_v33  ;;  %v6549_v0 = vpack.c.bf16 %v6531_v43, %v6530_v4  ;;  %v11543_v4 = vld [vmem:[%s16569_s7 + $0x264] ss:$8 sps:$4 sm:$0xff]   ;;  %v11541_v43 = vld [vmem:[%s16569_s7 + $0x260] ss:$8 sps:$4 sm:$0xff]  }
0x1276   : > { %v11036_v62 = vpop.f32.mrb[24].mxu1  ;;  %v6548_v41 = vpack.c.bf16 %v6529_v30, %v6528_v40  ;;  %v11546_v40 = vld [vmem:[%s16569_s7 + $0x274] ss:$8 sps:$4 sm:$0xff]   ;;  %v11544_v30 = vld [vmem:[%s16569_s7 + $0x270] ss:$8 sps:$4 sm:$0xff]  }
0x1277   : > { %v6469_v45 = vmul.f32 %v15313_v32, %v11036_v62  ;;  %v6422_v16 = vpop.f32.mrb[25].mxu1  ;;  %v11547_v62 = vld [vmem:[%s16569_s7 + $0x280] ss:$8 sps:$4 sm:$0xff]  }
0x1278   : > { %v6467_v51 = vmul.f32 %v15313_v32, %v6422_v16  ;;  %v11037_v36 = vpop.f32.mrb[26].mxu1  ;;  %10520 = vmatprep.subr.bf16.mxu0 %v6548_v41  ;;  %v11552_v41 = vld [vmem:[%s16569_s7 + $0x294] ss:$8 sps:$4 sm:$0xff]   ;;  %v11555_v16 = vld [vmem:[%s16569_s7 + $0x2a4] ss:$8 sps:$4 sm:$0xff]  }
0x1279   : > { %v6470_v31 = vmul.f32 %v15313_v32, %v11037_v36  ;;  %v6425_v7 = vpop.f32.mrb[27].mxu1  ;;  %10521 = vmatpush3.bf16.msra.mxu0 %v15349_v6  ;;  %v6534_v33 = vsub.f32 %v17162_v58, %v6469_v45  ;;  %v11528_v6 = vld [vmem:[%s16569_s7 + $0x214] ss:$8 sps:$4 sm:$0xff]   ;;  %v11550_v45 = vld [vmem:[%s16569_s7 + $0x290] ss:$8 sps:$4 sm:$0xff]  }
0x127a   : > { %v6468_v26 = vmul.f32 %v15313_v32, %v6425_v7  ;;  %10522 = vmatprep.subr.bf16.mxu0 %v6549_v0  ;;  %v6532_v8 = vsub.f32 %v17164_v5, %v6467_v51  ;;  %v11523_v32 = vld [vmem:[%s16569_s7 + $0x200] ss:$8 sps:$4 sm:$0xff]   ;;  %v11549_v0 = vld [vmem:[%s16569_s7 + $0x284] ss:$8 sps:$4 sm:$0xff]   ;;  %v11558_v36 = vld [vmem:[%s16569_s7 + $0x2b4] ss:$8 sps:$4 sm:$0xff]  }
0x127b   : > { %v6535_v52 = vsub.f32 %v17163_v25, %v6470_v31  ;;  %v11553_v51 = vld [vmem:[%s16569_s7 + $0x2a0] ss:$8 sps:$4 sm:$0xff]   ;;  %v11556_v31 = vld [vmem:[%s16569_s7 + $0x2b0] ss:$8 sps:$4 sm:$0xff]   ;;  %v11561_v7 = vld [vmem:[%s16569_s7 + $0x2c4] ss:$8 sps:$4 sm:$0xff]  }
0x127c   : > { %v6533_v10 = vsub.f32 %v17165_v46, %v6468_v26  ;;  %v11559_v26 = vld [vmem:[%s16569_s7 + $0x2c0] ss:$8 sps:$4 sm:$0xff]  }
0x127d   : > { %10523 = vmatpush3.bf16.msra.mxu0 %v15347_v12  ;;  %v6551_v38 = vpack.c.bf16 %v6535_v52, %v6534_v33  ;;  %v11526_v12 = vld [vmem:[%s16569_s7 + $0x210] ss:$8 sps:$4 sm:$0xff]   ;;  %v11564_v33 = vld [vmem:[%s16569_s7 + $0x2d4] ss:$8 sps:$4 sm:$0xff]  }
0x127e   : > { %v6550_v27 = vpack.c.bf16 %v6533_v10, %v6532_v8  ;;  %v11562_v52 = vld [vmem:[%s16569_s7 + $0x2d0] ss:$8 sps:$4 sm:$0xff]   ;;  %v11567_v8 = vld [vmem:[%s16569_s7 + $0x2e4] ss:$8 sps:$4 sm:$0xff]   ;;  %v11565_v10 = vld [vmem:[%s16569_s7 + $0x2e0] ss:$8 sps:$4 sm:$0xff]  }
0x1280   : > { %10524 = vmatprep.subr.bf16.mxu0 %v6550_v27  ;;  %v11568_v27 = vld [vmem:[%s16569_s7 + $0x2f0] ss:$8 sps:$4 sm:$0xff]  }
0x1281   : > { %10525 = vmatpush3.bf16.msra.mxu0 %v15361_v23  ;;  %v11531_v23 = vld [vmem:[%s16569_s7 + $0x224] ss:$8 sps:$4 sm:$0xff]  }
0x1282   : > { %10526 = vmatprep.subr.bf16.mxu0 %v6551_v38  ;;  %v11570_v38 = vld [vmem:[%s16569_s7 + $0x2f4] ss:$8 sps:$4 sm:$0xff]  }
0x1285   : > { %10527 = vmatpush3.bf16.msra.mxu0 %v15359_v19  ;;  %v11529_v19 = vld [vmem:[%s16569_s7 + $0x220] ss:$8 sps:$4 sm:$0xff]  }
0x1288   : > { %6938 = vmatmul.mubr.bf16.vlgmr.msra.gmra.mrb[68].mxu0 %v11523_v32 }
0x1289   : > { %6945 = vmatprep.mubr.bf16.mxu0 %v11528_v6 }
0x1290   : > { %6946 = vmatmul.mubr.bf16.gmra.mrb[72].mxu0 %v11526_v12 }
0x1291   : > { %6953 = vmatprep.mubr.bf16.mxu0 %v11531_v23 }
0x1298   : > { %6954 = vmatmul.mubr.bf16.gmra.mrb[76].mxu0 %v11529_v19  ;;  %v6588_v19 = vpop.permute.xlu0 %6587 }
0x1299   : > { %6961 = vmatprep.mubr.bf16.mxu0 %v11534_v1 }
0x12a0   : > { %6962 = vmatmul.mubr.bf16.gmra.mrb[80].mxu0 %v11532_v28 }
0x12a1   : > { %6969 = vmatprep.mubr.bf16.mxu0 %v11537_v44 }
0x12a8   : > { %6970 = vmatmul.mubr.bf16.gmra.mrb[84].mxu0 %v11535_v50  ;;  %v6593_v50 = vpop.permute.xlu1 %6592 }
0x12a9   : > { %6977 = vmatprep.mubr.bf16.mxu0 %v11540_v56 }
0x12b0   : > { %6978 = vmatmul.mubr.bf16.gmra.mrb[88].mxu0 %v11538_v37 }
0x12b1   : > { %6985 = vmatprep.mubr.bf16.mxu0 %v11543_v4 }
0x12b8   : > { %6986 = vmatmul.mubr.bf16.gmra.mrb[92].mxu0 %v11541_v43 }
0x12b9   : > { %6993 = vmatprep.mubr.bf16.mxu0 %v11546_v40 }
0x12c0   : > { %6994 = vmatmul.mubr.bf16.gmra.mrb[96].mxu0 %v11544_v30  ;;  %v11573_v30 = vld [vmem:[%s16567_s5 + $0x3c4] ss:$8 sps:$4 sm:$0xff]  }
0x12c1   : > { %7001 = vmatprep.mubr.bf16.mxu0 %v11549_v0  ;;  %7724 = vmatprep.mubr.bf16.mxu1 %v11573_v30 }
0x12c8   : > { %7002 = vmatmul.mubr.bf16.gmra.mrb[100].mxu0 %v11547_v62 }
0x12c9   : > { %7009 = vmatprep.mubr.bf16.mxu0 %v11552_v41 }
0x12d0   : > { %7010 = vmatmul.mubr.bf16.gmra.mrb[104].mxu0 %v11550_v45 }
0x12d1   : > { %7017 = vmatprep.mubr.bf16.mxu0 %v11555_v16  ;;  %v6598_v16 = vpop.permute.xlu0 %6597 }
0x12d8   : > { %7018 = vmatmul.mubr.bf16.gmra.mrb[108].mxu0 %v11553_v51 }
0x12d9   : > { %7025 = vmatprep.mubr.bf16.mxu0 %v11558_v36  ;;  %v17166_v36 = vld [vmem:[#allocation9_spill] sm:$0xff] }
0x12e0   : > { %7026 = vmatmul.mubr.bf16.gmra.mrb[112].mxu0 %v11556_v31 }
0x12e1   : > { %7033 = vmatprep.mubr.bf16.mxu0 %v11561_v7 }
0x12e8   : > { %7034 = vmatmul.mubr.bf16.gmra.mrb[116].mxu0 %v11559_v26 }
0x12e9   : > { %7041 = vmatprep.mubr.bf16.mxu0 %v11564_v33 }
0x12f0   : > { %7042 = vmatmul.mubr.bf16.gmra.mrb[120].mxu0 %v11562_v52  ;;  %v6603_v52 = vpop.permute.xlu1 %6602 }
0x12f1   : > { %7049 = vmatprep.mubr.bf16.mxu0 %v11567_v8 }
0x12f8   : > { %7050 = vmatmul.mubr.bf16.gmra.mrb[124].mxu0 %v11565_v10 }
0x12f9   : > { %7057 = vmatprep.mubr.bf16.mxu0 %v11570_v38 }
0x1300   : > { %7058 = vmatmul.mubr.bf16.gmra.mrb[128].mxu0 %v11568_v27 }
0x135b   : > { %v10528_v32 = vpop.f32.mrb[68].mxu0 }
0x135c   : > { %v10529_v6 = vpop.f32.mrb[69].mxu0 }
0x135d   : > { %v10530_v12 = vadd.f32 %v10529_v6, %v10528_v32  ;;  %v10531_v23 = vpop.f32.mrb[70].mxu0 }
0x135e   : > { %v10532_v1 = vpop.f32.mrb[71].mxu0 }
0x135f   : > { %v6940_v28 = vadd.f32 %v10530_v12, %v6588_v19  ;;  %v10533_v44 = vadd.f32 %v10532_v1, %v10531_v23  ;;  %v6608_v1 = vpop.permute.xlu0 %6607 }
0x1361   : > { %v7066_v56 = vmax.f32 %v6940_v28, 0.0  ;;  %v6943_v37 = vadd.f32 %v10533_v44, %v6593_v50  ;;  %v17169_v44 = vld [vmem:[#allocation13_spill] sm:$0xff] }
0x1363   : > { %v7098_v4 = vadd.f32 %v7066_v56, %v17136_v63  ;;  %v7067_v43 = vmax.f32 %v6943_v37, 0.0  ;;  %v10534_v40 = vpop.f32.mrb[72].mxu0  ;;  %v17167_v63 = vld [vmem:[#allocation8_spill] sm:$0xff] }
0x1364   : > { %v10535_v0 = vpop.f32.mrb[73].mxu0  ;;  %v17170_v56 = vld [vmem:[#allocation12_spill] sm:$0xff] }
0x1365   : > { %7130 = vst [vmem:[%s13533_s23 + $0x200] sm:$0xff] %v7098_v4  ;;  %v7099_v62 = vadd.f32 %v7067_v43, %v17137_v18  ;;  %v10536_v41 = vadd.f32 %v10535_v0, %v10534_v40  ;;  %v10537_v45 = vpop.f32.mrb[74].mxu0  ;;  %v15503_v31 = vadd.f32 %v7098_v4, %v17166_v36  ;;  %v6613_v43 = vpop.permute.xlu1 %6612 }
0x1366   : > { %v10538_v51 = vpop.f32.mrb[75].mxu0 }
0x1367   : > { %7131 = vst [vmem:[%s13533_s23 + $0x208] sm:$0xff] %v7099_v62  ;;  %v15507_v7 = vadd.f32 %v7099_v62, %v17167_v63  ;;  %v6948_v26 = vadd.f32 %v10536_v41, %v6598_v16  ;;  %v10539_v33 = vadd.f32 %v10538_v51, %v10537_v45  ;;  %v6618_v63 = vpop.permute.xlu0 %6617 }
0x1369   : > { %17168 = vst [vmem:[#allocation10_spill] sm:$0xff] %v15507_v7  ;;  %v7068_v8 = vmax.f32 %v6948_v26, 0.0  ;;  %v6951_v10 = vadd.f32 %v10539_v33, %v6603_v52  ;;  %v7194_v18 = vpack.c.bf16 %v15507_v7, %v15503_v31  ;;  %v17171_v33 = vld [vmem:[#allocation15_spill] sm:$0xff]  ;;  %v9986_v7 = vld [vmem:[%s16570_s8 + $0x3b0] sm:$0xff] }
0x136b   : > { %v7100_v38 = vadd.f32 %v7068_v8, %v14541_v61  ;;  %v7069_v27 = vmax.f32 %v6951_v10, 0.0  ;;  %v10540_v32 = vpop.f32.mrb[76].mxu0  ;;  %7693 = vmatpush1.bf16.msra.mxu1 %v7194_v18  ;;  %v17173_v8 = vld [vmem:[#allocation14_spill] sm:$0xff] }
0x136c   : > { %v10541_v6 = vpop.f32.mrb[77].mxu0  ;;  %7694 = vmatprep.subr.bf16.mxu1 %v16924_v53 }
0x136d   : > { %7132 = vst [vmem:[%s13533_s23 + $0x210] sm:$0xff] %v7100_v38  ;;  %v7101_v12 = vadd.f32 %v7069_v27, %v14545_v39  ;;  %v10542_v23 = vadd.f32 %v10541_v6, %v10540_v32  ;;  %v10543_v19 = vpop.f32.mrb[78].mxu0  ;;  %v15516_v50 = vadd.f32 %v7100_v38, %v17169_v44  ;;  %v6623_v38 = vpop.permute.xlu1 %6622 }
0x136e   : > { %v10544_v28 = vpop.f32.mrb[79].mxu0 }
0x136f   : > { %7133 = vst [vmem:[%s13533_s23 + $0x218] sm:$0xff] %v7101_v12  ;;  %v15520_v61 = vadd.f32 %v7101_v12, %v17170_v56  ;;  %v6956_v37 = vadd.f32 %v10542_v23, %v6608_v1  ;;  %v10545_v4 = vadd.f32 %v10544_v28, %v10543_v19  ;;  %v6628_v56 = vpop.permute.xlu0 %6627 }
0x1371   : > { %v7070_v40 = vmax.f32 %v6956_v37, 0.0  ;;  %v6959_v30 = vadd.f32 %v10545_v4, %v6613_v43  ;;  %v7195_v39 = vpack.c.bf16 %v15520_v61, %v15516_v50  ;;  %v17175_v4 = vld [vmem:[#allocation19_spill] sm:$0xff] }
0x1373   : > { %v7102_v0 = vadd.f32 %v7070_v40, %v17140_v24  ;;  %v7071_v62 = vmax.f32 %v6959_v30, 0.0  ;;  %v10546_v41 = vpop.f32.mrb[80].mxu0  ;;  %7695 = vmatpush1.bf16.msra.mxu1 %v7195_v39  ;;  %v17177_v40 = vld [vmem:[#allocation18_spill] sm:$0xff] }
0x1374   : > { %v10547_v45 = vpop.f32.mrb[81].mxu0  ;;  %7696 = vmatprep.subr.bf16.mxu1 %v16924_v53 }
0x1375   : > { %7134 = vst [vmem:[%s13533_s23 + $0x220] sm:$0xff] %v7102_v0  ;;  %v7103_v16 = vadd.f32 %v7071_v62, %v17141_v17  ;;  %v10548_v51 = vadd.f32 %v10547_v45, %v10546_v41  ;;  %v10549_v36 = vpop.f32.mrb[82].mxu0  ;;  %v15529_v52 = vadd.f32 %v7102_v0, %v17171_v33  ;;  %v6633_v0 = vpop.permute.xlu1 %6632 }
0x1376   : > { %v10550_v26 = vpop.f32.mrb[83].mxu0 }
0x1377   : > { %17172 = vst [vmem:[#allocation11_spill] sm:$0xff] %v15529_v52  ;;  %7135 = vst [vmem:[%s13533_s23 + $0x228] sm:$0xff] %v7103_v16  ;;  %v15533_v24 = vadd.f32 %v7103_v16, %v17173_v8  ;;  %v6964_v10 = vadd.f32 %v10548_v51, %v6618_v63  ;;  %v10551_v18 = vadd.f32 %v10550_v26, %v10549_v36  ;;  %v6638_v8 = vpop.permute.xlu0 %6637 }
0x1379   : > { %17174 = vst [vmem:[#allocation20_spill] sm:$0xff] %v15533_v24  ;;  %v7072_v27 = vmax.f32 %v6964_v10, 0.0  ;;  %v6967_v32 = vadd.f32 %v10551_v18, %v6623_v38  ;;  %v7196_v17 = vpack.c.bf16 %v15533_v24, %v15529_v52  ;;  %v17179_v18 = vld [vmem:[#allocation23_spill] sm:$0xff] }
0x137b   : > { %v7104_v6 = vadd.f32 %v7072_v27, %v17138_v20  ;;  %v7073_v12 = vmax.f32 %v6967_v32, 0.0  ;;  %v10552_v23 = vpop.f32.mrb[84].mxu0  ;;  %7697 = vmatpush1.bf16.msra.mxu1 %v7196_v17  ;;  %v17181_v27 = vld [vmem:[#allocation22_spill] sm:$0xff] }
0x137c   : > { %v10553_v19 = vpop.f32.mrb[85].mxu0  ;;  %7698 = vmatprep.subr.bf16.mxu1 %v16924_v53 }
0x137d   : > { %7136 = vst [vmem:[%s13533_s23 + $0x230] sm:$0xff] %v7104_v6  ;;  %v7105_v1 = vadd.f32 %v7073_v12, %v17139_v3  ;;  %v10554_v28 = vadd.f32 %v10553_v19, %v10552_v23  ;;  %v10555_v44 = vpop.f32.mrb[86].mxu0  ;;  %v15542_v43 = vadd.f32 %v7104_v6, %v17175_v4  ;;  %v6643_v6 = vpop.permute.xlu1 %6642 }
0x137e   : > { %v10556_v37 = vpop.f32.mrb[87].mxu0 }
0x137f   : > { %17176 = vst [vmem:[#allocation21_spill] sm:$0xff] %v15542_v43  ;;  %7137 = vst [vmem:[%s13533_s23 + $0x238] sm:$0xff] %v7105_v1  ;;  %v15546_v20 = vadd.f32 %v7105_v1, %v17177_v40  ;;  %v6972_v30 = vadd.f32 %v10554_v28, %v6628_v56  ;;  %v10557_v39 = vadd.f32 %v10556_v37, %v10555_v44  ;;  %v6648_v40 = vpop.permute.xlu0 %6647 }
0x1381   : > { %17178 = vst [vmem:[#allocation16_spill] sm:$0xff] %v15546_v20  ;;  %v7074_v62 = vmax.f32 %v6972_v30, 0.0  ;;  %v6975_v41 = vadd.f32 %v10557_v39, %v6633_v0  ;;  %v7197_v3 = vpack.c.bf16 %v15546_v20, %v15542_v43  ;;  %v17183_v39 = vld [vmem:[#allocation27_spill] sm:$0xff] }
0x1383   : > { %v7106_v45 = vadd.f32 %v7074_v62, %v17144_v47  ;;  %v7075_v16 = vmax.f32 %v6975_v41, 0.0  ;;  %v10558_v51 = vpop.f32.mrb[88].mxu0  ;;  %7699 = vmatpush1.bf16.msra.mxu1 %v7197_v3  ;;  %v17185_v62 = vld [vmem:[#allocation26_spill] sm:$0xff] }
0x1384   : > { %v10559_v36 = vpop.f32.mrb[89].mxu0  ;;  %7700 = vmatprep.subr.bf16.mxu1 %v16924_v53 }
0x1385   : > { %7138 = vst [vmem:[%s13533_s23 + $0x240] sm:$0xff] %v7106_v45  ;;  %v7107_v63 = vadd.f32 %v7075_v16, %v17145_v49  ;;  %v10560_v26 = vadd.f32 %v10559_v36, %v10558_v51  ;;  %v10561_v33 = vpop.f32.mrb[90].mxu0  ;;  %v15555_v38 = vadd.f32 %v7106_v45, %v17179_v18  ;;  %v6653_v45 = vpop.permute.xlu1 %6652 }
0x1386   : > { %v10562_v10 = vpop.f32.mrb[91].mxu0 }
0x1387   : > { %17180 = vst [vmem:[#allocation17_spill] sm:$0xff] %v15555_v38  ;;  %7139 = vst [vmem:[%s13533_s23 + $0x248] sm:$0xff] %v7107_v63  ;;  %v15559_v47 = vadd.f32 %v7107_v63, %v17181_v27  ;;  %v6980_v32 = vadd.f32 %v10560_v26, %v6638_v8  ;;  %v10563_v17 = vadd.f32 %v10562_v10, %v10561_v33  ;;  %v6658_v27 = vpop.permute.xlu0 %6657 }
0x1389   : > { %17182 = vst [vmem:[#allocation28_spill] sm:$0xff] %v15559_v47  ;;  %v7076_v12 = vmax.f32 %v6980_v32, 0.0  ;;  %v6983_v23 = vadd.f32 %v10563_v17, %v6643_v6  ;;  %v7198_v49 = vpack.c.bf16 %v15559_v47, %v15555_v38  ;;  %v17187_v17 = vld [vmem:[#allocation31_spill] sm:$0xff]  ;;  %v9981_v38 = vld [vmem:[%s16570_s8 + $0x388] sm:$0xff] }
0x138b   : > { %v7108_v19 = vadd.f32 %v7076_v12, %v17142_v54  ;;  %v7077_v1 = vmax.f32 %v6983_v23, 0.0  ;;  %v10564_v28 = vpop.f32.mrb[92].mxu0  ;;  %7701 = vmatpush1.bf16.msra.mxu1 %v7198_v49  ;;  %v17189_v12 = vld [vmem:[#allocation30_spill] sm:$0xff] }
0x138c   : > { %v10565_v44 = vpop.f32.mrb[93].mxu0  ;;  %7702 = vmatprep.subr.bf16.mxu1 %v16924_v53 }
0x138d   : > { %7140 = vst [vmem:[%s13533_s23 + $0x250] sm:$0xff] %v7108_v19  ;;  %v7109_v56 = vadd.f32 %v7077_v1, %v17143_v42  ;;  %v10566_v37 = vadd.f32 %v10565_v44, %v10564_v28  ;;  %v10567_v4 = vpop.f32.mrb[94].mxu0  ;;  %v15568_v0 = vadd.f32 %v7108_v19, %v17183_v39  ;;  %v6663_v19 = vpop.permute.xlu1 %6662 }
0x138e   : > { %v10568_v30 = vpop.f32.mrb[95].mxu0 }
0x138f   : > { %17184 = vst [vmem:[#allocation29_spill] sm:$0xff] %v15568_v0  ;;  %7141 = vst [vmem:[%s13533_s23 + $0x258] sm:$0xff] %v7109_v56  ;;  %v15572_v54 = vadd.f32 %v7109_v56, %v17185_v62  ;;  %v6988_v41 = vadd.f32 %v10566_v37, %v6648_v40  ;;  %v10569_v3 = vadd.f32 %v10568_v30, %v10567_v4  ;;  %v6668_v62 = vpop.permute.xlu0 %6667 }
0x1391   : > { %17186 = vst [vmem:[#allocation24_spill] sm:$0xff] %v15572_v54  ;;  %v7078_v16 = vmax.f32 %v6988_v41, 0.0  ;;  %v6991_v51 = vadd.f32 %v10569_v3, %v6653_v45  ;;  %v7199_v42 = vpack.c.bf16 %v15572_v54, %v15568_v0  ;;  %v17191_v3 = vld [vmem:[#allocation35_spill] sm:$0xff] }
0x1393   : > { %v7110_v36 = vadd.f32 %v7078_v16, %v17148_v11  ;;  %v7079_v63 = vmax.f32 %v6991_v51, 0.0  ;;  %v10570_v26 = vpop.f32.mrb[96].mxu0  ;;  %7703 = vmatpush1.bf16.msra.mxu1 %v7199_v42  ;;  %v17193_v16 = vld [vmem:[#allocation34_spill] sm:$0xff] }
0x1394   : > { %v10571_v33 = vpop.f32.mrb[97].mxu0  ;;  %7704 = vmatprep.subr.bf16.mxu1 %v16924_v53 }
0x1395   : > { %7142 = vst [vmem:[%s13533_s23 + $0x260] sm:$0xff] %v7110_v36  ;;  %v7111_v8 = vadd.f32 %v7079_v63, %v17149_v55  ;;  %v10572_v10 = vadd.f32 %v10571_v33, %v10570_v26  ;;  %v10573_v18 = vpop.f32.mrb[98].mxu0  ;;  %v15581_v6 = vadd.f32 %v7110_v36, %v17187_v17  ;;  %v6673_v36 = vpop.permute.xlu1 %6672 }
0x1396   : > { %v10574_v32 = vpop.f32.mrb[99].mxu0 }
0x1397   : > { %17188 = vst [vmem:[#allocation25_spill] sm:$0xff] %v15581_v6  ;;  %7143 = vst [vmem:[%s13533_s23 + $0x268] sm:$0xff] %v7111_v8  ;;  %v15585_v11 = vadd.f32 %v7111_v8, %v17189_v12  ;;  %v6996_v23 = vadd.f32 %v10572_v10, %v6658_v27  ;;  %v10575_v49 = vadd.f32 %v10574_v32, %v10573_v18  ;;  %v6678_v12 = vpop.permute.xlu0 %6677 }
0x1399   : > { %17190 = vst [vmem:[#allocation36_spill] sm:$0xff] %v15585_v11  ;;  %v7080_v1 = vmax.f32 %v6996_v23, 0.0  ;;  %v6999_v28 = vadd.f32 %v10575_v49, %v6663_v19  ;;  %v7200_v55 = vpack.c.bf16 %v15585_v11, %v15581_v6  ;;  %v17195_v49 = vld [vmem:[#allocation39_spill] sm:$0xff] }
0x139b   : > { %v7112_v44 = vadd.f32 %v7080_v1, %v17146_v34  ;;  %v7081_v56 = vmax.f32 %v6999_v28, 0.0  ;;  %v10576_v37 = vpop.f32.mrb[100].mxu0  ;;  %7705 = vmatpush1.bf16.msra.mxu1 %v7200_v55  ;;  %v17197_v1 = vld [vmem:[#allocation38_spill] sm:$0xff] }
0x139c   : > { %v10577_v4 = vpop.f32.mrb[101].mxu0  ;;  %7706 = vmatprep.subr.bf16.mxu1 %v16924_v53 }
0x139d   : > { %7144 = vst [vmem:[%s13533_s23 + $0x270] sm:$0xff] %v7112_v44  ;;  %v7113_v40 = vadd.f32 %v7081_v56, %v17147_v9  ;;  %v10578_v30 = vadd.f32 %v10577_v4, %v10576_v37  ;;  %v10579_v39 = vpop.f32.mrb[102].mxu0  ;;  %v15594_v45 = vadd.f32 %v7112_v44, %v17191_v3  ;;  %v6683_v44 = vpop.permute.xlu1 %6682 }
0x139e   : > { %v10580_v41 = vpop.f32.mrb[103].mxu0 }
0x139f   : > { %17192 = vst [vmem:[#allocation37_spill] sm:$0xff] %v15594_v45  ;;  %7145 = vst [vmem:[%s13533_s23 + $0x278] sm:$0xff] %v7113_v40  ;;  %v15598_v34 = vadd.f32 %v7113_v40, %v17193_v16  ;;  %v7004_v51 = vadd.f32 %v10578_v30, %v6668_v62  ;;  %v10581_v42 = vadd.f32 %v10580_v41, %v10579_v39  ;;  %v6688_v16 = vpop.permute.xlu0 %6687 }
0x13a1   : > { %17194 = vst [vmem:[#allocation32_spill] sm:$0xff] %v15598_v34  ;;  %v7082_v63 = vmax.f32 %v7004_v51, 0.0  ;;  %v7007_v26 = vadd.f32 %v10581_v42, %v6673_v36  ;;  %v7201_v9 = vpack.c.bf16 %v15598_v34, %v15594_v45  ;;  %v17199_v42 = vld [vmem:[#allocation43_spill] sm:$0xff] }
0x13a3   : > { %v7114_v33 = vadd.f32 %v7082_v63, %v17152_v13  ;;  %v7083_v8 = vmax.f32 %v7007_v26, 0.0  ;;  %v10582_v10 = vpop.f32.mrb[104].mxu0  ;;  %7707 = vmatpush1.bf16.msra.mxu1 %v7201_v9  ;;  %v17201_v63 = vld [vmem:[#allocation42_spill] sm:$0xff] }
0x13a4   : > { %v10583_v18 = vpop.f32.mrb[105].mxu0  ;;  %7708 = vmatprep.subr.bf16.mxu1 %v16924_v53 }
0x13a5   : > { %7146 = vst [vmem:[%s13533_s23 + $0x280] sm:$0xff] %v7114_v33  ;;  %v7115_v27 = vadd.f32 %v7083_v8, %v17153_v59  ;;  %v10584_v32 = vadd.f32 %v10583_v18, %v10582_v10  ;;  %v10585_v17 = vpop.f32.mrb[106].mxu0  ;;  %v15607_v19 = vadd.f32 %v7114_v33, %v17195_v49  ;;  %v6693_v33 = vpop.permute.xlu1 %6692 }
0x13a6   : > { %v10586_v23 = vpop.f32.mrb[107].mxu0 }
0x13a7   : > { %17196 = vst [vmem:[#allocation33_spill] sm:$0xff] %v15607_v19  ;;  %7147 = vst [vmem:[%s13533_s23 + $0x288] sm:$0xff] %v7115_v27  ;;  %v15611_v13 = vadd.f32 %v7115_v27, %v17197_v1  ;;  %v7012_v28 = vadd.f32 %v10584_v32, %v6678_v12  ;;  %v10587_v55 = vadd.f32 %v10586_v23, %v10585_v17  ;;  %v6698_v1 = vpop.permute.xlu0 %6697 }
0x13a9   : > { %17198 = vst [vmem:[#allocation44_spill] sm:$0xff] %v15611_v13  ;;  %v7084_v56 = vmax.f32 %v7012_v28, 0.0  ;;  %v7015_v37 = vadd.f32 %v10587_v55, %v6683_v44  ;;  %v7202_v59 = vpack.c.bf16 %v15611_v13, %v15607_v19  ;;  %v17203_v55 = vld [vmem:[#allocation47_spill] sm:$0xff] }
0x13ab   : > { %v7116_v4 = vadd.f32 %v7084_v56, %v17150_v57  ;;  %v7085_v40 = vmax.f32 %v7015_v37, 0.0  ;;  %v10588_v30 = vpop.f32.mrb[108].mxu0  ;;  %7709 = vmatpush1.bf16.msra.mxu1 %v7202_v59  ;;  %v17205_v56 = vld [vmem:[#allocation46_spill] sm:$0xff] }
0x13ac   : > { %v10589_v39 = vpop.f32.mrb[109].mxu0  ;;  %7710 = vmatprep.subr.bf16.mxu1 %v16924_v53 }
0x13ad   : > { %7148 = vst [vmem:[%s13533_s23 + $0x290] sm:$0xff] %v7116_v4  ;;  %v7117_v62 = vadd.f32 %v7085_v40, %v17151_v2  ;;  %v10590_v41 = vadd.f32 %v10589_v39, %v10588_v30  ;;  %v10591_v3 = vpop.f32.mrb[110].mxu0  ;;  %v15620_v36 = vadd.f32 %v7116_v4, %v17199_v42  ;;  %v6703_v4 = vpop.permute.xlu1 %6702 }
0x13ae   : > { %v10592_v51 = vpop.f32.mrb[111].mxu0 }
0x13af   : > { %17200 = vst [vmem:[#allocation45_spill] sm:$0xff] %v15620_v36  ;;  %7149 = vst [vmem:[%s13533_s23 + $0x298] sm:$0xff] %v7117_v62  ;;  %v15624_v57 = vadd.f32 %v7117_v62, %v17201_v63  ;;  %v7020_v26 = vadd.f32 %v10590_v41, %v6688_v16  ;;  %v10593_v9 = vadd.f32 %v10592_v51, %v10591_v3  ;;  %v6708_v63 = vpop.permute.xlu0 %6707 }
0x13b1   : > { %17202 = vst [vmem:[#allocation40_spill] sm:$0xff] %v15624_v57  ;;  %v7086_v8 = vmax.f32 %v7020_v26, 0.0  ;;  %v7023_v10 = vadd.f32 %v10593_v9, %v6693_v33  ;;  %v7203_v2 = vpack.c.bf16 %v15624_v57, %v15620_v36  ;;  %v17207_v9 = vld [vmem:[#allocation51_spill] sm:$0xff] }
0x13b3   : > { %v7118_v18 = vadd.f32 %v7086_v8, %v17156_v22  ;;  %v7087_v27 = vmax.f32 %v7023_v10, 0.0  ;;  %v10594_v32 = vpop.f32.mrb[112].mxu0  ;;  %7711 = vmatpush1.bf16.msra.mxu1 %v7203_v2  ;;  %v17209_v8 = vld [vmem:[#allocation50_spill] sm:$0xff] }
0x13b4   : > { %v10595_v17 = vpop.f32.mrb[113].mxu0  ;;  %7712 = vmatprep.subr.bf16.mxu1 %v16924_v53 }
0x13b5   : > { %7150 = vst [vmem:[%s13533_s23 + $0x2a0] sm:$0xff] %v7118_v18  ;;  %v7119_v12 = vadd.f32 %v7087_v27, %v17157_v29  ;;  %v10596_v23 = vadd.f32 %v10595_v17, %v10594_v32  ;;  %v10597_v49 = vpop.f32.mrb[114].mxu0  ;;  %v15633_v44 = vadd.f32 %v7118_v18, %v17203_v55  ;;  %v6713_v18 = vpop.permute.xlu1 %6712 }
0x13b6   : > { %v10598_v28 = vpop.f32.mrb[115].mxu0 }
0x13b7   : > { %17204 = vst [vmem:[#allocation41_spill] sm:$0xff] %v15633_v44  ;;  %7151 = vst [vmem:[%s13533_s23 + $0x2a8] sm:$0xff] %v7119_v12  ;;  %v15637_v22 = vadd.f32 %v7119_v12, %v17205_v56  ;;  %v7028_v37 = vadd.f32 %v10596_v23, %v6698_v1  ;;  %v10599_v59 = vadd.f32 %v10598_v28, %v10597_v49  ;;  %v6718_v56 = vpop.permute.xlu0 %6717 }
0x13b9   : > { %17206 = vst [vmem:[#allocation52_spill] sm:$0xff] %v15637_v22  ;;  %v7088_v40 = vmax.f32 %v7028_v37, 0.0  ;;  %v7031_v30 = vadd.f32 %v10599_v59, %v6703_v4  ;;  %v7204_v29 = vpack.c.bf16 %v15637_v22, %v15633_v44  ;;  %v17211_v59 = vld [vmem:[#allocation55_spill] sm:$0xff]  ;;  %v9873_v44 = vld [vmem:[%s16568_s6 + $0x4a8] sm:$0xff] }
0x13ba   : > { %v9871_v22 = vld [vmem:[%s16568_s6 + $0x498] sm:$0xff] }
0x13bb   : > { %v7120_v39 = vadd.f32 %v7088_v40, %v17154_v14  ;;  %v7089_v62 = vmax.f32 %v7031_v30, 0.0  ;;  %v10600_v41 = vpop.f32.mrb[116].mxu0  ;;  %7713 = vmatpush1.bf16.msra.mxu1 %v7204_v29  ;;  %v17213_v40 = vld [vmem:[#allocation54_spill] sm:$0xff] }
0x13bc   : > { %v10601_v3 = vpop.f32.mrb[117].mxu0  ;;  %7714 = vmatprep.subr.bf16.mxu1 %v16924_v53 }
0x13bd   : > { %7152 = vst [vmem:[%s13533_s23 + $0x2b0] sm:$0xff] %v7120_v39  ;;  %v7121_v16 = vadd.f32 %v7089_v62, %v17155_v48  ;;  %v10602_v51 = vadd.f32 %v10601_v3, %v10600_v41  ;;  %v10603_v42 = vpop.f32.mrb[118].mxu0  ;;  %v15646_v33 = vadd.f32 %v7120_v39, %v17207_v9  ;;  %v6723_v39 = vpop.permute.xlu1 %6722 }
0x13be   : > { %v10604_v26 = vpop.f32.mrb[119].mxu0 }
0x13bf   : > { %17208 = vst [vmem:[#allocation53_spill] sm:$0xff] %v15646_v33  ;;  %7153 = vst [vmem:[%s13533_s23 + $0x2b8] sm:$0xff] %v7121_v16  ;;  %v15650_v14 = vadd.f32 %v7121_v16, %v17209_v8  ;;  %v7036_v10 = vadd.f32 %v10602_v51, %v6708_v63  ;;  %v10605_v2 = vadd.f32 %v10604_v26, %v10603_v42  ;;  %v6728_v8 = vpop.permute.xlu0 %6727 }
0x13c1   : > { %17210 = vst [vmem:[#allocation48_spill] sm:$0xff] %v15650_v14  ;;  %v7090_v27 = vmax.f32 %v7036_v10, 0.0  ;;  %v7039_v32 = vadd.f32 %v10605_v2, %v6713_v18  ;;  %v7205_v48 = vpack.c.bf16 %v15650_v14, %v15646_v33  ;;  %v17215_v2 = vld [vmem:[#allocation59_spill] sm:$0xff]  ;;  %v9877_v33 = vld [vmem:[%s16568_s6 + $0x4c8] sm:$0xff] }
0x13c2   : > { %v9875_v14 = vld [vmem:[%s16568_s6 + $0x4b8] sm:$0xff] }
0x13c3   : > { %v7122_v17 = vadd.f32 %v7090_v27, %v17160_v35  ;;  %v7091_v12 = vmax.f32 %v7039_v32, 0.0  ;;  %v10606_v23 = vpop.f32.mrb[120].mxu0  ;;  %7715 = vmatpush1.bf16.msra.mxu1 %v7205_v48  ;;  %v17217_v27 = vld [vmem:[#allocation58_spill] sm:$0xff] }
0x13c4   : > { %v10607_v49 = vpop.f32.mrb[121].mxu0  ;;  %7716 = vmatprep.subr.bf16.mxu1 %v16924_v53 }
0x13c5   : > { %7154 = vst [vmem:[%s13533_s23 + $0x2c0] sm:$0xff] %v7122_v17  ;;  %v7123_v1 = vadd.f32 %v7091_v12, %v17161_v21  ;;  %v10608_v28 = vadd.f32 %v10607_v49, %v10606_v23  ;;  %v10609_v55 = vpop.f32.mrb[122].mxu0  ;;  %v15659_v4 = vadd.f32 %v7122_v17, %v17211_v59  ;;  %v6733_v17 = vpop.permute.xlu1 %6732 }
0x13c6   : > { %v10610_v37 = vpop.f32.mrb[123].mxu0 }
0x13c7   : > { %17212 = vst [vmem:[#allocation49_spill] sm:$0xff] %v15659_v4  ;;  %7155 = vst [vmem:[%s13533_s23 + $0x2c8] sm:$0xff] %v7123_v1  ;;  %v15663_v35 = vadd.f32 %v7123_v1, %v17213_v40  ;;  %v7044_v30 = vadd.f32 %v10608_v28, %v6718_v56  ;;  %v10611_v29 = vadd.f32 %v10610_v37, %v10609_v55  ;;  %v6738_v40 = vpop.permute.xlu0 %6737 }
0x13c9   : > { %17214 = vst [vmem:[#allocation60_spill] sm:$0xff] %v15663_v35  ;;  %v7092_v62 = vmax.f32 %v7044_v30, 0.0  ;;  %v7047_v41 = vadd.f32 %v10611_v29, %v6723_v39  ;;  %v7206_v21 = vpack.c.bf16 %v15663_v35, %v15659_v4  ;;  %v17219_v29 = vld [vmem:[#allocation63_spill] sm:$0xff]  ;;  %v9865_v4 = vld [vmem:[%s16568_s6 + $0x468] sm:$0xff] }
0x13ca   : > { %v9863_v35 = vld [vmem:[%s16568_s6 + $0x458] sm:$0xff] }
0x13cb   : > { %v7124_v3 = vadd.f32 %v7092_v62, %v17158_v60  ;;  %v7093_v16 = vmax.f32 %v7047_v41, 0.0  ;;  %v10612_v51 = vpop.f32.mrb[124].mxu0  ;;  %7717 = vmatpush1.bf16.msra.mxu1 %v7206_v21 }
0x13cc   : > { %v10613_v42 = vpop.f32.mrb[125].mxu0  ;;  %7718 = vmatprep.subr.bf16.mxu1 %v16924_v53 }
0x13cd   : > { %7156 = vst [vmem:[%s13533_s23 + $0x2d0] sm:$0xff] %v7124_v3  ;;  %v7125_v63 = vadd.f32 %v7093_v16, %v17159_v15  ;;  %v10614_v26 = vadd.f32 %v10613_v42, %v10612_v51  ;;  %v10615_v9 = vpop.f32.mrb[126].mxu0  ;;  %v15672_v18 = vadd.f32 %v7124_v3, %v17215_v2  ;;  %v6743_v3 = vpop.permute.xlu1 %6742 }
0x13ce   : > { %v10616_v10 = vpop.f32.mrb[127].mxu0 }
0x13cf   : > { %17216 = vst [vmem:[#allocation61_spill] sm:$0xff] %v15672_v18  ;;  %7157 = vst [vmem:[%s13533_s23 + $0x2d8] sm:$0xff] %v7125_v63  ;;  %v15676_v60 = vadd.f32 %v7125_v63, %v17217_v27  ;;  %v7052_v32 = vadd.f32 %v10614_v26, %v6728_v8  ;;  %v10617_v48 = vadd.f32 %v10616_v10, %v10615_v9  ;;  %v17223_v9 = vld [vmem:[#allocation67_spill] sm:$0xff]  ;;  %v17225_v10 = vld [vmem:[#allocation66_spill] sm:$0xff] }
0x13d1   : > { %17218 = vst [vmem:[#allocation56_spill] sm:$0xff] %v15676_v60  ;;  %v7094_v12 = vmax.f32 %v7052_v32, 0.0  ;;  %v7055_v23 = vadd.f32 %v10617_v48, %v6733_v17  ;;  %v7207_v15 = vpack.c.bf16 %v15676_v60, %v15672_v18  ;;  %v11579_v32 = vld [vmem:[%s16567_s5 + $0x3e4] ss:$8 sps:$4 sm:$0xff]   ;;  %v11577_v48 = vld [vmem:[%s16567_s5 + $0x3e0] ss:$8 sps:$4 sm:$0xff]  }
0x13d2   : > { %v11582_v17 = vld [vmem:[%s16567_s5 + $0x3f4] ss:$8 sps:$4 sm:$0xff]   ;;  %v9869_v18 = vld [vmem:[%s16568_s6 + $0x488] sm:$0xff] }
0x13d3   : > { %v7126_v49 = vadd.f32 %v7094_v12, %v17164_v5  ;;  %v7095_v1 = vmax.f32 %v7055_v23, 0.0  ;;  %v10618_v28 = vpop.f32.mrb[128].mxu0  ;;  %7719 = vmatpush1.bf16.msra.mxu1 %v7207_v15  ;;  %v17221_v5 = vld [vmem:[#allocation62_spill] sm:$0xff]  ;;  %v7300_v15 = vpop.permute.xlu1 %7299  ;;  %v9867_v60 = vld [vmem:[%s16568_s6 + $0x478] sm:$0xff] }
0x13d4   : > { %v10619_v55 = vpop.f32.mrb[129].mxu0  ;;  %7720 = vmatprep.subr.bf16.mxu1 %v16924_v53  ;;  %v11580_v12 = vld [vmem:[%s16567_s5 + $0x3f0] ss:$8 sps:$4 sm:$0xff]  }
0x13d5   : > { %7158 = vst [vmem:[%s13533_s23 + $0x2e0] sm:$0xff] %v7126_v49  ;;  %v7127_v56 = vadd.f32 %v7095_v1, %v17165_v46  ;;  %v10620_v37 = vadd.f32 %v10619_v55, %v10618_v28  ;;  %v10621_v59 = vpop.f32.mrb[130].mxu0  ;;  %v15685_v39 = vadd.f32 %v7126_v49, %v17219_v29  ;;  %v7295_v1 = vpop.permute.xlu0 %7294 }
0x13d6   : > { %v10622_v30 = vpop.f32.mrb[131].mxu0 }
0x13d7   : > { %17220 = vst [vmem:[#allocation57_spill] sm:$0xff] %v15685_v39  ;;  %7159 = vst [vmem:[%s13533_s23 + $0x2e8] sm:$0xff] %v7127_v56  ;;  %v15689_v62 = vadd.f32 %v7127_v56, %v17221_v5  ;;  %v7060_v41 = vadd.f32 %v10620_v37, %v6738_v40  ;;  %v10623_v21 = vadd.f32 %v10622_v30, %v10621_v59  ;;  %v7310_v30 = vpop.permute.xlu1 %7309 }
0x13d9   : > { %17222 = vst [vmem:[#allocation68_spill] sm:$0xff] %v15689_v62  ;;  %v7096_v16 = vmax.f32 %v7060_v41, 0.0  ;;  %v7063_v51 = vadd.f32 %v10623_v21, %v6743_v3  ;;  %v7208_v46 = vpack.c.bf16 %v15689_v62, %v15685_v39  ;;  %v7305_v5 = vpop.permute.xlu0 %7304 }
0x13db   : > { %v7128_v42 = vadd.f32 %v7096_v16, %v17162_v58  ;;  %v7097_v63 = vmax.f32 %v7063_v51, 0.0  ;;  %7721 = vmatpush1.bf16.msra.mxu1 %v7208_v46  ;;  %v11571_v58 = vld [vmem:[%s16567_s5 + $0x3c0] ss:$8 sps:$4 sm:$0xff]  }
0x13dc   : > { %7722 = vmatprep.subr.bf16.mxu1 %v16924_v53  ;;  %v11576_v53 = vld [vmem:[%s16567_s5 + $0x3d4] ss:$8 sps:$4 sm:$0xff]  }
0x13dd   : > { %7160 = vst [vmem:[%s13533_s23 + $0x2f0] sm:$0xff] %v7128_v42  ;;  %v7129_v26 = vadd.f32 %v7097_v63, %v17163_v25  ;;  %v15698_v8 = vadd.f32 %v7128_v42, %v17223_v9  ;;  %v11574_v25 = vld [vmem:[%s16567_s5 + $0x3d0] ss:$8 sps:$4 sm:$0xff]   ;;  %v7320_v42 = vpop.permute.xlu1 %7319 }
0x13df   : > { %17224 = vst [vmem:[#allocation69_spill] sm:$0xff] %v15698_v8  ;;  %7161 = vst [vmem:[%s13533_s23 + $0x2f8] sm:$0xff] %v7129_v26  ;;  %v15702_v2 = vadd.f32 %v7129_v26, %v17225_v10  ;;  %v7315_v26 = vpop.permute.xlu0 %7314 }
0x13e1   : > { %17226 = vst [vmem:[#allocation64_spill] sm:$0xff] %v15702_v2  ;;  %v7209_v27 = vpack.c.bf16 %v15702_v2, %v15698_v8  ;;  %v9861_v2 = vld [vmem:[%s16568_s6 + $0x448] sm:$0xff] }
0x13e3   : > { %7723 = vmatpush1.bf16.msra.mxu1 %v7209_v27 }
0x13e6   : > { %7725 = vmatmul.mubr.bf16.vlgmr.msra.gmra.mrb[28].mxu1 %v11571_v58 }
0x13e7   : > { %7732 = vmatprep.mubr.bf16.mxu1 %v11576_v53 }
0x13ee   : > { %7733 = vmatmul.mubr.bf16.gmra.mrb[32].mxu1 %v11574_v25  ;;  %v11583_v25 = vld [vmem:[%s16567_s5 + $0x400] ss:$8 sps:$4 sm:$0xff]  }
0x13ef   : > { %7740 = vmatprep.mubr.bf16.mxu1 %v11579_v32  ;;  %v11585_v32 = vld [vmem:[%s16567_s5 + $0x404] ss:$8 sps:$4 sm:$0xff]  }
0x13f6   : > { %7741 = vmatmul.mubr.bf16.gmra.mrb[36].mxu1 %v11577_v48  ;;  %v11588_v48 = vld [vmem:[%s16567_s5 + $0x414] ss:$8 sps:$4 sm:$0xff]  }
0x13f7   : > { %7748 = vmatprep.mubr.bf16.mxu1 %v11582_v17 }
0x13fe   : > { %7749 = vmatmul.mubr.bf16.gmra.mrb[40].mxu1 %v11580_v12  ;;  %v7330_v12 = vpop.permute.xlu1 %7329 }
0x13ff   : > { %7756 = vmatprep.mubr.bf16.mxu1 %v11585_v32  ;;  %v11609_v32 = vld [vmem:[%s16567_s5 + $0x484] ss:$8 sps:$4 sm:$0xff]  }
0x1406   : > { %7757 = vmatmul.mubr.bf16.gmra.mrb[44].mxu1 %v11583_v25  ;;  %v11604_v25 = vld [vmem:[%s16567_s5 + $0x470] ss:$8 sps:$4 sm:$0xff]  }
0x1407   : > { %7764 = vmatprep.mubr.bf16.mxu1 %v11588_v48  ;;  %v11607_v48 = vld [vmem:[%s16567_s5 + $0x480] ss:$8 sps:$4 sm:$0xff]  }
0x14b9   : > { %v7726_v23 = vpop.f32.mrb[28].mxu1 }
0x14ba   : > { %v7728_v49 = vpop.f32.mrb[29].mxu1  ;;  %v7727_v55 = vadd.f32 %v7726_v23, %v7295_v1 }
0x14bb   : > { %v7729_v28 = vpop.f32.mrb[30].mxu1 }
0x14bc   : > { %v7730_v56 = vadd.f32 %v7729_v28, %v7300_v15  ;;  %v7731_v37 = vpop.f32.mrb[31].mxu1  ;;  %v7325_v15 = vpop.permute.xlu0 %7324 }
0x14bd   : > { %v11586_v37 = vld [vmem:[%s16567_s5 + $0x410] ss:$8 sps:$4 sm:$0xff]  }
0x14be   : > { %v7885_v59 = vpack.c.bf16 %v7730_v56, %v7727_v55  ;;  %7765 = vmatmul.mubr.bf16.gmra.mrb[48].mxu1 %v11586_v37 }
0x14c0   : > { %7905 = vxpose.xlu0.c.b16.start [1/4] (short) %v7885_v59, 128  ;;  %11038 = vmatprep.subr.bf16.mxu0 %v7885_v59 }
0x14c1   : > { %v7734_v40 = vpop.f32.mrb[32].mxu1  ;;  %11039 = vmatpush3.bf16.msra.mxu0 %v7885_v59 }
0x14c2   : > { %v7736_v29 = vpop.f32.mrb[33].mxu1  ;;  %v7735_v21 = vadd.f32 %v7734_v40, %v7305_v5 }
0x14c3   : > { %v7737_v41 = vpop.f32.mrb[34].mxu1 }
0x14c4   : > { %v7738_v3 = vadd.f32 %v7737_v41, %v7310_v30  ;;  %v7739_v16 = vpop.f32.mrb[35].mxu1 }
0x14c5   : > { %v11589_v16 = vld [vmem:[%s16567_s5 + $0x420] ss:$8 sps:$4 sm:$0xff]  }
0x14c6   : > { %v7886_v51 = vpack.c.bf16 %v7738_v3, %v7735_v21 }
0x14c8   : > { %7906 = vxpose.xlu0.c.b16.cont [2/4] (short) %v7886_v51, 128  ;;  %11040 = vmatprep.subr.bf16.mxu0 %v7886_v51 }
0x14c9   : > { %v7742_v46 = vpop.f32.mrb[36].mxu1  ;;  %11041 = vmatpush3.bf16.msra.mxu0 %v7886_v51  ;;  %v11591_v51 = vld [vmem:[%s16567_s5 + $0x424] ss:$8 sps:$4 sm:$0xff]  }
0x14ca   : > { %v7744_v63 = vpop.f32.mrb[37].mxu1  ;;  %v7743_v10 = vadd.f32 %v7742_v46, %v7315_v26  ;;  %v11594_v46 = vld [vmem:[%s16567_s5 + $0x434] ss:$8 sps:$4 sm:$0xff]   ;;  %7772 = vmatprep.mubr.bf16.mxu1 %v11591_v51  ;;  %v11595_v26 = vld [vmem:[%s16567_s5 + $0x440] ss:$8 sps:$4 sm:$0xff]  }
0x14cb   : > { %v7745_v9 = vpop.f32.mrb[38].mxu1  ;;  %7773 = vmatmul.mubr.bf16.gmra.mrb[52].mxu1 %v11589_v16  ;;  %v11597_v63 = vld [vmem:[%s16567_s5 + $0x444] ss:$8 sps:$4 sm:$0xff]   ;;  %v11616_v16 = vld [vmem:[%s16567_s5 + $0x4b0] ss:$8 sps:$4 sm:$0xff]  }
0x14cc   : > { %v7746_v27 = vadd.f32 %v7745_v9, %v7320_v42  ;;  %v7747_v58 = vpop.f32.mrb[39].mxu1  ;;  %7780 = vmatprep.mubr.bf16.mxu1 %v11594_v46  ;;  %v11592_v42 = vld [vmem:[%s16567_s5 + $0x430] ss:$8 sps:$4 sm:$0xff]   ;;  %v11600_v9 = vld [vmem:[%s16567_s5 + $0x454] ss:$8 sps:$4 sm:$0xff]  }
0x14cd   : > { %v11601_v58 = vld [vmem:[%s16567_s5 + $0x460] ss:$8 sps:$4 sm:$0xff]  }
0x14ce   : > { %v7887_v53 = vpack.c.bf16 %v7746_v27, %v7743_v10  ;;  %v11598_v10 = vld [vmem:[%s16567_s5 + $0x450] ss:$8 sps:$4 sm:$0xff]   ;;  %v11603_v27 = vld [vmem:[%s16567_s5 + $0x464] ss:$8 sps:$4 sm:$0xff]  }
0x14d0   : > { %7907 = vxpose.xlu0.c.b16.cont [3/4] (short) %v7887_v53, 128  ;;  %11042 = vmatprep.subr.bf16.mxu0 %v7887_v53 }
0x14d1   : > { %v7750_v17 = vpop.f32.mrb[40].mxu1  ;;  %11043 = vmatpush3.bf16.msra.mxu0 %v7887_v53  ;;  %v11606_v53 = vld [vmem:[%s16567_s5 + $0x474] ss:$8 sps:$4 sm:$0xff]  }
0x14d2   : > { %v7752_v23 = vpop.f32.mrb[41].mxu1  ;;  %v7751_v1 = vadd.f32 %v7750_v17, %v7325_v15  ;;  %v11612_v17 = vld [vmem:[%s16567_s5 + $0x494] ss:$8 sps:$4 sm:$0xff]  }
0x14d3   : > { %v7753_v49 = vpop.f32.mrb[42].mxu1  ;;  %7781 = vmatmul.mubr.bf16.gmra.mrb[56].mxu1 %v11592_v42 }
0x14d4   : > { %v7754_v28 = vadd.f32 %v7753_v49, %v7330_v12  ;;  %v7755_v55 = vpop.f32.mrb[43].mxu1  ;;  %7788 = vmatprep.mubr.bf16.mxu1 %v11597_v63  ;;  %v11610_v12 = vld [vmem:[%s16567_s5 + $0x490] ss:$8 sps:$4 sm:$0xff]   ;;  %v11621_v63 = vld [vmem:[%s16567_s5 + $0x4c4] ss:$8 sps:$4 sm:$0xff]  }
0x14d6   : > { %v7888_v56 = vpack.c.bf16 %v7754_v28, %v7751_v1 }
0x14d8   : > { %7908 = vxpose.xlu0.c.b16.end [4/4] (short) %v7888_v56, 128  ;;  %11044 = vmatprep.subr.bf16.mxu0 %v7888_v56 }
0x14d9   : > { %11045 = vmatpush3.bf16.msra.mxu0 %v7888_v56 }
0x14db   : > { %7789 = vmatmul.mubr.bf16.gmra.mrb[60].mxu1 %v11595_v26  ;;  %v11619_v26 = vld [vmem:[%s16567_s5 + $0x4c0] ss:$8 sps:$4 sm:$0xff]  }
0x14dc   : > { %7796 = vmatprep.mubr.bf16.mxu1 %v11600_v9  ;;  %v11624_v9 = vld [vmem:[%s16567_s5 + $0x4d4] ss:$8 sps:$4 sm:$0xff]  }
0x14e3   : > { %7797 = vmatmul.mubr.bf16.gmra.mrb[64].mxu1 %v11598_v10  ;;  %v11622_v10 = vld [vmem:[%s16567_s5 + $0x4d0] ss:$8 sps:$4 sm:$0xff]  }
0x14e4   : > { %7804 = vmatprep.mubr.bf16.mxu1 %v11603_v27  ;;  %v11627_v27 = vld [vmem:[%s16567_s5 + $0x4e4] ss:$8 sps:$4 sm:$0xff]  }
0x14eb   : > { %7805 = vmatmul.mubr.bf16.gmra.mrb[68].mxu1 %v11601_v58  ;;  %v11625_v58 = vld [vmem:[%s16567_s5 + $0x4e0] ss:$8 sps:$4 sm:$0xff]  }
0x14ec   : > { %7812 = vmatprep.mubr.bf16.mxu1 %v11606_v53  ;;  %v9853_v53 = vld [vmem:[%s16568_s6 + $0x408] sm:$0xff] }
0x14f3   : > { %7813 = vmatmul.mubr.bf16.gmra.mrb[72].mxu1 %v11604_v25  ;;  %v15876_v25 = vpop.f32.mrb[44].mxu1 }
0x14f4   : > { %7820 = vmatprep.mubr.bf16.mxu1 %v11609_v32  ;;  %v7760_v32 = vpop.f32.mrb[45].mxu1 }
0x14fb   : > { %7821 = vmatmul.mubr.bf16.gmra.mrb[76].mxu1 %v11607_v48  ;;  %v15878_v48 = vpop.f32.mrb[46].mxu1 }
0x14fc   : > { %7828 = vmatprep.mubr.bf16.mxu1 %v11612_v17  ;;  %v7763_v17 = vpop.f32.mrb[47].mxu1 }
0x1503   : > { %7829 = vmatmul.mubr.bf16.gmra.mrb[80].mxu1 %v11610_v12  ;;  %v11630_v12 = vld [vmem:[%s16567_s5 + $0x4f4] ss:$8 sps:$4 sm:$0xff]  }
0x1532   : > { %v7913_v59 = vpop.trf.xlu0 }
0x1533   : > { %11046 = vmatprep.mubr.msk.bf16.mxu0 %vm2105_vm2, %v7913_v59  ;;  %v11615_v59 = vld [vmem:[%s16567_s5 + $0x4a4] ss:$8 sps:$4 sm:$0xff]  }
0x1534   : > { %7836 = vmatprep.mubr.bf16.mxu1 %v11615_v59  ;;  %v11628_v59 = vld [vmem:[%s16567_s5 + $0x4f0] ss:$8 sps:$4 sm:$0xff]  }
0x1536   : > { %v7914_v40 = vpop.trf.xlu0 }
0x1537   : > { %11047 = vmatmul.mubr.msk.bf16.vlgmr.msra.gmra.mrb[132].mxu0 %vm2105_vm2, %v7914_v40 }
0x153a   : > { %v7915_v30 = vpop.trf.xlu0 }
0x153b   : > { %11050 = vmatprep.mubr.msk.bf16.mxu0 %vm2105_vm2, %v7915_v30  ;;  %v11613_v30 = vld [vmem:[%s16567_s5 + $0x4a0] ss:$8 sps:$4 sm:$0xff]  }
0x153c   : > { %7837 = vmatmul.mubr.bf16.gmra.mrb[84].mxu1 %v11613_v30  ;;  %v9852_v30 = vld [vmem:[%s16568_s6 + $0x400] sm:$0xff] }
0x153e   : > { %v7916_v29 = vpop.trf.xlu0 }
0x153f   : > { %11051 = vmatmul.mubr.msk.bf16.gmra.mrb[136].mxu0 %vm2105_vm2, %v7916_v29 }
0x1542   : > { %v7917_v5 = vpop.trf.xlu0 }
0x1543   : > { %11054 = vmatprep.mubr.msk.bf16.mxu0 %vm2105_vm2, %v7917_v5 }
0x1546   : > { %v7918_v41 = vpop.trf.xlu0 }
0x1547   : > { %11055 = vmatmul.mubr.msk.bf16.gmra.mrb[140].mxu0 %vm2105_vm2, %v7918_v41 }
0x154a   : > { %v7919_v21 = vpop.trf.xlu0 }
0x154b   : > { %11058 = vmatprep.mubr.msk.bf16.mxu0 %vm2105_vm2, %v7919_v21  ;;  %v11618_v21 = vld [vmem:[%s16567_s5 + $0x4b4] ss:$8 sps:$4 sm:$0xff]  }
0x154c   : > { %7844 = vmatprep.mubr.bf16.mxu1 %v11618_v21  ;;  %v9854_v21 = vld [vmem:[%s16568_s6 + $0x410] sm:$0xff] }
0x154d   : > { %7845 = vmatmul.mubr.bf16.gmra.mrb[88].mxu1 %v11616_v16 }
0x154e   : > { %v7920_v3 = vpop.trf.xlu0  ;;  %7852 = vmatprep.mubr.bf16.mxu1 %v11621_v63 }
0x154f   : > { %11059 = vmatmul.mubr.msk.bf16.gmra.mrb[144].mxu0 %vm2105_vm2, %v7920_v3 }
0x1555   : > { %7853 = vmatmul.mubr.bf16.gmra.mrb[92].mxu1 %v11619_v26  ;;  %v9855_v26 = vld [vmem:[%s16568_s6 + $0x418] sm:$0xff] }
0x1556   : > { %7860 = vmatprep.mubr.bf16.mxu1 %v11624_v9 }
0x155d   : > { %7861 = vmatmul.mubr.bf16.gmra.mrb[96].mxu1 %v11622_v10 }
0x155e   : > { %7868 = vmatprep.mubr.bf16.mxu1 %v11627_v27 }
0x1565   : > { %7869 = vmatmul.mubr.bf16.gmra.mrb[100].mxu1 %v11625_v58 }
0x1566   : > { %7876 = vmatprep.mubr.bf16.mxu1 %v11630_v12 }
0x156d   : > { %7877 = vmatmul.mubr.bf16.gmra.mrb[104].mxu1 %v11628_v59 }
0x1591   : > { %v15892_v16 = vpop.f32.mrb[48].mxu1 }
0x1592   : > { %v7768_v63 = vpop.f32.mrb[49].mxu1 }
0x1593   : > { %v15897_v9 = vpop.f32.mrb[50].mxu1 }
0x1594   : > { %v7771_v10 = vpop.f32.mrb[51].mxu1 }
0x160a   : > { %v15795_v23 = vpop.f32.mrb[132].mxu0 }
0x160b   : > { %8046 = vmax.xlane.f32.xlu1 %v15795_v23  ;;  %v15798_v15 = vpop.f32.mrb[133].mxu0 }
0x160c   : > { %v15800_v49 = vpop.f32.mrb[134].mxu0 }
0x160d   : > { %8048 = vmax.xlane.f32.xlu0 %v15800_v49  ;;  %v15803_v1 = vpop.f32.mrb[135].mxu0 }
0x160f   : > { %8042 = vmax.xlane.f32.xlu1 %v15798_v15 }
0x1612   : > { %v15806_v28 = vpop.f32.mrb[136].mxu0 }
0x1613   : > { %8044 = vmax.xlane.f32.xlu1 %v15803_v1  ;;  %v15809_v55 = vpop.f32.mrb[137].mxu0 }
0x1614   : > { %v15811_v56 = vpop.f32.mrb[138].mxu0 }
0x1615   : > { %v15813_v37 = vpop.f32.mrb[139].mxu0 }
0x1617   : > { %8054 = vmax.xlane.f32.xlu1 %v15806_v28 }
0x161a   : > { %v15819_v40 = vpop.f32.mrb[140].mxu0 }
0x161b   : > { %8050 = vmax.xlane.f32.xlu1 %v15809_v55  ;;  %v15825_v29 = vpop.f32.mrb[141].mxu0 }
0x161c   : > { %v15827_v5 = vpop.f32.mrb[142].mxu0 }
0x161d   : > { %8064 = vmax.xlane.f32.xlu0 %v15827_v5  ;;  %v15830_v41 = vpop.f32.mrb[143].mxu0 }
0x161f   : > { %8056 = vmax.xlane.f32.xlu1 %v15811_v56 }
0x1622   : > { %v15836_v3 = vpop.f32.mrb[144].mxu0 }
0x1623   : > { %8052 = vmax.xlane.f32.xlu1 %v15813_v37  ;;  %v15842_v51 = vpop.f32.mrb[145].mxu0 }
0x1624   : > { %v15844_v46 = vpop.f32.mrb[146].mxu0 }
0x1625   : > { %v15846_v42 = vpop.f32.mrb[147].mxu0 }
0x1626   : > { %8068 = vmax.xlane.f32.xlu0 %v15846_v42 }
0x1627   : > { %8062 = vmax.xlane.f32.xlu1 %v15819_v40 }
0x162a   : > { %8072 = vmax.xlane.f32.xlu0 %v15844_v46 }
0x162b   : > { %8058 = vmax.xlane.f32.xlu1 %v15825_v29 }
0x162f   : > { %8060 = vmax.xlane.f32.xlu1 %v15830_v41 }
0x1633   : > { %8070 = vmax.xlane.f32.xlu1 %v15836_v3 }
0x1637   : > { %8066 = vmax.xlane.f32.xlu1 %v15842_v51 }
0x1640   : > { %7339 = vperm.xlu0 %11197, %v9853_v53  }
0x1648   : > { %7334 = vperm.xlu1 %11198, %v9852_v30  }
0x164c   : > { %7344 = vperm.xlu1 %11198, %v9854_v21  }
0x1650   : > { %7349 = vperm.xlu1 %11198, %v9855_v26  }
0x1698   : > { %v8047_v27 = vpop.xlane.xlu1 %8046 }
0x1699   : > { %v8076_v58 = vsub.f32 %v15795_v23, %v8047_v27 }
0x169a   : > { %v8049_v53 = vpop.xlane.xlu0 %8048 }
0x169b   : > { %v8094_v32 = vmul.f32 1.442695, %v8076_v58  ;;  %v8077_v17 = vsub.f32 %v15800_v49, %v8049_v53 }
0x169c   : > { %v8043_v12 = vpop.xlane.xlu1 %8042 }
0x169d   : > { %11877 = vpow2.f32 %v8094_v32  ;;  %v8096_v59 = vmul.f32 1.442695, %v8077_v17  ;;  %v8074_v30 = vsub.f32 %v15798_v15, %v8043_v12 }
0x169f   : > { %11879 = vpow2.f32 %v8096_v59  ;;  %v8090_v21 = vmul.f32 1.442695, %v8074_v30 }
0x16a0   : > { %v8045_v63 = vpop.xlane.xlu1 %8044 }
0x16a1   : > { %11881 = vpow2.f32 %v8090_v21  ;;  %v8075_v62 = vsub.f32 %v15803_v1, %v8045_v63 }
0x16a3   : > { %v8092_v10 = vmul.f32 1.442695, %v8075_v62 }
0x16a4   : > { %v8055_v26 = vpop.xlane.xlu1 %8054 }
0x16a5   : > { %11883 = vpow2.f32 %v8092_v10  ;;  %v8080_v23 = vsub.f32 %v15806_v28, %v8055_v26 }
0x16a7   : > { %v15904_v27 = vpop.eup %11877  ;;  %v8102_v58 = vmul.f32 1.442695, %v8080_v23 }
0x16a8   : > { %v8051_v49 = vpop.xlane.xlu1 %8050  ;;  %8126 = vadd.xlane.f32.xlu1 %v15904_v27 }
0x16a9   : > { %v15907_v53 = vpop.eup %11879  ;;  %11885 = vpow2.f32 %v8102_v58  ;;  %v8078_v15 = vsub.f32 %v15809_v55, %v8051_v49 }
0x16aa   : > { %8128 = vadd.xlane.f32.xlu0 %v15907_v53  ;;  %v8065_v28 = vpop.xlane.xlu0 %8064 }
0x16ab   : > { %v15911_v32 = vpop.eup %11881  ;;  %v8098_v62 = vmul.f32 1.442695, %v8078_v15  ;;  %v8085_v30 = vsub.f32 %v15827_v5, %v8065_v28 }
0x16ac   : > { %v8057_v1 = vpop.xlane.xlu1 %8056  ;;  %8122 = vadd.xlane.f32.xlu1 %v15911_v32 }
0x16ad   : > { %11887 = vpow2.f32 %v8098_v62  ;;  %v8081_v17 = vsub.f32 %v15811_v56, %v8057_v1  ;;  %v8112_v23 = vmul.f32 1.442695, %v8085_v30 }
0x16af   : > { %v15915_v12 = vpop.eup %11883  ;;  %v8104_v59 = vmul.f32 1.442695, %v8081_v17 }
0x16b0   : > { %v8053_v21 = vpop.xlane.xlu1 %8052  ;;  %8124 = vadd.xlane.f32.xlu0 %v15915_v12 }
0x16b1   : > { %11889 = vpow2.f32 %v8104_v59  ;;  %v8079_v55 = vsub.f32 %v15813_v37, %v8053_v21 }
0x16b3   : > { %v15920_v63 = vpop.eup %11885  ;;  %v8100_v10 = vmul.f32 1.442695, %v8079_v55  ;;  %v8069_v26 = vpop.xlane.xlu0 %8068 }
0x16b4   : > { %v8063_v58 = vpop.xlane.xlu1 %8062  ;;  %8134 = vadd.xlane.f32.xlu1 %v15920_v63  ;;  %v8087_v55 = vsub.f32 %v15846_v42, %v8069_v26 }
0x16b5   : > { %11891 = vpow2.f32 %v8100_v10  ;;  %v8084_v56 = vsub.f32 %v15819_v40, %v8063_v58 }
0x16b6   : > { %11893 = vpow2.f32 %v8112_v23 }
0x16b7   : > { %v15924_v49 = vpop.eup %11887  ;;  %v8110_v5 = vmul.f32 1.442695, %v8084_v56  ;;  %v8073_v37 = vpop.xlane.xlu0 %8072 }
0x16b8   : > { %v8059_v15 = vpop.xlane.xlu1 %8058  ;;  %8130 = vadd.xlane.f32.xlu1 %v15924_v49  ;;  %v8089_v17 = vsub.f32 %v15844_v46, %v8073_v37 }
0x16b9   : > { %11895 = vpow2.f32 %v8110_v5  ;;  %v8082_v62 = vsub.f32 %v15825_v29, %v8059_v15  ;;  %v15937_v29 = vpop.f32.mrb[52].mxu1 }
0x16ba   : > { %v8120_v10 = vmul.f32 1.442695, %v8089_v17  ;;  %v7776_v58 = vpop.f32.mrb[53].mxu1 }
0x16bb   : > { %v15928_v1 = vpop.eup %11889  ;;  %v8106_v28 = vmul.f32 1.442695, %v8082_v62  ;;  %v15942_v5 = vpop.f32.mrb[54].mxu1  ;;  %v8116_v62 = vmul.f32 1.442695, %v8087_v55 }
0x16bc   : > { %v8061_v59 = vpop.xlane.xlu1 %8060  ;;  %8136 = vadd.xlane.f32.xlu0 %v15928_v1  ;;  %v7779_v37 = vpop.f32.mrb[55].mxu1 }
0x16bd   : > { %11897 = vpow2.f32 %v8106_v28  ;;  %v8083_v40 = vsub.f32 %v15830_v41, %v8061_v59 }
0x16bf   : > { %v15933_v30 = vpop.eup %11891  ;;  %v8108_v21 = vmul.f32 1.442695, %v8083_v40  ;;  %v15952_v40 = vpop.f32.mrb[56].mxu1 }
0x16c0   : > { %v8071_v23 = vpop.xlane.xlu1 %8070  ;;  %8132 = vadd.xlane.f32.xlu0 %v15933_v30  ;;  %v15940_v56 = vpop.eup %11893 }
0x16c1   : > { %11899 = vpow2.f32 %v8108_v21  ;;  %v8088_v46 = vsub.f32 %v15836_v3, %v8071_v23  ;;  %v7340_v3 = vpop.permute.xlu0 %7339 }
0x16c2   : > { %11901 = vpow2.f32 %v8120_v10  ;;  %v7762_v21 = vadd.f32 %v15878_v48, %v7340_v3  ;;  %v7784_v10 = vpop.f32.mrb[57].mxu1 }
0x16c3   : > { %v15944_v41 = vpop.eup %11895  ;;  %v8118_v15 = vmul.f32 1.442695, %v8088_v46  ;;  %v15956_v23 = vpop.f32.mrb[58].mxu1 }
0x16c4   : > { %8142 = vadd.xlane.f32.xlu1 %v15944_v41  ;;  %v8067_v42 = vpop.xlane.xlu1 %8066  ;;  %8144 = vadd.xlane.f32.xlu0 %v15940_v56  ;;  %v7787_v58 = vpop.f32.mrb[59].mxu1 }
0x16c5   : > { %11903 = vpow2.f32 %v8118_v15  ;;  %v8086_v26 = vsub.f32 %v15842_v51, %v8067_v42  ;;  %v15970_v42 = vpop.f32.mrb[60].mxu1 }
0x16c6   : > { %11905 = vpow2.f32 %v8116_v62  ;;  %v7792_v3 = vpop.f32.mrb[61].mxu1 }
0x16c7   : > { %v15949_v28 = vpop.eup %11897  ;;  %v8114_v17 = vmul.f32 1.442695, %v8086_v26  ;;  %v9857_v3 = vld [vmem:[%s16568_s6 + $0x428] sm:$0xff] }
0x16c8   : > { %8138 = vadd.xlane.f32.xlu1 %v15949_v28  ;;  %v7335_v59 = vpop.permute.xlu1 %7334 }
0x16c9   : > { %11907 = vpow2.f32 %v8114_v17  ;;  %v7759_v55 = vadd.f32 %v15876_v25, %v7335_v59 }
0x16cb   : > { %v15958_v46 = vpop.eup %11899  ;;  %v7889_v51 = vpack.c.bf16 %v7762_v21, %v7759_v55  ;;  %v9859_v21 = vld [vmem:[%s16568_s6 + $0x438] sm:$0xff] }
0x16cc   : > { %v7345_v15 = vpop.permute.xlu1 %7344  ;;  %8140 = vadd.xlane.f32.xlu0 %v15958_v46  ;;  %v15964_v62 = vpop.eup %11901 }
0x16cd   : > { %v15962_v37 = vadd.f32 %v15892_v16, %v7345_v15  ;;  %11078 = vmatprep.mubr.bf16.mxu0 %v7889_v51  ;;  %v15977_v16 = vpop.f32.mrb[62].mxu1 }
0x16ce   : > { %v7795_v55 = vpop.f32.mrb[63].mxu1 }
0x16cf   : > { %v15966_v48 = vpop.eup %11903  ;;  %v15985_v10 = vpop.f32.mrb[64].mxu1 }
0x16d0   : > { %8150 = vadd.xlane.f32.xlu1 %v15966_v48  ;;  %v7350_v25 = vpop.permute.xlu1 %7349  ;;  %8152 = vadd.xlane.f32.xlu0 %v15964_v62  ;;  %v15975_v17 = vpop.eup %11905 }
0x16d1   : > { %v15973_v26 = vadd.f32 %v15897_v9, %v7350_v25  ;;  %v7800_v51 = vpop.f32.mrb[65].mxu1 }
0x16d2   : > { %v15987_v9 = vpop.f32.mrb[66].mxu1  ;;  %v9856_v51 = vld [vmem:[%s16568_s6 + $0x420] sm:$0xff] }
0x16d3   : > { %v15979_v59 = vpop.eup %11907  ;;  %v7803_v58 = vpop.f32.mrb[67].mxu1 }
0x16d4   : > { %8146 = vadd.xlane.f32.xlu1 %v15979_v59  ;;  %8148 = vadd.xlane.f32.xlu0 %v15975_v17  ;;  %v15989_v15 = vpop.f32.mrb[68].mxu1 }
0x16d5   : > { %v7808_v25 = vpop.f32.mrb[69].mxu1 }
0x16d6   : > { %v15994_v39 = vpop.f32.mrb[70].mxu1 }
0x16d7   : > { %v7811_v55 = vpop.f32.mrb[71].mxu1 }
0x16d8   : > { %v16002_v58 = vpop.f32.mrb[72].mxu1 }
0x16d9   : > { %v7816_v25 = vpop.f32.mrb[73].mxu1 }
0x16da   : > { %v16007_v8 = vpop.f32.mrb[74].mxu1 }
0x16db   : > { %v7819_v55 = vpop.f32.mrb[75].mxu1 }
0x16e5   : > { %7359 = vperm.xlu1 %11198, %v9857_v3   ;;  %v9858_v3 = vld [vmem:[%s16568_s6 + $0x430] sm:$0xff] }
0x16e9   : > { %7369 = vperm.xlu1 %11198, %v9859_v21   ;;  %v9860_v21 = vld [vmem:[%s16568_s6 + $0x440] sm:$0xff] }
0x16ea   : > { %7354 = vperm.xlu0 %11197, %v9856_v51   ;;  %v16018_v51 = vpop.f32.mrb[76].mxu1 }
0x16eb   : > { %v7824_v25 = vpop.f32.mrb[77].mxu1 }
0x16ec   : > { %v16023_v55 = vpop.f32.mrb[78].mxu1 }
0x16ed   : > { %7379 = vperm.xlu1 %11198, %v9861_v2   ;;  %v9862_v2 = vld [vmem:[%s16568_s6 + $0x450] sm:$0xff] }
0x16ee   : > { %7364 = vperm.xlu0 %11197, %v9858_v3   ;;  %v7827_v3 = vpop.f32.mrb[79].mxu1 }
0x16f1   : > { %7389 = vperm.xlu1 %11198, %v9863_v35   ;;  %v9864_v35 = vld [vmem:[%s16568_s6 + $0x460] sm:$0xff] }
0x16f2   : > { %7374 = vperm.xlu0 %11197, %v9860_v21   ;;  %v16034_v21 = vpop.f32.mrb[80].mxu1 }
0x16f3   : > { %v7832_v25 = vpop.f32.mrb[81].mxu1 }
0x16f4   : > { %v16039_v3 = vpop.f32.mrb[82].mxu1 }
0x16f5   : > { %7399 = vperm.xlu1 %11198, %v9865_v4   ;;  %v9866_v4 = vld [vmem:[%s16568_s6 + $0x470] sm:$0xff] }
0x16f6   : > { %7384 = vperm.xlu0 %11197, %v9862_v2   ;;  %v7835_v2 = vpop.f32.mrb[83].mxu1 }
0x16f9   : > { %7409 = vperm.xlu1 %11198, %v9867_v60   ;;  %v9868_v60 = vld [vmem:[%s16568_s6 + $0x480] sm:$0xff] }
0x16fa   : > { %7394 = vperm.xlu0 %11197, %v9864_v35   ;;  %v16050_v35 = vpop.f32.mrb[84].mxu1 }
0x16fb   : > { %v7840_v25 = vpop.f32.mrb[85].mxu1 }
0x16fc   : > { %v16055_v2 = vpop.f32.mrb[86].mxu1 }
0x16fd   : > { %7419 = vperm.xlu1 %11198, %v9869_v18   ;;  %v9870_v18 = vld [vmem:[%s16568_s6 + $0x490] sm:$0xff] }
0x16fe   : > { %7404 = vperm.xlu0 %11197, %v9866_v4   ;;  %v7843_v4 = vpop.f32.mrb[87].mxu1 }
0x1701   : > { %7429 = vperm.xlu1 %11198, %v9871_v22   ;;  %v9872_v22 = vld [vmem:[%s16568_s6 + $0x4a0] sm:$0xff] }
0x1702   : > { %7414 = vperm.xlu0 %11197, %v9868_v60   ;;  %v16066_v60 = vpop.f32.mrb[88].mxu1 }
0x1703   : > { %v7848_v25 = vpop.f32.mrb[89].mxu1 }
0x1704   : > { %v16071_v4 = vpop.f32.mrb[90].mxu1  ;;  %v9876_v25 = vld [vmem:[%s16568_s6 + $0x4c0] sm:$0xff] }
0x1705   : > { %7439 = vperm.xlu1 %11198, %v9873_v44   ;;  %v9874_v44 = vld [vmem:[%s16568_s6 + $0x4b0] sm:$0xff] }
0x1706   : > { %7424 = vperm.xlu0 %11197, %v9870_v18   ;;  %v7851_v18 = vpop.f32.mrb[91].mxu1 }
0x1707   : > { %v16076_v13 = vpop.f32.mrb[92].mxu1 }
0x1708   : > { %v7856_v19 = vpop.f32.mrb[93].mxu1 }
0x1709   : > { %7449 = vperm.xlu1 %11198, %v9875_v14   ;;  %v9879_v14 = vld [vmem:[%s16568_s6 + $0x4d8] sm:$0xff]  ;;  %v9881_v19 = vld [vmem:[%s16568_s6 + $0x4e8] sm:$0xff] }
0x170a   : > { %7434 = vperm.xlu0 %11197, %v9872_v22   ;;  %v16081_v22 = vpop.f32.mrb[94].mxu1 }
0x170b   : > { %v7859_v57 = vpop.f32.mrb[95].mxu1 }
0x170c   : > { %v16086_v36 = vpop.f32.mrb[96].mxu1 }
0x170d   : > { %7459 = vperm.xlu1 %11198, %v9877_v33   ;;  %v7864_v18 = vpop.f32.mrb[97].mxu1 }
0x170e   : > { %7444 = vperm.xlu0 %11197, %v9874_v44   ;;  %v16091_v33 = vpop.f32.mrb[98].mxu1  ;;  %v9878_v44 = vld [vmem:[%s16568_s6 + $0x4d0] sm:$0xff]  ;;  %v9880_v18 = vld [vmem:[%s16568_s6 + $0x4e0] sm:$0xff] }
0x170f   : > { %v7867_v11 = vpop.f32.mrb[99].mxu1 }
0x1710   : > { %v16096_v6 = vpop.f32.mrb[100].mxu1 }
0x1711   : > { %7469 = vperm.xlu1 %11198, %v9879_v14   ;;  %v7872_v57 = vpop.f32.mrb[101].mxu1  ;;  %v9883_v14 = vld [vmem:[%s16568_s6 + $0x4f8] sm:$0xff] }
0x1712   : > { %7454 = vperm.xlu0 %11197, %v9876_v25   ;;  %v16101_v25 = vpop.f32.mrb[102].mxu1  ;;  %v9882_v57 = vld [vmem:[%s16568_s6 + $0x4f0] sm:$0xff] }
0x1713   : > { %v7875_v34 = vpop.f32.mrb[103].mxu1 }
0x1714   : > { %v16106_v45 = vpop.f32.mrb[104].mxu1  ;;  %v9967_v34 = vld [vmem:[%s16570_s8 + $0x318] sm:$0xff] }
0x1715   : > { %7479 = vperm.xlu1 %11198, %v9881_v19   ;;  %v7880_v11 = vpop.f32.mrb[105].mxu1  ;;  %v9965_v19 = vld [vmem:[%s16570_s8 + $0x308] sm:$0xff] }
0x1716   : > { %7464 = vperm.xlu0 %11197, %v9878_v44   ;;  %v16111_v44 = vpop.f32.mrb[106].mxu1  ;;  %v9971_v11 = vld [vmem:[%s16570_s8 + $0x338] sm:$0xff] }
0x1717   : > { %v7883_v47 = vpop.f32.mrb[107].mxu1 }
0x1718   : > { %v9966_v47 = vld [vmem:[%s16570_s8 + $0x310] sm:$0xff] }
0x1719   : > { %7489 = vperm.xlu1 %11198, %v9883_v14   ;;  %v9964_v14 = vld [vmem:[%s16570_s8 + $0x300] sm:$0xff] }
0x171a   : > { %7474 = vperm.xlu0 %11197, %v9880_v18   ;;  %v9969_v18 = vld [vmem:[%s16570_s8 + $0x328] sm:$0xff] }
0x171d   : > { %8531 = vperm.xlu1 %11198, %v9965_v19   ;;  %v9968_v19 = vld [vmem:[%s16570_s8 + $0x320] sm:$0xff] }
0x171e   : > { %7484 = vperm.xlu0 %11197, %v9882_v57   ;;  %v9973_v57 = vld [vmem:[%s16570_s8 + $0x348] sm:$0xff] }
0x1721   : > { %8541 = vperm.xlu1 %11198, %v9967_v34   ;;  %v9970_v34 = vld [vmem:[%s16570_s8 + $0x330] sm:$0xff] }
0x1722   : > { %8526 = vperm.xlu0 %11197, %v9964_v14   ;;  %v9975_v14 = vld [vmem:[%s16570_s8 + $0x358] sm:$0xff] }
0x1725   : > { %8551 = vperm.xlu1 %11198, %v9969_v18   ;;  %v9972_v18 = vld [vmem:[%s16570_s8 + $0x340] sm:$0xff] }
0x1726   : > { %8536 = vperm.xlu0 %11197, %v9966_v47   ;;  %v9977_v47 = vld [vmem:[%s16570_s8 + $0x368] sm:$0xff] }
0x1729   : > { %8561 = vperm.xlu1 %11198, %v9971_v11   ;;  %v9974_v11 = vld [vmem:[%s16570_s8 + $0x350] sm:$0xff] }
0x172a   : > { %8546 = vperm.xlu0 %11197, %v9968_v19  }
0x172d   : > { %8571 = vperm.xlu1 %11198, %v9973_v57   ;;  %v9979_v57 = vld [vmem:[%s16570_s8 + $0x378] sm:$0xff] }
0x172e   : > { %8556 = vperm.xlu0 %11197, %v9970_v34   ;;  %v9976_v34 = vld [vmem:[%s16570_s8 + $0x360] sm:$0xff] }
0x1731   : > { %8581 = vperm.xlu1 %11198, %v9975_v14  }
0x1732   : > { %8566 = vperm.xlu0 %11197, %v9972_v18  }
0x1735   : > { %8591 = vperm.xlu1 %11198, %v9977_v47   ;;  %v8127_v19 = vpop.xlane.xlu1 %8126  ;;  %v9978_v47 = vld [vmem:[%s16570_s8 + $0x370] sm:$0xff] }
0x1736   : > { %8576 = vperm.xlu0 %11197, %v9974_v11  }
0x1737   : > { %v8129_v14 = vpop.xlane.xlu0 %8128 }
0x1738   : > { %11909 = vrcp.f32 %v8129_v14 }
0x1739   : > { %8601 = vperm.xlu1 %11198, %v9979_v57   ;;  %v8123_v18 = vpop.xlane.xlu1 %8122  ;;  %v9983_v57 = vld [vmem:[%s16570_s8 + $0x398] sm:$0xff] }
0x173a   : > { %8586 = vperm.xlu0 %11197, %v9976_v34   ;;  %11911 = vrcp.f32 %v8123_v18  ;;  %v9980_v34 = vld [vmem:[%s16570_s8 + $0x380] sm:$0xff]  ;;  %v9985_v18 = vld [vmem:[%s16570_s8 + $0x3a8] sm:$0xff] }
0x173b   : > { %11913 = vrcp.f32 %v8127_v19 }
0x173d   : > { %8611 = vperm.xlu1 %11198, %v9981_v38   ;;  %v8125_v11 = vpop.xlane.xlu0 %8124  ;;  %v9982_v38 = vld [vmem:[%s16570_s8 + $0x390] sm:$0xff] }
0x173e   : > { %11915 = vrcp.f32 %v8125_v11  ;;  %8596 = vperm.xlu0 %11197, %v9978_v47  }
0x1741   : > { %8621 = vperm.xlu1 %11198, %v9983_v57   ;;  %v8135_v14 = vpop.xlane.xlu1 %8134  ;;  %v9987_v57 = vld [vmem:[%s16570_s8 + $0x3b8] sm:$0xff] }
0x1742   : > { %8606 = vperm.xlu0 %11197, %v9980_v34   ;;  %v11910_v19 = vpop.eup %11909  ;;  %v9984_v34 = vld [vmem:[%s16570_s8 + $0x3a0] sm:$0xff] }
0x1743   : > { %v8173_v20 = vmul.f32 %v11910_v19, %v15907_v53 }
0x1744   : > { %v11912_v11 = vpop.eup %11911 }
0x1745   : > { %8631 = vperm.xlu1 %11198, %v9985_v18   ;;  %v8131_v47 = vpop.xlane.xlu1 %8130  ;;  %v11914_v54 = vpop.eup %11913  ;;  %v8170_v52 = vmul.f32 %v11912_v11, %v15911_v32 }
0x1746   : > { %11917 = vrcp.f32 %v8131_v47  ;;  %8616 = vperm.xlu0 %11197, %v9982_v38   ;;  %v9989_v38 = vld [vmem:[%s16570_s8 + $0x3c8] sm:$0xff] }
0x1748   : > { %v11916_v0 = vpop.eup %11915 }
0x1749   : > { %8641 = vperm.xlu1 %11198, %v9987_v57   ;;  %v8137_v24 = vpop.xlane.xlu0 %8136  ;;  %v8171_v18 = vmul.f32 %v11916_v0, %v15915_v12  ;;  %v8172_v57 = vmul.f32 %v11914_v54, %v15904_v27  ;;  %v9988_v54 = vld [vmem:[%s16570_s8 + $0x3c0] sm:$0xff] }
0x174a   : > { %8626 = vperm.xlu0 %11197, %v9984_v34   ;;  %11919 = vrcp.f32 %v8137_v24 }
0x174b   : > { %v8186_v47 = vadd.f32 %v8171_v18, %v8170_v52  ;;  %v8207_v43 = vpack.c.bf16 %v8171_v18, %v8170_v52  ;;  %11921 = vrcp.f32 %v8135_v14  ;;  %v8208_v53 = vpack.c.bf16 %v8173_v20, %v8172_v57  ;;  %v9991_v52 = vld [vmem:[%s16570_s8 + $0x3d8] sm:$0xff] }
0x174d   : > { %8651 = vperm.xlu1 %11198, %v9989_v38   ;;  %11062 = vmatprep.subr.bf16.mxu0 %v8207_v43  ;;  %v8133_v0 = vpop.xlane.xlu0 %8132  ;;  %v8187_v32 = vadd.f32 %v8186_v47, %v8172_v57  ;;  %v9992_v38 = vld [vmem:[%s16570_s8 + $0x3e0] sm:$0xff] }
0x174e   : > { %11923 = vrcp.f32 %v8133_v0  ;;  %8636 = vperm.xlu0 %11197, %v9986_v7   ;;  %11063 = vmatpush3.bf16.msra.mxu0 %v8207_v43  ;;  %v9993_v7 = vld [vmem:[%s16570_s8 + $0x3e8] sm:$0xff]  ;;  %v9990_v43 = vld [vmem:[%s16570_s8 + $0x3d0] sm:$0xff] }
0x174f   : > { %v8188_v12 = vadd.f32 %v8187_v32, %v8173_v20  ;;  %11064 = vmatprep.subr.bf16.mxu0 %v8208_v53 }
0x1750   : > { %v11918_v24 = vpop.eup %11917 }
0x1751   : > { %8661 = vperm.xlu1 %11198, %v9991_v52   ;;  %v8143_v27 = vpop.xlane.xlu1 %8142  ;;  %v8174_v14 = vmul.f32 %v11918_v24, %v15924_v49  ;;  %v8145_v19 = vpop.xlane.xlu0 %8144  ;;  %v9995_v49 = vld [vmem:[%s16570_s8 + $0x3f8] sm:$0xff] }
0x1752   : > { %8646 = vperm.xlu0 %11197, %v9988_v54   ;;  %11065 = vmatpush3.bf16.msra.mxu0 %v8208_v53 }
0x1753   : > { %v8189_v20 = vadd.f32 %v8188_v12, %v8174_v14  ;;  %v9994_v12 = vld [vmem:[%s16570_s8 + $0x3f0] sm:$0xff] }
0x1754   : > { %v11920_v34 = vpop.eup %11919 }
0x1755   : > { %8671 = vperm.xlu1 %11198, %v9993_v7   ;;  %v8139_v11 = vpop.xlane.xlu1 %8138  ;;  %v11922_v18 = vpop.eup %11921  ;;  %v8177_v32 = vmul.f32 %v11920_v34, %v15928_v1 }
0x1756   : > { %11925 = vrcp.f32 %v8139_v11  ;;  %8656 = vperm.xlu0 %11197, %v9990_v43   ;;  %v8176_v54 = vmul.f32 %v11922_v18, %v15920_v63 }
0x1757   : > { %11927 = vrcp.f32 %v8143_v27 }
0x1758   : > { %v11924_v47 = vpop.eup %11923  ;;  %11929 = vrcp.f32 %v8145_v19  ;;  %v8210_v43 = vpack.c.bf16 %v8177_v32, %v8176_v54 }
0x1759   : > { %8681 = vperm.xlu1 %11198, %v9995_v49   ;;  %v8141_v57 = vpop.xlane.xlu0 %8140  ;;  %v8175_v0 = vmul.f32 %v11924_v47, %v15933_v30 }
0x175a   : > { %11931 = vrcp.f32 %v8141_v57  ;;  %8666 = vperm.xlu0 %11197, %v9992_v38  }
0x175b   : > { %v8190_v53 = vadd.f32 %v8189_v20, %v8175_v0  ;;  %v8209_v52 = vpack.c.bf16 %v8175_v0, %v8174_v14 }
0x175d   : > { %v8151_v24 = vpop.xlane.xlu1 %8150  ;;  %11066 = vmatprep.subr.bf16.mxu0 %v8209_v52  ;;  %v8153_v27 = vpop.xlane.xlu0 %8152  ;;  %v8191_v7 = vadd.f32 %v8190_v53, %v8176_v54 }
0x175e   : > { %8676 = vperm.xlu0 %11197, %v9994_v12   ;;  %11067 = vmatpush3.bf16.msra.mxu0 %v8209_v52  ;;  %11933 = vrcp.f32 %v8151_v24 }
0x175f   : > { %v8192_v30 = vadd.f32 %v8191_v7, %v8177_v32  ;;  %11068 = vmatprep.subr.bf16.mxu0 %v8210_v43  ;;  %11935 = vrcp.f32 %v8153_v27 }
0x1760   : > { %v11926_v1 = vpop.eup %11925 }
0x1761   : > { %v11928_v19 = vpop.eup %11927  ;;  %v8147_v14 = vpop.xlane.xlu1 %8146  ;;  %v8178_v11 = vmul.f32 %v11926_v1, %v15949_v28 }
0x1762   : > { %v8149_v20 = vpop.xlane.xlu0 %8148  ;;  %v11930_v34 = vpop.eup %11929  ;;  %11937 = vrcp.f32 %v8147_v14  ;;  %11069 = vmatpush3.bf16.msra.mxu0 %v8210_v43  ;;  %v8180_v47 = vmul.f32 %v11928_v19, %v15944_v41 }
0x1763   : > { %11939 = vrcp.f32 %v8149_v20  ;;  %v8193_v63 = vadd.f32 %v8192_v30, %v8178_v11  ;;  %v8181_v57 = vmul.f32 %v11930_v34, %v15940_v56 }
0x1764   : > { %v11932_v49 = vpop.eup %11931 }
0x1765   : > { %v7360_v18 = vpop.permute.xlu1 %7359  ;;  %v8179_v38 = vmul.f32 %v11932_v49, %v15958_v46  ;;  %v8212_v28 = vpack.c.bf16 %v8181_v57, %v8180_v47 }
0x1766   : > { %v7778_v24 = vadd.f32 %v15942_v5, %v7360_v18 }
0x1767   : > { %v8194_v0 = vadd.f32 %v8193_v63, %v8179_v38  ;;  %v8211_v32 = vpack.c.bf16 %v8179_v38, %v8178_v11 }
0x1768   : > { %v11934_v54 = vpop.eup %11933 }
0x1769   : > { %v7370_v53 = vpop.permute.xlu1 %7369  ;;  %11070 = vmatprep.subr.bf16.mxu0 %v8211_v32  ;;  %v7355_v52 = vpop.permute.xlu0 %7354  ;;  %v8195_v12 = vadd.f32 %v8194_v0, %v8180_v47  ;;  %v8184_v14 = vmul.f32 %v11934_v54, %v15966_v48 }
0x176a   : > { %v7775_v27 = vadd.f32 %v15937_v29, %v7355_v52  ;;  %11071 = vmatpush3.bf16.msra.mxu0 %v8211_v32  ;;  %v11936_v7 = vpop.eup %11935  ;;  %v7786_v20 = vadd.f32 %v15956_v23, %v7370_v53 }
0x176b   : > { %v8196_v43 = vadd.f32 %v8195_v12, %v8181_v57  ;;  %11072 = vmatprep.subr.bf16.mxu0 %v8212_v28  ;;  %v8185_v5 = vmul.f32 %v11936_v7, %v15964_v62 }
0x176c   : > { %v11938_v46 = vpop.eup %11937  ;;  %v7891_v41 = vpack.c.bf16 %v7778_v24, %v7775_v27 }
0x176d   : > { %v11940_v30 = vpop.eup %11939  ;;  %v7380_v56 = vpop.permute.xlu1 %7379  ;;  %v8182_v19 = vmul.f32 %v11938_v46, %v15979_v59  ;;  %v8214_v59 = vpack.c.bf16 %v8185_v5, %v8184_v14 }
0x176e   : > { %v7365_v1 = vpop.permute.xlu0 %7364  ;;  %11073 = vmatpush3.bf16.msra.mxu0 %v8212_v28  ;;  %v8183_v29 = vmul.f32 %v11940_v30, %v15975_v17  ;;  %v7794_v57 = vadd.f32 %v15977_v16, %v7380_v56 }
0x176f   : > { %v7783_v11 = vadd.f32 %v15952_v40, %v7365_v1  ;;  %v8197_v34 = vadd.f32 %v8196_v43, %v8182_v19 }
0x1770   : > { %v8213_v49 = vpack.c.bf16 %v8183_v29, %v8182_v19 }
0x1771   : > { %v7892_v63 = vpack.c.bf16 %v7786_v20, %v7783_v11  ;;  %v7390_v18 = vpop.permute.xlu1 %7389  ;;  %v8198_v38 = vadd.f32 %v8197_v34, %v8183_v29 }
0x1772   : > { %v7375_v47 = vpop.permute.xlu0 %7374  ;;  %11074 = vmatprep.subr.bf16.mxu0 %v8213_v49  ;;  %v7802_v32 = vadd.f32 %v15987_v9, %v7390_v18 }
0x1773   : > { %v7791_v48 = vadd.f32 %v15970_v42, %v7375_v47  ;;  %11075 = vmatpush3.bf16.msra.mxu0 %v8213_v49  ;;  %v8199_v23 = vadd.f32 %v8198_v38, %v8184_v14  ;;  %v17227_v42 = vpack.c.bf16 %v15973_v26, %v15962_v37 }
0x1774   : > { %11076 = vmatprep.subr.bf16.mxu0 %v8214_v59 }
0x1775   : > { %v7893_v40 = vpack.c.bf16 %v7794_v57, %v7791_v48  ;;  %v16231_v0 = vadd.f32 %v8199_v23, %v8185_v5  ;;  %v7400_v17 = vpop.permute.xlu1 %7399 }
0x1776   : > { %v7385_v62 = vpop.permute.xlu0 %7384  ;;  %v7810_v28 = vadd.f32 %v15994_v39, %v7400_v17 }
0x1777   : > { %v7799_v53 = vadd.f32 %v15985_v10, %v7385_v62  ;;  %11077 = vmatpush3.bf16.msra.mxu0 %v8214_v59 }
0x1779   : > { %v7894_v52 = vpack.c.bf16 %v7802_v32, %v7799_v53  ;;  %v7410_v12 = vpop.permute.xlu1 %7409 }
0x177a   : > { %v7395_v16 = vpop.permute.xlu0 %7394  ;;  %11079 = vmatmul.mubr.bf16.vlgmr.msra.gmra.mrb[148].mxu0 %v17227_v42  ;;  %v7818_v9 = vadd.f32 %v16007_v8, %v7410_v12 }
0x177b   : > { %v7807_v54 = vadd.f32 %v15989_v15, %v7395_v16  ;;  %11082 = vmatprep.mubr.bf16.mxu0 %v7891_v41 }
0x177d   : > { %v7895_v24 = vpack.c.bf16 %v7810_v28, %v7807_v54  ;;  %v7420_v27 = vpop.permute.xlu1 %7419 }
0x177e   : > { %v7405_v7 = vpop.permute.xlu0 %7404  ;;  %v7826_v56 = vadd.f32 %v16023_v55, %v7420_v27 }
0x177f   : > { %v7815_v10 = vadd.f32 %v16002_v58, %v7405_v7 }
0x1781   : > { %v7896_v43 = vpack.c.bf16 %v7818_v9, %v7815_v10  ;;  %v7430_v46 = vpop.permute.xlu1 %7429  ;;  %v17228_v10 = vld [vmem:[#allocation10_spill] sm:$0xff] }
0x1782   : > { %v7415_v30 = vpop.permute.xlu0 %7414  ;;  %11083 = vmatmul.mubr.bf16.gmra.mrb[152].mxu0 %v7892_v63  ;;  %v7834_v41 = vadd.f32 %v16039_v3, %v7430_v46 }
0x1783   : > { %v7823_v39 = vadd.f32 %v16018_v51, %v7415_v30  ;;  %11086 = vmatprep.mubr.bf16.mxu0 %v7893_v40 }
0x1785   : > { %v7897_v37 = vpack.c.bf16 %v7826_v56, %v7823_v39  ;;  %v7440_v26 = vpop.permute.xlu1 %7439 }
0x1786   : > { %v7425_v15 = vpop.permute.xlu0 %7424  ;;  %v7842_v58 = vadd.f32 %v16055_v2, %v7440_v26 }
0x1787   : > { %v7831_v1 = vadd.f32 %v16034_v21, %v7425_v15 }
0x1789   : > { %v7898_v19 = vpack.c.bf16 %v7834_v41, %v7831_v1  ;;  %v7450_v8 = vpop.permute.xlu1 %7449 }
0x178a   : > { %v7435_v14 = vpop.permute.xlu0 %7434  ;;  %11087 = vmatmul.mubr.bf16.gmra.mrb[156].mxu0 %v7894_v52  ;;  %v7850_v29 = vadd.f32 %v16071_v4, %v7450_v8  ;;  %v17229_v8 = vld [vmem:[#allocation21_spill] sm:$0xff] }
0x178b   : > { %v7839_v20 = vadd.f32 %v16050_v35, %v7435_v14  ;;  %11090 = vmatprep.mubr.bf16.mxu0 %v7895_v24 }
0x178d   : > { %v7899_v55 = vpack.c.bf16 %v7842_v58, %v7839_v20  ;;  %v7460_v11 = vpop.permute.xlu1 %7459  ;;  %v17230_v58 = vld [vmem:[#allocation16_spill] sm:$0xff] }
0x178e   : > { %v7445_v51 = vpop.permute.xlu0 %7444  ;;  %v7858_v21 = vadd.f32 %v16081_v22, %v7460_v11 }
0x178f   : > { %v7847_v5 = vadd.f32 %v16066_v60, %v7445_v51  ;;  %v17232_v51 = vld [vmem:[#allocation20_spill] sm:$0xff] }
0x1791   : > { %v7900_v34 = vpack.c.bf16 %v7850_v29, %v7847_v5  ;;  %v7470_v3 = vpop.permute.xlu1 %7469 }
0x1792   : > { %v7455_v63 = vpop.permute.xlu0 %7454  ;;  %11091 = vmatmul.mubr.bf16.gmra.mrb[160].mxu0 %v7896_v43  ;;  %v7866_v38 = vadd.f32 %v16091_v33, %v7470_v3 }
0x1793   : > { %v7855_v49 = vadd.f32 %v16076_v13, %v7455_v63  ;;  %11094 = vmatprep.mubr.bf16.mxu0 %v7897_v37 }
0x1795   : > { %v7901_v2 = vpack.c.bf16 %v7858_v21, %v7855_v49  ;;  %v7480_v18 = vpop.permute.xlu1 %7479 }
0x1796   : > { %v7465_v35 = vpop.permute.xlu0 %7464  ;;  %v7874_v60 = vadd.f32 %v16101_v25, %v7480_v18 }
0x1797   : > { %v7863_v47 = vadd.f32 %v16086_v36, %v7465_v35  ;;  %v11633_v36 = vld [vmem:[%s16569_s7 + $0x304] ss:$8 sps:$4 sm:$0xff]  }
0x1798   : > { %8876 = vmatprep.mubr.bf16.mxu1 %v11633_v36 }
0x1799   : > { %v7902_v57 = vpack.c.bf16 %v7866_v38, %v7863_v47  ;;  %v7490_v59 = vpop.permute.xlu1 %7489  ;;  %v17233_v47 = vld [vmem:[#allocation29_spill] sm:$0xff] }
0x179a   : > { %v7475_v4 = vpop.permute.xlu0 %7474  ;;  %11095 = vmatmul.mubr.bf16.gmra.mrb[164].mxu0 %v7898_v19  ;;  %v7882_v13 = vadd.f32 %v16111_v44, %v7490_v59 }
0x179b   : > { %v7871_v48 = vadd.f32 %v16096_v6, %v7475_v4  ;;  %11098 = vmatprep.mubr.bf16.mxu0 %v7899_v55  ;;  %v8201_v6 = vrot.slane %v16231_v0, 4  ;;  %v17231_v55 = vld [vmem:[#allocation11_spill] sm:$0xff]  ;;  %v17234_v4 = vld [vmem:[#allocation24_spill] sm:$0xff] }
0x179d   : > { %v7903_v22 = vpack.c.bf16 %v7874_v60, %v7871_v48  ;;  %v8202_v33 = vadd.f32 %v8201_v6, %v16231_v0  ;;  %v17235_v48 = vld [vmem:[#allocation17_spill] sm:$0xff] }
0x179e   : > { %v7485_v23 = vpop.permute.xlu0 %7484 }
0x179f   : > { %v7879_v40 = vadd.f32 %v16106_v45, %v7485_v23  ;;  %v8203_v25 = vrot.slane %v8202_v33, 2 }
0x17a1   : > { %v7904_v17 = vpack.c.bf16 %v7882_v13, %v7879_v40  ;;  %v8204_v62 = vadd.f32 %v8203_v25, %v8202_v33 }
0x17a2   : > { %11099 = vmatmul.mubr.bf16.gmra.mrb[168].mxu0 %v7900_v34 }
0x17a3   : > { %11102 = vmatprep.mubr.bf16.mxu0 %v7901_v2  ;;  %v8205_v44 = vrot.slane %v8204_v62, 1 }
0x17a5   : > { %v8206_v32 = vadd.f32 %v8205_v44, %v8204_v62 }
0x17a7   : > { %v8376_v45 = vadd.f32 1e-09, %v8206_v32 }
0x17a9   : > { %11941 = vrcp.f32 %v8376_v45  ;;  %v17237_v45 = vld [vmem:[#allocation37_spill] sm:$0xff] }
0x17aa   : > { %11103 = vmatmul.mubr.bf16.gmra.mrb[172].mxu0 %v7902_v57 }
0x17ab   : > { %11106 = vmatprep.mubr.bf16.mxu0 %v7903_v22  ;;  %v17236_v22 = vld [vmem:[#allocation28_spill] sm:$0xff] }
0x17b2   : > { %11107 = vmatmul.mubr.bf16.gmra.mrb[176].mxu0 %v7904_v17 }
0x17b3   : > { %v16263_v53 = vpop.eup %11941 }
0x184d   : > { %v11080_v52 = vpop.f32.mrb[148].mxu0 }
0x184e   : > { %v8380_v12 = vmul.f32 %v16263_v53, %v11080_v52  ;;  %v8249_v16 = vpop.f32.mrb[149].mxu0 }
0x184f   : > { %v8378_v28 = vmul.f32 %v16263_v53, %v8249_v16  ;;  %v11081_v42 = vpop.f32.mrb[150].mxu0 }
0x1850   : > { %v8381_v54 = vmul.f32 %v16263_v53, %v11081_v42  ;;  %v8252_v24 = vpop.f32.mrb[151].mxu0  ;;  %v8445_v27 = vsub.f32 %v15516_v50, %v8380_v12  ;;  %v17238_v12 = vld [vmem:[#allocation32_spill] sm:$0xff] }
0x1851   : > { %v8379_v0 = vmul.f32 %v16263_v53, %v8252_v24  ;;  %v8443_v9 = vsub.f32 %v15503_v31, %v8378_v28  ;;  %v17239_v28 = vld [vmem:[#allocation25_spill] sm:$0xff] }
0x1852   : > { %v8446_v7 = vsub.f32 %v15520_v61, %v8381_v54  ;;  %v17240_v54 = vld [vmem:[#allocation36_spill] sm:$0xff] }
0x1853   : > { %v8444_v43 = vsub.f32 %v17228_v10, %v8379_v0 }
0x1854   : > { %v16273_v46 = vpack.c.bf16 %v8446_v7, %v8445_v27 }
0x1855   : > { %v16275_v30 = vpack.c.bf16 %v8444_v43, %v8443_v9  ;;  %v11084_v56 = vpop.f32.mrb[152].mxu0 }
0x1856   : > { %v8384_v39 = vmul.f32 %v16263_v53, %v11084_v56  ;;  %v8265_v37 = vpop.f32.mrb[153].mxu0 }
0x1857   : > { %v8382_v26 = vmul.f32 %v16263_v53, %v8265_v37  ;;  %v11085_v15 = vpop.f32.mrb[154].mxu0 }
0x1858   : > { %v8385_v41 = vmul.f32 %v16263_v53, %v11085_v15  ;;  %v8268_v1 = vpop.f32.mrb[155].mxu0  ;;  %v8449_v14 = vsub.f32 %v17229_v8, %v8384_v39 }
0x1859   : > { %v8383_v19 = vmul.f32 %v16263_v53, %v8268_v1  ;;  %v8447_v11 = vsub.f32 %v17231_v55, %v8382_v26 }
0x185a   : > { %v8450_v20 = vsub.f32 %v17230_v58, %v8385_v41  ;;  %v17241_v41 = vld [vmem:[#allocation45_spill] sm:$0xff] }
0x185b   : > { %v8448_v29 = vsub.f32 %v17232_v51, %v8383_v19  ;;  %v17242_v19 = vld [vmem:[#allocation40_spill] sm:$0xff] }
0x185c   : > { %v16285_v5 = vpack.c.bf16 %v8450_v20, %v8449_v14  ;;  %v17243_v20 = vld [vmem:[#allocation33_spill] sm:$0xff] }
0x185d   : > { %v16287_v34 = vpack.c.bf16 %v8448_v29, %v8447_v11  ;;  %v11088_v3 = vpop.f32.mrb[156].mxu0  ;;  %v17244_v29 = vld [vmem:[#allocation44_spill] sm:$0xff] }
0x185e   : > { %v8388_v63 = vmul.f32 %v16263_v53, %v11088_v3  ;;  %v8281_v21 = vpop.f32.mrb[157].mxu0 }
0x185f   : > { %v8386_v49 = vmul.f32 %v16263_v53, %v8281_v21  ;;  %v11089_v2 = vpop.f32.mrb[158].mxu0 }
0x1860   : > { %v8389_v18 = vmul.f32 %v16263_v53, %v11089_v2  ;;  %v8284_v35 = vpop.f32.mrb[159].mxu0  ;;  %v8453_v57 = vsub.f32 %v17233_v47, %v8388_v63 }
0x1861   : > { %v8387_v38 = vmul.f32 %v16263_v53, %v8284_v35  ;;  %v8451_v59 = vsub.f32 %v17235_v48, %v8386_v49 }
0x1862   : > { %v8454_v60 = vsub.f32 %v17234_v4, %v8389_v18 }
0x1863   : > { %v8452_v23 = vsub.f32 %v17236_v22, %v8387_v38 }
0x1864   : > { %v16297_v13 = vpack.c.bf16 %v8454_v60, %v8453_v57 }
0x1865   : > { %v16299_v40 = vpack.c.bf16 %v8452_v23, %v8451_v59  ;;  %v11092_v17 = vpop.f32.mrb[160].mxu0  ;;  %v17245_v23 = vld [vmem:[#allocation53_spill] sm:$0xff] }
0x1866   : > { %v8392_v36 = vmul.f32 %v16263_v53, %v11092_v17  ;;  %v8297_v6 = vpop.f32.mrb[161].mxu0 }
0x1867   : > { %v8390_v33 = vmul.f32 %v16263_v53, %v8297_v6  ;;  %v11093_v25 = vpop.f32.mrb[162].mxu0 }
0x1868   : > { %v8393_v62 = vmul.f32 %v16263_v53, %v11093_v25  ;;  %v8300_v44 = vpop.f32.mrb[163].mxu0  ;;  %v8457_v52 = vsub.f32 %v17237_v45, %v8392_v36  ;;  %v17246_v36 = vld [vmem:[#allocation48_spill] sm:$0xff] }
0x1869   : > { %v8391_v32 = vmul.f32 %v16263_v53, %v8300_v44  ;;  %v8455_v42 = vsub.f32 %v17239_v28, %v8390_v33  ;;  %v17247_v33 = vld [vmem:[#allocation41_spill] sm:$0xff] }
0x186a   : > { %v8458_v16 = vsub.f32 %v17238_v12, %v8393_v62  ;;  %v17248_v62 = vld [vmem:[#allocation52_spill] sm:$0xff] }
0x186b   : > { %v8456_v24 = vsub.f32 %v17240_v54, %v8391_v32 }
0x186c   : > { %v16309_v0 = vpack.c.bf16 %v8458_v16, %v8457_v52 }
0x186d   : > { %v16311_v27 = vpack.c.bf16 %v8456_v24, %v8455_v42  ;;  %v11096_v7 = vpop.f32.mrb[164].mxu0 }
0x186e   : > { %v8396_v9 = vmul.f32 %v16263_v53, %v11096_v7  ;;  %v8313_v43 = vpop.f32.mrb[165].mxu0 }
0x186f   : > { %v8394_v56 = vmul.f32 %v16263_v53, %v8313_v43  ;;  %v11097_v39 = vpop.f32.mrb[166].mxu0 }
0x1870   : > { %v8397_v37 = vmul.f32 %v16263_v53, %v11097_v39  ;;  %v8316_v26 = vpop.f32.mrb[167].mxu0  ;;  %v8461_v1 = vsub.f32 %v17241_v41, %v8396_v9  ;;  %v17249_v39 = vld [vmem:[#allocation61_spill] sm:$0xff] }
0x1871   : > { %v8395_v15 = vmul.f32 %v16263_v53, %v8316_v26  ;;  %v8459_v11 = vsub.f32 %v17243_v20, %v8394_v56 }
0x1872   : > { %v8462_v14 = vsub.f32 %v17242_v19, %v8397_v37  ;;  %v17250_v37 = vld [vmem:[#allocation56_spill] sm:$0xff] }
0x1873   : > { %v8460_v3 = vsub.f32 %v17244_v29, %v8395_v15  ;;  %v17251_v15 = vld [vmem:[#allocation49_spill] sm:$0xff] }
0x1874   : > { %v8484_v63 = vpack.c.bf16 %v8462_v14, %v8461_v1  ;;  %v17252_v14 = vld [vmem:[#allocation60_spill] sm:$0xff] }
0x1875   : > { %v11100_v21 = vpop.f32.mrb[168].mxu0  ;;  %v8483_v49 = vpack.c.bf16 %v8460_v3, %v8459_v11 }
0x1876   : > { %v8400_v2 = vmul.f32 %v16263_v53, %v11100_v21  ;;  %v8329_v18 = vpop.f32.mrb[169].mxu0 }
0x1877   : > { %v8398_v35 = vmul.f32 %v16263_v53, %v8329_v18  ;;  %v11101_v38 = vpop.f32.mrb[170].mxu0  ;;  %10660 = vmatprep.subr.bf16.mxu1 %v8483_v49 }
0x1878   : > { %v8401_v57 = vmul.f32 %v16263_v53, %v11101_v38  ;;  %v8332_v60 = vpop.f32.mrb[171].mxu0  ;;  %10661 = vmatpush3.bf16.msra.mxu1 %v16275_v30  ;;  %v8465_v17 = vsub.f32 %v17245_v23, %v8400_v2 }
0x1879   : > { %v8399_v59 = vmul.f32 %v16263_v53, %v8332_v60  ;;  %10662 = vmatprep.subr.bf16.mxu1 %v8484_v63  ;;  %v8463_v25 = vsub.f32 %v17247_v33, %v8398_v35  ;;  %v17253_v60 = vld [vmem:[#allocation69_spill] sm:$0xff] }
0x187a   : > { %v8466_v6 = vsub.f32 %v17246_v36, %v8401_v57 }
0x187b   : > { %v8464_v44 = vsub.f32 %v17248_v62, %v8399_v59  ;;  %v17254_v59 = vld [vmem:[#allocation64_spill] sm:$0xff] }
0x187c   : > { %10663 = vmatpush3.bf16.msra.mxu1 %v16273_v46  ;;  %v8486_v32 = vpack.c.bf16 %v8466_v6, %v8465_v17  ;;  %v17255_v6 = vld [vmem:[#allocation57_spill] sm:$0xff] }
0x187d   : > { %v11104_v52 = vpop.f32.mrb[172].mxu0  ;;  %v8485_v16 = vpack.c.bf16 %v8464_v44, %v8463_v25  ;;  %v17256_v44 = vld [vmem:[#allocation68_spill] sm:$0xff] }
0x187e   : > { %v8404_v42 = vmul.f32 %v16263_v53, %v11104_v52  ;;  %v8345_v24 = vpop.f32.mrb[173].mxu0 }
0x187f   : > { %v8402_v30 = vmul.f32 %v16263_v53, %v8345_v24  ;;  %v11105_v7 = vpop.f32.mrb[174].mxu0  ;;  %10664 = vmatprep.subr.bf16.mxu1 %v8485_v16  ;;  %v11640_v24 = vld [vmem:[%s16569_s7 + $0x330] ss:$8 sps:$4 sm:$0xff]  }
0x1880   : > { %v8405_v9 = vmul.f32 %v16263_v53, %v11105_v7  ;;  %v8348_v43 = vpop.f32.mrb[175].mxu0  ;;  %10665 = vmatpush3.bf16.msra.mxu1 %v16287_v34  ;;  %v8469_v46 = vsub.f32 %v17249_v39, %v8404_v42  ;;  %v11642_v42 = vld [vmem:[%s16569_s7 + $0x334] ss:$8 sps:$4 sm:$0xff]   ;;  %v11643_v7 = vld [vmem:[%s16569_s7 + $0x340] ss:$8 sps:$4 sm:$0xff]  }
0x1881   : > { %v8403_v56 = vmul.f32 %v16263_v53, %v8348_v43  ;;  %10666 = vmatprep.subr.bf16.mxu1 %v8486_v32  ;;  %v8467_v1 = vsub.f32 %v17251_v15, %v8402_v30  ;;  %v11645_v30 = vld [vmem:[%s16569_s7 + $0x344] ss:$8 sps:$4 sm:$0xff]   ;;  %v11646_v43 = vld [vmem:[%s16569_s7 + $0x350] ss:$8 sps:$4 sm:$0xff]  }
0x1882   : > { %v8470_v26 = vsub.f32 %v17250_v37, %v8405_v9  ;;  %v11648_v9 = vld [vmem:[%s16569_s7 + $0x354] ss:$8 sps:$4 sm:$0xff]  }
0x1883   : > { %v8468_v11 = vsub.f32 %v17252_v14, %v8403_v56  ;;  %v11651_v56 = vld [vmem:[%s16569_s7 + $0x364] ss:$8 sps:$4 sm:$0xff]  }
0x1884   : > { %10667 = vmatpush3.bf16.msra.mxu1 %v16285_v5  ;;  %v8488_v3 = vpack.c.bf16 %v8470_v26, %v8469_v46  ;;  %v11649_v46 = vld [vmem:[%s16569_s7 + $0x360] ss:$8 sps:$4 sm:$0xff]   ;;  %v11654_v26 = vld [vmem:[%s16569_s7 + $0x374] ss:$8 sps:$4 sm:$0xff]  }
0x1885   : > { %v11108_v63 = vpop.f32.mrb[176].mxu0  ;;  %v8487_v21 = vpack.c.bf16 %v8468_v11, %v8467_v1  ;;  %v11652_v1 = vld [vmem:[%s16569_s7 + $0x370] ss:$8 sps:$4 sm:$0xff]   ;;  %v11657_v11 = vld [vmem:[%s16569_s7 + $0x384] ss:$8 sps:$4 sm:$0xff]  }
0x1886   : > { %v8408_v49 = vmul.f32 %v16263_v53, %v11108_v63  ;;  %v8361_v2 = vpop.f32.mrb[177].mxu0  ;;  %v11660_v63 = vld [vmem:[%s16569_s7 + $0x394] ss:$8 sps:$4 sm:$0xff]  }
0x1887   : > { %v8406_v34 = vmul.f32 %v16263_v53, %v8361_v2  ;;  %v11109_v18 = vpop.f32.mrb[178].mxu0  ;;  %10668 = vmatprep.subr.bf16.mxu1 %v8487_v21  ;;  %v11658_v21 = vld [vmem:[%s16569_s7 + $0x390] ss:$8 sps:$4 sm:$0xff]   ;;  %v11661_v2 = vld [vmem:[%s16569_s7 + $0x3a0] ss:$8 sps:$4 sm:$0xff]  }
0x1888   : > { %v8409_v35 = vmul.f32 %v16263_v53, %v11109_v18  ;;  %v8364_v38 = vpop.f32.mrb[179].mxu0  ;;  %10669 = vmatpush3.bf16.msra.mxu1 %v16299_v40  ;;  %v8473_v5 = vsub.f32 %v17253_v60, %v8408_v49  ;;  %v11636_v40 = vld [vmem:[%s16569_s7 + $0x314] ss:$8 sps:$4 sm:$0xff]   ;;  %v11663_v49 = vld [vmem:[%s16569_s7 + $0x3a4] ss:$8 sps:$4 sm:$0xff]  }
0x1889   : > { %v8407_v57 = vmul.f32 %v16263_v53, %v8364_v38  ;;  %10670 = vmatprep.subr.bf16.mxu1 %v8488_v3  ;;  %v8471_v25 = vsub.f32 %v17255_v6, %v8406_v34  ;;  %v11631_v53 = vld [vmem:[%s16569_s7 + $0x300] ss:$8 sps:$4 sm:$0xff]   ;;  %v11666_v34 = vld [vmem:[%s16569_s7 + $0x3b4] ss:$8 sps:$4 sm:$0xff]   ;;  %v11664_v18 = vld [vmem:[%s16569_s7 + $0x3b0] ss:$8 sps:$4 sm:$0xff]  }
0x188a   : > { %v8474_v17 = vsub.f32 %v17254_v59, %v8409_v35  ;;  %v11655_v3 = vld [vmem:[%s16569_s7 + $0x380] ss:$8 sps:$4 sm:$0xff]   ;;  %v11669_v35 = vld [vmem:[%s16569_s7 + $0x3c4] ss:$8 sps:$4 sm:$0xff]  }
0x188b   : > { %v8472_v32 = vsub.f32 %v17256_v44, %v8407_v57  ;;  %v11667_v38 = vld [vmem:[%s16569_s7 + $0x3c0] ss:$8 sps:$4 sm:$0xff]   ;;  %v11672_v57 = vld [vmem:[%s16569_s7 + $0x3d4] ss:$8 sps:$4 sm:$0xff]  }
0x188c   : > { %10671 = vmatpush3.bf16.msra.mxu1 %v16297_v13  ;;  %v8490_v52 = vpack.c.bf16 %v8474_v17, %v8473_v5  ;;  %v11634_v13 = vld [vmem:[%s16569_s7 + $0x310] ss:$8 sps:$4 sm:$0xff]   ;;  %v11675_v17 = vld [vmem:[%s16569_s7 + $0x3e4] ss:$8 sps:$4 sm:$0xff]  }
0x188d   : > { %v8489_v16 = vpack.c.bf16 %v8472_v32, %v8471_v25  ;;  %v11670_v5 = vld [vmem:[%s16569_s7 + $0x3d0] ss:$8 sps:$4 sm:$0xff]   ;;  %v11673_v25 = vld [vmem:[%s16569_s7 + $0x3e0] ss:$8 sps:$4 sm:$0xff]   ;;  %v11678_v32 = vld [vmem:[%s16569_s7 + $0x3f4] ss:$8 sps:$4 sm:$0xff]  }
0x188f   : > { %10672 = vmatprep.subr.bf16.mxu1 %v8489_v16 }
0x1890   : > { %10673 = vmatpush3.bf16.msra.mxu1 %v16311_v27  ;;  %v11639_v27 = vld [vmem:[%s16569_s7 + $0x324] ss:$8 sps:$4 sm:$0xff]  }
0x1891   : > { %10674 = vmatprep.subr.bf16.mxu1 %v8490_v52  ;;  %v11676_v52 = vld [vmem:[%s16569_s7 + $0x3f0] ss:$8 sps:$4 sm:$0xff]  }
0x1894   : > { %10675 = vmatpush3.bf16.msra.mxu1 %v16309_v0  ;;  %v11637_v0 = vld [vmem:[%s16569_s7 + $0x320] ss:$8 sps:$4 sm:$0xff]  }
0x1897   : > { %8877 = vmatmul.mubr.bf16.vlgmr.msra.gmra.mrb[108].mxu1 %v11631_v53 }
0x1898   : > { %8884 = vmatprep.mubr.bf16.mxu1 %v11636_v40 }
0x189f   : > { %8885 = vmatmul.mubr.bf16.gmra.mrb[112].mxu1 %v11634_v13 }
0x18a0   : > { %8892 = vmatprep.mubr.bf16.mxu1 %v11639_v27  ;;  %v8527_v27 = vpop.permute.xlu0 %8526 }
0x18a7   : > { %8893 = vmatmul.mubr.bf16.gmra.mrb[116].mxu1 %v11637_v0 }
0x18a8   : > { %8900 = vmatprep.mubr.bf16.mxu1 %v11642_v42 }
0x18af   : > { %8901 = vmatmul.mubr.bf16.gmra.mrb[120].mxu1 %v11640_v24 }
0x18b0   : > { %8908 = vmatprep.mubr.bf16.mxu1 %v11645_v30  ;;  %v8532_v30 = vpop.permute.xlu1 %8531 }
0x18b7   : > { %8909 = vmatmul.mubr.bf16.gmra.mrb[124].mxu1 %v11643_v7 }
0x18b8   : > { %8916 = vmatprep.mubr.bf16.mxu1 %v11648_v9 }
0x18bf   : > { %8917 = vmatmul.mubr.bf16.gmra.mrb[128].mxu1 %v11646_v43 }
0x18c0   : > { %8924 = vmatprep.mubr.bf16.mxu1 %v11651_v56 }
0x18c7   : > { %8925 = vmatmul.mubr.bf16.gmra.mrb[132].mxu1 %v11649_v46 }
0x18c8   : > { %8932 = vmatprep.mubr.bf16.mxu1 %v11654_v26 }
0x18cf   : > { %8933 = vmatmul.mubr.bf16.gmra.mrb[136].mxu1 %v11652_v1 }
0x18d0   : > { %8940 = vmatprep.mubr.bf16.mxu1 %v11657_v11 }
0x18d7   : > { %8941 = vmatmul.mubr.bf16.gmra.mrb[140].mxu1 %v11655_v3 }
0x18d8   : > { %8948 = vmatprep.mubr.bf16.mxu1 %v11660_v63  ;;  %v8537_v63 = vpop.permute.xlu0 %8536 }
0x18df   : > { %8949 = vmatmul.mubr.bf16.gmra.mrb[144].mxu1 %v11658_v21 }
0x18e0   : > { %8956 = vmatprep.mubr.bf16.mxu1 %v11663_v49 }
0x18e7   : > { %8957 = vmatmul.mubr.bf16.gmra.mrb[148].mxu1 %v11661_v2 }
0x18e8   : > { %8964 = vmatprep.mubr.bf16.mxu1 %v11666_v34  ;;  %v8542_v34 = vpop.permute.xlu1 %8541 }
0x18ef   : > { %8965 = vmatmul.mubr.bf16.gmra.mrb[152].mxu1 %v11664_v18 }
0x18f0   : > { %8972 = vmatprep.mubr.bf16.mxu1 %v11669_v35 }
0x18f7   : > { %8973 = vmatmul.mubr.bf16.gmra.mrb[156].mxu1 %v11667_v38 }
0x18f8   : > { %8980 = vmatprep.mubr.bf16.mxu1 %v11672_v57 }
0x18ff   : > { %8981 = vmatmul.mubr.bf16.gmra.mrb[160].mxu1 %v11670_v5 }
0x1900   : > { %8988 = vmatprep.mubr.bf16.mxu1 %v11675_v17 }
0x1907   : > { %8989 = vmatmul.mubr.bf16.gmra.mrb[164].mxu1 %v11673_v25 }
0x1908   : > { %8996 = vmatprep.mubr.bf16.mxu1 %v11678_v32  ;;  %v8547_v32 = vpop.permute.xlu0 %8546 }
0x190f   : > { %8997 = vmatmul.mubr.bf16.gmra.mrb[168].mxu1 %v11676_v52 }
0x196a   : > { %v10676_v16 = vpop.f32.mrb[108].mxu1 }
0x196b   : > { %v10677_v53 = vpop.f32.mrb[109].mxu1 }
0x196c   : > { %v10678_v40 = vadd.f32 %v10677_v53, %v10676_v16  ;;  %v10679_v13 = vpop.f32.mrb[110].mxu1 }
0x196d   : > { %v10680_v0 = vpop.f32.mrb[111].mxu1 }
0x196e   : > { %v8879_v42 = vadd.f32 %v10678_v40, %v8527_v27  ;;  %v10681_v24 = vadd.f32 %v10680_v0, %v10679_v13  ;;  %v8552_v40 = vpop.permute.xlu1 %8551 }
0x1970   : > { %v9005_v7 = vmax.f32 %v8879_v42, 0.0  ;;  %v8882_v9 = vadd.f32 %v10681_v24, %v8532_v30 }
0x1972   : > { %v9037_v43 = vadd.f32 %v9005_v7, %v15503_v31  ;;  %v9006_v56 = vmax.f32 %v8882_v9, 0.0  ;;  %v10682_v46 = vpop.f32.mrb[112].mxu1  ;;  %v8557_v9 = vpop.permute.xlu0 %8556 }
0x1973   : > { %v10683_v26 = vpop.f32.mrb[113].mxu1 }
0x1974   : > { %9069 = vst [vmem:[%s13533_s23 + $0x300] sm:$0xff] %v9037_v43  ;;  %v9038_v1 = vadd.f32 %v9006_v56, %v17228_v10  ;;  %v10684_v11 = vadd.f32 %v10683_v26, %v10682_v46  ;;  %v10685_v3 = vpop.f32.mrb[114].mxu1  ;;  %v8562_v26 = vpop.permute.xlu1 %8561 }
0x1975   : > { %v10686_v21 = vpop.f32.mrb[115].mxu1 }
0x1976   : > { %9070 = vst [vmem:[%s13533_s23 + $0x308] sm:$0xff] %v9038_v1  ;;  %v8887_v49 = vadd.f32 %v10684_v11, %v8537_v63  ;;  %v10687_v2 = vadd.f32 %v10686_v21, %v10685_v3 }
0x1978   : > { %v9007_v18 = vmax.f32 %v8887_v49, 0.0  ;;  %v8890_v35 = vadd.f32 %v10687_v2, %v8542_v34  ;;  %v8567_v34 = vpop.permute.xlu0 %8566 }
0x197a   : > { %v9039_v31 = vadd.f32 %v9007_v18, %v15516_v50  ;;  %v9008_v38 = vmax.f32 %v8890_v35, 0.0  ;;  %v10688_v57 = vpop.f32.mrb[116].mxu1 }
0x197b   : > { %v10689_v5 = vpop.f32.mrb[117].mxu1 }
0x197c   : > { %9071 = vst [vmem:[%s13533_s23 + $0x310] sm:$0xff] %v9039_v31  ;;  %v9040_v10 = vadd.f32 %v9008_v38, %v15520_v61  ;;  %v10690_v17 = vadd.f32 %v10689_v5, %v10688_v57  ;;  %v10691_v25 = vpop.f32.mrb[118].mxu1  ;;  %v8572_v38 = vpop.permute.xlu1 %8571 }
0x197d   : > { %v10692_v52 = vpop.f32.mrb[119].mxu1 }
0x197e   : > { %9072 = vst [vmem:[%s13533_s23 + $0x318] sm:$0xff] %v9040_v10  ;;  %v8895_v16 = vadd.f32 %v10690_v17, %v8547_v32  ;;  %v10693_v53 = vadd.f32 %v10692_v52, %v10691_v25 }
0x1980   : > { %v9009_v13 = vmax.f32 %v8895_v16, 0.0  ;;  %v8898_v27 = vadd.f32 %v10693_v53, %v8552_v40  ;;  %v8577_v16 = vpop.permute.xlu0 %8576 }
0x1982   : > { %v9041_v50 = vadd.f32 %v9009_v13, %v17231_v55  ;;  %v9010_v0 = vmax.f32 %v8898_v27, 0.0  ;;  %v10694_v42 = vpop.f32.mrb[120].mxu1  ;;  %v8582_v27 = vpop.permute.xlu1 %8581 }
0x1983   : > { %v10695_v24 = vpop.f32.mrb[121].mxu1 }
0x1984   : > { %9073 = vst [vmem:[%s13533_s23 + $0x320] sm:$0xff] %v9041_v50  ;;  %v9042_v61 = vadd.f32 %v9010_v0, %v17232_v51  ;;  %v10696_v30 = vadd.f32 %v10695_v24, %v10694_v42  ;;  %v10697_v7 = vpop.f32.mrb[122].mxu1 }
0x1985   : > { %v10698_v43 = vpop.f32.mrb[123].mxu1 }
0x1986   : > { %9074 = vst [vmem:[%s13533_s23 + $0x328] sm:$0xff] %v9042_v61  ;;  %v8903_v56 = vadd.f32 %v10696_v30, %v8557_v9  ;;  %v10699_v46 = vadd.f32 %v10698_v43, %v10697_v7  ;;  %v8587_v9 = vpop.permute.xlu0 %8586 }
0x1988   : > { %v9011_v1 = vmax.f32 %v8903_v56, 0.0  ;;  %v8906_v11 = vadd.f32 %v10699_v46, %v8562_v26  ;;  %v8592_v26 = vpop.permute.xlu1 %8591 }
0x198a   : > { %v9043_v55 = vadd.f32 %v9011_v1, %v17229_v8  ;;  %v9012_v3 = vmax.f32 %v8906_v11, 0.0  ;;  %v10700_v63 = vpop.f32.mrb[124].mxu1 }
0x198b   : > { %v10701_v21 = vpop.f32.mrb[125].mxu1 }
0x198c   : > { %9075 = vst [vmem:[%s13533_s23 + $0x330] sm:$0xff] %v9043_v55  ;;  %v9044_v51 = vadd.f32 %v9012_v3, %v17230_v58  ;;  %v10702_v49 = vadd.f32 %v10701_v21, %v10700_v63  ;;  %v10703_v2 = vpop.f32.mrb[126].mxu1 }
0x198d   : > { %v10704_v18 = vpop.f32.mrb[127].mxu1 }
0x198e   : > { %9076 = vst [vmem:[%s13533_s23 + $0x338] sm:$0xff] %v9044_v51  ;;  %v8911_v35 = vadd.f32 %v10702_v49, %v8567_v34  ;;  %v10705_v31 = vadd.f32 %v10704_v18, %v10703_v2  ;;  %v8597_v49 = vpop.permute.xlu0 %8596 }
0x1990   : > { %v9013_v57 = vmax.f32 %v8911_v35, 0.0  ;;  %v8914_v5 = vadd.f32 %v10705_v31, %v8572_v38  ;;  %v8602_v35 = vpop.permute.xlu1 %8601 }
0x1992   : > { %v9045_v8 = vadd.f32 %v9013_v57, %v17235_v48  ;;  %v9014_v10 = vmax.f32 %v8914_v5, 0.0  ;;  %v10706_v17 = vpop.f32.mrb[128].mxu1 }
0x1993   : > { %v10707_v25 = vpop.f32.mrb[129].mxu1 }
0x1994   : > { %9077 = vst [vmem:[%s13533_s23 + $0x340] sm:$0xff] %v9045_v8  ;;  %v9046_v58 = vadd.f32 %v9014_v10, %v17236_v22  ;;  %v10708_v32 = vadd.f32 %v10707_v25, %v10706_v17  ;;  %v10709_v52 = vpop.f32.mrb[130].mxu1  ;;  %v8607_v25 = vpop.permute.xlu0 %8606 }
0x1995   : > { %v10710_v53 = vpop.f32.mrb[131].mxu1 }
0x1996   : > { %9078 = vst [vmem:[%s13533_s23 + $0x348] sm:$0xff] %v9046_v58  ;;  %v8919_v40 = vadd.f32 %v10708_v32, %v8577_v16  ;;  %v10711_v13 = vadd.f32 %v10710_v53, %v10709_v52  ;;  %v8612_v16 = vpop.permute.xlu1 %8611 }
0x1998   : > { %v9015_v50 = vmax.f32 %v8919_v40, 0.0  ;;  %v8922_v0 = vadd.f32 %v10711_v13, %v8582_v27 }
0x199a   : > { %v9047_v48 = vadd.f32 %v9015_v50, %v17233_v47  ;;  %v9016_v42 = vmax.f32 %v8922_v0, 0.0  ;;  %v10712_v24 = vpop.f32.mrb[132].mxu1 }
0x199b   : > { %v10713_v61 = vpop.f32.mrb[133].mxu1 }
0x199c   : > { %9079 = vst [vmem:[%s13533_s23 + $0x350] sm:$0xff] %v9047_v48  ;;  %v9048_v22 = vadd.f32 %v9016_v42, %v17234_v4  ;;  %v10714_v30 = vadd.f32 %v10713_v61, %v10712_v24  ;;  %v10715_v7 = vpop.f32.mrb[134].mxu1  ;;  %v8617_v42 = vpop.permute.xlu0 %8616 }
0x199d   : > { %v10716_v43 = vpop.f32.mrb[135].mxu1 }
0x199e   : > { %9080 = vst [vmem:[%s13533_s23 + $0x358] sm:$0xff] %v9048_v22  ;;  %v8927_v56 = vadd.f32 %v10714_v30, %v8587_v9  ;;  %v10717_v46 = vadd.f32 %v10716_v43, %v10715_v7  ;;  %v8622_v30 = vpop.permute.xlu1 %8621 }
0x19a0   : > { %v9017_v1 = vmax.f32 %v8927_v56, 0.0  ;;  %v8930_v11 = vadd.f32 %v10717_v46, %v8592_v26 }
0x19a2   : > { %v9049_v47 = vadd.f32 %v9017_v1, %v17239_v28  ;;  %v9018_v55 = vmax.f32 %v8930_v11, 0.0  ;;  %v10718_v3 = vpop.f32.mrb[136].mxu1  ;;  %v8627_v11 = vpop.permute.xlu0 %8626 }
0x19a3   : > { %v10719_v63 = vpop.f32.mrb[137].mxu1 }
0x19a4   : > { %9081 = vst [vmem:[%s13533_s23 + $0x360] sm:$0xff] %v9049_v47  ;;  %v9050_v4 = vadd.f32 %v9018_v55, %v17240_v54  ;;  %v10720_v21 = vadd.f32 %v10719_v63, %v10718_v3  ;;  %v10721_v51 = vpop.f32.mrb[138].mxu1  ;;  %v8632_v63 = vpop.permute.xlu1 %8631 }
0x19a5   : > { %v10722_v2 = vpop.f32.mrb[139].mxu1 }
0x19a6   : > { %9082 = vst [vmem:[%s13533_s23 + $0x368] sm:$0xff] %v9050_v4  ;;  %v8935_v34 = vadd.f32 %v10720_v21, %v8597_v49  ;;  %v10723_v18 = vadd.f32 %v10722_v2, %v10721_v51 }
0x19a8   : > { %v9019_v31 = vmax.f32 %v8935_v34, 0.0  ;;  %v8938_v38 = vadd.f32 %v10723_v18, %v8602_v35  ;;  %v8637_v35 = vpop.permute.xlu0 %8636 }
0x19aa   : > { %v9051_v28 = vadd.f32 %v9019_v31, %v17237_v45  ;;  %v9020_v57 = vmax.f32 %v8938_v38, 0.0  ;;  %v10724_v5 = vpop.f32.mrb[140].mxu1 }
0x19ab   : > { %v10725_v8 = vpop.f32.mrb[141].mxu1 }
0x19ac   : > { %9083 = vst [vmem:[%s13533_s23 + $0x370] sm:$0xff] %v9051_v28  ;;  %v9052_v54 = vadd.f32 %v9020_v57, %v17238_v12  ;;  %v10726_v10 = vadd.f32 %v10725_v8, %v10724_v5  ;;  %v10727_v17 = vpop.f32.mrb[142].mxu1  ;;  %v8642_v57 = vpop.permute.xlu1 %8641 }
0x19ad   : > { %v10728_v58 = vpop.f32.mrb[143].mxu1 }
0x19ae   : > { %9084 = vst [vmem:[%s13533_s23 + $0x378] sm:$0xff] %v9052_v54  ;;  %v8943_v32 = vadd.f32 %v10726_v10, %v8607_v25  ;;  %v10729_v52 = vadd.f32 %v10728_v58, %v10727_v17 }
0x19b0   : > { %v9021_v53 = vmax.f32 %v8943_v32, 0.0  ;;  %v8946_v40 = vadd.f32 %v10729_v52, %v8612_v16  ;;  %v8647_v32 = vpop.permute.xlu0 %8646 }
0x19b2   : > { %v9053_v45 = vadd.f32 %v9021_v53, %v17243_v20  ;;  %v9022_v13 = vmax.f32 %v8946_v40, 0.0  ;;  %v10730_v27 = vpop.f32.mrb[144].mxu1  ;;  %v8652_v40 = vpop.permute.xlu1 %8651 }
0x19b3   : > { %v10731_v50 = vpop.f32.mrb[145].mxu1 }
0x19b4   : > { %9085 = vst [vmem:[%s13533_s23 + $0x380] sm:$0xff] %v9053_v45  ;;  %v9054_v12 = vadd.f32 %v9022_v13, %v17244_v29  ;;  %v10732_v0 = vadd.f32 %v10731_v50, %v10730_v27  ;;  %v10733_v48 = vpop.f32.mrb[146].mxu1 }
0x19b5   : > { %v10734_v24 = vpop.f32.mrb[147].mxu1 }
0x19b6   : > { %9086 = vst [vmem:[%s13533_s23 + $0x388] sm:$0xff] %v9054_v12  ;;  %v8951_v61 = vadd.f32 %v10732_v0, %v8617_v42  ;;  %v10735_v22 = vadd.f32 %v10734_v24, %v10733_v48  ;;  %v8657_v42 = vpop.permute.xlu0 %8656 }
0x19b8   : > { %v9023_v7 = vmax.f32 %v8951_v61, 0.0  ;;  %v8954_v9 = vadd.f32 %v10735_v22, %v8622_v30  ;;  %v8662_v30 = vpop.permute.xlu1 %8661 }
0x19ba   : > { %v9055_v20 = vadd.f32 %v9023_v7, %v17241_v41  ;;  %v9024_v43 = vmax.f32 %v8954_v9, 0.0  ;;  %v10736_v56 = vpop.f32.mrb[148].mxu1 }
0x19bb   : > { %v10737_v46 = vpop.f32.mrb[149].mxu1 }
0x19bc   : > { %9087 = vst [vmem:[%s13533_s23 + $0x390] sm:$0xff] %v9055_v20  ;;  %v9056_v29 = vadd.f32 %v9024_v43, %v17242_v19  ;;  %v10738_v26 = vadd.f32 %v10737_v46, %v10736_v56  ;;  %v10739_v1 = vpop.f32.mrb[150].mxu1 }
0x19bd   : > { %v10740_v47 = vpop.f32.mrb[151].mxu1 }
0x19be   : > { %9088 = vst [vmem:[%s13533_s23 + $0x398] sm:$0xff] %v9056_v29  ;;  %v8959_v55 = vadd.f32 %v10738_v26, %v8627_v11  ;;  %v10741_v3 = vadd.f32 %v10740_v47, %v10739_v1  ;;  %v8667_v26 = vpop.permute.xlu0 %8666 }
0x19c0   : > { %v9025_v4 = vmax.f32 %v8959_v55, 0.0  ;;  %v8962_v21 = vadd.f32 %v10741_v3, %v8632_v63  ;;  %v8672_v55 = vpop.permute.xlu1 %8671 }
0x19c2   : > { %v9057_v41 = vadd.f32 %v9025_v4, %v17247_v33  ;;  %v9026_v51 = vmax.f32 %v8962_v21, 0.0  ;;  %v10742_v49 = vpop.f32.mrb[152].mxu1 }
0x19c3   : > { %v10743_v2 = vpop.f32.mrb[153].mxu1 }
0x19c4   : > { %9089 = vst [vmem:[%s13533_s23 + $0x3a0] sm:$0xff] %v9057_v41  ;;  %v9058_v19 = vadd.f32 %v9026_v51, %v17248_v62  ;;  %v10744_v34 = vadd.f32 %v10743_v2, %v10742_v49  ;;  %v10745_v18 = vpop.f32.mrb[154].mxu1  ;;  %v8677_v2 = vpop.permute.xlu0 %8676 }
0x19c5   : > { %v10746_v31 = vpop.f32.mrb[155].mxu1 }
0x19c6   : > { %9090 = vst [vmem:[%s13533_s23 + $0x3a8] sm:$0xff] %v9058_v19  ;;  %v8967_v38 = vadd.f32 %v10744_v34, %v8637_v35  ;;  %v10747_v28 = vadd.f32 %v10746_v31, %v10745_v18 }
0x19c8   : > { %v9027_v5 = vmax.f32 %v8967_v38, 0.0  ;;  %v8970_v8 = vadd.f32 %v10747_v28, %v8642_v57 }
0x19ca   : > { %v9059_v33 = vadd.f32 %v9027_v5, %v17245_v23  ;;  %v9028_v54 = vmax.f32 %v8970_v8, 0.0  ;;  %v10748_v10 = vpop.f32.mrb[156].mxu1 }
0x19cb   : > { %v10749_v17 = vpop.f32.mrb[157].mxu1 }
0x19cc   : > { %9091 = vst [vmem:[%s13533_s23 + $0x3b0] sm:$0xff] %v9059_v33  ;;  %v9060_v62 = vadd.f32 %v9028_v54, %v17246_v36  ;;  %v10750_v25 = vadd.f32 %v10749_v17, %v10748_v10  ;;  %v10751_v58 = vpop.f32.mrb[158].mxu1 }
0x19cd   : > { %v10752_v52 = vpop.f32.mrb[159].mxu1 }
0x19ce   : > { %9092 = vst [vmem:[%s13533_s23 + $0x3b8] sm:$0xff] %v9060_v62  ;;  %v8975_v16 = vadd.f32 %v10750_v25, %v8647_v32  ;;  %v10753_v53 = vadd.f32 %v10752_v52, %v10751_v58 }
0x19d0   : > { %v9029_v45 = vmax.f32 %v8975_v16, 0.0  ;;  %v8978_v13 = vadd.f32 %v10753_v53, %v8652_v40 }
0x19d2   : > { %v9061_v23 = vadd.f32 %v9029_v45, %v17251_v15  ;;  %v9030_v27 = vmax.f32 %v8978_v13, 0.0  ;;  %v10754_v50 = vpop.f32.mrb[160].mxu1 }
0x19d3   : > { %v10755_v12 = vpop.f32.mrb[161].mxu1 }
0x19d4   : > { %9093 = vst [vmem:[%s13533_s23 + $0x3c0] sm:$0xff] %v9061_v23  ;;  %v9062_v36 = vadd.f32 %v9030_v27, %v17252_v14  ;;  %v10756_v0 = vadd.f32 %v10755_v12, %v10754_v50  ;;  %v10757_v48 = vpop.f32.mrb[162].mxu1 }
0x19d5   : > { %v10758_v24 = vpop.f32.mrb[163].mxu1 }
0x19d6   : > { %9094 = vst [vmem:[%s13533_s23 + $0x3c8] sm:$0xff] %v9062_v36  ;;  %v8983_v61 = vadd.f32 %v10756_v0, %v8657_v42  ;;  %v10759_v22 = vadd.f32 %v10758_v24, %v10757_v48 }
0x19d8   : > { %v9031_v7 = vmax.f32 %v8983_v61, 0.0  ;;  %v8986_v9 = vadd.f32 %v10759_v22, %v8662_v30 }
0x19da   : > { %v9063_v15 = vadd.f32 %v9031_v7, %v17249_v39  ;;  %v9032_v20 = vmax.f32 %v8986_v9, 0.0  ;;  %v10760_v43 = vpop.f32.mrb[164].mxu1 }
0x19db   : > { %v10761_v56 = vpop.f32.mrb[165].mxu1 }
0x19dc   : > { %9095 = vst [vmem:[%s13533_s23 + $0x3d0] sm:$0xff] %v9063_v15  ;;  %v9064_v14 = vadd.f32 %v9032_v20, %v17250_v37  ;;  %v10762_v46 = vadd.f32 %v10761_v56, %v10760_v43  ;;  %v10763_v29 = vpop.f32.mrb[166].mxu1 }
0x19dd   : > { %v10764_v1 = vpop.f32.mrb[167].mxu1 }
0x19de   : > { %9096 = vst [vmem:[%s13533_s23 + $0x3d8] sm:$0xff] %v9064_v14  ;;  %v8991_v11 = vadd.f32 %v10762_v46, %v8667_v26  ;;  %v10765_v47 = vadd.f32 %v10764_v1, %v10763_v29 }
0x19e0   : > { %v9033_v3 = vmax.f32 %v8991_v11, 0.0  ;;  %v8994_v63 = vadd.f32 %v10765_v47, %v8672_v55 }
0x19e2   : > { %v9065_v39 = vadd.f32 %v9033_v3, %v17255_v6  ;;  %v9034_v4 = vmax.f32 %v8994_v63, 0.0  ;;  %v10766_v21 = vpop.f32.mrb[168].mxu1  ;;  %v8682_v6 = vpop.permute.xlu1 %8681 }
0x19e3   : > { %v10767_v41 = vpop.f32.mrb[169].mxu1 }
0x19e4   : > { %9097 = vst [vmem:[%s13533_s23 + $0x3e0] sm:$0xff] %v9065_v39  ;;  %v9066_v37 = vadd.f32 %v9034_v4, %v17256_v44  ;;  %v10768_v51 = vadd.f32 %v10767_v41, %v10766_v21  ;;  %v10769_v49 = vpop.f32.mrb[170].mxu1 }
0x19e5   : > { %v10770_v19 = vpop.f32.mrb[171].mxu1 }
0x19e6   : > { %9098 = vst [vmem:[%s13533_s23 + $0x3e8] sm:$0xff] %v9066_v37  ;;  %v8999_v34 = vadd.f32 %v10768_v51, %v8677_v2  ;;  %v10771_v18 = vadd.f32 %v10770_v19, %v10769_v49 }
0x19e8   : > { %v9035_v35 = vmax.f32 %v8999_v34, 0.0  ;;  %v9002_v31 = vadd.f32 %v10771_v18, %v8682_v6 }
0x19ea   : > { %v9067_v38 = vadd.f32 %v9035_v35, %v17253_v60  ;;  %v9036_v28 = vmax.f32 %v9002_v31, 0.0 }
0x19ec   : > { %9099 = vst [vmem:[%s13533_s23 + $0x3f0] sm:$0xff] %v9067_v38  ;;  %v9068_v44 = vadd.f32 %v9036_v28, %v17254_v59 }
0x19ee   : > { %9100 = vst [vmem:[%s13533_s23 + $0x3f8] sm:$0xff] %v9068_v44 }
0x19ef   : > { %11984 = shalt.err (!%p11981_p7)
}
0x19f0   : > { %s11985_s26 = scalar_lea.hbm %s16512_s29, 16384  ;;  %s11989_s25 = scalar_lea.hbm %s16571_s9, 32768 }
0x19f1   : > { %p11986_p8 = scmp.ne.s32.totalorder %s16512_s29, %s11985_s26  ;;  %p11990_p1 = scmp.lt.u32.totalorder %s16512_s29, %s16571_s9 }
0x19f2   : > { %p11991_p0 = scmp.lt.u32.totalorder %s11989_s25, %s11985_s26  ;;  %p11993_p6 = scmp.lt.u32.totalorder %s11985_s26, %s16512_s29 }
0x19f3   : > { %p11987_p11 = pnand %p11986_p8, %p17257_p9 }
0x19f4   : > { %p11992_p5 = por %p11991_p0, %p11990_p1 }
0x19f5   : > { %p11988_p13 = pneg %p11987_p11 }
0x19f6   : > { %p11994_p10 = por %p11993_p6, %p11992_p5 }
0x19f8   : > { %p11995_p12 = pnand %p11994_p10, %p11988_p13 }
0x19fa   : > { %11998 = shalt.err (!%p11995_p12)
}
0x19fb   : > { %s12044_s14 = smov 128   ;;  %s12045_s16 = smov 8  }
0x19fc   : > { %11146 = dma.vmem_to_hbm [thread:$0]  (%p17257_p9), %s16514_s28, 16384, %s16512_s29, %s16521_s13, %s12044_s14, %s12044_s14, %s12045_s16  }
0x19fd PF: > { %p11158_p2 = scmp.ge.s32.totalorder %s12037_s12, 2  ;;  %s9130_s17 = sand.u32 1, %s12025_s30  }
0x19fe   : > { %p17258_p3 = scmp.ne.s32.totalorder %s16880_s20, 0  ;;  %s9131_s22 = scalar_lea.sflag [#allocation4], %s9130_s17 }
0x1a00   : > { %p11153_p4 = pnand %p11158_p2, %p17258_p3 }
0x1a02   : > { %12020 = dma.done.wait (!%p11153_p4), %s9131_s22, 16384  }
0x1a03   : > { %12022 = vsyncadd (!%p11153_p4), %s9131_s22, 4294950912  ;;  %p20_p7 = scmp.ge.s32.totalorder %s12121_s15, 4   ;;  %s17259_s30 = smov %s12029_s10 }
0x1a04   : > { %s17260_s10 = smov %s12033_s11  ;;  %s17261_s11 = smov %s12132_s18 }
0x1a05   : > { %s17262_s12 = smov %s12121_s15  ;;  %22 = sbr.rel (!%p20_p7) target bundleno = 4 (0x4), region = 111 }
0x1a0c   :  { %9136 = vsyncpa [#allocation3], 1 }
0x1a0d   :  { %9138 = vsyncpa [#allocation3 + $0x1], 1 }
0x1a0e   :  { %9139 = vsyncpa [#allocation4], 1 }
0x1a0f   :  { %9141 = vsyncpa [#allocation4 + $0x1], 1 }

</bundles_post_ra>
